<compile_context>
chip_gen: v5e
topology: v5e:2x2
jax: 0.10.0
libtpu: 0.0.40
codegen_flags: <defaults>
</compile_context>

<pallas_src>
import functools
import math
import random

import jax
import jax.numpy as jnp
import numpy as np
from jax.experimental import pallas as pl
from jax.experimental.pallas import tpu as pltpu


def _sigmoid(x):
    # logistic via EUP tanh (separate VLIW slot; avoids the exact f32 divide chain)
    return 0.5 * (jnp.tanh(0.5 * x) + 1.0)


def _round_up(x, m):
    return (x + m - 1) // m * m


def _fused_decoder_kernel(flags_ref,      # SMEM (T,) int32: 1 = use teacher token
                          tok_ref,        # (T, B, 1) int32 teacher token ids
                          h0_ref,         # (L, B, Hp) initial GRU hidden
                          enc_ref,        # (B, S, Hp) encoder memory (f32)
                          mask_ref,       # (B, S) f32 source mask (0 == pad)
                          enc_last_ref,   # (B, Hp) encoder_output[-1]
                          fused_ref,      # (Vp, 3Hp) bf16: emb_table @ W_ih_emb^T (gate-split)
                          w_ih_x_ref,     # (L, Hp, 3Hp) bf16 input->gates (feature part)
                          w_hh_ref,       # (L, Hp, 3Hp) bf16 hidden->gates
                          b_ih_ref,       # (L, 1, 3Hp) f32
                          b_hh_ref,       # (L, 1, 3Hp) f32
                          w_dec_ref,      # (Hp, Vp) bf16 vocab projection (pre-transposed)
                          b_dec_ref,      # (1, Vp) f32 (padded cols hold -1e30)
                          logits_ref):    # OUT (T, B, Vp) f32
    f32 = jnp.float32
    bf16 = jnp.bfloat16
    L, B, Hp = h0_ref.shape
    T, _, Vp = logits_ref.shape

    # time-invariant values read once
    enc = enc_ref[...]                                       # (B, S, Hp)
    mask = mask_ref[...]                                      # (B, S)
    b_dec = b_dec_ref[...]                                    # (1, Vp)
    iota_i = jax.lax.broadcasted_iota(jnp.int32, (B, Vp), 1)
    iota_f = iota_i.astype(f32)

    # recurrent state carried as values (whole decode is one kernel invocation)
    h = [h0_ref[l] for l in range(L)]                         # L x (B, Hp) f32
    feat = enc_last_ref[...]                                  # (B, Hp)
    prev_logits = None

    for t in range(T):                                        # static unroll over time
        # ---- token feedback: teacher token vs argmax(previous logits) ----
        teach_tok = tok_ref[t]                                # (B, 1) int32
        teach_oh = (iota_i == teach_tok).astype(f32)          # (B, Vp)
        if t == 0:
            onehot = teach_oh                                 # step 0 always uses x[:, 0]
        else:
            row_max = jnp.max(prev_logits, axis=-1, keepdims=True)
            cand = jnp.where(prev_logits == row_max, iota_f, jnp.float32(Vp))
            amin = jnp.min(cand, axis=-1, keepdims=True)      # first max index
            model_oh = (iota_f == amin).astype(f32)
            w_t = (flags_ref[t] > 0).astype(f32)              # scalar blend weight
            onehot = w_t * teach_oh + (1.0 - w_t) * model_oh

        # fused embedding lookup + layer-0 embedding projection: ONE matmul
        gi_emb = jnp.dot(onehot.astype(bf16), fused_ref[...],
                         preferred_element_type=f32)          # (B, 3Hp)

        # ---- multi-layer GRU cell (PyTorch gate order r, z, n; 128-aligned) ----
        layer_in = feat
        for l in range(L):                                    # static unroll over layers
            gi = jnp.dot(layer_in.astype(bf16), w_ih_x_ref[l],
                         preferred_element_type=f32) + b_ih_ref[l]
            if l == 0:
                gi = gi + gi_emb
            h_prev = h[l]
            gh = jnp.dot(h_prev.astype(bf16), w_hh_ref[l],
                         preferred_element_type=f32) + b_hh_ref[l]
            r = _sigmoid(gi[:, 0:Hp] + gh[:, 0:Hp])
            z = _sigmoid(gi[:, Hp:2 * Hp] + gh[:, Hp:2 * Hp])
            n = jnp.tanh(gi[:, 2 * Hp:3 * Hp] + r * gh[:, 2 * Hp:3 * Hp])
            h[l] = (1.0 - z) * n + z * h_prev
            layer_in = h[l]

        feat_out = layer_in                                   # (B, Hp)

        # ---- vocab projection (lane-dense 128-padded store) ----
        logits = jnp.dot(feat_out.astype(bf16), w_dec_ref[...],
                         preferred_element_type=f32) + b_dec  # (B, Vp)
        logits_ref[t] = logits
        prev_logits = logits            # padded cols carry -1e30 -> argmax-safe

        # ---- masked scaled-dot attention, VPU/XLU form (q_len=1 -> scale 1) ----
        score = jnp.sum(feat_out[:, None, :] * enc, axis=-1)  # (B, S)
        score = jnp.where(mask == 0.0, jnp.float32(-9000.0), score)
        score = score - jnp.max(score, axis=-1, keepdims=True)
        p = jnp.exp(score)
        p = p * pl.reciprocal(jnp.sum(p, axis=-1, keepdims=True), approx=True)
        feat = jnp.sum(p[:, :, None] * enc, axis=1)           # (B, Hp)


def prepare_params(params):
    """One-time weight layout work: transpose, gate split/pad, emb fusion, bf16 cast."""
    emb_table = params["emb"]            # (V, E)
    w_ih = params["w_ih"]                # (L, 3H, H+E)
    w_hh = params["w_hh"]                # (L, 3H, H)
    b_ih = params["b_ih"]                # (L, 1, 3H)
    b_hh = params["b_hh"]                # (L, 1, 3H)
    w_dec = params["w_dec"]              # (V, H)
    b_dec = params["b_dec"]              # (1, V)

    V, E = emb_table.shape
    L, _, H = w_hh.shape
    Hp = _round_up(H, 128)
    Vp = _round_up(V, 128)
    f32 = jnp.float32
    bf16 = jnp.bfloat16

    w_ih_t = jnp.transpose(w_ih, (0, 2, 1))            # (L, H+E, 3H)
    w_hh_t = jnp.transpose(w_hh, (0, 2, 1))            # (L, H, 3H)
    w_dec_t = jnp.transpose(w_dec, (1, 0))             # (H, V)

    def split_pad_gates(w):                            # (..., 3H) -> (..., 3Hp)
        parts = []
        for g in range(3):
            blk = w[..., g * H:(g + 1) * H]
            pad = [(0, 0)] * (blk.ndim - 1) + [(0, Hp - H)]
            parts.append(jnp.pad(blk, pad))
        return jnp.concatenate(parts, axis=-1)

    w_ih_g = split_pad_gates(w_ih_t)                   # (L, H+E, 3Hp)
    w_ih_x = jnp.pad(w_ih_g[:, :H, :], ((0, 0), (0, Hp - H), (0, 0)))   # (L, Hp, 3Hp)
    w_ih_e = w_ih_g[0, H:H + E, :]                                      # (E, 3Hp)
    # fold embedding lookup into the layer-0 input projection (computed in f32)
    fused_emb = jnp.pad(emb_table.astype(f32) @ w_ih_e, ((0, Vp - V), (0, 0)))  # (Vp, 3Hp)
    w_hh_p = jnp.pad(split_pad_gates(w_hh_t), ((0, 0), (0, Hp - H), (0, 0)))
    b_ih_p = split_pad_gates(b_ih).astype(f32)         # (L, 1, 3Hp)
    b_hh_p = split_pad_gates(b_hh).astype(f32)         # (L, 1, 3Hp)
    w_dec_p = jnp.pad(w_dec_t, ((0, Hp - H), (0, Vp - V)))              # (Hp, Vp)
    b_dec_p = jnp.full((1, Vp), -1e30, f32).at[:, :V].set(b_dec)        # (1, Vp)

    arrays = dict(
        fused_emb=fused_emb.astype(bf16),
        w_ih_x=w_ih_x.astype(bf16),
        w_hh=w_hh_p.astype(bf16),
        b_ih=b_ih_p,
        b_hh=b_hh_p,
        w_dec=w_dec_p.astype(bf16),
        b_dec=b_dec_p,
    )
    meta = dict(V=V, E=E, H=H, L=L, Hp=Hp, Vp=Vp)
    return arrays, meta


@functools.partial(jax.jit, static_argnames=("T", "V"))
def _decode_core(arrays, x_tokens, encoder_output, input_indice,
                 encoder_hidden_state, flags, *, T, V):
    f32 = jnp.float32
    fused_emb = arrays["fused_emb"]
    w_ih_x = arrays["w_ih_x"]
    w_hh = arrays["w_hh"]
    b_ih = arrays["b_ih"]
    b_hh = arrays["b_hh"]
    w_dec = arrays["w_dec"]
    b_dec = arrays["b_dec"]

    L, Hp, H3 = w_hh.shape
    Vp = w_dec.shape[1]
    S, B, H = encoder_output.shape

    # dynamic (per-call) inputs: pad/transpose inside jit
    enc_bsh = jnp.transpose(encoder_output, (1, 0, 2)).astype(f32)      # (B, S, H)
    enc_p = jnp.pad(enc_bsh, ((0, 0), (0, 0), (0, Hp - H)))             # (B, S, Hp)
    enc_last_p = jnp.pad(encoder_output[-1].astype(f32), ((0, 0), (0, Hp - H)))
    h0_p = jnp.pad(encoder_hidden_state.astype(f32),
                   ((0, 0), (0, 0), (0, Hp - H)))                       # (L, B, Hp)
    mask_f = input_indice.astype(f32)                                   # (B, S)

    if x_tokens.shape[1] < T:
        tok_bt = jnp.pad(x_tokens, ((0, 0), (0, T - x_tokens.shape[1])))
    else:
        tok_bt = x_tokens[:, :T]
    tok_tb1 = jnp.transpose(tok_bt.astype(jnp.int32), (1, 0))[:, :, None]  # (T, B, 1)

    # VMEM budget: resident operands + output, x2 for pipeline buffers, + headroom
    def nbytes(a):
        return int(np.prod(a.shape)) * a.dtype.itemsize
    operands = [tok_tb1, h0_p, enc_p, mask_f, enc_last_p, fused_emb,
                w_ih_x, w_hh, b_ih, b_hh, w_dec, b_dec]
    total = sum(nbytes(a) for a in operands) + T * B * Vp * 4
    vmem_limit = int(min(64 * 1024 * 1024, max(16 * 1024 * 1024, 4 * total)))

    grid_spec = pltpu.PrefetchScalarGridSpec(
        num_scalar_prefetch=1,           # teacher flags -> SMEM
        grid=(1,),                       # whole decode is one invocation
        in_specs=[
            pl.BlockSpec((T, B, 1), lambda i, fl: (0, 0, 0)),      # teacher token ids
            pl.BlockSpec((L, B, Hp), lambda i, fl: (0, 0, 0)),     # h0
            pl.BlockSpec((B, S, Hp), lambda i, fl: (0, 0, 0)),     # encoder memory
            pl.BlockSpec((B, S), lambda i, fl: (0, 0)),            # mask
            pl.BlockSpec((B, Hp), lambda i, fl: (0, 0)),           # enc_last
            pl.BlockSpec((Vp, H3), lambda i, fl: (0, 0)),          # fused emb->gates
            pl.BlockSpec((L, Hp, H3), lambda i, fl: (0, 0, 0)),    # w_ih_x
            pl.BlockSpec((L, Hp, H3), lambda i, fl: (0, 0, 0)),    # w_hh
            pl.BlockSpec((L, 1, H3), lambda i, fl: (0, 0, 0)),     # b_ih
            pl.BlockSpec((L, 1, H3), lambda i, fl: (0, 0, 0)),     # b_hh
            pl.BlockSpec((Hp, Vp), lambda i, fl: (0, 0)),          # w_dec
            pl.BlockSpec((1, Vp), lambda i, fl: (0, 0)),           # b_dec
        ],
        out_specs=pl.BlockSpec((T, B, Vp), lambda i, fl: (0, 0, 0)),
    )
    logits_p = pl.pallas_call(
        _fused_decoder_kernel,
        out_shape=jax.ShapeDtypeStruct((T, B, Vp), jnp.float32),
        grid_spec=grid_spec,
        compiler_params=pltpu.CompilerParams(
            dimension_semantics=("arbitrary",),
            vmem_limit_bytes=vmem_limit),
    )(flags, tok_tb1, h0_p, enc_p, mask_f, enc_last_p,
      fused_emb, w_ih_x, w_hh, b_ih, b_hh, w_dec, b_dec)

    return logits_p[:, :, :V]                                  # (T, B, V)


def rnn_decoder_forward(prep, x_tokens, encoder_output, input_indice,
                        encoder_hidden_state, max_seq_length=20,
                        teaching_rate=0.5, teacher_flags=None):
    """Mirrors RNNDecoder.forward (GRU branch, dropout = identity)."""
    arrays, meta = prep
    T = max_seq_length
    # teacher-forcing schedule (host-side Python random, as in the PyTorch code)
    if teacher_flags is None:
        teacher_flags = [random.random() < teaching_rate for _ in range(T)]
    flags_np = np.zeros((T,), np.int32)
    flags_np[0] = 1                                   # step 0 always uses x[:, 0]
    for i in range(1, T):
        flags_np[i] = 1 if teacher_flags[i] else 0
    flags = jnp.asarray(flags_np, jnp.int32)
    return _decode_core(arrays, x_tokens, encoder_output, input_indice,
                        encoder_hidden_state, flags, T=T, V=meta["V"])


def rnn_decoder_forward_ref(params, x_tokens, encoder_output, input_indice,
                            encoder_hidden_state, max_seq_length, teacher_flags):
    """Pure-JAX reference of the same forward pass (for sanity checking)."""
    emb_table = params["emb"]
    w_ih, w_hh = params["w_ih"], params["w_hh"]
    b_ih, b_hh = params["b_ih"], params["b_hh"]
    w_dec, b_dec = params["w_dec"], params["b_dec"]
    L, _, H = w_hh.shape
    mask = input_indice
    h = encoder_hidden_state
    prev_feat = encoder_output[-1]
    tok = x_tokens[:, 0]
    logits = None
    outs = []
    for i in range(max_seq_length):
        if i > 0:
            tok = x_tokens[:, i] if teacher_flags[i] else jnp.argmax(logits, axis=-1)
        emb = emb_table[tok]
        layer_in = jnp.concatenate([prev_feat, emb], axis=1)
        new_h = []
        for l in range(L):
            w = w_ih[l] if l == 0 else w_ih[l][:, :H]
            gi = layer_in @ w.T + b_ih[l][0]
            gh = h[l] @ w_hh[l].T + b_hh[l][0]
            r = _sigmoid(gi[:, :H] + gh[:, :H])
            z = _sigmoid(gi[:, H:2 * H] + gh[:, H:2 * H])
            n = jnp.tanh(gi[:, 2 * H:] + r * gh[:, 2 * H:])
            hn = (1.0 - z) * n + z * h[l]
            new_h.append(hn)
            layer_in = hn
        h = jnp.stack(new_h, axis=0)
        feat = layer_in
        logits = feat @ w_dec.T + b_dec[0]
        outs.append(logits)
        score = jnp.einsum('bh,sbh->bs', feat, encoder_output) / math.sqrt(1.0)
        score = jnp.where(mask == 0, -9000.0, score)
        score = jax.nn.softmax(score, axis=-1)
        prev_feat = jnp.einsum('bs,sbh->bh', score, encoder_output)
    return jnp.stack(outs, axis=0)


def init_params(key, vocab_size, embedding_size, hidden, layers):
    V, E, H, L = vocab_size, embedding_size, hidden, layers
    ks = jax.random.split(key, 8)
    scale = 0.1
    w_ih = jnp.zeros((L, 3 * H, H + E), jnp.float32)
    w_ih = w_ih.at[0].set(jax.random.normal(ks[1], (3 * H, H + E), jnp.float32) * scale)
    for l in range(1, L):
        kl = jax.random.fold_in(ks[2], l)
        w_ih = w_ih.at[l, :, :H].set(jax.random.normal(kl, (3 * H, H), jnp.float32) * scale)
    return {
        "emb":   jax.random.normal(ks[0], (V, E), jnp.float32) * scale,
        "w_ih":  w_ih,
        "w_hh":  jax.random.normal(ks[3], (L, 3 * H, H), jnp.float32) * scale,
        "b_ih":  jax.random.normal(ks[4], (L, 1, 3 * H), jnp.float32) * scale,
        "b_hh":  jax.random.normal(ks[5], (L, 1, 3 * H), jnp.float32) * scale,
        "w_dec": jax.random.normal(ks[6], (V, H), jnp.float32) * scale,
        "b_dec": jax.random.normal(ks[7], (1, V), jnp.float32) * scale,
    }


if __name__ == "__main__":
    random.seed(0)
    # small, deterministic problem sizes
    V, E, H, L = 50, 16, 32, 2        # vocab, embedding, hidden, GRU layers
    B, S, T = 2, 10, 6                # batch, source length, max_seq_length

    key = jax.random.PRNGKey(0)
    kp, kx, ke, kh = jax.random.split(key, 4)
    params = init_params(kp, V, E, H, L)
    prep = prepare_params(params)      # one-time weight layout / fusion / bf16 cast

    x_tokens = jax.random.randint(kx, (B, T), 0, V, dtype=jnp.int32)        # (B, T)
    encoder_output = jax.random.normal(ke, (S, B, H), jnp.float32) * 0.1    # (S, B, H)
    encoder_hidden = jax.random.normal(kh, (L, B, H), jnp.float32) * 0.1    # (L, B, H)
    input_indice = jnp.ones((B, S), jnp.int32).at[1, S - 3:].set(0)         # (B, S)

    # --- run 1: full teacher forcing (deterministic) — numeric check vs f32 ref ---
    teacher_flags = [True] * T
    out = rnn_decoder_forward(prep, x_tokens, encoder_output, input_indice,
                              encoder_hidden, max_seq_length=T,
                              teaching_rate=1.0, teacher_flags=teacher_flags)
    out = jax.block_until_ready(out)
    assert out.shape == (T, B, V), out.shape

    ref = rnn_decoder_forward_ref(params, x_tokens, encoder_output, input_indice,
                                  encoder_hidden, T, teacher_flags)
    np.testing.assert_allclose(np.asarray(out), np.asarray(ref),
                               rtol=5e-2, atol=5e-2)

    # --- run 2: mixed teacher forcing — exercises the in-kernel argmax feedback ---
    mixed_flags = [True, False, True, False, True, False][:T]
    out2 = rnn_decoder_forward(prep, x_tokens, encoder_output, input_indice,
                               encoder_hidden, max_seq_length=T,
                               teaching_rate=0.5, teacher_flags=mixed_flags)
    out2 = jax.block_until_ready(out2)
    assert out2.shape == (T, B, V), out2.shape
    assert bool(jnp.all(jnp.isfinite(out2)))

    print("KERNEL_OK")
</pallas_src>

<mosaic_0001>
module attributes {stable_mosaic.version = 11 : i64} {
  func.func @_fused_decoder_kernel(%arg0: i32, %arg1: memref<6xi32, #tpu.memory_space<smem>>, %arg2: memref<6x2x1xi32, #tpu.memory_space<vmem>>, %arg3: memref<2x2x128xf32, #tpu.memory_space<vmem>>, %arg4: memref<2x10x128xf32, #tpu.memory_space<vmem>>, %arg5: memref<2x10xf32, #tpu.memory_space<vmem>>, %arg6: memref<2x128xf32, #tpu.memory_space<vmem>>, %arg7: memref<128x384xbf16, #tpu.memory_space<vmem>>, %arg8: memref<2x128x384xbf16, #tpu.memory_space<vmem>>, %arg9: memref<2x128x384xbf16, #tpu.memory_space<vmem>>, %arg10: memref<2x1x384xf32, #tpu.memory_space<vmem>>, %arg11: memref<2x1x384xf32, #tpu.memory_space<vmem>>, %arg12: memref<128x128xbf16, #tpu.memory_space<vmem>>, %arg13: memref<1x128xf32, #tpu.memory_space<vmem>>, %arg14: memref<6x2x128xf32, #tpu.memory_space<vmem>>) attributes {dimension_semantics = [#tpu.dimension_semantics<arbitrary>], iteration_bounds = array<i64: 1>, scalar_prefetch = 1 : i64, scratch_operands = 0 : i64, tpu.core_type = #tpu.core_type<tc>, window_params = [{pipeline_mode = #tpu.pipeline_mode<synchronous>, transform_indices = @transform_0, window_bounds = array<i64: 6, 2, 1>}, {pipeline_mode = #tpu.pipeline_mode<synchronous>, transform_indices = @transform_1, window_bounds = array<i64: 2, 2, 128>}, {pipeline_mode = #tpu.pipeline_mode<synchronous>, transform_indices = @transform_2, window_bounds = array<i64: 2, 10, 128>}, {pipeline_mode = #tpu.pipeline_mode<synchronous>, transform_indices = @transform_3, window_bounds = array<i64: 2, 10>}, {pipeline_mode = #tpu.pipeline_mode<synchronous>, transform_indices = @transform_4, window_bounds = array<i64: 2, 128>}, {pipeline_mode = #tpu.pipeline_mode<synchronous>, transform_indices = @transform_5, window_bounds = array<i64: 128, 384>}, {pipeline_mode = #tpu.pipeline_mode<synchronous>, transform_indices = @transform_6, window_bounds = array<i64: 2, 128, 384>}, {pipeline_mode = #tpu.pipeline_mode<synchronous>, transform_indices = @transform_7, window_bounds = array<i64: 2, 128, 384>}, {pipeline_mode = #tpu.pipeline_mode<synchronous>, transform_indices = @transform_8, window_bounds = array<i64: 2, 1, 384>}, {pipeline_mode = #tpu.pipeline_mode<synchronous>, transform_indices = @transform_9, window_bounds = array<i64: 2, 1, 384>}, {pipeline_mode = #tpu.pipeline_mode<synchronous>, transform_indices = @transform_10, window_bounds = array<i64: 128, 128>}, {pipeline_mode = #tpu.pipeline_mode<synchronous>, transform_indices = @transform_11, window_bounds = array<i64: 1, 128>}, {pipeline_mode = #tpu.pipeline_mode<synchronous>, transform_indices = @transform_12, window_bounds = array<i64: 6, 2, 128>}]} {
    %c0 = arith.constant 0 : index
    %c0_0 = arith.constant 0 : index
    %c0_1 = arith.constant 0 : index
    %0 = vector.load %arg4[%c0, %c0_0, %c0_1] : memref<2x10x128xf32, #tpu.memory_space<vmem>>, vector<2x10x128xf32>
    %c0_2 = arith.constant 0 : index
    %c0_3 = arith.constant 0 : index
    %1 = vector.load %arg5[%c0_2, %c0_3] : memref<2x10xf32, #tpu.memory_space<vmem>>, vector<2x10xf32>
    %c0_4 = arith.constant 0 : index
    %c0_5 = arith.constant 0 : index
    %2 = vector.load %arg13[%c0_4, %c0_5] : memref<1x128xf32, #tpu.memory_space<vmem>>, vector<1x128xf32>
    %3 = tpu.iota {dimensions = array<i32: 1>} : vector<2x128xi32>
    %4 = arith.sitofp %3 : vector<2x128xi32> to vector<2x128xf32>
    %c0_6 = arith.constant 0 : index
    %c0_7 = arith.constant 0 : index
    %c0_8 = arith.constant 0 : index
    %5 = vector.load %arg3[%c0_6, %c0_7, %c0_8] : memref<2x2x128xf32, #tpu.memory_space<vmem>>, vector<1x2x128xf32>
    %6 = vector.shape_cast %5 : vector<1x2x128xf32> to vector<2x128xf32>
    %c1 = arith.constant 1 : index
    %c0_9 = arith.constant 0 : index
    %c0_10 = arith.constant 0 : index
    %7 = vector.load %arg3[%c1, %c0_9, %c0_10] : memref<2x2x128xf32, #tpu.memory_space<vmem>>, vector<1x2x128xf32>
    %8 = vector.shape_cast %7 : vector<1x2x128xf32> to vector<2x128xf32>
    %c0_11 = arith.constant 0 : index
    %c0_12 = arith.constant 0 : index
    %9 = vector.load %arg6[%c0_11, %c0_12] : memref<2x128xf32, #tpu.memory_space<vmem>>, vector<2x128xf32>
    %c0_13 = arith.constant 0 : index
    %c0_14 = arith.constant 0 : index
    %c0_15 = arith.constant 0 : index
    %10 = vector.load %arg2[%c0_13, %c0_14, %c0_15] : memref<6x2x1xi32, #tpu.memory_space<vmem>>, vector<1x2x1xi32>
    %11 = vector.shape_cast %10 : vector<1x2x1xi32> to vector<2x1xi32>
    %12 = vector.broadcast %11 : vector<2x1xi32> to vector<2x128xi32>
    %13 = arith.cmpi eq, %3, %12 : vector<2x128xi32>
    %14 = arith.extui %13 : vector<2x128xi1> to vector<2x128xi32>
    %15 = arith.sitofp %14 : vector<2x128xi32> to vector<2x128xf32>
    %16 = arith.truncf %15 : vector<2x128xf32> to vector<2x128xbf16>
    %c0_16 = arith.constant 0 : index
    %c0_17 = arith.constant 0 : index
    %17 = vector.load %arg7[%c0_16, %c0_17] : memref<128x384xbf16, #tpu.memory_space<vmem>>, vector<128x384xbf16>
    %cst = arith.constant dense<0.000000e+00> : vector<2x384xf32>
    %18 = tpu.matmul %16, %17, %cst {dimension_numbers = #tpu.dot_dimension_numbers<[1], [0], [0], [1], [0, 0, 1, 1], [], []>} : vector<2x128xbf16>, vector<128x384xbf16>, vector<2x384xf32> -> vector<2x384xf32>
    %19 = arith.truncf %9 : vector<2x128xf32> to vector<2x128xbf16>
    %c0_18 = arith.constant 0 : index
    %c0_19 = arith.constant 0 : index
    %c0_20 = arith.constant 0 : index
    %20 = vector.load %arg8[%c0_18, %c0_19, %c0_20] : memref<2x128x384xbf16, #tpu.memory_space<vmem>>, vector<1x128x384xbf16>
    %21 = vector.shape_cast %20 : vector<1x128x384xbf16> to vector<128x384xbf16>
    %cst_21 = arith.constant dense<0.000000e+00> : vector<2x384xf32>
    %22 = tpu.matmul %19, %21, %cst_21 {dimension_numbers = #tpu.dot_dimension_numbers<[1], [0], [0], [1], [0, 0, 1, 1], [], []>} : vector<2x128xbf16>, vector<128x384xbf16>, vector<2x384xf32> -> vector<2x384xf32>
    %c0_22 = arith.constant 0 : index
    %c0_23 = arith.constant 0 : index
    %c0_24 = arith.constant 0 : index
    %23 = vector.load %arg10[%c0_22, %c0_23, %c0_24] : memref<2x1x384xf32, #tpu.memory_space<vmem>>, vector<1x1x384xf32>
    %24 = vector.shape_cast %23 : vector<1x1x384xf32> to vector<1x384xf32>
    %25 = vector.broadcast %24 : vector<1x384xf32> to vector<2x384xf32>
    %26 = arith.addf %22, %25 : vector<2x384xf32>
    %27 = arith.addf %26, %18 : vector<2x384xf32>
    %28 = arith.truncf %6 : vector<2x128xf32> to vector<2x128xbf16>
    %c0_25 = arith.constant 0 : index
    %c0_26 = arith.constant 0 : index
    %c0_27 = arith.constant 0 : index
    %29 = vector.load %arg9[%c0_25, %c0_26, %c0_27] : memref<2x128x384xbf16, #tpu.memory_space<vmem>>, vector<1x128x384xbf16>
    %30 = vector.shape_cast %29 : vector<1x128x384xbf16> to vector<128x384xbf16>
    %cst_28 = arith.constant dense<0.000000e+00> : vector<2x384xf32>
    %31 = tpu.matmul %28, %30, %cst_28 {dimension_numbers = #tpu.dot_dimension_numbers<[1], [0], [0], [1], [0, 0, 1, 1], [], []>} : vector<2x128xbf16>, vector<128x384xbf16>, vector<2x384xf32> -> vector<2x384xf32>
    %c0_29 = arith.constant 0 : index
    %c0_30 = arith.constant 0 : index
    %c0_31 = arith.constant 0 : index
    %32 = vector.load %arg11[%c0_29, %c0_30, %c0_31] : memref<2x1x384xf32, #tpu.memory_space<vmem>>, vector<1x1x384xf32>
    %33 = vector.shape_cast %32 : vector<1x1x384xf32> to vector<1x384xf32>
    %34 = vector.broadcast %33 : vector<1x384xf32> to vector<2x384xf32>
    %35 = arith.addf %31, %34 : vector<2x384xf32>
    %36 = vector.extract_strided_slice %27 {offsets = [0, 0], sizes = [2, 128], strides = [1, 1]} : vector<2x384xf32> to vector<2x128xf32>
    %37 = vector.extract_strided_slice %35 {offsets = [0, 0], sizes = [2, 128], strides = [1, 1]} : vector<2x384xf32> to vector<2x128xf32>
    %38 = arith.addf %36, %37 : vector<2x128xf32>
    %cst_32 = arith.constant 5.000000e-01 : f32
    %39 = vector.broadcast %cst_32 : f32 to vector<2x128xf32>
    %40 = arith.mulf %39, %38 : vector<2x128xf32>
    %41 = math.tanh %40 : vector<2x128xf32>
    %cst_33 = arith.constant 1.000000e+00 : f32
    %42 = vector.broadcast %cst_33 : f32 to vector<2x128xf32>
    %43 = arith.addf %41, %42 : vector<2x128xf32>
    %cst_34 = arith.constant 5.000000e-01 : f32
    %44 = vector.broadcast %cst_34 : f32 to vector<2x128xf32>
    %45 = arith.mulf %44, %43 : vector<2x128xf32>
    %46 = vector.extract_strided_slice %27 {offsets = [0, 128], sizes = [2, 128], strides = [1, 1]} : vector<2x384xf32> to vector<2x128xf32>
    %47 = vector.extract_strided_slice %35 {offsets = [0, 128], sizes = [2, 128], strides = [1, 1]} : vector<2x384xf32> to vector<2x128xf32>
    %48 = arith.addf %46, %47 : vector<2x128xf32>
    %cst_35 = arith.constant 5.000000e-01 : f32
    %49 = vector.broadcast %cst_35 : f32 to vector<2x128xf32>
    %50 = arith.mulf %49, %48 : vector<2x128xf32>
    %51 = math.tanh %50 : vector<2x128xf32>
    %cst_36 = arith.constant 1.000000e+00 : f32
    %52 = vector.broadcast %cst_36 : f32 to vector<2x128xf32>
    %53 = arith.addf %51, %52 : vector<2x128xf32>
    %cst_37 = arith.constant 5.000000e-01 : f32
    %54 = vector.broadcast %cst_37 : f32 to vector<2x128xf32>
    %55 = arith.mulf %54, %53 : vector<2x128xf32>
    %56 = vector.extract_strided_slice %27 {offsets = [0, 256], sizes = [2, 128], strides = [1, 1]} : vector<2x384xf32> to vector<2x128xf32>
    %57 = vector.extract_strided_slice %35 {offsets = [0, 256], sizes = [2, 128], strides = [1, 1]} : vector<2x384xf32> to vector<2x128xf32>
    %58 = arith.mulf %45, %57 : vector<2x128xf32>
    %59 = arith.addf %56, %58 : vector<2x128xf32>
    %60 = math.tanh %59 : vector<2x128xf32>
    %cst_38 = arith.constant 1.000000e+00 : f32
    %61 = vector.broadcast %cst_38 : f32 to vector<2x128xf32>
    %62 = arith.subf %61, %55 : vector<2x128xf32>
    %63 = arith.mulf %62, %60 : vector<2x128xf32>
    %64 = arith.mulf %55, %6 : vector<2x128xf32>
    %65 = arith.addf %63, %64 : vector<2x128xf32>
    %66 = arith.truncf %65 : vector<2x128xf32> to vector<2x128xbf16>
    %c1_39 = arith.constant 1 : index
    %c0_40 = arith.constant 0 : index
    %c0_41 = arith.constant 0 : index
    %67 = vector.load %arg8[%c1_39, %c0_40, %c0_41] : memref<2x128x384xbf16, #tpu.memory_space<vmem>>, vector<1x128x384xbf16>
    %68 = vector.shape_cast %67 : vector<1x128x384xbf16> to vector<128x384xbf16>
    %cst_42 = arith.constant dense<0.000000e+00> : vector<2x384xf32>
    %69 = tpu.matmul %66, %68, %cst_42 {dimension_numbers = #tpu.dot_dimension_numbers<[1], [0], [0], [1], [0, 0, 1, 1], [], []>} : vector<2x128xbf16>, vector<128x384xbf16>, vector<2x384xf32> -> vector<2x384xf32>
    %c1_43 = arith.constant 1 : index
    %c0_44 = arith.constant 0 : index
    %c0_45 = arith.constant 0 : index
    %70 = vector.load %arg10[%c1_43, %c0_44, %c0_45] : memref<2x1x384xf32, #tpu.memory_space<vmem>>, vector<1x1x384xf32>
    %71 = vector.shape_cast %70 : vector<1x1x384xf32> to vector<1x384xf32>
    %72 = vector.broadcast %71 : vector<1x384xf32> to vector<2x384xf32>
    %73 = arith.addf %69, %72 : vector<2x384xf32>
    %74 = arith.truncf %8 : vector<2x128xf32> to vector<2x128xbf16>
    %c1_46 = arith.constant 1 : index
    %c0_47 = arith.constant 0 : index
    %c0_48 = arith.constant 0 : index
    %75 = vector.load %arg9[%c1_46, %c0_47, %c0_48] : memref<2x128x384xbf16, #tpu.memory_space<vmem>>, vector<1x128x384xbf16>
    %76 = vector.shape_cast %75 : vector<1x128x384xbf16> to vector<128x384xbf16>
    %cst_49 = arith.constant dense<0.000000e+00> : vector<2x384xf32>
    %77 = tpu.matmul %74, %76, %cst_49 {dimension_numbers = #tpu.dot_dimension_numbers<[1], [0], [0], [1], [0, 0, 1, 1], [], []>} : vector<2x128xbf16>, vector<128x384xbf16>, vector<2x384xf32> -> vector<2x384xf32>
    %c1_50 = arith.constant 1 : index
    %c0_51 = arith.constant 0 : index
    %c0_52 = arith.constant 0 : index
    %78 = vector.load %arg11[%c1_50, %c0_51, %c0_52] : memref<2x1x384xf32, #tpu.memory_space<vmem>>, vector<1x1x384xf32>
    %79 = vector.shape_cast %78 : vector<1x1x384xf32> to vector<1x384xf32>
    %80 = vector.broadcast %79 : vector<1x384xf32> to vector<2x384xf32>
    %81 = arith.addf %77, %80 : vector<2x384xf32>
    %82 = vector.extract_strided_slice %73 {offsets = [0, 0], sizes = [2, 128], strides = [1, 1]} : vector<2x384xf32> to vector<2x128xf32>
    %83 = vector.extract_strided_slice %81 {offsets = [0, 0], sizes = [2, 128], strides = [1, 1]} : vector<2x384xf32> to vector<2x128xf32>
    %84 = arith.addf %82, %83 : vector<2x128xf32>
    %cst_53 = arith.constant 5.000000e-01 : f32
    %85 = vector.broadcast %cst_53 : f32 to vector<2x128xf32>
    %86 = arith.mulf %85, %84 : vector<2x128xf32>
    %87 = math.tanh %86 : vector<2x128xf32>
    %cst_54 = arith.constant 1.000000e+00 : f32
    %88 = vector.broadcast %cst_54 : f32 to vector<2x128xf32>
    %89 = arith.addf %87, %88 : vector<2x128xf32>
    %cst_55 = arith.constant 5.000000e-01 : f32
    %90 = vector.broadcast %cst_55 : f32 to vector<2x128xf32>
    %91 = arith.mulf %90, %89 : vector<2x128xf32>
    %92 = vector.extract_strided_slice %73 {offsets = [0, 128], sizes = [2, 128], strides = [1, 1]} : vector<2x384xf32> to vector<2x128xf32>
    %93 = vector.extract_strided_slice %81 {offsets = [0, 128], sizes = [2, 128], strides = [1, 1]} : vector<2x384xf32> to vector<2x128xf32>
    %94 = arith.addf %92, %93 : vector<2x128xf32>
    %cst_56 = arith.constant 5.000000e-01 : f32
    %95 = vector.broadcast %cst_56 : f32 to vector<2x128xf32>
    %96 = arith.mulf %95, %94 : vector<2x128xf32>
    %97 = math.tanh %96 : vector<2x128xf32>
    %cst_57 = arith.constant 1.000000e+00 : f32
    %98 = vector.broadcast %cst_57 : f32 to vector<2x128xf32>
    %99 = arith.addf %97, %98 : vector<2x128xf32>
    %cst_58 = arith.constant 5.000000e-01 : f32
    %100 = vector.broadcast %cst_58 : f32 to vector<2x128xf32>
    %101 = arith.mulf %100, %99 : vector<2x128xf32>
    %102 = vector.extract_strided_slice %73 {offsets = [0, 256], sizes = [2, 128], strides = [1, 1]} : vector<2x384xf32> to vector<2x128xf32>
    %103 = vector.extract_strided_slice %81 {offsets = [0, 256], sizes = [2, 128], strides = [1, 1]} : vector<2x384xf32> to vector<2x128xf32>
    %104 = arith.mulf %91, %103 : vector<2x128xf32>
    %105 = arith.addf %102, %104 : vector<2x128xf32>
    %106 = math.tanh %105 : vector<2x128xf32>
    %cst_59 = arith.constant 1.000000e+00 : f32
    %107 = vector.broadcast %cst_59 : f32 to vector<2x128xf32>
    %108 = arith.subf %107, %101 : vector<2x128xf32>
    %109 = arith.mulf %108, %106 : vector<2x128xf32>
    %110 = arith.mulf %101, %8 : vector<2x128xf32>
    %111 = arith.addf %109, %110 : vector<2x128xf32>
    %112 = arith.truncf %111 : vector<2x128xf32> to vector<2x128xbf16>
    %c0_60 = arith.constant 0 : index
    %c0_61 = arith.constant 0 : index
    %113 = vector.load %arg12[%c0_60, %c0_61] : memref<128x128xbf16, #tpu.memory_space<vmem>>, vector<128x128xbf16>
    %cst_62 = arith.constant dense<0.000000e+00> : vector<2x128xf32>
    %114 = tpu.matmul %112, %113, %cst_62 {dimension_numbers = #tpu.dot_dimension_numbers<[1], [0], [0], [1], [0, 0, 1, 1], [], []>} : vector<2x128xbf16>, vector<128x128xbf16>, vector<2x128xf32> -> vector<2x128xf32>
    %115 = vector.broadcast %2 : vector<1x128xf32> to vector<2x128xf32>
    %116 = arith.addf %114, %115 : vector<2x128xf32>
    %c0_63 = arith.constant 0 : index
    %c0_64 = arith.constant 0 : index
    %c0_65 = arith.constant 0 : index
    %117 = vector.load %arg14[%c0_63, %c0_64, %c0_65] : memref<6x2x128xf32, #tpu.memory_space<vmem>>, vector<1x2x128xf32>
    %118 = vector.shape_cast %117 : vector<1x2x128xf32> to vector<2x128xf32>
    %119 = vector.shape_cast %116 : vector<2x128xf32> to vector<1x2x128xf32>
    tpu.vector_store %arg14[%c0_63, %c0_64, %c0_65], %119 {strides = array<i32>} : memref<6x2x128xf32, #tpu.memory_space<vmem>>, vector<1x2x128xf32>,
    %120 = vector.shape_cast %111 : vector<2x128xf32> to vector<2x1x128xf32>
    %121 = vector.broadcast %120 : vector<2x1x128xf32> to vector<2x10x128xf32>
    %122 = arith.mulf %121, %0 : vector<2x10x128xf32>
    %cst_66 = arith.constant dense<0.000000e+00> : vector<2x10xf32>
    %123 = vector.multi_reduction <add>, %122, %cst_66 [2] : vector<2x10x128xf32> to vector<2x10xf32>
    %cst_67 = arith.constant 0.000000e+00 : f32
    %124 = vector.broadcast %cst_67 : f32 to vector<2x10xf32>
    %125 = arith.cmpf oeq, %1, %124 : vector<2x10xf32>
    %cst_68 = arith.constant -9.000000e+03 : f32
    %126 = vector.broadcast %cst_68 : f32 to vector<2x10xf32>
    %127 = arith.select %125, %126, %123 : vector<2x10xi1>, vector<2x10xf32>
    %cst_69 = arith.constant dense<0xFF800000> : vector<2xf32>
    %128 = vector.multi_reduction <maximumf>, %127, %cst_69 [1] : vector<2x10xf32> to vector<2xf32>
    %129 = vector.shape_cast %128 : vector<2xf32> to vector<2x1xf32>
    %130 = vector.broadcast %129 : vector<2x1xf32> to vector<2x10xf32>
    %131 = arith.subf %127, %130 : vector<2x10xf32>
    %132 = math.exp %131 : vector<2x10xf32>
    %cst_70 = arith.constant dense<0.000000e+00> : vector<2xf32>
    %133 = vector.multi_reduction <add>, %132, %cst_70 [1] : vector<2x10xf32> to vector<2xf32>
    %134 = vector.shape_cast %133 : vector<2xf32> to vector<2x1xf32>
    %135 = tpu.reciprocal %134 {approx = true} : vector<2x1xf32> -> vector<2x1xf32>
    %136 = vector.broadcast %135 : vector<2x1xf32> to vector<2x10xf32>
    %137 = arith.mulf %132, %136 : vector<2x10xf32>
    %138 = vector.shape_cast %137 : vector<2x10xf32> to vector<2x10x1xf32>
    %139 = vector.broadcast %138 : vector<2x10x1xf32> to vector<2x10x128xf32>
    %140 = arith.mulf %139, %0 : vector<2x10x128xf32>
    %cst_71 = arith.constant dense<0.000000e+00> : vector<2x128xf32>
    %141 = vector.multi_reduction <add>, %140, %cst_71 [1] : vector<2x10x128xf32> to vector<2x128xf32>
    %c1_72 = arith.constant 1 : index
    %c0_73 = arith.constant 0 : index
    %c0_74 = arith.constant 0 : index
    %142 = vector.load %arg2[%c1_72, %c0_73, %c0_74] : memref<6x2x1xi32, #tpu.memory_space<vmem>>, vector<1x2x1xi32>
    %143 = vector.shape_cast %142 : vector<1x2x1xi32> to vector<2x1xi32>
    %144 = vector.broadcast %143 : vector<2x1xi32> to vector<2x128xi32>
    %145 = arith.cmpi eq, %3, %144 : vector<2x128xi32>
    %146 = arith.extui %145 : vector<2x128xi1> to vector<2x128xi32>
    %147 = arith.sitofp %146 : vector<2x128xi32> to vector<2x128xf32>
    %cst_75 = arith.constant dense<0xFF800000> : vector<2xf32>
    %148 = vector.multi_reduction <maximumf>, %116, %cst_75 [1] : vector<2x128xf32> to vector<2xf32>
    %149 = vector.shape_cast %148 : vector<2xf32> to vector<2x1xf32>
    %150 = vector.broadcast %149 : vector<2x1xf32> to vector<2x128xf32>
    %151 = arith.cmpf oeq, %116, %150 : vector<2x128xf32>
    %cst_76 = arith.constant 1.280000e+02 : f32
    %152 = vector.broadcast %cst_76 : f32 to vector<2x128xf32>
    %153 = arith.select %151, %4, %152 : vector<2x128xi1>, vector<2x128xf32>
    %cst_77 = arith.constant dense<0x7F800000> : vector<2xf32>
    %154 = vector.multi_reduction <minimumf>, %153, %cst_77 [1] : vector<2x128xf32> to vector<2xf32>
    %155 = vector.shape_cast %154 : vector<2xf32> to vector<2x1xf32>
    %156 = vector.broadcast %155 : vector<2x1xf32> to vector<2x128xf32>
    %157 = arith.cmpf oeq, %4, %156 : vector<2x128xf32>
    %158 = arith.extui %157 : vector<2x128xi1> to vector<2x128xi32>
    %159 = arith.sitofp %158 : vector<2x128xi32> to vector<2x128xf32>
    %c1_78 = arith.constant 1 : index
    %160 = memref.load %arg1[%c1_78] : memref<6xi32, #tpu.memory_space<smem>>
    %c0_i32 = arith.constant 0 : i32
    %161 = arith.cmpi sgt, %160, %c0_i32 : i32
    %162 = arith.extui %161 : i1 to i32
    %163 = arith.sitofp %162 : i32 to f32
    %164 = vector.broadcast %163 : f32 to vector<2x128xf32>
    %165 = arith.mulf %164, %147 : vector<2x128xf32>
    %cst_79 = arith.constant 1.000000e+00 : f32
    %166 = arith.subf %cst_79, %163 : f32
    %167 = vector.broadcast %166 : f32 to vector<2x128xf32>
    %168 = arith.mulf %167, %159 : vector<2x128xf32>
    %169 = arith.addf %165, %168 : vector<2x128xf32>
    %170 = arith.truncf %169 : vector<2x128xf32> to vector<2x128xbf16>
    %c0_80 = arith.constant 0 : index
    %c0_81 = arith.constant 0 : index
    %171 = vector.load %arg7[%c0_80, %c0_81] : memref<128x384xbf16, #tpu.memory_space<vmem>>, vector<128x384xbf16>
    %cst_82 = arith.constant dense<0.000000e+00> : vector<2x384xf32>
    %172 = tpu.matmul %170, %171, %cst_82 {dimension_numbers = #tpu.dot_dimension_numbers<[1], [0], [0], [1], [0, 0, 1, 1], [], []>} : vector<2x128xbf16>, vector<128x384xbf16>, vector<2x384xf32> -> vector<2x384xf32>
    %173 = arith.truncf %141 : vector<2x128xf32> to vector<2x128xbf16>
    %c0_83 = arith.constant 0 : index
    %c0_84 = arith.constant 0 : index
    %c0_85 = arith.constant 0 : index
    %174 = vector.load %arg8[%c0_83, %c0_84, %c0_85] : memref<2x128x384xbf16, #tpu.memory_space<vmem>>, vector<1x128x384xbf16>
    %175 = vector.shape_cast %174 : vector<1x128x384xbf16> to vector<128x384xbf16>
    %cst_86 = arith.constant dense<0.000000e+00> : vector<2x384xf32>
    %176 = tpu.matmul %173, %175, %cst_86 {dimension_numbers = #tpu.dot_dimension_numbers<[1], [0], [0], [1], [0, 0, 1, 1], [], []>} : vector<2x128xbf16>, vector<128x384xbf16>, vector<2x384xf32> -> vector<2x384xf32>
    %c0_87 = arith.constant 0 : index
    %c0_88 = arith.constant 0 : index
    %c0_89 = arith.constant 0 : index
    %177 = vector.load %arg10[%c0_87, %c0_88, %c0_89] : memref<2x1x384xf32, #tpu.memory_space<vmem>>, vector<1x1x384xf32>
    %178 = vector.shape_cast %177 : vector<1x1x384xf32> to vector<1x384xf32>
    %179 = vector.broadcast %178 : vector<1x384xf32> to vector<2x384xf32>
    %180 = arith.addf %176, %179 : vector<2x384xf32>
    %181 = arith.addf %180, %172 : vector<2x384xf32>
    %182 = arith.truncf %65 : vector<2x128xf32> to vector<2x128xbf16>
    %c0_90 = arith.constant 0 : index
    %c0_91 = arith.constant 0 : index
    %c0_92 = arith.constant 0 : index
    %183 = vector.load %arg9[%c0_90, %c0_91, %c0_92] : memref<2x128x384xbf16, #tpu.memory_space<vmem>>, vector<1x128x384xbf16>
    %184 = vector.shape_cast %183 : vector<1x128x384xbf16> to vector<128x384xbf16>
    %cst_93 = arith.constant dense<0.000000e+00> : vector<2x384xf32>
    %185 = tpu.matmul %182, %184, %cst_93 {dimension_numbers = #tpu.dot_dimension_numbers<[1], [0], [0], [1], [0, 0, 1, 1], [], []>} : vector<2x128xbf16>, vector<128x384xbf16>, vector<2x384xf32> -> vector<2x384xf32>
    %c0_94 = arith.constant 0 : index
    %c0_95 = arith.constant 0 : index
    %c0_96 = arith.constant 0 : index
    %186 = vector.load %arg11[%c0_94, %c0_95, %c0_96] : memref<2x1x384xf32, #tpu.memory_space<vmem>>, vector<1x1x384xf32>
    %187 = vector.shape_cast %186 : vector<1x1x384xf32> to vector<1x384xf32>
    %188 = vector.broadcast %187 : vector<1x384xf32> to vector<2x384xf32>
    %189 = arith.addf %185, %188 : vector<2x384xf32>
    %190 = vector.extract_strided_slice %181 {offsets = [0, 0], sizes = [2, 128], strides = [1, 1]} : vector<2x384xf32> to vector<2x128xf32>
    %191 = vector.extract_strided_slice %189 {offsets = [0, 0], sizes = [2, 128], strides = [1, 1]} : vector<2x384xf32> to vector<2x128xf32>
    %192 = arith.addf %190, %191 : vector<2x128xf32>
    %cst_97 = arith.constant 5.000000e-01 : f32
    %193 = vector.broadcast %cst_97 : f32 to vector<2x128xf32>
    %194 = arith.mulf %193, %192 : vector<2x128xf32>
    %195 = math.tanh %194 : vector<2x128xf32>
    %cst_98 = arith.constant 1.000000e+00 : f32
    %196 = vector.broadcast %cst_98 : f32 to vector<2x128xf32>
    %197 = arith.addf %195, %196 : vector<2x128xf32>
    %cst_99 = arith.constant 5.000000e-01 : f32
    %198 = vector.broadcast %cst_99 : f32 to vector<2x128xf32>
    %199 = arith.mulf %198, %197 : vector<2x128xf32>
    %200 = vector.extract_strided_slice %181 {offsets = [0, 128], sizes = [2, 128], strides = [1, 1]} : vector<2x384xf32> to vector<2x128xf32>
    %201 = vector.extract_strided_slice %189 {offsets = [0, 128], sizes = [2, 128], strides = [1, 1]} : vector<2x384xf32> to vector<2x128xf32>
    %202 = arith.addf %200, %201 : vector<2x128xf32>
    %cst_100 = arith.constant 5.000000e-01 : f32
    %203 = vector.broadcast %cst_100 : f32 to vector<2x128xf32>
    %204 = arith.mulf %203, %202 : vector<2x128xf32>
    %205 = math.tanh %204 : vector<2x128xf32>
    %cst_101 = arith.constant 1.000000e+00 : f32
    %206 = vector.broadcast %cst_101 : f32 to vector<2x128xf32>
    %207 = arith.addf %205, %206 : vector<2x128xf32>
    %cst_102 = arith.constant 5.000000e-01 : f32
    %208 = vector.broadcast %cst_102 : f32 to vector<2x128xf32>
    %209 = arith.mulf %208, %207 : vector<2x128xf32>
    %210 = vector.extract_strided_slice %181 {offsets = [0, 256], sizes = [2, 128], strides = [1, 1]} : vector<2x384xf32> to vector<2x128xf32>
    %211 = vector.extract_strided_slice %189 {offsets = [0, 256], sizes = [2, 128], strides = [1, 1]} : vector<2x384xf32> to vector<2x128xf32>
    %212 = arith.mulf %199, %211 : vector<2x128xf32>
    %213 = arith.addf %210, %212 : vector<2x128xf32>
    %214 = math.tanh %213 : vector<2x128xf32>
    %cst_103 = arith.constant 1.000000e+00 : f32
    %215 = vector.broadcast %cst_103 : f32 to vector<2x128xf32>
    %216 = arith.subf %215, %209 : vector<2x128xf32>
    %217 = arith.mulf %216, %214 : vector<2x128xf32>
    %218 = arith.mulf %209, %65 : vector<2x128xf32>
    %219 = arith.addf %217, %218 : vector<2x128xf32>
    %220 = arith.truncf %219 : vector<2x128xf32> to vector<2x128xbf16>
    %c1_104 = arith.constant 1 : index
    %c0_105 = arith.constant 0 : index
    %c0_106 = arith.constant 0 : index
    %221 = vector.load %arg8[%c1_104, %c0_105, %c0_106] : memref<2x128x384xbf16, #tpu.memory_space<vmem>>, vector<1x128x384xbf16>
    %222 = vector.shape_cast %221 : vector<1x128x384xbf16> to vector<128x384xbf16>
    %cst_107 = arith.constant dense<0.000000e+00> : vector<2x384xf32>
    %223 = tpu.matmul %220, %222, %cst_107 {dimension_numbers = #tpu.dot_dimension_numbers<[1], [0], [0], [1], [0, 0, 1, 1], [], []>} : vector<2x128xbf16>, vector<128x384xbf16>, vector<2x384xf32> -> vector<2x384xf32>
    %c1_108 = arith.constant 1 : index
    %c0_109 = arith.constant 0 : index
    %c0_110 = arith.constant 0 : index
    %224 = vector.load %arg10[%c1_108, %c0_109, %c0_110] : memref<2x1x384xf32, #tpu.memory_space<vmem>>, vector<1x1x384xf32>
    %225 = vector.shape_cast %224 : vector<1x1x384xf32> to vector<1x384xf32>
    %226 = vector.broadcast %225 : vector<1x384xf32> to vector<2x384xf32>
    %227 = arith.addf %223, %226 : vector<2x384xf32>
    %228 = arith.truncf %111 : vector<2x128xf32> to vector<2x128xbf16>
    %c1_111 = arith.constant 1 : index
    %c0_112 = arith.constant 0 : index
    %c0_113 = arith.constant 0 : index
    %229 = vector.load %arg9[%c1_111, %c0_112, %c0_113] : memref<2x128x384xbf16, #tpu.memory_space<vmem>>, vector<1x128x384xbf16>
    %230 = vector.shape_cast %229 : vector<1x128x384xbf16> to vector<128x384xbf16>
    %cst_114 = arith.constant dense<0.000000e+00> : vector<2x384xf32>
    %231 = tpu.matmul %228, %230, %cst_114 {dimension_numbers = #tpu.dot_dimension_numbers<[1], [0], [0], [1], [0, 0, 1, 1], [], []>} : vector<2x128xbf16>, vector<128x384xbf16>, vector<2x384xf32> -> vector<2x384xf32>
    %c1_115 = arith.constant 1 : index
    %c0_116 = arith.constant 0 : index
    %c0_117 = arith.constant 0 : index
    %232 = vector.load %arg11[%c1_115, %c0_116, %c0_117] : memref<2x1x384xf32, #tpu.memory_space<vmem>>, vector<1x1x384xf32>
    %233 = vector.shape_cast %232 : vector<1x1x384xf32> to vector<1x384xf32>
    %234 = vector.broadcast %233 : vector<1x384xf32> to vector<2x384xf32>
    %235 = arith.addf %231, %234 : vector<2x384xf32>
    %236 = vector.extract_strided_slice %227 {offsets = [0, 0], sizes = [2, 128], strides = [1, 1]} : vector<2x384xf32> to vector<2x128xf32>
    %237 = vector.extract_strided_slice %235 {offsets = [0, 0], sizes = [2, 128], strides = [1, 1]} : vector<2x384xf32> to vector<2x128xf32>
    %238 = arith.addf %236, %237 : vector<2x128xf32>
    %cst_118 = arith.constant 5.000000e-01 : f32
    %239 = vector.broadcast %cst_118 : f32 to vector<2x128xf32>
    %240 = arith.mulf %239, %238 : vector<2x128xf32>
    %241 = math.tanh %240 : vector<2x128xf32>
    %cst_119 = arith.constant 1.000000e+00 : f32
    %242 = vector.broadcast %cst_119 : f32 to vector<2x128xf32>
    %243 = arith.addf %241, %242 : vector<2x128xf32>
    %cst_120 = arith.constant 5.000000e-01 : f32
    %244 = vector.broadcast %cst_120 : f32 to vector<2x128xf32>
    %245 = arith.mulf %244, %243 : vector<2x128xf32>
    %246 = vector.extract_strided_slice %227 {offsets = [0, 128], sizes = [2, 128], strides = [1, 1]} : vector<2x384xf32> to vector<2x128xf32>
    %247 = vector.extract_strided_slice %235 {offsets = [0, 128], sizes = [2, 128], strides = [1, 1]} : vector<2x384xf32> to vector<2x128xf32>
    %248 = arith.addf %246, %247 : vector<2x128xf32>
    %cst_121 = arith.constant 5.000000e-01 : f32
    %249 = vector.broadcast %cst_121 : f32 to vector<2x128xf32>
    %250 = arith.mulf %249, %248 : vector<2x128xf32>
    %251 = math.tanh %250 : vector<2x128xf32>
    %cst_122 = arith.constant 1.000000e+00 : f32
    %252 = vector.broadcast %cst_122 : f32 to vector<2x128xf32>
    %253 = arith.addf %251, %252 : vector<2x128xf32>
    %cst_123 = arith.constant 5.000000e-01 : f32
    %254 = vector.broadcast %cst_123 : f32 to vector<2x128xf32>
    %255 = arith.mulf %254, %253 : vector<2x128xf32>
    %256 = vector.extract_strided_slice %227 {offsets = [0, 256], sizes = [2, 128], strides = [1, 1]} : vector<2x384xf32> to vector<2x128xf32>
    %257 = vector.extract_strided_slice %235 {offsets = [0, 256], sizes = [2, 128], strides = [1, 1]} : vector<2x384xf32> to vector<2x128xf32>
    %258 = arith.mulf %245, %257 : vector<2x128xf32>
    %259 = arith.addf %256, %258 : vector<2x128xf32>
    %260 = math.tanh %259 : vector<2x128xf32>
    %cst_124 = arith.constant 1.000000e+00 : f32
    %261 = vector.broadcast %cst_124 : f32 to vector<2x128xf32>
    %262 = arith.subf %261, %255 : vector<2x128xf32>
    %263 = arith.mulf %262, %260 : vector<2x128xf32>
    %264 = arith.mulf %255, %111 : vector<2x128xf32>
    %265 = arith.addf %263, %264 : vector<2x128xf32>
    %266 = arith.truncf %265 : vector<2x128xf32> to vector<2x128xbf16>
    %c0_125 = arith.constant 0 : index
    %c0_126 = arith.constant 0 : index
    %267 = vector.load %arg12[%c0_125, %c0_126] : memref<128x128xbf16, #tpu.memory_space<vmem>>, vector<128x128xbf16>
    %cst_127 = arith.constant dense<0.000000e+00> : vector<2x128xf32>
    %268 = tpu.matmul %266, %267, %cst_127 {dimension_numbers = #tpu.dot_dimension_numbers<[1], [0], [0], [1], [0, 0, 1, 1], [], []>} : vector<2x128xbf16>, vector<128x128xbf16>, vector<2x128xf32> -> vector<2x128xf32>
    %269 = vector.broadcast %2 : vector<1x128xf32> to vector<2x128xf32>
    %270 = arith.addf %268, %269 : vector<2x128xf32>
    %c1_128 = arith.constant 1 : index
    %c0_129 = arith.constant 0 : index
    %c0_130 = arith.constant 0 : index
    %271 = vector.load %arg14[%c1_128, %c0_129, %c0_130] : memref<6x2x128xf32, #tpu.memory_space<vmem>>, vector<1x2x128xf32>
    %272 = vector.shape_cast %271 : vector<1x2x128xf32> to vector<2x128xf32>
    %273 = vector.shape_cast %270 : vector<2x128xf32> to vector<1x2x128xf32>
    tpu.vector_store %arg14[%c1_128, %c0_129, %c0_130], %273 {strides = array<i32>} : memref<6x2x128xf32, #tpu.memory_space<vmem>>, vector<1x2x128xf32>,
    %274 = vector.shape_cast %265 : vector<2x128xf32> to vector<2x1x128xf32>
    %275 = vector.broadcast %274 : vector<2x1x128xf32> to vector<2x10x128xf32>
    %276 = arith.mulf %275, %0 : vector<2x10x128xf32>
    %cst_131 = arith.constant dense<0.000000e+00> : vector<2x10xf32>
    %277 = vector.multi_reduction <add>, %276, %cst_131 [2] : vector<2x10x128xf32> to vector<2x10xf32>
    %cst_132 = arith.constant 0.000000e+00 : f32
    %278 = vector.broadcast %cst_132 : f32 to vector<2x10xf32>
    %279 = arith.cmpf oeq, %1, %278 : vector<2x10xf32>
    %cst_133 = arith.constant -9.000000e+03 : f32
    %280 = vector.broadcast %cst_133 : f32 to vector<2x10xf32>
    %281 = arith.select %279, %280, %277 : vector<2x10xi1>, vector<2x10xf32>
    %cst_134 = arith.constant dense<0xFF800000> : vector<2xf32>
    %282 = vector.multi_reduction <maximumf>, %281, %cst_134 [1] : vector<2x10xf32> to vector<2xf32>
    %283 = vector.shape_cast %282 : vector<2xf32> to vector<2x1xf32>
    %284 = vector.broadcast %283 : vector<2x1xf32> to vector<2x10xf32>
    %285 = arith.subf %281, %284 : vector<2x10xf32>
    %286 = math.exp %285 : vector<2x10xf32>
    %cst_135 = arith.constant dense<0.000000e+00> : vector<2xf32>
    %287 = vector.multi_reduction <add>, %286, %cst_135 [1] : vector<2x10xf32> to vector<2xf32>
    %288 = vector.shape_cast %287 : vector<2xf32> to vector<2x1xf32>
    %289 = tpu.reciprocal %288 {approx = true} : vector<2x1xf32> -> vector<2x1xf32>
    %290 = vector.broadcast %289 : vector<2x1xf32> to vector<2x10xf32>
    %291 = arith.mulf %286, %290 : vector<2x10xf32>
    %292 = vector.shape_cast %291 : vector<2x10xf32> to vector<2x10x1xf32>
    %293 = vector.broadcast %292 : vector<2x10x1xf32> to vector<2x10x128xf32>
    %294 = arith.mulf %293, %0 : vector<2x10x128xf32>
    %cst_136 = arith.constant dense<0.000000e+00> : vector<2x128xf32>
    %295 = vector.multi_reduction <add>, %294, %cst_136 [1] : vector<2x10x128xf32> to vector<2x128xf32>
    %c2 = arith.constant 2 : index
    %c0_137 = arith.constant 0 : index
    %c0_138 = arith.constant 0 : index
    %296 = vector.load %arg2[%c2, %c0_137, %c0_138] : memref<6x2x1xi32, #tpu.memory_space<vmem>>, vector<1x2x1xi32>
    %297 = vector.shape_cast %296 : vector<1x2x1xi32> to vector<2x1xi32>
    %298 = vector.broadcast %297 : vector<2x1xi32> to vector<2x128xi32>
    %299 = arith.cmpi eq, %3, %298 : vector<2x128xi32>
    %300 = arith.extui %299 : vector<2x128xi1> to vector<2x128xi32>
    %301 = arith.sitofp %300 : vector<2x128xi32> to vector<2x128xf32>
    %cst_139 = arith.constant dense<0xFF800000> : vector<2xf32>
    %302 = vector.multi_reduction <maximumf>, %270, %cst_139 [1] : vector<2x128xf32> to vector<2xf32>
    %303 = vector.shape_cast %302 : vector<2xf32> to vector<2x1xf32>
    %304 = vector.broadcast %303 : vector<2x1xf32> to vector<2x128xf32>
    %305 = arith.cmpf oeq, %270, %304 : vector<2x128xf32>
    %cst_140 = arith.constant 1.280000e+02 : f32
    %306 = vector.broadcast %cst_140 : f32 to vector<2x128xf32>
    %307 = arith.select %305, %4, %306 : vector<2x128xi1>, vector<2x128xf32>
    %cst_141 = arith.constant dense<0x7F800000> : vector<2xf32>
    %308 = vector.multi_reduction <minimumf>, %307, %cst_141 [1] : vector<2x128xf32> to vector<2xf32>
    %309 = vector.shape_cast %308 : vector<2xf32> to vector<2x1xf32>
    %310 = vector.broadcast %309 : vector<2x1xf32> to vector<2x128xf32>
    %311 = arith.cmpf oeq, %4, %310 : vector<2x128xf32>
    %312 = arith.extui %311 : vector<2x128xi1> to vector<2x128xi32>
    %313 = arith.sitofp %312 : vector<2x128xi32> to vector<2x128xf32>
    %c2_142 = arith.constant 2 : index
    %314 = memref.load %arg1[%c2_142] : memref<6xi32, #tpu.memory_space<smem>>
    %c0_i32_143 = arith.constant 0 : i32
    %315 = arith.cmpi sgt, %314, %c0_i32_143 : i32
    %316 = arith.extui %315 : i1 to i32
    %317 = arith.sitofp %316 : i32 to f32
    %318 = vector.broadcast %317 : f32 to vector<2x128xf32>
    %319 = arith.mulf %318, %301 : vector<2x128xf32>
    %cst_144 = arith.constant 1.000000e+00 : f32
    %320 = arith.subf %cst_144, %317 : f32
    %321 = vector.broadcast %320 : f32 to vector<2x128xf32>
    %322 = arith.mulf %321, %313 : vector<2x128xf32>
    %323 = arith.addf %319, %322 : vector<2x128xf32>
    %324 = arith.truncf %323 : vector<2x128xf32> to vector<2x128xbf16>
    %c0_145 = arith.constant 0 : index
    %c0_146 = arith.constant 0 : index
    %325 = vector.load %arg7[%c0_145, %c0_146] : memref<128x384xbf16, #tpu.memory_space<vmem>>, vector<128x384xbf16>
    %cst_147 = arith.constant dense<0.000000e+00> : vector<2x384xf32>
    %326 = tpu.matmul %324, %325, %cst_147 {dimension_numbers = #tpu.dot_dimension_numbers<[1], [0], [0], [1], [0, 0, 1, 1], [], []>} : vector<2x128xbf16>, vector<128x384xbf16>, vector<2x384xf32> -> vector<2x384xf32>
    %327 = arith.truncf %295 : vector<2x128xf32> to vector<2x128xbf16>
    %c0_148 = arith.constant 0 : index
    %c0_149 = arith.constant 0 : index
    %c0_150 = arith.constant 0 : index
    %328 = vector.load %arg8[%c0_148, %c0_149, %c0_150] : memref<2x128x384xbf16, #tpu.memory_space<vmem>>, vector<1x128x384xbf16>
    %329 = vector.shape_cast %328 : vector<1x128x384xbf16> to vector<128x384xbf16>
    %cst_151 = arith.constant dense<0.000000e+00> : vector<2x384xf32>
    %330 = tpu.matmul %327, %329, %cst_151 {dimension_numbers = #tpu.dot_dimension_numbers<[1], [0], [0], [1], [0, 0, 1, 1], [], []>} : vector<2x128xbf16>, vector<128x384xbf16>, vector<2x384xf32> -> vector<2x384xf32>
    %c0_152 = arith.constant 0 : index
    %c0_153 = arith.constant 0 : index
    %c0_154 = arith.constant 0 : index
    %331 = vector.load %arg10[%c0_152, %c0_153, %c0_154] : memref<2x1x384xf32, #tpu.memory_space<vmem>>, vector<1x1x384xf32>
    %332 = vector.shape_cast %331 : vector<1x1x384xf32> to vector<1x384xf32>
    %333 = vector.broadcast %332 : vector<1x384xf32> to vector<2x384xf32>
    %334 = arith.addf %330, %333 : vector<2x384xf32>
    %335 = arith.addf %334, %326 : vector<2x384xf32>
    %336 = arith.truncf %219 : vector<2x128xf32> to vector<2x128xbf16>
    %c0_155 = arith.constant 0 : index
    %c0_156 = arith.constant 0 : index
    %c0_157 = arith.constant 0 : index
    %337 = vector.load %arg9[%c0_155, %c0_156, %c0_157] : memref<2x128x384xbf16, #tpu.memory_space<vmem>>, vector<1x128x384xbf16>
    %338 = vector.shape_cast %337 : vector<1x128x384xbf16> to vector<128x384xbf16>
    %cst_158 = arith.constant dense<0.000000e+00> : vector<2x384xf32>
    %339 = tpu.matmul %336, %338, %cst_158 {dimension_numbers = #tpu.dot_dimension_numbers<[1], [0], [0], [1], [0, 0, 1, 1], [], []>} : vector<2x128xbf16>, vector<128x384xbf16>, vector<2x384xf32> -> vector<2x384xf32>
    %c0_159 = arith.constant 0 : index
    %c0_160 = arith.constant 0 : index
    %c0_161 = arith.constant 0 : index
    %340 = vector.load %arg11[%c0_159, %c0_160, %c0_161] : memref<2x1x384xf32, #tpu.memory_space<vmem>>, vector<1x1x384xf32>
    %341 = vector.shape_cast %340 : vector<1x1x384xf32> to vector<1x384xf32>
    %342 = vector.broadcast %341 : vector<1x384xf32> to vector<2x384xf32>
    %343 = arith.addf %339, %342 : vector<2x384xf32>
    %344 = vector.extract_strided_slice %335 {offsets = [0, 0], sizes = [2, 128], strides = [1, 1]} : vector<2x384xf32> to vector<2x128xf32>
    %345 = vector.extract_strided_slice %343 {offsets = [0, 0], sizes = [2, 128], strides = [1, 1]} : vector<2x384xf32> to vector<2x128xf32>
    %346 = arith.addf %344, %345 : vector<2x128xf32>
    %cst_162 = arith.constant 5.000000e-01 : f32
    %347 = vector.broadcast %cst_162 : f32 to vector<2x128xf32>
    %348 = arith.mulf %347, %346 : vector<2x128xf32>
    %349 = math.tanh %348 : vector<2x128xf32>
    %cst_163 = arith.constant 1.000000e+00 : f32
    %350 = vector.broadcast %cst_163 : f32 to vector<2x128xf32>
    %351 = arith.addf %349, %350 : vector<2x128xf32>
    %cst_164 = arith.constant 5.000000e-01 : f32
    %352 = vector.broadcast %cst_164 : f32 to vector<2x128xf32>
    %353 = arith.mulf %352, %351 : vector<2x128xf32>
    %354 = vector.extract_strided_slice %335 {offsets = [0, 128], sizes = [2, 128], strides = [1, 1]} : vector<2x384xf32> to vector<2x128xf32>
    %355 = vector.extract_strided_slice %343 {offsets = [0, 128], sizes = [2, 128], strides = [1, 1]} : vector<2x384xf32> to vector<2x128xf32>
    %356 = arith.addf %354, %355 : vector<2x128xf32>
    %cst_165 = arith.constant 5.000000e-01 : f32
    %357 = vector.broadcast %cst_165 : f32 to vector<2x128xf32>
    %358 = arith.mulf %357, %356 : vector<2x128xf32>
    %359 = math.tanh %358 : vector<2x128xf32>
    %cst_166 = arith.constant 1.000000e+00 : f32
    %360 = vector.broadcast %cst_166 : f32 to vector<2x128xf32>
    %361 = arith.addf %359, %360 : vector<2x128xf32>
    %cst_167 = arith.constant 5.000000e-01 : f32
    %362 = vector.broadcast %cst_167 : f32 to vector<2x128xf32>
    %363 = arith.mulf %362, %361 : vector<2x128xf32>
    %364 = vector.extract_strided_slice %335 {offsets = [0, 256], sizes = [2, 128], strides = [1, 1]} : vector<2x384xf32> to vector<2x128xf32>
    %365 = vector.extract_strided_slice %343 {offsets = [0, 256], sizes = [2, 128], strides = [1, 1]} : vector<2x384xf32> to vector<2x128xf32>
    %366 = arith.mulf %353, %365 : vector<2x128xf32>
    %367 = arith.addf %364, %366 : vector<2x128xf32>
    %368 = math.tanh %367 : vector<2x128xf32>
    %cst_168 = arith.constant 1.000000e+00 : f32
    %369 = vector.broadcast %cst_168 : f32 to vector<2x128xf32>
    %370 = arith.subf %369, %363 : vector<2x128xf32>
    %371 = arith.mulf %370, %368 : vector<2x128xf32>
    %372 = arith.mulf %363, %219 : vector<2x128xf32>
    %373 = arith.addf %371, %372 : vector<2x128xf32>
    %374 = arith.truncf %373 : vector<2x128xf32> to vector<2x128xbf16>
    %c1_169 = arith.constant 1 : index
    %c0_170 = arith.constant 0 : index
    %c0_171 = arith.constant 0 : index
    %375 = vector.load %arg8[%c1_169, %c0_170, %c0_171] : memref<2x128x384xbf16, #tpu.memory_space<vmem>>, vector<1x128x384xbf16>
    %376 = vector.shape_cast %375 : vector<1x128x384xbf16> to vector<128x384xbf16>
    %cst_172 = arith.constant dense<0.000000e+00> : vector<2x384xf32>
    %377 = tpu.matmul %374, %376, %cst_172 {dimension_numbers = #tpu.dot_dimension_numbers<[1], [0], [0], [1], [0, 0, 1, 1], [], []>} : vector<2x128xbf16>, vector<128x384xbf16>, vector<2x384xf32> -> vector<2x384xf32>
    %c1_173 = arith.constant 1 : index
    %c0_174 = arith.constant 0 : index
    %c0_175 = arith.constant 0 : index
    %378 = vector.load %arg10[%c1_173, %c0_174, %c0_175] : memref<2x1x384xf32, #tpu.memory_space<vmem>>, vector<1x1x384xf32>
    %379 = vector.shape_cast %378 : vector<1x1x384xf32> to vector<1x384xf32>
    %380 = vector.broadcast %379 : vector<1x384xf32> to vector<2x384xf32>
    %381 = arith.addf %377, %380 : vector<2x384xf32>
    %382 = arith.truncf %265 : vector<2x128xf32> to vector<2x128xbf16>
    %c1_176 = arith.constant 1 : index
    %c0_177 = arith.constant 0 : index
    %c0_178 = arith.constant 0 : index
    %383 = vector.load %arg9[%c1_176, %c0_177, %c0_178] : memref<2x128x384xbf16, #tpu.memory_space<vmem>>, vector<1x128x384xbf16>
    %384 = vector.shape_cast %383 : vector<1x128x384xbf16> to vector<128x384xbf16>
    %cst_179 = arith.constant dense<0.000000e+00> : vector<2x384xf32>
    %385 = tpu.matmul %382, %384, %cst_179 {dimension_numbers = #tpu.dot_dimension_numbers<[1], [0], [0], [1], [0, 0, 1, 1], [], []>} : vector<2x128xbf16>, vector<128x384xbf16>, vector<2x384xf32> -> vector<2x384xf32>
    %c1_180 = arith.constant 1 : index
    %c0_181 = arith.constant 0 : index
    %c0_182 = arith.constant 0 : index
    %386 = vector.load %arg11[%c1_180, %c0_181, %c0_182] : memref<2x1x384xf32, #tpu.memory_space<vmem>>, vector<1x1x384xf32>
    %387 = vector.shape_cast %386 : vector<1x1x384xf32> to vector<1x384xf32>
    %388 = vector.broadcast %387 : vector<1x384xf32> to vector<2x384xf32>
    %389 = arith.addf %385, %388 : vector<2x384xf32>
    %390 = vector.extract_strided_slice %381 {offsets = [0, 0], sizes = [2, 128], strides = [1, 1]} : vector<2x384xf32> to vector<2x128xf32>
    %391 = vector.extract_strided_slice %389 {offsets = [0, 0], sizes = [2, 128], strides = [1, 1]} : vector<2x384xf32> to vector<2x128xf32>
    %392 = arith.addf %390, %391 : vector<2x128xf32>
    %cst_183 = arith.constant 5.000000e-01 : f32
    %393 = vector.broadcast %cst_183 : f32 to vector<2x128xf32>
    %394 = arith.mulf %393, %392 : vector<2x128xf32>
    %395 = math.tanh %394 : vector<2x128xf32>
    %cst_184 = arith.constant 1.000000e+00 : f32
    %396 = vector.broadcast %cst_184 : f32 to vector<2x128xf32>
    %397 = arith.addf %395, %396 : vector<2x128xf32>
    %cst_185 = arith.constant 5.000000e-01 : f32
    %398 = vector.broadcast %cst_185 : f32 to vector<2x128xf32>
    %399 = arith.mulf %398, %397 : vector<2x128xf32>
    %400 = vector.extract_strided_slice %381 {offsets = [0, 128], sizes = [2, 128], strides = [1, 1]} : vector<2x384xf32> to vector<2x128xf32>
    %401 = vector.extract_strided_slice %389 {offsets = [0, 128], sizes = [2, 128], strides = [1, 1]} : vector<2x384xf32> to vector<2x128xf32>
    %402 = arith.addf %400, %401 : vector<2x128xf32>
    %cst_186 = arith.constant 5.000000e-01 : f32
    %403 = vector.broadcast %cst_186 : f32 to vector<2x128xf32>
    %404 = arith.mulf %403, %402 : vector<2x128xf32>
    %405 = math.tanh %404 : vector<2x128xf32>
    %cst_187 = arith.constant 1.000000e+00 : f32
    %406 = vector.broadcast %cst_187 : f32 to vector<2x128xf32>
    %407 = arith.addf %405, %406 : vector<2x128xf32>
    %cst_188 = arith.constant 5.000000e-01 : f32
    %408 = vector.broadcast %cst_188 : f32 to vector<2x128xf32>
    %409 = arith.mulf %408, %407 : vector<2x128xf32>
    %410 = vector.extract_strided_slice %381 {offsets = [0, 256], sizes = [2, 128], strides = [1, 1]} : vector<2x384xf32> to vector<2x128xf32>
    %411 = vector.extract_strided_slice %389 {offsets = [0, 256], sizes = [2, 128], strides = [1, 1]} : vector<2x384xf32> to vector<2x128xf32>
    %412 = arith.mulf %399, %411 : vector<2x128xf32>
    %413 = arith.addf %410, %412 : vector<2x128xf32>
    %414 = math.tanh %413 : vector<2x128xf32>
    %cst_189 = arith.constant 1.000000e+00 : f32
    %415 = vector.broadcast %cst_189 : f32 to vector<2x128xf32>
    %416 = arith.subf %415, %409 : vector<2x128xf32>
    %417 = arith.mulf %416, %414 : vector<2x128xf32>
    %418 = arith.mulf %409, %265 : vector<2x128xf32>
    %419 = arith.addf %417, %418 : vector<2x128xf32>
    %420 = arith.truncf %419 : vector<2x128xf32> to vector<2x128xbf16>
    %c0_190 = arith.constant 0 : index
    %c0_191 = arith.constant 0 : index
    %421 = vector.load %arg12[%c0_190, %c0_191] : memref<128x128xbf16, #tpu.memory_space<vmem>>, vector<128x128xbf16>
    %cst_192 = arith.constant dense<0.000000e+00> : vector<2x128xf32>
    %422 = tpu.matmul %420, %421, %cst_192 {dimension_numbers = #tpu.dot_dimension_numbers<[1], [0], [0], [1], [0, 0, 1, 1], [], []>} : vector<2x128xbf16>, vector<128x128xbf16>, vector<2x128xf32> -> vector<2x128xf32>
    %423 = vector.broadcast %2 : vector<1x128xf32> to vector<2x128xf32>
    %424 = arith.addf %422, %423 : vector<2x128xf32>
    %c2_193 = arith.constant 2 : index
    %c0_194 = arith.constant 0 : index
    %c0_195 = arith.constant 0 : index
    %425 = vector.load %arg14[%c2_193, %c0_194, %c0_195] : memref<6x2x128xf32, #tpu.memory_space<vmem>>, vector<1x2x128xf32>
    %426 = vector.shape_cast %425 : vector<1x2x128xf32> to vector<2x128xf32>
    %427 = vector.shape_cast %424 : vector<2x128xf32> to vector<1x2x128xf32>
    tpu.vector_store %arg14[%c2_193, %c0_194, %c0_195], %427 {strides = array<i32>} : memref<6x2x128xf32, #tpu.memory_space<vmem>>, vector<1x2x128xf32>,
    %428 = vector.shape_cast %419 : vector<2x128xf32> to vector<2x1x128xf32>
    %429 = vector.broadcast %428 : vector<2x1x128xf32> to vector<2x10x128xf32>
    %430 = arith.mulf %429, %0 : vector<2x10x128xf32>
    %cst_196 = arith.constant dense<0.000000e+00> : vector<2x10xf32>
    %431 = vector.multi_reduction <add>, %430, %cst_196 [2] : vector<2x10x128xf32> to vector<2x10xf32>
    %cst_197 = arith.constant 0.000000e+00 : f32
    %432 = vector.broadcast %cst_197 : f32 to vector<2x10xf32>
    %433 = arith.cmpf oeq, %1, %432 : vector<2x10xf32>
    %cst_198 = arith.constant -9.000000e+03 : f32
    %434 = vector.broadcast %cst_198 : f32 to vector<2x10xf32>
    %435 = arith.select %433, %434, %431 : vector<2x10xi1>, vector<2x10xf32>
    %cst_199 = arith.constant dense<0xFF800000> : vector<2xf32>
    %436 = vector.multi_reduction <maximumf>, %435, %cst_199 [1] : vector<2x10xf32> to vector<2xf32>
    %437 = vector.shape_cast %436 : vector<2xf32> to vector<2x1xf32>
    %438 = vector.broadcast %437 : vector<2x1xf32> to vector<2x10xf32>
    %439 = arith.subf %435, %438 : vector<2x10xf32>
    %440 = math.exp %439 : vector<2x10xf32>
    %cst_200 = arith.constant dense<0.000000e+00> : vector<2xf32>
    %441 = vector.multi_reduction <add>, %440, %cst_200 [1] : vector<2x10xf32> to vector<2xf32>
    %442 = vector.shape_cast %441 : vector<2xf32> to vector<2x1xf32>
    %443 = tpu.reciprocal %442 {approx = true} : vector<2x1xf32> -> vector<2x1xf32>
    %444 = vector.broadcast %443 : vector<2x1xf32> to vector<2x10xf32>
    %445 = arith.mulf %440, %444 : vector<2x10xf32>
    %446 = vector.shape_cast %445 : vector<2x10xf32> to vector<2x10x1xf32>
    %447 = vector.broadcast %446 : vector<2x10x1xf32> to vector<2x10x128xf32>
    %448 = arith.mulf %447, %0 : vector<2x10x128xf32>
    %cst_201 = arith.constant dense<0.000000e+00> : vector<2x128xf32>
    %449 = vector.multi_reduction <add>, %448, %cst_201 [1] : vector<2x10x128xf32> to vector<2x128xf32>
    %c3 = arith.constant 3 : index
    %c0_202 = arith.constant 0 : index
    %c0_203 = arith.constant 0 : index
    %450 = vector.load %arg2[%c3, %c0_202, %c0_203] : memref<6x2x1xi32, #tpu.memory_space<vmem>>, vector<1x2x1xi32>
    %451 = vector.shape_cast %450 : vector<1x2x1xi32> to vector<2x1xi32>
    %452 = vector.broadcast %451 : vector<2x1xi32> to vector<2x128xi32>
    %453 = arith.cmpi eq, %3, %452 : vector<2x128xi32>
    %454 = arith.extui %453 : vector<2x128xi1> to vector<2x128xi32>
    %455 = arith.sitofp %454 : vector<2x128xi32> to vector<2x128xf32>
    %cst_204 = arith.constant dense<0xFF800000> : vector<2xf32>
    %456 = vector.multi_reduction <maximumf>, %424, %cst_204 [1] : vector<2x128xf32> to vector<2xf32>
    %457 = vector.shape_cast %456 : vector<2xf32> to vector<2x1xf32>
    %458 = vector.broadcast %457 : vector<2x1xf32> to vector<2x128xf32>
    %459 = arith.cmpf oeq, %424, %458 : vector<2x128xf32>
    %cst_205 = arith.constant 1.280000e+02 : f32
    %460 = vector.broadcast %cst_205 : f32 to vector<2x128xf32>
    %461 = arith.select %459, %4, %460 : vector<2x128xi1>, vector<2x128xf32>
    %cst_206 = arith.constant dense<0x7F800000> : vector<2xf32>
    %462 = vector.multi_reduction <minimumf>, %461, %cst_206 [1] : vector<2x128xf32> to vector<2xf32>
    %463 = vector.shape_cast %462 : vector<2xf32> to vector<2x1xf32>
    %464 = vector.broadcast %463 : vector<2x1xf32> to vector<2x128xf32>
    %465 = arith.cmpf oeq, %4, %464 : vector<2x128xf32>
    %466 = arith.extui %465 : vector<2x128xi1> to vector<2x128xi32>
    %467 = arith.sitofp %466 : vector<2x128xi32> to vector<2x128xf32>
    %c3_207 = arith.constant 3 : index
    %468 = memref.load %arg1[%c3_207] : memref<6xi32, #tpu.memory_space<smem>>
    %c0_i32_208 = arith.constant 0 : i32
    %469 = arith.cmpi sgt, %468, %c0_i32_208 : i32
    %470 = arith.extui %469 : i1 to i32
    %471 = arith.sitofp %470 : i32 to f32
    %472 = vector.broadcast %471 : f32 to vector<2x128xf32>
    %473 = arith.mulf %472, %455 : vector<2x128xf32>
    %cst_209 = arith.constant 1.000000e+00 : f32
    %474 = arith.subf %cst_209, %471 : f32
    %475 = vector.broadcast %474 : f32 to vector<2x128xf32>
    %476 = arith.mulf %475, %467 : vector<2x128xf32>
    %477 = arith.addf %473, %476 : vector<2x128xf32>
    %478 = arith.truncf %477 : vector<2x128xf32> to vector<2x128xbf16>
    %c0_210 = arith.constant 0 : index
    %c0_211 = arith.constant 0 : index
    %479 = vector.load %arg7[%c0_210, %c0_211] : memref<128x384xbf16, #tpu.memory_space<vmem>>, vector<128x384xbf16>
    %cst_212 = arith.constant dense<0.000000e+00> : vector<2x384xf32>
    %480 = tpu.matmul %478, %479, %cst_212 {dimension_numbers = #tpu.dot_dimension_numbers<[1], [0], [0], [1], [0, 0, 1, 1], [], []>} : vector<2x128xbf16>, vector<128x384xbf16>, vector<2x384xf32> -> vector<2x384xf32>
    %481 = arith.truncf %449 : vector<2x128xf32> to vector<2x128xbf16>
    %c0_213 = arith.constant 0 : index
    %c0_214 = arith.constant 0 : index
    %c0_215 = arith.constant 0 : index
    %482 = vector.load %arg8[%c0_213, %c0_214, %c0_215] : memref<2x128x384xbf16, #tpu.memory_space<vmem>>, vector<1x128x384xbf16>
    %483 = vector.shape_cast %482 : vector<1x128x384xbf16> to vector<128x384xbf16>
    %cst_216 = arith.constant dense<0.000000e+00> : vector<2x384xf32>
    %484 = tpu.matmul %481, %483, %cst_216 {dimension_numbers = #tpu.dot_dimension_numbers<[1], [0], [0], [1], [0, 0, 1, 1], [], []>} : vector<2x128xbf16>, vector<128x384xbf16>, vector<2x384xf32> -> vector<2x384xf32>
    %c0_217 = arith.constant 0 : index
    %c0_218 = arith.constant 0 : index
    %c0_219 = arith.constant 0 : index
    %485 = vector.load %arg10[%c0_217, %c0_218, %c0_219] : memref<2x1x384xf32, #tpu.memory_space<vmem>>, vector<1x1x384xf32>
    %486 = vector.shape_cast %485 : vector<1x1x384xf32> to vector<1x384xf32>
    %487 = vector.broadcast %486 : vector<1x384xf32> to vector<2x384xf32>
    %488 = arith.addf %484, %487 : vector<2x384xf32>
    %489 = arith.addf %488, %480 : vector<2x384xf32>
    %490 = arith.truncf %373 : vector<2x128xf32> to vector<2x128xbf16>
    %c0_220 = arith.constant 0 : index
    %c0_221 = arith.constant 0 : index
    %c0_222 = arith.constant 0 : index
    %491 = vector.load %arg9[%c0_220, %c0_221, %c0_222] : memref<2x128x384xbf16, #tpu.memory_space<vmem>>, vector<1x128x384xbf16>
    %492 = vector.shape_cast %491 : vector<1x128x384xbf16> to vector<128x384xbf16>
    %cst_223 = arith.constant dense<0.000000e+00> : vector<2x384xf32>
    %493 = tpu.matmul %490, %492, %cst_223 {dimension_numbers = #tpu.dot_dimension_numbers<[1], [0], [0], [1], [0, 0, 1, 1], [], []>} : vector<2x128xbf16>, vector<128x384xbf16>, vector<2x384xf32> -> vector<2x384xf32>
    %c0_224 = arith.constant 0 : index
    %c0_225 = arith.constant 0 : index
    %c0_226 = arith.constant 0 : index
    %494 = vector.load %arg11[%c0_224, %c0_225, %c0_226] : memref<2x1x384xf32, #tpu.memory_space<vmem>>, vector<1x1x384xf32>
    %495 = vector.shape_cast %494 : vector<1x1x384xf32> to vector<1x384xf32>
    %496 = vector.broadcast %495 : vector<1x384xf32> to vector<2x384xf32>
    %497 = arith.addf %493, %496 : vector<2x384xf32>
    %498 = vector.extract_strided_slice %489 {offsets = [0, 0], sizes = [2, 128], strides = [1, 1]} : vector<2x384xf32> to vector<2x128xf32>
    %499 = vector.extract_strided_slice %497 {offsets = [0, 0], sizes = [2, 128], strides = [1, 1]} : vector<2x384xf32> to vector<2x128xf32>
    %500 = arith.addf %498, %499 : vector<2x128xf32>
    %cst_227 = arith.constant 5.000000e-01 : f32
    %501 = vector.broadcast %cst_227 : f32 to vector<2x128xf32>
    %502 = arith.mulf %501, %500 : vector<2x128xf32>
    %503 = math.tanh %502 : vector<2x128xf32>
    %cst_228 = arith.constant 1.000000e+00 : f32
    %504 = vector.broadcast %cst_228 : f32 to vector<2x128xf32>
    %505 = arith.addf %503, %504 : vector<2x128xf32>
    %cst_229 = arith.constant 5.000000e-01 : f32
    %506 = vector.broadcast %cst_229 : f32 to vector<2x128xf32>
    %507 = arith.mulf %506, %505 : vector<2x128xf32>
    %508 = vector.extract_strided_slice %489 {offsets = [0, 128], sizes = [2, 128], strides = [1, 1]} : vector<2x384xf32> to vector<2x128xf32>
    %509 = vector.extract_strided_slice %497 {offsets = [0, 128], sizes = [2, 128], strides = [1, 1]} : vector<2x384xf32> to vector<2x128xf32>
    %510 = arith.addf %508, %509 : vector<2x128xf32>
    %cst_230 = arith.constant 5.000000e-01 : f32
    %511 = vector.broadcast %cst_230 : f32 to vector<2x128xf32>
    %512 = arith.mulf %511, %510 : vector<2x128xf32>
    %513 = math.tanh %512 : vector<2x128xf32>
    %cst_231 = arith.constant 1.000000e+00 : f32
    %514 = vector.broadcast %cst_231 : f32 to vector<2x128xf32>
    %515 = arith.addf %513, %514 : vector<2x128xf32>
    %cst_232 = arith.constant 5.000000e-01 : f32
    %516 = vector.broadcast %cst_232 : f32 to vector<2x128xf32>
    %517 = arith.mulf %516, %515 : vector<2x128xf32>
    %518 = vector.extract_strided_slice %489 {offsets = [0, 256], sizes = [2, 128], strides = [1, 1]} : vector<2x384xf32> to vector<2x128xf32>
    %519 = vector.extract_strided_slice %497 {offsets = [0, 256], sizes = [2, 128], strides = [1, 1]} : vector<2x384xf32> to vector<2x128xf32>
    %520 = arith.mulf %507, %519 : vector<2x128xf32>
    %521 = arith.addf %518, %520 : vector<2x128xf32>
    %522 = math.tanh %521 : vector<2x128xf32>
    %cst_233 = arith.constant 1.000000e+00 : f32
    %523 = vector.broadcast %cst_233 : f32 to vector<2x128xf32>
    %524 = arith.subf %523, %517 : vector<2x128xf32>
    %525 = arith.mulf %524, %522 : vector<2x128xf32>
    %526 = arith.mulf %517, %373 : vector<2x128xf32>
    %527 = arith.addf %525, %526 : vector<2x128xf32>
    %528 = arith.truncf %527 : vector<2x128xf32> to vector<2x128xbf16>
    %c1_234 = arith.constant 1 : index
    %c0_235 = arith.constant 0 : index
    %c0_236 = arith.constant 0 : index
    %529 = vector.load %arg8[%c1_234, %c0_235, %c0_236] : memref<2x128x384xbf16, #tpu.memory_space<vmem>>, vector<1x128x384xbf16>
    %530 = vector.shape_cast %529 : vector<1x128x384xbf16> to vector<128x384xbf16>
    %cst_237 = arith.constant dense<0.000000e+00> : vector<2x384xf32>
    %531 = tpu.matmul %528, %530, %cst_237 {dimension_numbers = #tpu.dot_dimension_numbers<[1], [0], [0], [1], [0, 0, 1, 1], [], []>} : vector<2x128xbf16>, vector<128x384xbf16>, vector<2x384xf32> -> vector<2x384xf32>
    %c1_238 = arith.constant 1 : index
    %c0_239 = arith.constant 0 : index
    %c0_240 = arith.constant 0 : index
    %532 = vector.load %arg10[%c1_238, %c0_239, %c0_240] : memref<2x1x384xf32, #tpu.memory_space<vmem>>, vector<1x1x384xf32>
    %533 = vector.shape_cast %532 : vector<1x1x384xf32> to vector<1x384xf32>
    %534 = vector.broadcast %533 : vector<1x384xf32> to vector<2x384xf32>
    %535 = arith.addf %531, %534 : vector<2x384xf32>
    %536 = arith.truncf %419 : vector<2x128xf32> to vector<2x128xbf16>
    %c1_241 = arith.constant 1 : index
    %c0_242 = arith.constant 0 : index
    %c0_243 = arith.constant 0 : index
    %537 = vector.load %arg9[%c1_241, %c0_242, %c0_243] : memref<2x128x384xbf16, #tpu.memory_space<vmem>>, vector<1x128x384xbf16>
    %538 = vector.shape_cast %537 : vector<1x128x384xbf16> to vector<128x384xbf16>
    %cst_244 = arith.constant dense<0.000000e+00> : vector<2x384xf32>
    %539 = tpu.matmul %536, %538, %cst_244 {dimension_numbers = #tpu.dot_dimension_numbers<[1], [0], [0], [1], [0, 0, 1, 1], [], []>} : vector<2x128xbf16>, vector<128x384xbf16>, vector<2x384xf32> -> vector<2x384xf32>
    %c1_245 = arith.constant 1 : index
    %c0_246 = arith.constant 0 : index
    %c0_247 = arith.constant 0 : index
    %540 = vector.load %arg11[%c1_245, %c0_246, %c0_247] : memref<2x1x384xf32, #tpu.memory_space<vmem>>, vector<1x1x384xf32>
    %541 = vector.shape_cast %540 : vector<1x1x384xf32> to vector<1x384xf32>
    %542 = vector.broadcast %541 : vector<1x384xf32> to vector<2x384xf32>
    %543 = arith.addf %539, %542 : vector<2x384xf32>
    %544 = vector.extract_strided_slice %535 {offsets = [0, 0], sizes = [2, 128], strides = [1, 1]} : vector<2x384xf32> to vector<2x128xf32>
    %545 = vector.extract_strided_slice %543 {offsets = [0, 0], sizes = [2, 128], strides = [1, 1]} : vector<2x384xf32> to vector<2x128xf32>
    %546 = arith.addf %544, %545 : vector<2x128xf32>
    %cst_248 = arith.constant 5.000000e-01 : f32
    %547 = vector.broadcast %cst_248 : f32 to vector<2x128xf32>
    %548 = arith.mulf %547, %546 : vector<2x128xf32>
    %549 = math.tanh %548 : vector<2x128xf32>
    %cst_249 = arith.constant 1.000000e+00 : f32
    %550 = vector.broadcast %cst_249 : f32 to vector<2x128xf32>
    %551 = arith.addf %549, %550 : vector<2x128xf32>
    %cst_250 = arith.constant 5.000000e-01 : f32
    %552 = vector.broadcast %cst_250 : f32 to vector<2x128xf32>
    %553 = arith.mulf %552, %551 : vector<2x128xf32>
    %554 = vector.extract_strided_slice %535 {offsets = [0, 128], sizes = [2, 128], strides = [1, 1]} : vector<2x384xf32> to vector<2x128xf32>
    %555 = vector.extract_strided_slice %543 {offsets = [0, 128], sizes = [2, 128], strides = [1, 1]} : vector<2x384xf32> to vector<2x128xf32>
    %556 = arith.addf %554, %555 : vector<2x128xf32>
    %cst_251 = arith.constant 5.000000e-01 : f32
    %557 = vector.broadcast %cst_251 : f32 to vector<2x128xf32>
    %558 = arith.mulf %557, %556 : vector<2x128xf32>
    %559 = math.tanh %558 : vector<2x128xf32>
    %cst_252 = arith.constant 1.000000e+00 : f32
    %560 = vector.broadcast %cst_252 : f32 to vector<2x128xf32>
    %561 = arith.addf %559, %560 : vector<2x128xf32>
    %cst_253 = arith.constant 5.000000e-01 : f32
    %562 = vector.broadcast %cst_253 : f32 to vector<2x128xf32>
    %563 = arith.mulf %562, %561 : vector<2x128xf32>
    %564 = vector.extract_strided_slice %535 {offsets = [0, 256], sizes = [2, 128], strides = [1, 1]} : vector<2x384xf32> to vector<2x128xf32>
    %565 = vector.extract_strided_slice %543 {offsets = [0, 256], sizes = [2, 128], strides = [1, 1]} : vector<2x384xf32> to vector<2x128xf32>
    %566 = arith.mulf %553, %565 : vector<2x128xf32>
    %567 = arith.addf %564, %566 : vector<2x128xf32>
    %568 = math.tanh %567 : vector<2x128xf32>
    %cst_254 = arith.constant 1.000000e+00 : f32
    %569 = vector.broadcast %cst_254 : f32 to vector<2x128xf32>
    %570 = arith.subf %569, %563 : vector<2x128xf32>
    %571 = arith.mulf %570, %568 : vector<2x128xf32>
    %572 = arith.mulf %563, %419 : vector<2x128xf32>
    %573 = arith.addf %571, %572 : vector<2x128xf32>
    %574 = arith.truncf %573 : vector<2x128xf32> to vector<2x128xbf16>
    %c0_255 = arith.constant 0 : index
    %c0_256 = arith.constant 0 : index
    %575 = vector.load %arg12[%c0_255, %c0_256] : memref<128x128xbf16, #tpu.memory_space<vmem>>, vector<128x128xbf16>
    %cst_257 = arith.constant dense<0.000000e+00> : vector<2x128xf32>
    %576 = tpu.matmul %574, %575, %cst_257 {dimension_numbers = #tpu.dot_dimension_numbers<[1], [0], [0], [1], [0, 0, 1, 1], [], []>} : vector<2x128xbf16>, vector<128x128xbf16>, vector<2x128xf32> -> vector<2x128xf32>
    %577 = vector.broadcast %2 : vector<1x128xf32> to vector<2x128xf32>
    %578 = arith.addf %576, %577 : vector<2x128xf32>
    %c3_258 = arith.constant 3 : index
    %c0_259 = arith.constant 0 : index
    %c0_260 = arith.constant 0 : index
    %579 = vector.load %arg14[%c3_258, %c0_259, %c0_260] : memref<6x2x128xf32, #tpu.memory_space<vmem>>, vector<1x2x128xf32>
    %580 = vector.shape_cast %579 : vector<1x2x128xf32> to vector<2x128xf32>
    %581 = vector.shape_cast %578 : vector<2x128xf32> to vector<1x2x128xf32>
    tpu.vector_store %arg14[%c3_258, %c0_259, %c0_260], %581 {strides = array<i32>} : memref<6x2x128xf32, #tpu.memory_space<vmem>>, vector<1x2x128xf32>,
    %582 = vector.shape_cast %573 : vector<2x128xf32> to vector<2x1x128xf32>
    %583 = vector.broadcast %582 : vector<2x1x128xf32> to vector<2x10x128xf32>
    %584 = arith.mulf %583, %0 : vector<2x10x128xf32>
    %cst_261 = arith.constant dense<0.000000e+00> : vector<2x10xf32>
    %585 = vector.multi_reduction <add>, %584, %cst_261 [2] : vector<2x10x128xf32> to vector<2x10xf32>
    %cst_262 = arith.constant 0.000000e+00 : f32
    %586 = vector.broadcast %cst_262 : f32 to vector<2x10xf32>
    %587 = arith.cmpf oeq, %1, %586 : vector<2x10xf32>
    %cst_263 = arith.constant -9.000000e+03 : f32
    %588 = vector.broadcast %cst_263 : f32 to vector<2x10xf32>
    %589 = arith.select %587, %588, %585 : vector<2x10xi1>, vector<2x10xf32>
    %cst_264 = arith.constant dense<0xFF800000> : vector<2xf32>
    %590 = vector.multi_reduction <maximumf>, %589, %cst_264 [1] : vector<2x10xf32> to vector<2xf32>
    %591 = vector.shape_cast %590 : vector<2xf32> to vector<2x1xf32>
    %592 = vector.broadcast %591 : vector<2x1xf32> to vector<2x10xf32>
    %593 = arith.subf %589, %592 : vector<2x10xf32>
    %594 = math.exp %593 : vector<2x10xf32>
    %cst_265 = arith.constant dense<0.000000e+00> : vector<2xf32>
    %595 = vector.multi_reduction <add>, %594, %cst_265 [1] : vector<2x10xf32> to vector<2xf32>
    %596 = vector.shape_cast %595 : vector<2xf32> to vector<2x1xf32>
    %597 = tpu.reciprocal %596 {approx = true} : vector<2x1xf32> -> vector<2x1xf32>
    %598 = vector.broadcast %597 : vector<2x1xf32> to vector<2x10xf32>
    %599 = arith.mulf %594, %598 : vector<2x10xf32>
    %600 = vector.shape_cast %599 : vector<2x10xf32> to vector<2x10x1xf32>
    %601 = vector.broadcast %600 : vector<2x10x1xf32> to vector<2x10x128xf32>
    %602 = arith.mulf %601, %0 : vector<2x10x128xf32>
    %cst_266 = arith.constant dense<0.000000e+00> : vector<2x128xf32>
    %603 = vector.multi_reduction <add>, %602, %cst_266 [1] : vector<2x10x128xf32> to vector<2x128xf32>
    %c4 = arith.constant 4 : index
    %c0_267 = arith.constant 0 : index
    %c0_268 = arith.constant 0 : index
    %604 = vector.load %arg2[%c4, %c0_267, %c0_268] : memref<6x2x1xi32, #tpu.memory_space<vmem>>, vector<1x2x1xi32>
    %605 = vector.shape_cast %604 : vector<1x2x1xi32> to vector<2x1xi32>
    %606 = vector.broadcast %605 : vector<2x1xi32> to vector<2x128xi32>
    %607 = arith.cmpi eq, %3, %606 : vector<2x128xi32>
    %608 = arith.extui %607 : vector<2x128xi1> to vector<2x128xi32>
    %609 = arith.sitofp %608 : vector<2x128xi32> to vector<2x128xf32>
    %cst_269 = arith.constant dense<0xFF800000> : vector<2xf32>
    %610 = vector.multi_reduction <maximumf>, %578, %cst_269 [1] : vector<2x128xf32> to vector<2xf32>
    %611 = vector.shape_cast %610 : vector<2xf32> to vector<2x1xf32>
    %612 = vector.broadcast %611 : vector<2x1xf32> to vector<2x128xf32>
    %613 = arith.cmpf oeq, %578, %612 : vector<2x128xf32>
    %cst_270 = arith.constant 1.280000e+02 : f32
    %614 = vector.broadcast %cst_270 : f32 to vector<2x128xf32>
    %615 = arith.select %613, %4, %614 : vector<2x128xi1>, vector<2x128xf32>
    %cst_271 = arith.constant dense<0x7F800000> : vector<2xf32>
    %616 = vector.multi_reduction <minimumf>, %615, %cst_271 [1] : vector<2x128xf32> to vector<2xf32>
    %617 = vector.shape_cast %616 : vector<2xf32> to vector<2x1xf32>
    %618 = vector.broadcast %617 : vector<2x1xf32> to vector<2x128xf32>
    %619 = arith.cmpf oeq, %4, %618 : vector<2x128xf32>
    %620 = arith.extui %619 : vector<2x128xi1> to vector<2x128xi32>
    %621 = arith.sitofp %620 : vector<2x128xi32> to vector<2x128xf32>
    %c4_272 = arith.constant 4 : index
    %622 = memref.load %arg1[%c4_272] : memref<6xi32, #tpu.memory_space<smem>>
    %c0_i32_273 = arith.constant 0 : i32
    %623 = arith.cmpi sgt, %622, %c0_i32_273 : i32
    %624 = arith.extui %623 : i1 to i32
    %625 = arith.sitofp %624 : i32 to f32
    %626 = vector.broadcast %625 : f32 to vector<2x128xf32>
    %627 = arith.mulf %626, %609 : vector<2x128xf32>
    %cst_274 = arith.constant 1.000000e+00 : f32
    %628 = arith.subf %cst_274, %625 : f32
    %629 = vector.broadcast %628 : f32 to vector<2x128xf32>
    %630 = arith.mulf %629, %621 : vector<2x128xf32>
    %631 = arith.addf %627, %630 : vector<2x128xf32>
    %632 = arith.truncf %631 : vector<2x128xf32> to vector<2x128xbf16>
    %c0_275 = arith.constant 0 : index
    %c0_276 = arith.constant 0 : index
    %633 = vector.load %arg7[%c0_275, %c0_276] : memref<128x384xbf16, #tpu.memory_space<vmem>>, vector<128x384xbf16>
    %cst_277 = arith.constant dense<0.000000e+00> : vector<2x384xf32>
    %634 = tpu.matmul %632, %633, %cst_277 {dimension_numbers = #tpu.dot_dimension_numbers<[1], [0], [0], [1], [0, 0, 1, 1], [], []>} : vector<2x128xbf16>, vector<128x384xbf16>, vector<2x384xf32> -> vector<2x384xf32>
    %635 = arith.truncf %603 : vector<2x128xf32> to vector<2x128xbf16>
    %c0_278 = arith.constant 0 : index
    %c0_279 = arith.constant 0 : index
    %c0_280 = arith.constant 0 : index
    %636 = vector.load %arg8[%c0_278, %c0_279, %c0_280] : memref<2x128x384xbf16, #tpu.memory_space<vmem>>, vector<1x128x384xbf16>
    %637 = vector.shape_cast %636 : vector<1x128x384xbf16> to vector<128x384xbf16>
    %cst_281 = arith.constant dense<0.000000e+00> : vector<2x384xf32>
    %638 = tpu.matmul %635, %637, %cst_281 {dimension_numbers = #tpu.dot_dimension_numbers<[1], [0], [0], [1], [0, 0, 1, 1], [], []>} : vector<2x128xbf16>, vector<128x384xbf16>, vector<2x384xf32> -> vector<2x384xf32>
    %c0_282 = arith.constant 0 : index
    %c0_283 = arith.constant 0 : index
    %c0_284 = arith.constant 0 : index
    %639 = vector.load %arg10[%c0_282, %c0_283, %c0_284] : memref<2x1x384xf32, #tpu.memory_space<vmem>>, vector<1x1x384xf32>
    %640 = vector.shape_cast %639 : vector<1x1x384xf32> to vector<1x384xf32>
    %641 = vector.broadcast %640 : vector<1x384xf32> to vector<2x384xf32>
    %642 = arith.addf %638, %641 : vector<2x384xf32>
    %643 = arith.addf %642, %634 : vector<2x384xf32>
    %644 = arith.truncf %527 : vector<2x128xf32> to vector<2x128xbf16>
    %c0_285 = arith.constant 0 : index
    %c0_286 = arith.constant 0 : index
    %c0_287 = arith.constant 0 : index
    %645 = vector.load %arg9[%c0_285, %c0_286, %c0_287] : memref<2x128x384xbf16, #tpu.memory_space<vmem>>, vector<1x128x384xbf16>
    %646 = vector.shape_cast %645 : vector<1x128x384xbf16> to vector<128x384xbf16>
    %cst_288 = arith.constant dense<0.000000e+00> : vector<2x384xf32>
    %647 = tpu.matmul %644, %646, %cst_288 {dimension_numbers = #tpu.dot_dimension_numbers<[1], [0], [0], [1], [0, 0, 1, 1], [], []>} : vector<2x128xbf16>, vector<128x384xbf16>, vector<2x384xf32> -> vector<2x384xf32>
    %c0_289 = arith.constant 0 : index
    %c0_290 = arith.constant 0 : index
    %c0_291 = arith.constant 0 : index
    %648 = vector.load %arg11[%c0_289, %c0_290, %c0_291] : memref<2x1x384xf32, #tpu.memory_space<vmem>>, vector<1x1x384xf32>
    %649 = vector.shape_cast %648 : vector<1x1x384xf32> to vector<1x384xf32>
    %650 = vector.broadcast %649 : vector<1x384xf32> to vector<2x384xf32>
    %651 = arith.addf %647, %650 : vector<2x384xf32>
    %652 = vector.extract_strided_slice %643 {offsets = [0, 0], sizes = [2, 128], strides = [1, 1]} : vector<2x384xf32> to vector<2x128xf32>
    %653 = vector.extract_strided_slice %651 {offsets = [0, 0], sizes = [2, 128], strides = [1, 1]} : vector<2x384xf32> to vector<2x128xf32>
    %654 = arith.addf %652, %653 : vector<2x128xf32>
    %cst_292 = arith.constant 5.000000e-01 : f32
    %655 = vector.broadcast %cst_292 : f32 to vector<2x128xf32>
    %656 = arith.mulf %655, %654 : vector<2x128xf32>
    %657 = math.tanh %656 : vector<2x128xf32>
    %cst_293 = arith.constant 1.000000e+00 : f32
    %658 = vector.broadcast %cst_293 : f32 to vector<2x128xf32>
    %659 = arith.addf %657, %658 : vector<2x128xf32>
    %cst_294 = arith.constant 5.000000e-01 : f32
    %660 = vector.broadcast %cst_294 : f32 to vector<2x128xf32>
    %661 = arith.mulf %660, %659 : vector<2x128xf32>
    %662 = vector.extract_strided_slice %643 {offsets = [0, 128], sizes = [2, 128], strides = [1, 1]} : vector<2x384xf32> to vector<2x128xf32>
    %663 = vector.extract_strided_slice %651 {offsets = [0, 128], sizes = [2, 128], strides = [1, 1]} : vector<2x384xf32> to vector<2x128xf32>
    %664 = arith.addf %662, %663 : vector<2x128xf32>
    %cst_295 = arith.constant 5.000000e-01 : f32
    %665 = vector.broadcast %cst_295 : f32 to vector<2x128xf32>
    %666 = arith.mulf %665, %664 : vector<2x128xf32>
    %667 = math.tanh %666 : vector<2x128xf32>
    %cst_296 = arith.constant 1.000000e+00 : f32
    %668 = vector.broadcast %cst_296 : f32 to vector<2x128xf32>
    %669 = arith.addf %667, %668 : vector<2x128xf32>
    %cst_297 = arith.constant 5.000000e-01 : f32
    %670 = vector.broadcast %cst_297 : f32 to vector<2x128xf32>
    %671 = arith.mulf %670, %669 : vector<2x128xf32>
    %672 = vector.extract_strided_slice %643 {offsets = [0, 256], sizes = [2, 128], strides = [1, 1]} : vector<2x384xf32> to vector<2x128xf32>
    %673 = vector.extract_strided_slice %651 {offsets = [0, 256], sizes = [2, 128], strides = [1, 1]} : vector<2x384xf32> to vector<2x128xf32>
    %674 = arith.mulf %661, %673 : vector<2x128xf32>
    %675 = arith.addf %672, %674 : vector<2x128xf32>
    %676 = math.tanh %675 : vector<2x128xf32>
    %cst_298 = arith.constant 1.000000e+00 : f32
    %677 = vector.broadcast %cst_298 : f32 to vector<2x128xf32>
    %678 = arith.subf %677, %671 : vector<2x128xf32>
    %679 = arith.mulf %678, %676 : vector<2x128xf32>
    %680 = arith.mulf %671, %527 : vector<2x128xf32>
    %681 = arith.addf %679, %680 : vector<2x128xf32>
    %682 = arith.truncf %681 : vector<2x128xf32> to vector<2x128xbf16>
    %c1_299 = arith.constant 1 : index
    %c0_300 = arith.constant 0 : index
    %c0_301 = arith.constant 0 : index
    %683 = vector.load %arg8[%c1_299, %c0_300, %c0_301] : memref<2x128x384xbf16, #tpu.memory_space<vmem>>, vector<1x128x384xbf16>
    %684 = vector.shape_cast %683 : vector<1x128x384xbf16> to vector<128x384xbf16>
    %cst_302 = arith.constant dense<0.000000e+00> : vector<2x384xf32>
    %685 = tpu.matmul %682, %684, %cst_302 {dimension_numbers = #tpu.dot_dimension_numbers<[1], [0], [0], [1], [0, 0, 1, 1], [], []>} : vector<2x128xbf16>, vector<128x384xbf16>, vector<2x384xf32> -> vector<2x384xf32>
    %c1_303 = arith.constant 1 : index
    %c0_304 = arith.constant 0 : index
    %c0_305 = arith.constant 0 : index
    %686 = vector.load %arg10[%c1_303, %c0_304, %c0_305] : memref<2x1x384xf32, #tpu.memory_space<vmem>>, vector<1x1x384xf32>
    %687 = vector.shape_cast %686 : vector<1x1x384xf32> to vector<1x384xf32>
    %688 = vector.broadcast %687 : vector<1x384xf32> to vector<2x384xf32>
    %689 = arith.addf %685, %688 : vector<2x384xf32>
    %690 = arith.truncf %573 : vector<2x128xf32> to vector<2x128xbf16>
    %c1_306 = arith.constant 1 : index
    %c0_307 = arith.constant 0 : index
    %c0_308 = arith.constant 0 : index
    %691 = vector.load %arg9[%c1_306, %c0_307, %c0_308] : memref<2x128x384xbf16, #tpu.memory_space<vmem>>, vector<1x128x384xbf16>
    %692 = vector.shape_cast %691 : vector<1x128x384xbf16> to vector<128x384xbf16>
    %cst_309 = arith.constant dense<0.000000e+00> : vector<2x384xf32>
    %693 = tpu.matmul %690, %692, %cst_309 {dimension_numbers = #tpu.dot_dimension_numbers<[1], [0], [0], [1], [0, 0, 1, 1], [], []>} : vector<2x128xbf16>, vector<128x384xbf16>, vector<2x384xf32> -> vector<2x384xf32>
    %c1_310 = arith.constant 1 : index
    %c0_311 = arith.constant 0 : index
    %c0_312 = arith.constant 0 : index
    %694 = vector.load %arg11[%c1_310, %c0_311, %c0_312] : memref<2x1x384xf32, #tpu.memory_space<vmem>>, vector<1x1x384xf32>
    %695 = vector.shape_cast %694 : vector<1x1x384xf32> to vector<1x384xf32>
    %696 = vector.broadcast %695 : vector<1x384xf32> to vector<2x384xf32>
    %697 = arith.addf %693, %696 : vector<2x384xf32>
    %698 = vector.extract_strided_slice %689 {offsets = [0, 0], sizes = [2, 128], strides = [1, 1]} : vector<2x384xf32> to vector<2x128xf32>
    %699 = vector.extract_strided_slice %697 {offsets = [0, 0], sizes = [2, 128], strides = [1, 1]} : vector<2x384xf32> to vector<2x128xf32>
    %700 = arith.addf %698, %699 : vector<2x128xf32>
    %cst_313 = arith.constant 5.000000e-01 : f32
    %701 = vector.broadcast %cst_313 : f32 to vector<2x128xf32>
    %702 = arith.mulf %701, %700 : vector<2x128xf32>
    %703 = math.tanh %702 : vector<2x128xf32>
    %cst_314 = arith.constant 1.000000e+00 : f32
    %704 = vector.broadcast %cst_314 : f32 to vector<2x128xf32>
    %705 = arith.addf %703, %704 : vector<2x128xf32>
    %cst_315 = arith.constant 5.000000e-01 : f32
    %706 = vector.broadcast %cst_315 : f32 to vector<2x128xf32>
    %707 = arith.mulf %706, %705 : vector<2x128xf32>
    %708 = vector.extract_strided_slice %689 {offsets = [0, 128], sizes = [2, 128], strides = [1, 1]} : vector<2x384xf32> to vector<2x128xf32>
    %709 = vector.extract_strided_slice %697 {offsets = [0, 128], sizes = [2, 128], strides = [1, 1]} : vector<2x384xf32> to vector<2x128xf32>
    %710 = arith.addf %708, %709 : vector<2x128xf32>
    %cst_316 = arith.constant 5.000000e-01 : f32
    %711 = vector.broadcast %cst_316 : f32 to vector<2x128xf32>
    %712 = arith.mulf %711, %710 : vector<2x128xf32>
    %713 = math.tanh %712 : vector<2x128xf32>
    %cst_317 = arith.constant 1.000000e+00 : f32
    %714 = vector.broadcast %cst_317 : f32 to vector<2x128xf32>
    %715 = arith.addf %713, %714 : vector<2x128xf32>
    %cst_318 = arith.constant 5.000000e-01 : f32
    %716 = vector.broadcast %cst_318 : f32 to vector<2x128xf32>
    %717 = arith.mulf %716, %715 : vector<2x128xf32>
    %718 = vector.extract_strided_slice %689 {offsets = [0, 256], sizes = [2, 128], strides = [1, 1]} : vector<2x384xf32> to vector<2x128xf32>
    %719 = vector.extract_strided_slice %697 {offsets = [0, 256], sizes = [2, 128], strides = [1, 1]} : vector<2x384xf32> to vector<2x128xf32>
    %720 = arith.mulf %707, %719 : vector<2x128xf32>
    %721 = arith.addf %718, %720 : vector<2x128xf32>
    %722 = math.tanh %721 : vector<2x128xf32>
    %cst_319 = arith.constant 1.000000e+00 : f32
    %723 = vector.broadcast %cst_319 : f32 to vector<2x128xf32>
    %724 = arith.subf %723, %717 : vector<2x128xf32>
    %725 = arith.mulf %724, %722 : vector<2x128xf32>
    %726 = arith.mulf %717, %573 : vector<2x128xf32>
    %727 = arith.addf %725, %726 : vector<2x128xf32>
    %728 = arith.truncf %727 : vector<2x128xf32> to vector<2x128xbf16>
    %c0_320 = arith.constant 0 : index
    %c0_321 = arith.constant 0 : index
    %729 = vector.load %arg12[%c0_320, %c0_321] : memref<128x128xbf16, #tpu.memory_space<vmem>>, vector<128x128xbf16>
    %cst_322 = arith.constant dense<0.000000e+00> : vector<2x128xf32>
    %730 = tpu.matmul %728, %729, %cst_322 {dimension_numbers = #tpu.dot_dimension_numbers<[1], [0], [0], [1], [0, 0, 1, 1], [], []>} : vector<2x128xbf16>, vector<128x128xbf16>, vector<2x128xf32> -> vector<2x128xf32>
    %731 = vector.broadcast %2 : vector<1x128xf32> to vector<2x128xf32>
    %732 = arith.addf %730, %731 : vector<2x128xf32>
    %c4_323 = arith.constant 4 : index
    %c0_324 = arith.constant 0 : index
    %c0_325 = arith.constant 0 : index
    %733 = vector.load %arg14[%c4_323, %c0_324, %c0_325] : memref<6x2x128xf32, #tpu.memory_space<vmem>>, vector<1x2x128xf32>
    %734 = vector.shape_cast %733 : vector<1x2x128xf32> to vector<2x128xf32>
    %735 = vector.shape_cast %732 : vector<2x128xf32> to vector<1x2x128xf32>
    tpu.vector_store %arg14[%c4_323, %c0_324, %c0_325], %735 {strides = array<i32>} : memref<6x2x128xf32, #tpu.memory_space<vmem>>, vector<1x2x128xf32>,
    %736 = vector.shape_cast %727 : vector<2x128xf32> to vector<2x1x128xf32>
    %737 = vector.broadcast %736 : vector<2x1x128xf32> to vector<2x10x128xf32>
    %738 = arith.mulf %737, %0 : vector<2x10x128xf32>
    %cst_326 = arith.constant dense<0.000000e+00> : vector<2x10xf32>
    %739 = vector.multi_reduction <add>, %738, %cst_326 [2] : vector<2x10x128xf32> to vector<2x10xf32>
    %cst_327 = arith.constant 0.000000e+00 : f32
    %740 = vector.broadcast %cst_327 : f32 to vector<2x10xf32>
    %741 = arith.cmpf oeq, %1, %740 : vector<2x10xf32>
    %cst_328 = arith.constant -9.000000e+03 : f32
    %742 = vector.broadcast %cst_328 : f32 to vector<2x10xf32>
    %743 = arith.select %741, %742, %739 : vector<2x10xi1>, vector<2x10xf32>
    %cst_329 = arith.constant dense<0xFF800000> : vector<2xf32>
    %744 = vector.multi_reduction <maximumf>, %743, %cst_329 [1] : vector<2x10xf32> to vector<2xf32>
    %745 = vector.shape_cast %744 : vector<2xf32> to vector<2x1xf32>
    %746 = vector.broadcast %745 : vector<2x1xf32> to vector<2x10xf32>
    %747 = arith.subf %743, %746 : vector<2x10xf32>
    %748 = math.exp %747 : vector<2x10xf32>
    %cst_330 = arith.constant dense<0.000000e+00> : vector<2xf32>
    %749 = vector.multi_reduction <add>, %748, %cst_330 [1] : vector<2x10xf32> to vector<2xf32>
    %750 = vector.shape_cast %749 : vector<2xf32> to vector<2x1xf32>
    %751 = tpu.reciprocal %750 {approx = true} : vector<2x1xf32> -> vector<2x1xf32>
    %752 = vector.broadcast %751 : vector<2x1xf32> to vector<2x10xf32>
    %753 = arith.mulf %748, %752 : vector<2x10xf32>
    %754 = vector.shape_cast %753 : vector<2x10xf32> to vector<2x10x1xf32>
    %755 = vector.broadcast %754 : vector<2x10x1xf32> to vector<2x10x128xf32>
    %756 = arith.mulf %755, %0 : vector<2x10x128xf32>
    %cst_331 = arith.constant dense<0.000000e+00> : vector<2x128xf32>
    %757 = vector.multi_reduction <add>, %756, %cst_331 [1] : vector<2x10x128xf32> to vector<2x128xf32>
    %c5 = arith.constant 5 : index
    %c0_332 = arith.constant 0 : index
    %c0_333 = arith.constant 0 : index
    %758 = vector.load %arg2[%c5, %c0_332, %c0_333] : memref<6x2x1xi32, #tpu.memory_space<vmem>>, vector<1x2x1xi32>
    %759 = vector.shape_cast %758 : vector<1x2x1xi32> to vector<2x1xi32>
    %760 = vector.broadcast %759 : vector<2x1xi32> to vector<2x128xi32>
    %761 = arith.cmpi eq, %3, %760 : vector<2x128xi32>
    %762 = arith.extui %761 : vector<2x128xi1> to vector<2x128xi32>
    %763 = arith.sitofp %762 : vector<2x128xi32> to vector<2x128xf32>
    %cst_334 = arith.constant dense<0xFF800000> : vector<2xf32>
    %764 = vector.multi_reduction <maximumf>, %732, %cst_334 [1] : vector<2x128xf32> to vector<2xf32>
    %765 = vector.shape_cast %764 : vector<2xf32> to vector<2x1xf32>
    %766 = vector.broadcast %765 : vector<2x1xf32> to vector<2x128xf32>
    %767 = arith.cmpf oeq, %732, %766 : vector<2x128xf32>
    %cst_335 = arith.constant 1.280000e+02 : f32
    %768 = vector.broadcast %cst_335 : f32 to vector<2x128xf32>
    %769 = arith.select %767, %4, %768 : vector<2x128xi1>, vector<2x128xf32>
    %cst_336 = arith.constant dense<0x7F800000> : vector<2xf32>
    %770 = vector.multi_reduction <minimumf>, %769, %cst_336 [1] : vector<2x128xf32> to vector<2xf32>
    %771 = vector.shape_cast %770 : vector<2xf32> to vector<2x1xf32>
    %772 = vector.broadcast %771 : vector<2x1xf32> to vector<2x128xf32>
    %773 = arith.cmpf oeq, %4, %772 : vector<2x128xf32>
    %774 = arith.extui %773 : vector<2x128xi1> to vector<2x128xi32>
    %775 = arith.sitofp %774 : vector<2x128xi32> to vector<2x128xf32>
    %c5_337 = arith.constant 5 : index
    %776 = memref.load %arg1[%c5_337] : memref<6xi32, #tpu.memory_space<smem>>
    %c0_i32_338 = arith.constant 0 : i32
    %777 = arith.cmpi sgt, %776, %c0_i32_338 : i32
    %778 = arith.extui %777 : i1 to i32
    %779 = arith.sitofp %778 : i32 to f32
    %780 = vector.broadcast %779 : f32 to vector<2x128xf32>
    %781 = arith.mulf %780, %763 : vector<2x128xf32>
    %cst_339 = arith.constant 1.000000e+00 : f32
    %782 = arith.subf %cst_339, %779 : f32
    %783 = vector.broadcast %782 : f32 to vector<2x128xf32>
    %784 = arith.mulf %783, %775 : vector<2x128xf32>
    %785 = arith.addf %781, %784 : vector<2x128xf32>
    %786 = arith.truncf %785 : vector<2x128xf32> to vector<2x128xbf16>
    %c0_340 = arith.constant 0 : index
    %c0_341 = arith.constant 0 : index
    %787 = vector.load %arg7[%c0_340, %c0_341] : memref<128x384xbf16, #tpu.memory_space<vmem>>, vector<128x384xbf16>
    %cst_342 = arith.constant dense<0.000000e+00> : vector<2x384xf32>
    %788 = tpu.matmul %786, %787, %cst_342 {dimension_numbers = #tpu.dot_dimension_numbers<[1], [0], [0], [1], [0, 0, 1, 1], [], []>} : vector<2x128xbf16>, vector<128x384xbf16>, vector<2x384xf32> -> vector<2x384xf32>
    %789 = arith.truncf %757 : vector<2x128xf32> to vector<2x128xbf16>
    %c0_343 = arith.constant 0 : index
    %c0_344 = arith.constant 0 : index
    %c0_345 = arith.constant 0 : index
    %790 = vector.load %arg8[%c0_343, %c0_344, %c0_345] : memref<2x128x384xbf16, #tpu.memory_space<vmem>>, vector<1x128x384xbf16>
    %791 = vector.shape_cast %790 : vector<1x128x384xbf16> to vector<128x384xbf16>
    %cst_346 = arith.constant dense<0.000000e+00> : vector<2x384xf32>
    %792 = tpu.matmul %789, %791, %cst_346 {dimension_numbers = #tpu.dot_dimension_numbers<[1], [0], [0], [1], [0, 0, 1, 1], [], []>} : vector<2x128xbf16>, vector<128x384xbf16>, vector<2x384xf32> -> vector<2x384xf32>
    %c0_347 = arith.constant 0 : index
    %c0_348 = arith.constant 0 : index
    %c0_349 = arith.constant 0 : index
    %793 = vector.load %arg10[%c0_347, %c0_348, %c0_349] : memref<2x1x384xf32, #tpu.memory_space<vmem>>, vector<1x1x384xf32>
    %794 = vector.shape_cast %793 : vector<1x1x384xf32> to vector<1x384xf32>
    %795 = vector.broadcast %794 : vector<1x384xf32> to vector<2x384xf32>
    %796 = arith.addf %792, %795 : vector<2x384xf32>
    %797 = arith.addf %796, %788 : vector<2x384xf32>
    %798 = arith.truncf %681 : vector<2x128xf32> to vector<2x128xbf16>
    %c0_350 = arith.constant 0 : index
    %c0_351 = arith.constant 0 : index
    %c0_352 = arith.constant 0 : index
    %799 = vector.load %arg9[%c0_350, %c0_351, %c0_352] : memref<2x128x384xbf16, #tpu.memory_space<vmem>>, vector<1x128x384xbf16>
    %800 = vector.shape_cast %799 : vector<1x128x384xbf16> to vector<128x384xbf16>
    %cst_353 = arith.constant dense<0.000000e+00> : vector<2x384xf32>
    %801 = tpu.matmul %798, %800, %cst_353 {dimension_numbers = #tpu.dot_dimension_numbers<[1], [0], [0], [1], [0, 0, 1, 1], [], []>} : vector<2x128xbf16>, vector<128x384xbf16>, vector<2x384xf32> -> vector<2x384xf32>
    %c0_354 = arith.constant 0 : index
    %c0_355 = arith.constant 0 : index
    %c0_356 = arith.constant 0 : index
    %802 = vector.load %arg11[%c0_354, %c0_355, %c0_356] : memref<2x1x384xf32, #tpu.memory_space<vmem>>, vector<1x1x384xf32>
    %803 = vector.shape_cast %802 : vector<1x1x384xf32> to vector<1x384xf32>
    %804 = vector.broadcast %803 : vector<1x384xf32> to vector<2x384xf32>
    %805 = arith.addf %801, %804 : vector<2x384xf32>
    %806 = vector.extract_strided_slice %797 {offsets = [0, 0], sizes = [2, 128], strides = [1, 1]} : vector<2x384xf32> to vector<2x128xf32>
    %807 = vector.extract_strided_slice %805 {offsets = [0, 0], sizes = [2, 128], strides = [1, 1]} : vector<2x384xf32> to vector<2x128xf32>
    %808 = arith.addf %806, %807 : vector<2x128xf32>
    %cst_357 = arith.constant 5.000000e-01 : f32
    %809 = vector.broadcast %cst_357 : f32 to vector<2x128xf32>
    %810 = arith.mulf %809, %808 : vector<2x128xf32>
    %811 = math.tanh %810 : vector<2x128xf32>
    %cst_358 = arith.constant 1.000000e+00 : f32
    %812 = vector.broadcast %cst_358 : f32 to vector<2x128xf32>
    %813 = arith.addf %811, %812 : vector<2x128xf32>
    %cst_359 = arith.constant 5.000000e-01 : f32
    %814 = vector.broadcast %cst_359 : f32 to vector<2x128xf32>
    %815 = arith.mulf %814, %813 : vector<2x128xf32>
    %816 = vector.extract_strided_slice %797 {offsets = [0, 128], sizes = [2, 128], strides = [1, 1]} : vector<2x384xf32> to vector<2x128xf32>
    %817 = vector.extract_strided_slice %805 {offsets = [0, 128], sizes = [2, 128], strides = [1, 1]} : vector<2x384xf32> to vector<2x128xf32>
    %818 = arith.addf %816, %817 : vector<2x128xf32>
    %cst_360 = arith.constant 5.000000e-01 : f32
    %819 = vector.broadcast %cst_360 : f32 to vector<2x128xf32>
    %820 = arith.mulf %819, %818 : vector<2x128xf32>
    %821 = math.tanh %820 : vector<2x128xf32>
    %cst_361 = arith.constant 1.000000e+00 : f32
    %822 = vector.broadcast %cst_361 : f32 to vector<2x128xf32>
    %823 = arith.addf %821, %822 : vector<2x128xf32>
    %cst_362 = arith.constant 5.000000e-01 : f32
    %824 = vector.broadcast %cst_362 : f32 to vector<2x128xf32>
    %825 = arith.mulf %824, %823 : vector<2x128xf32>
    %826 = vector.extract_strided_slice %797 {offsets = [0, 256], sizes = [2, 128], strides = [1, 1]} : vector<2x384xf32> to vector<2x128xf32>
    %827 = vector.extract_strided_slice %805 {offsets = [0, 256], sizes = [2, 128], strides = [1, 1]} : vector<2x384xf32> to vector<2x128xf32>
    %828 = arith.mulf %815, %827 : vector<2x128xf32>
    %829 = arith.addf %826, %828 : vector<2x128xf32>
    %830 = math.tanh %829 : vector<2x128xf32>
    %cst_363 = arith.constant 1.000000e+00 : f32
    %831 = vector.broadcast %cst_363 : f32 to vector<2x128xf32>
    %832 = arith.subf %831, %825 : vector<2x128xf32>
    %833 = arith.mulf %832, %830 : vector<2x128xf32>
    %834 = arith.mulf %825, %681 : vector<2x128xf32>
    %835 = arith.addf %833, %834 : vector<2x128xf32>
    %836 = arith.truncf %835 : vector<2x128xf32> to vector<2x128xbf16>
    %c1_364 = arith.constant 1 : index
    %c0_365 = arith.constant 0 : index
    %c0_366 = arith.constant 0 : index
    %837 = vector.load %arg8[%c1_364, %c0_365, %c0_366] : memref<2x128x384xbf16, #tpu.memory_space<vmem>>, vector<1x128x384xbf16>
    %838 = vector.shape_cast %837 : vector<1x128x384xbf16> to vector<128x384xbf16>
    %cst_367 = arith.constant dense<0.000000e+00> : vector<2x384xf32>
    %839 = tpu.matmul %836, %838, %cst_367 {dimension_numbers = #tpu.dot_dimension_numbers<[1], [0], [0], [1], [0, 0, 1, 1], [], []>} : vector<2x128xbf16>, vector<128x384xbf16>, vector<2x384xf32> -> vector<2x384xf32>
    %c1_368 = arith.constant 1 : index
    %c0_369 = arith.constant 0 : index
    %c0_370 = arith.constant 0 : index
    %840 = vector.load %arg10[%c1_368, %c0_369, %c0_370] : memref<2x1x384xf32, #tpu.memory_space<vmem>>, vector<1x1x384xf32>
    %841 = vector.shape_cast %840 : vector<1x1x384xf32> to vector<1x384xf32>
    %842 = vector.broadcast %841 : vector<1x384xf32> to vector<2x384xf32>
    %843 = arith.addf %839, %842 : vector<2x384xf32>
    %844 = arith.truncf %727 : vector<2x128xf32> to vector<2x128xbf16>
    %c1_371 = arith.constant 1 : index
    %c0_372 = arith.constant 0 : index
    %c0_373 = arith.constant 0 : index
    %845 = vector.load %arg9[%c1_371, %c0_372, %c0_373] : memref<2x128x384xbf16, #tpu.memory_space<vmem>>, vector<1x128x384xbf16>
    %846 = vector.shape_cast %845 : vector<1x128x384xbf16> to vector<128x384xbf16>
    %cst_374 = arith.constant dense<0.000000e+00> : vector<2x384xf32>
    %847 = tpu.matmul %844, %846, %cst_374 {dimension_numbers = #tpu.dot_dimension_numbers<[1], [0], [0], [1], [0, 0, 1, 1], [], []>} : vector<2x128xbf16>, vector<128x384xbf16>, vector<2x384xf32> -> vector<2x384xf32>
    %c1_375 = arith.constant 1 : index
    %c0_376 = arith.constant 0 : index
    %c0_377 = arith.constant 0 : index
    %848 = vector.load %arg11[%c1_375, %c0_376, %c0_377] : memref<2x1x384xf32, #tpu.memory_space<vmem>>, vector<1x1x384xf32>
    %849 = vector.shape_cast %848 : vector<1x1x384xf32> to vector<1x384xf32>
    %850 = vector.broadcast %849 : vector<1x384xf32> to vector<2x384xf32>
    %851 = arith.addf %847, %850 : vector<2x384xf32>
    %852 = vector.extract_strided_slice %843 {offsets = [0, 0], sizes = [2, 128], strides = [1, 1]} : vector<2x384xf32> to vector<2x128xf32>
    %853 = vector.extract_strided_slice %851 {offsets = [0, 0], sizes = [2, 128], strides = [1, 1]} : vector<2x384xf32> to vector<2x128xf32>
    %854 = arith.addf %852, %853 : vector<2x128xf32>
    %cst_378 = arith.constant 5.000000e-01 : f32
    %855 = vector.broadcast %cst_378 : f32 to vector<2x128xf32>
    %856 = arith.mulf %855, %854 : vector<2x128xf32>
    %857 = math.tanh %856 : vector<2x128xf32>
    %cst_379 = arith.constant 1.000000e+00 : f32
    %858 = vector.broadcast %cst_379 : f32 to vector<2x128xf32>
    %859 = arith.addf %857, %858 : vector<2x128xf32>
    %cst_380 = arith.constant 5.000000e-01 : f32
    %860 = vector.broadcast %cst_380 : f32 to vector<2x128xf32>
    %861 = arith.mulf %860, %859 : vector<2x128xf32>
    %862 = vector.extract_strided_slice %843 {offsets = [0, 128], sizes = [2, 128], strides = [1, 1]} : vector<2x384xf32> to vector<2x128xf32>
    %863 = vector.extract_strided_slice %851 {offsets = [0, 128], sizes = [2, 128], strides = [1, 1]} : vector<2x384xf32> to vector<2x128xf32>
    %864 = arith.addf %862, %863 : vector<2x128xf32>
    %cst_381 = arith.constant 5.000000e-01 : f32
    %865 = vector.broadcast %cst_381 : f32 to vector<2x128xf32>
    %866 = arith.mulf %865, %864 : vector<2x128xf32>
    %867 = math.tanh %866 : vector<2x128xf32>
    %cst_382 = arith.constant 1.000000e+00 : f32
    %868 = vector.broadcast %cst_382 : f32 to vector<2x128xf32>
    %869 = arith.addf %867, %868 : vector<2x128xf32>
    %cst_383 = arith.constant 5.000000e-01 : f32
    %870 = vector.broadcast %cst_383 : f32 to vector<2x128xf32>
    %871 = arith.mulf %870, %869 : vector<2x128xf32>
    %872 = vector.extract_strided_slice %843 {offsets = [0, 256], sizes = [2, 128], strides = [1, 1]} : vector<2x384xf32> to vector<2x128xf32>
    %873 = vector.extract_strided_slice %851 {offsets = [0, 256], sizes = [2, 128], strides = [1, 1]} : vector<2x384xf32> to vector<2x128xf32>
    %874 = arith.mulf %861, %873 : vector<2x128xf32>
    %875 = arith.addf %872, %874 : vector<2x128xf32>
    %876 = math.tanh %875 : vector<2x128xf32>
    %cst_384 = arith.constant 1.000000e+00 : f32
    %877 = vector.broadcast %cst_384 : f32 to vector<2x128xf32>
    %878 = arith.subf %877, %871 : vector<2x128xf32>
    %879 = arith.mulf %878, %876 : vector<2x128xf32>
    %880 = arith.mulf %871, %727 : vector<2x128xf32>
    %881 = arith.addf %879, %880 : vector<2x128xf32>
    %882 = arith.truncf %881 : vector<2x128xf32> to vector<2x128xbf16>
    %c0_385 = arith.constant 0 : index
    %c0_386 = arith.constant 0 : index
    %883 = vector.load %arg12[%c0_385, %c0_386] : memref<128x128xbf16, #tpu.memory_space<vmem>>, vector<128x128xbf16>
    %cst_387 = arith.constant dense<0.000000e+00> : vector<2x128xf32>
    %884 = tpu.matmul %882, %883, %cst_387 {dimension_numbers = #tpu.dot_dimension_numbers<[1], [0], [0], [1], [0, 0, 1, 1], [], []>} : vector<2x128xbf16>, vector<128x128xbf16>, vector<2x128xf32> -> vector<2x128xf32>
    %885 = vector.broadcast %2 : vector<1x128xf32> to vector<2x128xf32>
    %886 = arith.addf %884, %885 : vector<2x128xf32>
    %c5_388 = arith.constant 5 : index
    %c0_389 = arith.constant 0 : index
    %c0_390 = arith.constant 0 : index
    %887 = vector.load %arg14[%c5_388, %c0_389, %c0_390] : memref<6x2x128xf32, #tpu.memory_space<vmem>>, vector<1x2x128xf32>
    %888 = vector.shape_cast %887 : vector<1x2x128xf32> to vector<2x128xf32>
    %889 = vector.shape_cast %886 : vector<2x128xf32> to vector<1x2x128xf32>
    tpu.vector_store %arg14[%c5_388, %c0_389, %c0_390], %889 {strides = array<i32>} : memref<6x2x128xf32, #tpu.memory_space<vmem>>, vector<1x2x128xf32>,
    return
  }
  func.func @transform_0(%arg0: i32, %arg1: memref<6xi32, #tpu.memory_space<smem>>) -> (i32, i32, i32) {
    %c0_i32 = arith.constant 0 : i32
    %c0_i32_0 = arith.constant 0 : i32
    %c0_i32_1 = arith.constant 0 : i32
    %c0_i32_2 = arith.constant 0 : i32
    return %c0_i32, %c0_i32_0, %c0_i32_1 : i32, i32, i32
  }
  func.func @transform_1(%arg0: i32, %arg1: memref<6xi32, #tpu.memory_space<smem>>) -> (i32, i32, i32) {
    %c0_i32 = arith.constant 0 : i32
    %c0_i32_0 = arith.constant 0 : i32
    %c0_i32_1 = arith.constant 0 : i32
    %c0_i32_2 = arith.constant 0 : i32
    return %c0_i32, %c0_i32_0, %c0_i32_1 : i32, i32, i32
  }
  func.func @transform_2(%arg0: i32, %arg1: memref<6xi32, #tpu.memory_space<smem>>) -> (i32, i32, i32) {
    %c0_i32 = arith.constant 0 : i32
    %c0_i32_0 = arith.constant 0 : i32
    %c0_i32_1 = arith.constant 0 : i32
    %c0_i32_2 = arith.constant 0 : i32
    return %c0_i32, %c0_i32_0, %c0_i32_1 : i32, i32, i32
  }
  func.func @transform_3(%arg0: i32, %arg1: memref<6xi32, #tpu.memory_space<smem>>) -> (i32, i32) {
    %c0_i32 = arith.constant 0 : i32
    %c0_i32_0 = arith.constant 0 : i32
    %c0_i32_1 = arith.constant 0 : i32
    return %c0_i32, %c0_i32_0 : i32, i32
  }
  func.func @transform_4(%arg0: i32, %arg1: memref<6xi32, #tpu.memory_space<smem>>) -> (i32, i32) {
    %c0_i32 = arith.constant 0 : i32
    %c0_i32_0 = arith.constant 0 : i32
    %c0_i32_1 = arith.constant 0 : i32
    return %c0_i32, %c0_i32_0 : i32, i32
  }
  func.func @transform_5(%arg0: i32, %arg1: memref<6xi32, #tpu.memory_space<smem>>) -> (i32, i32) {
    %c0_i32 = arith.constant 0 : i32
    %c0_i32_0 = arith.constant 0 : i32
    %c0_i32_1 = arith.constant 0 : i32
    return %c0_i32, %c0_i32_0 : i32, i32
  }
  func.func @transform_6(%arg0: i32, %arg1: memref<6xi32, #tpu.memory_space<smem>>) -> (i32, i32, i32) {
    %c0_i32 = arith.constant 0 : i32
    %c0_i32_0 = arith.constant 0 : i32
    %c0_i32_1 = arith.constant 0 : i32
    %c0_i32_2 = arith.constant 0 : i32
    return %c0_i32, %c0_i32_0, %c0_i32_1 : i32, i32, i32
  }
  func.func @transform_7(%arg0: i32, %arg1: memref<6xi32, #tpu.memory_space<smem>>) -> (i32, i32, i32) {
    %c0_i32 = arith.constant 0 : i32
    %c0_i32_0 = arith.constant 0 : i32
    %c0_i32_1 = arith.constant 0 : i32
    %c0_i32_2 = arith.constant 0 : i32
    return %c0_i32, %c0_i32_0, %c0_i32_1 : i32, i32, i32
  }
  func.func @transform_8(%arg0: i32, %arg1: memref<6xi32, #tpu.memory_space<smem>>) -> (i32, i32, i32) {
    %c0_i32 = arith.constant 0 : i32
    %c0_i32_0 = arith.constant 0 : i32
    %c0_i32_1 = arith.constant 0 : i32
    %c0_i32_2 = arith.constant 0 : i32
    return %c0_i32, %c0_i32_0, %c0_i32_1 : i32, i32, i32
  }
  func.func @transform_9(%arg0: i32, %arg1: memref<6xi32, #tpu.memory_space<smem>>) -> (i32, i32, i32) {
    %c0_i32 = arith.constant 0 : i32
    %c0_i32_0 = arith.constant 0 : i32
    %c0_i32_1 = arith.constant 0 : i32
    %c0_i32_2 = arith.constant 0 : i32
    return %c0_i32, %c0_i32_0, %c0_i32_1 : i32, i32, i32
  }
  func.func @transform_10(%arg0: i32, %arg1: memref<6xi32, #tpu.memory_space<smem>>) -> (i32, i32) {
    %c0_i32 = arith.constant 0 : i32
    %c0_i32_0 = arith.constant 0 : i32
    %c0_i32_1 = arith.constant 0 : i32
    return %c0_i32, %c0_i32_0 : i32, i32
  }
  func.func @transform_11(%arg0: i32, %arg1: memref<6xi32, #tpu.memory_space<smem>>) -> (i32, i32) {
    %c0_i32 = arith.constant 0 : i32
    %c0_i32_0 = arith.constant 0 : i32
    %c0_i32_1 = arith.constant 0 : i32
    return %c0_i32, %c0_i32_0 : i32, i32
  }
  func.func @transform_12(%arg0: i32, %arg1: memref<6xi32, #tpu.memory_space<smem>>) -> (i32, i32, i32) {
    %c0_i32 = arith.constant 0 : i32
    %c0_i32_0 = arith.constant 0 : i32
    %c0_i32_1 = arith.constant 0 : i32
    %c0_i32_2 = arith.constant 0 : i32
    return %c0_i32, %c0_i32_0, %c0_i32_1 : i32, i32, i32
  }
}

</mosaic_0001>

<bundles_post_ra>
// kernel: _decode_core.1
= control target key start
LH: loop header
LB: loop body
LE: loop exit
PB: predicated region body
PF: predicated region fallthrough
CT: control target
= control target key end

     0   :  { %s11816_s28 = smov [#allocation3]   ;;  %s12825_s0 = inlined_call_operand.vmem [shape: s32[6], index: 0, kind: input, shape index: {}]   ;;  %s12826_s1 = inlined_call_operand.vmem [shape: s32[6,2,1], index: 1, kind: input, shape index: {}]   ;;  %s12827_s2 = inlined_call_operand.vmem [shape: f32[2,2,128], index: 2, kind: input, shape index: {}]   ;;  %s12828_s3 = inlined_call_operand.vmem [shape: f32[2,10,128], index: 3, kind: input, shape index: {}]   ;;  %s12829_s4 = inlined_call_operand.vmem [shape: f32[2,10], index: 4, kind: input, shape index: {}]   ;;  %s12830_s5 = inlined_call_operand.vmem [shape: f32[2,128], index: 5, kind: input, shape index: {}]   ;;  %s12831_s6 = inlined_call_operand.hbm [shape: bf16[128,384], index: 6, kind: input, shape index: {}]   ;;  %s12832_s7 = inlined_call_operand.hbm [shape: bf16[2,128,384], index: 7, kind: input, shape index: {}]   ;;  %s12833_s8 = inlined_call_operand.hbm [shape: bf16[2,128,384], index: 8, kind: input, shape index: {}]   ;;  %s12834_s9 = inlined_call_operand.vmem [shape: f32[2,1,384], index: 9, kind: input, shape index: {}]   ;;  %s12835_s10 = inlined_call_operand.vmem [shape: f32[2,1,384], index: 10, kind: input, shape index: {}]   ;;  %s12836_s11 = inlined_call_operand.vmem [shape: bf16[128,128], index: 11, kind: input, shape index: {}]   ;;  %s12837_s12 = inlined_call_operand.vmem [shape: f32[1,128], index: 12, kind: input, shape index: {}]   ;;  %s12838_s13 = inlined_call_operand.hbm [shape: f32[6,2,128], index: 13, kind: output, shape index: {}]  }
   0x1   :  { %s19_s27 = sshll.u32 %s12825_s0, 4  ;;  %s20_s27 = int_to_ptr.vmem [resolvable:$true] %s19_s27 }
   0x2   :  { %22 = dma.vmem_to_smem %s20_s27, 16, %s11816_s28, [#allocation2] }
   0x3   :  { %11808 = dma.done.wait [#allocation2], 16 }
   0x4   :  { %11809 = vsyncadd [#allocation2], 4294967280 }
   0x5   :  { %25 = sfence }
   0x6   :  { %26 = vsyncpa [#allocation5], 0 }
   0x7   :  { %27 = vsyncpa [#allocation8], 0 }
   0x8   :  { %28 = vsyncpa [#allocation6], 0  ;;  %s56_s14 = sshll.u32 %s12832_s7, 4  ;;  %s11817_s15 = smov [#allocation7]   ;;  %s57_s14 = int_to_ptr.hbm [resolvable:$true] %s56_s14 }
   0x9   :  { %s58_s16 = sshll.u32 %s11817_s15, 4  ;;  %s43_s0 = sshll.u32 %s12831_s6, 4  ;;  %s59_s16 = int_to_ptr.vmem [resolvable:$true] %s58_s16  ;;  %s44_s0 = int_to_ptr.hbm [resolvable:$true] %s43_s0 }
   0xa   :  { %s11818_s19 = smov 192   ;;  %s11819_s20 = smov 12  }
   0xb   :  { %64 = dma.hbm_to_vmem [thread:$0]  %s57_s14, 6144, %s59_s16, [#allocation8], %s11818_s19, %s11818_s19, %s11819_s20  }
   0xc   :  { %s11820_s21 = smov [#allocation4]   ;;  %s69_s25 = sshll.u32 %s12833_s8, 4  ;;  %s70_s25 = int_to_ptr.hbm [resolvable:$true] %s69_s25 }
   0xd   :  { %s45_s22 = sshll.u32 %s11820_s21, 4  ;;  %s11821_s7 = smov [#allocation9]   ;;  %s46_s22 = int_to_ptr.vmem [resolvable:$true] %s45_s22 }
   0xe   :  { %51 = dma.hbm_to_vmem [thread:$0]  %s44_s0, 3072, %s46_s22, [#allocation5], %s11818_s19, %s11818_s19, %s11819_s20  }
   0xf   :  { %s71_s26 = sshll.u32 %s11821_s7, 4  ;;  %s72_s26 = int_to_ptr.vmem [resolvable:$true] %s71_s26 }
  0x10   :  { %77 = dma.hbm_to_vmem [thread:$0]  %s70_s25, 6144, %s72_s26, [#allocation8], %s11818_s19, %s11818_s19, %s11819_s20  }
  0x11   :  { %11810 = dma.done.wait [#allocation5], 3072  }
  0x12   :  { %11811 = vsyncadd [#allocation5], 4294964224 }
  0x13   :  { %11812 = dma.done.wait [#allocation8], 12288  }
  0x14   :  { %11813 = vsyncadd [#allocation8], 4294955008  ;;  %v11822_v0 = vmov 0   ;;  %v111_v1 = vld [vmem:[%s12826_s1] sm:$0x3]  ;;  %vm1285_vm2 = vcmask 1041408  }
  0x15   :  { %11561 = vset.pattern.permute.xlu0 %v11822_v0  ;;  %v7757_v2 = vld [vmem:[#allocation4 + $0xa8] sm:$0xf]  ;;  %v10803_v3 = vld [vmem:[#allocation4 + $0xb0] sm:$0xf0]  ;;  %v7745_v5 = vld [vmem:[#allocation4 + $0x90] sm:$0xf] }
  0x16   :  { %113 = vperm.xlu0 %11561, %v111_v1   ;;  %v7758_v4 = vor.u32 %v10803_v3, %v7757_v2  ;;  %v10800_v6 = vld [vmem:[#allocation4 + $0x98] sm:$0xf0]  ;;  %v7859_v7 = vld [vmem:[#allocation7 + $0xa8] sm:$0xf]  ;;  %v10827_v8 = vld [vmem:[#allocation7 + $0xb0] sm:$0xf0] }
  0x17   :  { %v7746_v9 = vor.u32 %v10800_v6, %v7745_v5  ;;  %v7733_v10 = vld [vmem:[#allocation4 + $0x78] sm:$0xf]  ;;  %v10797_v11 = vld [vmem:[#allocation4 + $0x80] sm:$0xf0]  ;;  %v7860_v12 = vor.u32 %v10827_v8, %v7859_v7  ;;  %v10802_v13 = vld [vmem:[#allocation4 + $0xac] sm:$0xf] }
  0x18   :  { %279 = vmatpush.bf16.msra.mxu0 %v7758_v4  ;;  %v7759_v14 = vld [vmem:[#allocation4 + $0xb4] sm:$0xf0]  ;;  %v7765_v15 = vld [vmem:[#allocation4 + $0xb0] sm:$0xf]  ;;  %v10804_v16 = vld [vmem:[#allocation4 + $0xb8] sm:$0xf0]  ;;  %v7734_v24 = vor.u32 %v10797_v11, %v7733_v10 }
  0x19   :  { %487 = vmatpush.bf16.msra.mxu3 %v7860_v12  ;;  %v7762_v17 = vor.u32 %v10802_v13, %v7759_v14  ;;  %v7766_v18 = vor.u32 %v10804_v16, %v7765_v15  ;;  %v7847_v19 = vld [vmem:[#allocation7 + $0x90] sm:$0xf]  ;;  %v10824_v20 = vld [vmem:[#allocation7 + $0x98] sm:$0xf0]  ;;  %v10799_v22 = vld [vmem:[#allocation4 + $0x94] sm:$0xf] }
  0x1a   :  { %v7848_v21 = vor.u32 %v10824_v20, %v7847_v19  ;;  %v7747_v23 = vld [vmem:[#allocation4 + $0x9c] sm:$0xf0]  ;;  %v7753_v26 = vld [vmem:[#allocation4 + $0x98] sm:$0xf]  ;;  %v10801_v27 = vld [vmem:[#allocation4 + $0xa0] sm:$0xf0] }
  0x1b   :  { %292 = vmatpush.bf16.msra.mxu1 %v7762_v17  ;;  %v7750_v25 = vor.u32 %v10799_v22, %v7747_v23  ;;  %v7835_v28 = vld [vmem:[#allocation7 + $0x78] sm:$0xf]  ;;  %v7721_v29 = vld [vmem:[#allocation4 + $0x60] sm:$0xf]  ;;  %v10794_v30 = vld [vmem:[#allocation4 + $0x68] sm:$0xf0]  ;;  %305 = vmatpush.bf16.msra.mxu2 %v7766_v18  ;;  %v7754_v31 = vor.u32 %v10801_v27, %v7753_v26 }
  0x1c   :  { %280 = vmatpush.bf16.msra.mxu0 %v7746_v9  ;;  %v10821_v32 = vld [vmem:[#allocation7 + $0x80] sm:$0xf0]  ;;  %v10796_v34 = vld [vmem:[#allocation4 + $0x7c] sm:$0xf]  ;;  %v7735_v35 = vld [vmem:[#allocation4 + $0x84] sm:$0xf0]  ;;  %v7722_v40 = vor.u32 %v10794_v30, %v7721_v29 }
  0x1d   :  { %488 = vmatpush.bf16.msra.mxu3 %v7848_v21  ;;  %v7836_v33 = vor.u32 %v10821_v32, %v7835_v28  ;;  %v7741_v36 = vld [vmem:[#allocation4 + $0x80] sm:$0xf]  ;;  %v10798_v37 = vld [vmem:[#allocation4 + $0x88] sm:$0xf0]  ;;  %v7709_v41 = vld [vmem:[#allocation4 + $0x48] sm:$0xf]  ;;  %v7738_v42 = vor.u32 %v10796_v34, %v7735_v35 }
  0x1e   :  { %v7823_v38 = vld [vmem:[#allocation7 + $0x60] sm:$0xf]  ;;  %v10818_v39 = vld [vmem:[#allocation7 + $0x68] sm:$0xf0]  ;;  %v10791_v43 = vld [vmem:[#allocation4 + $0x50] sm:$0xf0]  ;;  %v7742_v44 = vor.u32 %v10798_v37, %v7741_v36 }
  0x1f   :  { %293 = vmatpush.bf16.msra.mxu1 %v7750_v25  ;;  %306 = vmatpush.bf16.msra.mxu2 %v7754_v31  ;;  %v10793_v45 = vld [vmem:[#allocation4 + $0x64] sm:$0xf]  ;;  %v7723_v46 = vld [vmem:[#allocation4 + $0x6c] sm:$0xf0]  ;;  %v7824_v47 = vor.u32 %v10818_v39, %v7823_v38  ;;  %v7729_v48 = vld [vmem:[#allocation4 + $0x68] sm:$0xf]  ;;  %v7710_v52 = vor.u32 %v10791_v43, %v7709_v41 }
  0x20   :  { %281 = vmatpush.bf16.msra.mxu0 %v7734_v24  ;;  %v10795_v49 = vld [vmem:[#allocation4 + $0x70] sm:$0xf0]  ;;  %v7811_v50 = vld [vmem:[#allocation7 + $0x48] sm:$0xf]  ;;  %v7697_v53 = vld [vmem:[#allocation4 + $0x30] sm:$0xf]  ;;  %v7726_v54 = vor.u32 %v10793_v45, %v7723_v46 }
  0x21   :  { %489 = vmatpush.bf16.msra.mxu3 %v7836_v33  ;;  %v10815_v51 = vld [vmem:[#allocation7 + $0x50] sm:$0xf0]  ;;  %v10788_v55 = vld [vmem:[#allocation4 + $0x38] sm:$0xf0]  ;;  %v7730_v56 = vor.u32 %v10795_v49, %v7729_v48  ;;  %v10790_v57 = vld [vmem:[#allocation4 + $0x4c] sm:$0xf] }
  0x22   :  { %v7711_v58 = vld [vmem:[#allocation4 + $0x54] sm:$0xf0]  ;;  %v7812_v59 = vor.u32 %v10815_v51, %v7811_v50  ;;  %v7717_v60 = vld [vmem:[#allocation4 + $0x50] sm:$0xf]  ;;  %v10792_v61 = vld [vmem:[#allocation4 + $0x58] sm:$0xf0]  ;;  %v7698_v1 = vor.u32 %v10788_v55, %v7697_v53 }
  0x23   :  { %294 = vmatpush.bf16.msra.mxu1 %v7738_v42  ;;  %307 = vmatpush.bf16.msra.mxu2 %v7742_v44  ;;  %v7799_v62 = vld [vmem:[#allocation7 + $0x30] sm:$0xf]  ;;  %v10812_v63 = vld [vmem:[#allocation7 + $0x38] sm:$0xf0]  ;;  %v7685_v2 = vld [vmem:[#allocation4 + $0x18] sm:$0xf]  ;;  %v7714_v3 = vor.u32 %v10790_v57, %v7711_v58  ;;  %v7718_v5 = vor.u32 %v10792_v61, %v7717_v60 }
  0x24   :  { %282 = vmatpush.bf16.msra.mxu0 %v7722_v40  ;;  %v10785_v4 = vld [vmem:[#allocation4 + $0x20] sm:$0xf0]  ;;  %v10787_v6 = vld [vmem:[#allocation4 + $0x34] sm:$0xf]  ;;  %v7699_v7 = vld [vmem:[#allocation4 + $0x3c] sm:$0xf0]  ;;  %v7800_v8 = vor.u32 %v10812_v63, %v7799_v62 }
  0x25   :  { %490 = vmatpush.bf16.msra.mxu3 %v7824_v47  ;;  %v7705_v9 = vld [vmem:[#allocation4 + $0x38] sm:$0xf]  ;;  %v10789_v10 = vld [vmem:[#allocation4 + $0x40] sm:$0xf0]  ;;  %v7686_v13 = vor.u32 %v10785_v4, %v7685_v2  ;;  %v7673_v14 = vld [vmem:[#allocation4] sm:$0xf]  ;;  %v7702_v16 = vor.u32 %v10787_v6, %v7699_v7 }
  0x26   :  { %v7787_v11 = vld [vmem:[#allocation7 + $0x18] sm:$0xf]  ;;  %v10809_v12 = vld [vmem:[#allocation7 + $0x20] sm:$0xf0]  ;;  %v10782_v15 = vld [vmem:[#allocation4 + $0x8] sm:$0xf0]  ;;  %v7706_v18 = vor.u32 %v10789_v10, %v7705_v9 }
  0x27   :  { %295 = vmatpush.bf16.msra.mxu1 %v7726_v54  ;;  %308 = vmatpush.bf16.msra.mxu2 %v7730_v56  ;;  %v10826_v17 = vld [vmem:[#allocation7 + $0xac] sm:$0xf]  ;;  %v10784_v19 = vld [vmem:[#allocation4 + $0x1c] sm:$0xf]  ;;  %v7687_v20 = vld [vmem:[#allocation4 + $0x24] sm:$0xf0]  ;;  %v7788_v22 = vor.u32 %v10809_v12, %v7787_v11  ;;  %v7674_v27 = vor.u32 %v10782_v15, %v7673_v14 }
  0x28   :  { %283 = vmatpush.bf16.msra.mxu0 %v7710_v52  ;;  %v7861_v21 = vld [vmem:[#allocation7 + $0xb4] sm:$0xf0]  ;;  %v7693_v23 = vld [vmem:[#allocation4 + $0x20] sm:$0xf]  ;;  %v10786_v24 = vld [vmem:[#allocation4 + $0x28] sm:$0xf0]  ;;  %v7690_v29 = vor.u32 %v10784_v19, %v7687_v20 }
  0x29   :  { %491 = vmatpush.bf16.msra.mxu3 %v7812_v59  ;;  %v7775_v25 = vld [vmem:[#allocation7] sm:$0xf]  ;;  %v10806_v26 = vld [vmem:[#allocation7 + $0x8] sm:$0xf0]  ;;  %v10823_v28 = vld [vmem:[#allocation7 + $0x94] sm:$0xf]  ;;  %v7864_v32 = vor.u32 %v10826_v17, %v7861_v21  ;;  %v7694_v34 = vor.u32 %v10786_v24, %v7693_v23 }
  0x2a   :  { %v10850_v30 = vld [vmem:[#allocation9 + $0xac] sm:$0xf]  ;;  %v7957_v31 = vld [vmem:[#allocation9 + $0xb4] sm:$0xf0]  ;;  %v7849_v33 = vld [vmem:[#allocation7 + $0x9c] sm:$0xf0]  ;;  %v7776_v37 = vor.u32 %v10806_v26, %v7775_v25 }
  0x2b   :  { %296 = vmatpush.bf16.msra.mxu1 %v7714_v3  ;;  %309 = vmatpush.bf16.msra.mxu2 %v7718_v5  ;;  %v10781_v35 = vld [vmem:[#allocation4 + $0x4] sm:$0xf]  ;;  %v7675_v36 = vld [vmem:[#allocation4 + $0xc] sm:$0xf0]  ;;  %v7681_v38 = vld [vmem:[#allocation4 + $0x8] sm:$0xf]  ;;  %v7960_v41 = vor.u32 %v10850_v30, %v7957_v31  ;;  %v7852_v48 = vor.u32 %v10823_v28, %v7849_v33 }
  0x2c   :  { %284 = vmatpush.bf16.msra.mxu0 %v7698_v1  ;;  %v10783_v39 = vld [vmem:[#allocation4 + $0x10] sm:$0xf0]  ;;  %v7867_v40 = vld [vmem:[#allocation7 + $0xb0] sm:$0xf]  ;;  %v10828_v42 = vld [vmem:[#allocation7 + $0xb8] sm:$0xf0]  ;;  %v7678_v45 = vor.u32 %v10781_v35, %v7675_v36 }
  0x2d   :  { %492 = vmatpush.bf16.msra.mxu3 %v7800_v8  ;;  %v7955_v43 = vld [vmem:[#allocation9 + $0xa8] sm:$0xf]  ;;  %v10851_v44 = vld [vmem:[#allocation9 + $0xb0] sm:$0xf0]  ;;  %v7945_v47 = vld [vmem:[#allocation9 + $0x9c] sm:$0xf0]  ;;  %v7682_v49 = vor.u32 %v10783_v39, %v7681_v38  ;;  %v7868_v53 = vor.u32 %v10828_v42, %v7867_v40 }
  0x2e   :  { %v10847_v46 = vld [vmem:[#allocation9 + $0x94] sm:$0xf]  ;;  %v110_v50 = vld [vmem:[%s12830_s5] sm:$0x3]  ;;  %v10820_v51 = vld [vmem:[#allocation7 + $0x7c] sm:$0xf]  ;;  %v7956_v54 = vor.u32 %v10851_v44, %v7955_v43 }
  0x2f   :  { %297 = vmatpush.bf16.msra.mxu1 %v7702_v16  ;;  %310 = vmatpush.bf16.msra.mxu2 %v7706_v18  ;;  %v7837_v52 = vld [vmem:[#allocation7 + $0x84] sm:$0xf0]  ;;  %v7855_v55 = vld [vmem:[#allocation7 + $0x98] sm:$0xf]  ;;  %v7948_v56 = vor.u32 %v10847_v46, %v7945_v47  ;;  %v10825_v57 = vld [vmem:[#allocation7 + $0xa0] sm:$0xf0]  ;;  %v11917_v62 = vpack.c.bf16 %v110_v50, %v110_v50 }
  0x30   :  { %285 = vmatpush.bf16.msra.mxu0 %v7686_v13  ;;  %v7943_v58 = vld [vmem:[#allocation9 + $0x90] sm:$0xf]  ;;  %v10848_v59 = vld [vmem:[#allocation9 + $0x98] sm:$0xf0]  ;;  %v7933_v61 = vld [vmem:[#allocation9 + $0x84] sm:$0xf0]  ;;  %v7840_v63 = vor.u32 %v10820_v51, %v7837_v52  ;;  %v7856_v3 = vor.u32 %v10825_v57, %v7855_v55 }
  0x31   :  { %493 = vmatpush.bf16.msra.mxu3 %v7788_v22  ;;  %v10844_v60 = vld [vmem:[#allocation9 + $0x7c] sm:$0xf]  ;;  %v10817_v1 = vld [vmem:[#allocation7 + $0x64] sm:$0xf]  ;;  %v7825_v2 = vld [vmem:[#allocation7 + $0x6c] sm:$0xf0]  ;;  %v7944_v4 = vor.u32 %v10848_v59, %v7943_v58 }
  0x32   :  { %v7843_v5 = vld [vmem:[#allocation7 + $0x80] sm:$0xf]  ;;  %v7936_v6 = vor.u32 %v10844_v60, %v7933_v61  ;;  %v10822_v7 = vld [vmem:[#allocation7 + $0x88] sm:$0xf0]  ;;  %v7931_v8 = vld [vmem:[#allocation9 + $0x78] sm:$0xf]  ;;  %v7828_v12 = vor.u32 %v10817_v1, %v7825_v2 }
  0x33   :  { %298 = vmatpush.bf16.msra.mxu1 %v7690_v29  ;;  %311 = vmatpush.bf16.msra.mxu2 %v7694_v34  ;;  %v10845_v9 = vld [vmem:[#allocation9 + $0x80] sm:$0xf0]  ;;  %v7921_v11 = vld [vmem:[#allocation9 + $0x6c] sm:$0xf0]  ;;  %v10814_v13 = vld [vmem:[#allocation7 + $0x4c] sm:$0xf]  ;;  %v7844_v15 = vor.u32 %v10822_v7, %v7843_v5 }
  0x34   :  { %286 = vmatpush.bf16.msra.mxu0 %v7674_v27  ;;  %v10841_v10 = vld [vmem:[#allocation9 + $0x64] sm:$0xf]  ;;  %v7813_v14 = vld [vmem:[#allocation7 + $0x54] sm:$0xf0]  ;;  %v7932_v16 = vor.u32 %v10845_v9, %v7931_v8  ;;  %v7831_v17 = vld [vmem:[#allocation7 + $0x68] sm:$0xf] }
  0x35   :  { %494 = vmatpush.bf16.msra.mxu3 %v7776_v37  ;;  %v7924_v18 = vor.u32 %v10841_v10, %v7921_v11  ;;  %v10819_v19 = vld [vmem:[#allocation7 + $0x70] sm:$0xf0]  ;;  %v7919_v20 = vld [vmem:[#allocation9 + $0x60] sm:$0xf]  ;;  %v10842_v21 = vld [vmem:[#allocation9 + $0x68] sm:$0xf0]  ;;  %v7816_v24 = vor.u32 %v10814_v13, %v7813_v14  ;;  %v104_v10 = vlaneseq }
  0x36   :  { %v10838_v22 = vld [vmem:[#allocation9 + $0x4c] sm:$0xf]  ;;  %v7909_v23 = vld [vmem:[#allocation9 + $0x54] sm:$0xf0]  ;;  %v10811_v25 = vld [vmem:[#allocation7 + $0x34] sm:$0xf]  ;;  %v7832_v27 = vor.u32 %v10819_v19, %v7831_v17  ;;  %v7920_v28 = vor.u32 %v10842_v21, %v7919_v20 }
  0x37   :  { %299 = vmatpush.bf16.msra.mxu1 %v7678_v45  ;;  %312 = vmatpush.bf16.msra.mxu2 %v7682_v49  ;;  %v7801_v26 = vld [vmem:[#allocation7 + $0x3c] sm:$0xf0]  ;;  %v7912_v29 = vor.u32 %v10838_v22, %v7909_v23  ;;  %v10808_v31 = vld [vmem:[#allocation7 + $0x1c] sm:$0xf]  ;;  %v10805_v34 = vld [vmem:[#allocation7 + $0x4] sm:$0xf] }
  0x38   :  { %500 = vmatpush.bf16.msrb.mxu0 %v7864_v32  ;;  %495 = vmatmul.bf16.vlgmr.msra.gmra.mxu3 %v11917_v62  ;;  %v7804_v30 = vor.u32 %v10811_v25, %v7801_v26  ;;  %v7789_v32 = vld [vmem:[#allocation7 + $0x24] sm:$0xf0]  ;;  %v7777_v35 = vld [vmem:[#allocation7 + $0xc] sm:$0xf0]  ;;  %v10816_v38 = vld [vmem:[#allocation7 + $0x58] sm:$0xf0] }
  0x39   :  { %711 = vmatpush.bf16.msrb.mxu3 %v7960_v41  ;;  %v7792_v33 = vor.u32 %v10808_v31, %v7789_v32  ;;  %v7780_v36 = vor.u32 %v10805_v34, %v7777_v35  ;;  %v7819_v37 = vld [vmem:[#allocation7 + $0x50] sm:$0xf]  ;;  %v7907_v40 = vld [vmem:[#allocation9 + $0x48] sm:$0xf]  ;;  %v10839_v41 = vld [vmem:[#allocation9 + $0x50] sm:$0xf0] }
  0x3a   :  { %v7820_v39 = vor.u32 %v10816_v38, %v7819_v37  ;;  %v10835_v42 = vld [vmem:[#allocation9 + $0x34] sm:$0xf]  ;;  %v7908_v43 = vor.u32 %v10839_v41, %v7907_v40  ;;  %v7897_v44 = vld [vmem:[#allocation9 + $0x3c] sm:$0xf0]  ;;  %v7807_v46 = vld [vmem:[#allocation7 + $0x38] sm:$0xf] }
  0x3b   :  { %513 = vmatpush.bf16.msrb.mxu1 %v7868_v53  ;;  %698 = vmatpush.bf16.msrb.mxu2 %v7956_v54  ;;  %v7900_v45 = vor.u32 %v10835_v42, %v7897_v44  ;;  %v10813_v47 = vld [vmem:[#allocation7 + $0x40] sm:$0xf0]  ;;  %v10836_v50 = vld [vmem:[#allocation9 + $0x38] sm:$0xf0]  ;;  %v7885_v52 = vld [vmem:[#allocation9 + $0x24] sm:$0xf0] }
  0x3c   :  { %501 = vmatpush.bf16.msrb.mxu0 %v7852_v48  ;;  %v7895_v48 = vld [vmem:[#allocation9 + $0x30] sm:$0xf]  ;;  %v7808_v49 = vor.u32 %v10813_v47, %v7807_v46  ;;  %v10832_v51 = vld [vmem:[#allocation9 + $0x1c] sm:$0xf]  ;;  %v7795_v55 = vld [vmem:[#allocation7 + $0x20] sm:$0xf] }
  0x3d   :  { %712 = vmatpush.bf16.msrb.mxu3 %v7948_v56  ;;  %v7896_v53 = vor.u32 %v10836_v50, %v7895_v48  ;;  %v7888_v54 = vor.u32 %v10832_v51, %v7885_v52  ;;  %v10810_v56 = vld [vmem:[#allocation7 + $0x28] sm:$0xf0]  ;;  %v7883_v57 = vld [vmem:[#allocation9 + $0x18] sm:$0xf]  ;;  %v10833_v59 = vld [vmem:[#allocation9 + $0x20] sm:$0xf0] }
  0x3e   :  { %v7796_v58 = vor.u32 %v10810_v56, %v7795_v55  ;;  %v10829_v60 = vld [vmem:[#allocation9 + $0x4] sm:$0xf]  ;;  %v7873_v61 = vld [vmem:[#allocation9 + $0xc] sm:$0xf0]  ;;  %v11923_v2 = vld [vmem:[%s12827_s2] sm:$0x3] }
  0x3f   :  { %514 = vmatpush.bf16.msrb.mxu1 %v7856_v3  ;;  %699 = vmatpush.bf16.msrb.mxu2 %v7944_v4  ;;  %v7876_v1 = vor.u32 %v10829_v60, %v7873_v61  ;;  %v7783_v3 = vld [vmem:[#allocation7 + $0x8] sm:$0xf]  ;;  %v10807_v4 = vld [vmem:[#allocation7 + $0x10] sm:$0xf0]  ;;  %v10830_v7 = vld [vmem:[#allocation9 + $0x8] sm:$0xf0]  ;;  %v529_v8 = vpack.c.bf16 %v11923_v2, %v11923_v2 }
  0x40   :  { %502 = vmatpush.bf16.msrb.mxu0 %v7840_v63  ;;  %v7884_v63 = vor.u32 %v10833_v59, %v7883_v57  ;;  %v7784_v5 = vor.u32 %v10807_v4, %v7783_v3  ;;  %v11928_v11 = vand.u32 127, %v104_v10  ;;  %v10852_v13 = vld [vmem:[#allocation9 + $0xb8] sm:$0xf0]  ;;  %v10849_v17 = vld [vmem:[#allocation9 + $0xa0] sm:$0xf0]  ;;  %vm1302_vm3 = vcmask 130112  }
  0x41   :  { %713 = vmatpush.bf16.msrb.mxu3 %v7936_v6  ;;  %v7871_v6 = vld [vmem:[#allocation9] sm:$0xf]  ;;  %v10846_v21 = vld [vmem:[#allocation9 + $0x88] sm:$0xf0]  ;;  %v7927_v23 = vld [vmem:[#allocation9 + $0x68] sm:$0xf] }
  0x42   :  { %v7872_v9 = vor.u32 %v10830_v7, %v7871_v6  ;;  %v7939_v20 = vld [vmem:[#allocation9 + $0x80] sm:$0xf]  ;;  %v7915_v26 = vld [vmem:[#allocation9 + $0x50] sm:$0xf]  ;;  %v7879_v35 = vld [vmem:[#allocation9 + $0x8] sm:$0xf] }
  0x43   :  { %515 = vmatpush.bf16.msrb.mxu1 %v7844_v15  ;;  %700 = vmatpush.bf16.msrb.mxu2 %v7932_v16  ;;  %v7951_v16 = vld [vmem:[#allocation9 + $0x98] sm:$0xf]  ;;  %v7940_v22 = vor.u32 %v10846_v21, %v7939_v20  ;;  %v7891_v32 = vld [vmem:[#allocation9 + $0x20] sm:$0xf]  ;;  %v8052_v40 = vld [vmem:[#allocation7 + $0x168] sm:$0xf] }
  0x44   :  { %503 = vmatpush.bf16.msrb.mxu0 %v7828_v12  ;;  %v7963_v12 = vld [vmem:[#allocation9 + $0xb0] sm:$0xf]  ;;  %v7952_v19 = vor.u32 %v10849_v17, %v7951_v16  ;;  %v10875_v41 = vld [vmem:[#allocation7 + $0x170] sm:$0xf0]  ;;  %v10874_v42 = vld [vmem:[#allocation7 + $0x16c] sm:$0xf] }
  0x45   :  { %714 = vmatpush.bf16.msrb.mxu3 %v7924_v18  ;;  %v7964_v15 = vor.u32 %v10852_v13, %v7963_v12  ;;  %v11823_v18 = vmov 1.0|1.0   ;;  %v10872_v46 = vld [vmem:[#allocation7 + $0x158] sm:$0xf0]  ;;  %v10871_v48 = vld [vmem:[#allocation7 + $0x154] sm:$0xf] }
  0x46   :  { %v8028_v51 = vld [vmem:[#allocation7 + $0x138] sm:$0xf]  ;;  %v10869_v52 = vld [vmem:[#allocation7 + $0x140] sm:$0xf0]  ;;  %v8030_v55 = vld [vmem:[#allocation7 + $0x144] sm:$0xf0] }
  0x47   :  { %516 = vmatpush.bf16.msrb.mxu1 %v7832_v27  ;;  %701 = vmatpush.bf16.msrb.mxu2 %v7920_v28  ;;  %v10840_v27 = vld [vmem:[#allocation9 + $0x58] sm:$0xf0]  ;;  %v10866_v59 = vld [vmem:[#allocation7 + $0x128] sm:$0xf0]  ;;  %v10865_v60 = vld [vmem:[#allocation7 + $0x124] sm:$0xf] }
  0x48   :  { %504 = vmatpush.bf16.msrb.mxu0 %v7816_v24  ;;  %v10843_v24 = vld [vmem:[#allocation9 + $0x70] sm:$0xf0]  ;;  %v7916_v28 = vor.u32 %v10840_v27, %v7915_v26  ;;  %v8060_v6 = vld [vmem:[#allocation7 + $0x170] sm:$0xf]  ;;  %v10876_v7 = vld [vmem:[#allocation7 + $0x178] sm:$0xf0] }
  0x49   :  { %715 = vmatpush.bf16.msrb.mxu3 %v7912_v29  ;;  %v7928_v25 = vor.u32 %v10843_v24, %v7927_v23  ;;  %v7903_v29 = vld [vmem:[#allocation9 + $0x38] sm:$0xf]  ;;  %v10899_v3 = vld [vmem:[#allocation9 + $0x170] sm:$0xf0]  ;;  %v10862_v13 = vld [vmem:[#allocation7 + $0x10c] sm:$0xf] }
  0x4a   :  { %v10863_v12 = vld [vmem:[#allocation7 + $0x110] sm:$0xf0]  ;;  %v8137_v16 = vld [vmem:[#allocation9 + $0x150] sm:$0xf]  ;;  %v10896_v17 = vld [vmem:[#allocation9 + $0x158] sm:$0xf0] }
  0x4b   :  { %517 = vmatpush.bf16.msrb.mxu1 %v7820_v39  ;;  %702 = vmatpush.bf16.msrb.mxu2 %v7908_v43  ;;  %v8054_v43 = vld [vmem:[#allocation7 + $0x174] sm:$0xf0]  ;;  %v10873_v21 = vld [vmem:[#allocation7 + $0x160] sm:$0xf0]  ;;  %v7992_v24 = vld [vmem:[#allocation7 + $0xf0] sm:$0xf] }
  0x4c   :  { %505 = vmatpush.bf16.msrb.mxu0 %v7804_v30  ;;  %v10837_v30 = vld [vmem:[#allocation9 + $0x40] sm:$0xf0]  ;;  %v8057_v44 = vor.u32 %v10874_v42, %v8054_v43  ;;  %v8048_v20 = vld [vmem:[#allocation7 + $0x158] sm:$0xf]  ;;  %v10859_v26 = vld [vmem:[#allocation7 + $0xf4] sm:$0xf] }
  0x4d   :  { %716 = vmatpush.bf16.msrb.mxu3 %v7900_v45  ;;  %v7904_v31 = vor.u32 %v10837_v30, %v7903_v29  ;;  %v8040_v45 = vld [vmem:[#allocation7 + $0x150] sm:$0xf]  ;;  %v8049_v23 = vor.u32 %v10873_v21, %v8048_v20  ;;  %v7994_v30 = vld [vmem:[#allocation7 + $0xfc] sm:$0xf0]  ;;  %v7982_v43 = vld [vmem:[#allocation7 + $0xe4] sm:$0xf0] }
  0x4e   :  { %v8041_v47 = vor.u32 %v10872_v46, %v8040_v45  ;;  %v11944_v42 = vld [vmem:[%s12834_s9] sm:$0x7]  ;;  %v10890_v46 = vld [vmem:[#allocation9 + $0x128] sm:$0xf0]  ;;  %v10861_v20 = vld [vmem:[#allocation7 + $0x100] sm:$0xf0] }
  0x4f   :  { %518 = vmatpush.bf16.msrb.mxu1 %v7808_v49  ;;  %703 = vmatpush.bf16.msrb.mxu2 %v7896_v53  ;;  %v8042_v49 = vld [vmem:[#allocation7 + $0x15c] sm:$0xf0]  ;;  %v10868_v53 = vld [vmem:[#allocation7 + $0x13c] sm:$0xf]  ;;  %v10895_v21 = vld [vmem:[#allocation9 + $0x154] sm:$0xf] }
  0x50   :  { %506 = vmatpush.bf16.msrb.mxu0 %v7792_v33  ;;  %v10834_v33 = vld [vmem:[#allocation9 + $0x28] sm:$0xf0]  ;;  %v8045_v50 = vor.u32 %v10871_v48, %v8042_v49  ;;  %v8033_v57 = vor.u32 %v10868_v53, %v8030_v55  ;;  %v10867_v48 = vld [vmem:[#allocation7 + $0x130] sm:$0xf0]  ;;  %v354_v49 = vperm.slane %v11944_v42, 1  ;;  %vm1307_vm4 = vcmask 1041409  }
  0x51   :  { %717 = vmatpush.bf16.msrb.mxu3 %v7888_v54  ;;  %v7892_v34 = vor.u32 %v10834_v33, %v7891_v32  ;;  %v8029_v54 = vor.u32 %v10869_v52, %v8028_v51  ;;  %v10893_v32 = vld [vmem:[#allocation9 + $0x140] sm:$0xf0]  ;;  %v7997_v33 = vor.u32 %v10859_v26, %v7994_v30  ;;  %v7968_v53 = vld [vmem:[#allocation7 + $0xc0] sm:$0xf]  ;;  %v353_v30 = vperm.slane %v11944_v42, 0  ;;  %s12101_s26 = sld [smem:[#allocation3 + $0x1]] }
  0x52   :  { %v10853_v55 = vld [vmem:[#allocation7 + $0xc4] sm:$0xf]  ;;  %vm1311_vm6 = vcmask 74752   ;;  %s12272_s20 = sld [smem:[#allocation3 + $0x2]]  ;;  %s11826_s24 = smov 32  }
  0x53   :  { %519 = vmatpush.bf16.msrb.mxu1 %v7796_v58  ;;  %704 = vmatpush.bf16.msrb.mxu2 %v7884_v63  ;;  %v8016_v58 = vld [vmem:[#allocation7 + $0x120] sm:$0xf]  ;;  %v8018_v63 = vld [vmem:[#allocation7 + $0x12c] sm:$0xf0]  ;;  %s12424_s14 = sld [smem:[#allocation3 + $0x3]]  ;;  %s11827_s25 = smov 2  }
  0x54   :  { %507 = vmatpush.bf16.msrb.mxu0 %v7780_v36  ;;  %v10831_v36 = vld [vmem:[#allocation9 + $0x10] sm:$0xf0]  ;;  %v8017_v61 = vor.u32 %v10866_v59, %v8016_v58  ;;  %v8021_v4 = vor.u32 %v10865_v60, %v8018_v63  ;;  %v7970_v60 = vld [vmem:[#allocation7 + $0xcc] sm:$0xf0] }
  0x55   :  { %718 = vmatpush.bf16.msrb.mxu3 %v7876_v1  ;;  %v7880_v37 = vor.u32 %v10831_v36, %v7879_v35  ;;  %v8149_v1 = vld [vmem:[#allocation9 + $0x168] sm:$0xf]  ;;  %v8036_v35 = vld [vmem:[#allocation7 + $0x140] sm:$0xf]  ;;  %v10870_v36 = vld [vmem:[#allocation7 + $0x148] sm:$0xf0] }
  0x56   :  { %v10887_v63 = vld [vmem:[#allocation9 + $0x110] sm:$0xf0] }
  0x57   :  { %520 = vmatpush.bf16.msrb.mxu1 %v7784_v5  ;;  %705 = vmatpush.bf16.msrb.mxu2 %v7872_v9  ;;  %v8150_v5 = vor.u32 %v10899_v3, %v8149_v1  ;;  %v8004_v9 = vld [vmem:[#allocation7 + $0x108] sm:$0xf]  ;;  %v7973_v1 = vor.u32 %v10853_v55, %v7970_v60  ;;  %p1389_p0 = scmp.gt.s32.totalorder %s12101_s26, 0  ;;  %s12576_s26 = sld [smem:[#allocation3 + $0x4]] }
  0x58   :  { %719 = vmatmul.bf16.vlgmr.msrb.gmra.mxu3 %v529_v8  ;;  %p2663_p1 = scmp.gt.s32.totalorder %s12272_s20, 0 }
  0x59   :  { %s12108_s6 = scalar_select %p1389_p0, 1, 0 }
  0x5a   :  { %s2664_s21 = scalar_select %p2663_p1, 1, 0 }
  0x5b   :  { %s1391_s27 = scvt.s32.f32 %s12108_s6  ;;  %p3937_p2 = scmp.gt.s32.totalorder %s12424_s14, 0 }
  0x5c   :  { %s2665_s22 = scvt.s32.f32 %s2664_s21 }
  0x5d   :  { %s1394_s8 = ssub.f32 1.0, %s1391_s27  ;;  %p5211_p3 = scmp.gt.s32.totalorder %s12576_s26, 0 }
  0x5e   :  { %s2668_s23 = ssub.f32 1.0, %s2665_s22 }
  0x5f   :  { %s3938_s15 = scalar_select %p3937_p2, 1, 0 }
  0x60   :  { %s5212_s6 = scalar_select %p5211_p3, 1, 0 }
  0x61   :  { %s3939_s16 = scvt.s32.f32 %s3938_s15 }
  0x63   :  { %s3942_s17 = ssub.f32 1.0, %s3939_s16 }
  0x88   :  { %v114_v14 = vpop.permute.xlu0 %113 }
  0x89   :  { %vm115_vm0 = vcmp.eq.s32.totalorder %v11928_v11, %v114_v14  ;;  %v8005_v14 = vor.u32 %v10863_v12, %v8004_v9  ;;  %v8157_v9 = vld [vmem:[#allocation9 + $0x170] sm:$0xf]  ;;  %v10900_v12 = vld [vmem:[#allocation9 + $0x178] sm:$0xf0] }
  0x8a   :  { %vm7767_vm1 = vmpackc.low %vm115_vm0, %vm115_vm0 }
  0x8b   :  { %7768 = vmatmul.msk.bf16.vlgmr.msra.gmra.mxu0 %vm7767_vm1, %v11823_v18  ;;  %7770 = vmatmul.msk.bf16.vlgmr.msra.gmra.mxu1 %vm7767_vm1, %v11823_v18 }
  0x8c   :  { %7772 = vmatmul.msk.bf16.vlgmr.msra.gmra.mxu2 %vm7767_vm1, %v11823_v18  ;;  %724 = vmatpush.bf16.msra.mxu0 %v7964_v15  ;;  %v8006_v15 = vld [vmem:[#allocation7 + $0x114] sm:$0xf0] }
  0x8d   :  { %938 = vmatpush.bf16.msra.mxu2 %v8057_v44  ;;  %v8009_v18 = vor.u32 %v10862_v13, %v8006_v15  ;;  %v8113_v44 = vld [vmem:[#allocation9 + $0x120] sm:$0xf]  ;;  %v8158_v15 = vor.u32 %v10900_v12, %v8157_v9 }
  0x8e   :  { %v11952_v13 = vld [vmem:[%s12835_s10] sm:$0x7] }
  0x90   :  { %725 = vmatpush.bf16.msra.mxu0 %v7952_v19  ;;  %v8138_v19 = vor.u32 %v10896_v17, %v8137_v16  ;;  %v8089_v16 = vld [vmem:[#allocation9 + $0xf0] sm:$0xf]  ;;  %v10884_v17 = vld [vmem:[#allocation9 + $0xf8] sm:$0xf0] }
  0x91   :  { %939 = vmatpush.bf16.msra.mxu2 %v8045_v50  ;;  %v8114_v50 = vor.u32 %v10890_v46, %v8113_v44  ;;  %v8127_v44 = vld [vmem:[#allocation9 + $0x144] sm:$0xf0]  ;;  %v10894_v46 = vld [vmem:[#allocation9 + $0x148] sm:$0xf0] }
  0x94   :  { %726 = vmatpush.bf16.msra.mxu0 %v7940_v22 }
  0x95   :  { %940 = vmatpush.bf16.msra.mxu2 %v8033_v57 }
  0x98   :  { %727 = vmatpush.bf16.msra.mxu0 %v7928_v25  ;;  %v10860_v25 = vld [vmem:[#allocation7 + $0xf8] sm:$0xf0] }
  0x99   :  { %941 = vmatpush.bf16.msra.mxu2 %v8021_v4  ;;  %v7993_v29 = vor.u32 %v10860_v25, %v7992_v24  ;;  %v8012_v4 = vld [vmem:[#allocation7 + $0x110] sm:$0xf]  ;;  %v8145_v24 = vld [vmem:[#allocation9 + $0x158] sm:$0xf]  ;;  %v10897_v25 = vld [vmem:[#allocation9 + $0x160] sm:$0xf0] }
  0x9b   :  { %508 = vmatmul.bf16.vlgmr.msrb.gmra.mxu0 %v11917_v62  ;;  %521 = vmatmul.bf16.vlgmr.msrb.gmra.mxu1 %v11917_v62  ;;  %v8053_v62 = vor.u32 %v10875_v41, %v8052_v40  ;;  %v10857_v40 = vld [vmem:[#allocation7 + $0xe0] sm:$0xf0]  ;;  %v10856_v41 = vld [vmem:[#allocation7 + $0xdc] sm:$0xf] }
  0x9c   :  { %706 = vmatmul.bf16.vlgmr.msrb.gmra.mxu2 %v529_v8  ;;  %728 = vmatpush.bf16.msra.mxu0 %v7916_v28  ;;  %v7985_v45 = vor.u32 %v10856_v41, %v7982_v43  ;;  %v10892_v41 = vld [vmem:[#allocation9 + $0x13c] sm:$0xf] }
  0x9d   :  { %925 = vmatpush.bf16.msra.mxu1 %v8053_v62  ;;  %942 = vmatpush.bf16.msra.mxu2 %v8009_v18  ;;  %v8090_v18 = vor.u32 %v10884_v17, %v8089_v16  ;;  %v8109_v16 = vld [vmem:[#allocation9 + $0x110] sm:$0xf] }
  0xa0   :  { %729 = vmatpush.bf16.msra.mxu0 %v7904_v31  ;;  %v8125_v31 = vld [vmem:[#allocation9 + $0x138] sm:$0xf] }
  0xa1   :  { %926 = vmatpush.bf16.msra.mxu1 %v8041_v47  ;;  %943 = vmatpush.bf16.msra.mxu2 %v7997_v33  ;;  %v8024_v47 = vld [vmem:[#allocation7 + $0x128] sm:$0xf]  ;;  %v8077_v33 = vld [vmem:[#allocation9 + $0xd8] sm:$0xf] }
  0xa2   :  { %v8025_v51 = vor.u32 %v10867_v48, %v8024_v47  ;;  %v8130_v47 = vor.u32 %v10892_v41, %v8127_v44  ;;  %v8073_v44 = vld [vmem:[#allocation9 + $0xc8] sm:$0xf] }
  0xa4   :  { %730 = vmatpush.bf16.msra.mxu0 %v7892_v34  ;;  %v8126_v34 = vor.u32 %v10893_v32, %v8125_v31  ;;  %v565_v32 = vperm.slane %v11952_v13, 1 }
  0xa5   :  { %927 = vmatpush.bf16.msra.mxu1 %v8029_v54  ;;  %944 = vmatpush.bf16.msra.mxu2 %v7985_v45  ;;  %v10854_v54 = vld [vmem:[#allocation7 + $0xc8] sm:$0xf0]  ;;  %v8133_v45 = vld [vmem:[#allocation9 + $0x140] sm:$0xf] }
  0xa6   :  { %v7969_v59 = vor.u32 %v10854_v54, %v7968_v53  ;;  %v8134_v48 = vor.u32 %v10894_v46, %v8133_v45  ;;  %v10878_v53 = vld [vmem:[#allocation9 + $0xc8] sm:$0xf0]  ;;  %v10879_v45 = vld [vmem:[#allocation9 + $0xd0] sm:$0xf0] }
  0xa8   :  { %731 = vmatpush.bf16.msra.mxu0 %v7880_v37  ;;  %v8037_v37 = vor.u32 %v10870_v36, %v8036_v35 }
  0xa9   :  { %928 = vmatpush.bf16.msra.mxu1 %v8017_v61  ;;  %v8101_v61 = vld [vmem:[#allocation9 + $0x108] sm:$0xf]  ;;  %945 = vmatpush.bf16.msra.mxu2 %v7973_v1 }
  0xaa   :  { %v8102_v3 = vor.u32 %v10887_v63, %v8101_v61  ;;  %v8115_v63 = vld [vmem:[#allocation9 + $0x12c] sm:$0xf0]  ;;  %v8121_v1 = vld [vmem:[#allocation9 + $0x128] sm:$0xf] }
  0xab   :  { %732 = vmatmul.bf16.vlgmr.msra.gmra.mxu0 %v529_v8  ;;  %v8061_v8 = vor.u32 %v10876_v7, %v8060_v6  ;;  %v10898_v6 = vld [vmem:[#allocation9 + $0x16c] sm:$0xf] }
  0xac   :  { %1135 = vmatpush.bf16.msrb.mxu0 %v8150_v5  ;;  %v10864_v5 = vld [vmem:[#allocation7 + $0x118] sm:$0xf0] }
  0xad   :  { %951 = vmatpush.bf16.msra.mxu3 %v8061_v8  ;;  %929 = vmatpush.bf16.msra.mxu1 %v8005_v14  ;;  %v8013_v7 = vor.u32 %v10864_v5, %v8012_v4  ;;  %v8151_v8 = vld [vmem:[#allocation9 + $0x174] sm:$0xf0] }
  0xae   :  { %v8154_v14 = vor.u32 %v10898_v6, %v8151_v8  ;;  %1161 = vmatpush.bf16.msrb.mxu2 %v8158_v15  ;;  %v8103_v15 = vld [vmem:[#allocation9 + $0x114] sm:$0xf0] }
  0xb0   :  { %1136 = vmatpush.bf16.msrb.mxu0 %v8138_v19  ;;  %v8000_v19 = vld [vmem:[#allocation7 + $0xf8] sm:$0xf] }
  0xb1   :  { %952 = vmatpush.bf16.msra.mxu3 %v8049_v23  ;;  %930 = vmatpush.bf16.msra.mxu1 %v7993_v29  ;;  %v8139_v23 = vld [vmem:[#allocation9 + $0x15c] sm:$0xf0]  ;;  %v8146_v29 = vor.u32 %v10897_v25, %v8145_v24  ;;  %v10885_v24 = vld [vmem:[#allocation9 + $0x100] sm:$0xf0] }
  0xb2   :  { %v8142_v26 = vor.u32 %v10895_v21, %v8139_v23  ;;  %v10883_v21 = vld [vmem:[#allocation9 + $0xf4] sm:$0xf] }
  0xb3   :  { %1162 = vmatpush.bf16.msrb.mxu2 %v8146_v29 }
  0xb4   :  { %1137 = vmatpush.bf16.msrb.mxu0 %v8126_v34  ;;  %v10881_v34 = vld [vmem:[#allocation9 + $0xe0] sm:$0xf0] }
  0xb5   :  { %953 = vmatpush.bf16.msra.mxu3 %v8037_v37  ;;  %v8078_v37 = vor.u32 %v10881_v34, %v8077_v33  ;;  %v10882_v33 = vld [vmem:[#allocation9 + $0xe8] sm:$0xf0] }
  0xb7   :  { %1163 = vmatpush.bf16.msrb.mxu2 %v8134_v48 }
  0xb8   :  { %1138 = vmatpush.bf16.msrb.mxu0 %v8114_v50  ;;  %v564_v50 = vperm.slane %v11952_v13, 0 }
  0xb9   :  { %954 = vmatpush.bf16.msra.mxu3 %v8025_v51  ;;  %v8065_v51 = vld [vmem:[#allocation9 + $0xc0] sm:$0xf] }
  0xba   :  { %v8066_v55 = vor.u32 %v10878_v53, %v8065_v51  ;;  %v8074_v51 = vor.u32 %v10879_v45, %v8073_v44 }
  0xbb   :  { %v11933_v38 = vpop.f32.mrf.mxu3 }
  0xbc   :  { %1139 = vmatpush.bf16.msrb.mxu0 %v8102_v3  ;;  %v497_v54 = vadd.f32 %v11933_v38, %v353_v30  ;;  %v10891_v3 = vld [vmem:[#allocation9 + $0x130] sm:$0xf0]  ;;  %v11965_v38 = vld [vmem:[%s12827_s2 + $0x2] sm:$0x3]  ;;  %v10880_v30 = vld [vmem:[#allocation9 + $0xdc] sm:$0xf] }
  0xbd   :  { %955 = vmatpush.bf16.msra.mxu3 %v8013_v7  ;;  %v8122_v5 = vor.u32 %v10891_v3, %v8121_v1  ;;  %v11969_v7 = vpack.c.bf16 %v11965_v38, %v11965_v38 }
  0xbf   :  { %1164 = vmatpush.bf16.msrb.mxu2 %v8122_v5  ;;  %v10907_v5 = vld [vmem:[%s12836_s11 + $0x30] sm:$0xff] }
  0xc0   :  { %1140 = vmatpush.bf16.msrb.mxu0 %v8090_v18 }
  0xc3   :  { %v498_v39 = vpop.f32.mrf.mxu3 }
  0xc4   :  { %v7980_v39 = vld [vmem:[#allocation7 + $0xd8] sm:$0xf]  ;;  %1141 = vmatpush.bf16.msrb.mxu0 %v8078_v37 }
  0xc5   :  { %v7981_v62 = vor.u32 %v10857_v40, %v7980_v39  ;;  %v7988_v39 = vld [vmem:[#allocation7 + $0xe0] sm:$0xf]  ;;  %v10858_v40 = vld [vmem:[#allocation7 + $0xe8] sm:$0xf0] }
  0xc6   :  { %v7989_v43 = vor.u32 %v10858_v40, %v7988_v39  ;;  %v566_v39 = vperm.slane %v11952_v13, 2 }
  0xc7   :  { %931 = vmatpush.bf16.msra.mxu1 %v7981_v62 }
  0xc8   :  { %1142 = vmatpush.bf16.msrb.mxu0 %v8066_v55 }
  0xcb   :  { %932 = vmatpush.bf16.msra.mxu1 %v7969_v59  ;;  %1143 = vmatmul.bf16.vlgmr.msrb.gmra.mxu0 %v11969_v7 }
  0xcf   :  { %1148 = vmatpush.bf16.msrb.mxu1 %v8154_v14  ;;  %v10886_v14 = vld [vmem:[#allocation9 + $0x10c] sm:$0xf] }
  0xd0   :  { %v8106_v18 = vor.u32 %v10886_v14, %v8103_v15  ;;  %v10903_v14 = vld [vmem:[%s12836_s11 + $0x10] sm:$0xff] }
  0xd3   :  { %1149 = vmatpush.bf16.msrb.mxu1 %v8142_v26 }
  0xd7   :  { %1150 = vmatpush.bf16.msrb.mxu1 %v8130_v47 }
  0xdb   :  { %v11935_v56 = vpop.f32.mrf.mxu3 }
  0xdc   :  { %v721_v60 = vadd.f32 %v11935_v56, %v565_v32  ;;  %v8085_v32 = vld [vmem:[#allocation9 + $0xe0] sm:$0xf] }
  0xdd   :  { %v8086_v41 = vor.u32 %v10882_v33, %v8085_v32 }
  0xe3   :  { %v722_v22 = vpop.f32.mrf.mxu3 }
  0xe4   :  { %v8001_v22 = vor.u32 %v10861_v20, %v8000_v19  ;;  %v10888_v19 = vld [vmem:[#allocation9 + $0x118] sm:$0xf0] }
  0xe5   :  { %v8110_v20 = vor.u32 %v10888_v19, %v8109_v16 }
  0xe6   :  { %956 = vmatpush.bf16.msra.mxu3 %v8001_v22  ;;  %v8091_v22 = vld [vmem:[#allocation9 + $0xfc] sm:$0xf0] }
  0xe7   :  { %1165 = vmatpush.bf16.msrb.mxu2 %v8110_v20  ;;  %v8094_v26 = vor.u32 %v10883_v21, %v8091_v22  ;;  %v10901_v22 = vld [vmem:[%s12836_s11] sm:$0xff] }
  0xea   :  { %957 = vmatpush.bf16.msra.mxu3 %v7989_v43  ;;  %v8067_v43 = vld [vmem:[#allocation9 + $0xcc] sm:$0xf0] }
 0x108   :  { %v11937_v27 = vpop.f32.mrf.mxu0  ;;  %v11939_v28 = vpop.f32.mrf.mxu1 }
 0x109   :  { %v526_v56 = vadd.f32 %v497_v54, %v11937_v27  ;;  %v8097_v27 = vld [vmem:[#allocation9 + $0xf8] sm:$0xf] }
 0x10a   :  { %v8098_v29 = vor.u32 %v10885_v24, %v8097_v27 }
 0x10c   :  { %1166 = vmatpush.bf16.msrb.mxu2 %v8098_v29 }
 0x10f   :  { %v11947_v52 = vpop.f32.mrf.mxu2 }
 0x110   :  { %v290_v57 = vpop.f32.mrf.mxu0  ;;  %v303_v58 = vpop.f32.mrf.mxu1  ;;  %1167 = vmatpush.bf16.msrb.mxu2 %v8086_v41 }
 0x111   :  { %v7976_v57 = vld [vmem:[#allocation7 + $0xc8] sm:$0xf]  ;;  %v10855_v58 = vld [vmem:[#allocation7 + $0xd0] sm:$0xf0] }
 0x112   :  { %v7977_v61 = vor.u32 %v10855_v58, %v7976_v57 }
 0x114   :  { %958 = vmatpush.bf16.msra.mxu3 %v7977_v61  ;;  %1168 = vmatpush.bf16.msrb.mxu2 %v8074_v51 }
 0x117   :  { %v316_v31 = vpop.f32.mrf.mxu2 }
 0x118   :  { %v509_v35 = vpop.f32.mrf.mxu0  ;;  %v11956_v36 = vpop.f32.mrf.mxu1  ;;  %v8079_v31 = vld [vmem:[#allocation9 + $0xe4] sm:$0xf0] }
 0x119   :  { %v510_v62 = vadd.f32 %v509_v35, %v354_v49  ;;  %v10889_v49 = vld [vmem:[#allocation9 + $0x124] sm:$0xf]  ;;  %v355_v35 = vperm.slane %v11944_v42, 2  ;;  %v8082_v40 = vor.u32 %v10880_v30, %v8079_v31 }
 0x11a   :  { %v8118_v4 = vor.u32 %v10889_v49, %v8115_v63 }
 0x11b   :  { %v527_v59 = vadd.f32 %v510_v62, %v11939_v28  ;;  %v10877_v62 = vld [vmem:[#allocation9 + $0xc4] sm:$0xf]  ;;  %v523_v47 = vadd.f32 %v11956_v36, %v355_v35 }
 0x11c   :  { %1151 = vmatpush.bf16.msrb.mxu1 %v8118_v4  ;;  %v8070_v42 = vor.u32 %v10877_v62, %v8067_v43 }
 0x11d   :  { %v742_v12 = vadd.f32 %v721_v60, %v527_v59  ;;  %v528_v55 = vadd.f32 %v523_v47, %v11947_v52 }
 0x11f   :  { %v707_v6 = vpop.f32.mrf.mxu2  ;;  %v743_v25 = vmul.f32 0.5, %v742_v12 }
 0x120   :  { %v708_v28 = vadd.f32 %v707_v6, %v564_v50  ;;  %v511_v8 = vpop.f32.mrf.mxu0  ;;  %v524_v9 = vpop.f32.mrf.mxu1  ;;  %1152 = vmatpush.bf16.msrb.mxu1 %v8106_v18  ;;  %v10906_v6 = vld [vmem:[%s12836_s11 + $0x28] sm:$0xff] }
 0x121   :  { %v10904_v8 = vld [vmem:[%s12836_s11 + $0x18] sm:$0xff]  ;;  %v10902_v18 = vld [vmem:[%s12836_s11 + $0x8] sm:$0xff] }
 0x122   :  { %v737_v17 = vadd.f32 %v708_v28, %v526_v56  ;;  %v8062_v56 = vld [vmem:[%s12835_s10 + $0x3] sm:$0x7] }
 0x123   :  { %v7965_v28 = vld [vmem:[%s12834_s9 + $0x3] sm:$0x7]  ;;  %v1001_v9 = vperm.slane %v8062_v56, 0  ;;  %v1003_v35 = vperm.slane %v8062_v56, 2 }
 0x124   :  { %v738_v23 = vmul.f32 0.5, %v737_v17  ;;  %1153 = vmatpush.bf16.msrb.mxu1 %v8094_v26  ;;  %v791_v12 = vperm.slane %v7965_v28, 0  ;;  %v792_v24 = vperm.slane %v7965_v28, 1 }
 0x126   :  { %11587 = vtanh.f32 %v738_v23 }
 0x127   :  { %v709_v34 = vpop.f32.mrf.mxu2  ;;  %11589 = vtanh.f32 %v743_v25  ;;  %v1002_v25 = vperm.slane %v8062_v56, 1 }
 0x128   :  { %v733_v37 = vpop.f32.mrf.mxu0  ;;  %1154 = vmatpush.bf16.msrb.mxu1 %v8082_v40 }
 0x129   :  { %v734_v48 = vadd.f32 %v733_v37, %v566_v39  ;;  %v793_v39 = vperm.slane %v7965_v28, 2  ;;  %v12056_v28 = vadd.s32 4294967288, %v11928_v11 }
 0x12c   :  { %v11588_v46 = vpop.eup %11587  ;;  %1155 = vmatpush.bf16.msrb.mxu1 %v8070_v42 }
 0x12d   :  { %v740_v50 = vadd.f32 1.0, %v11588_v46  ;;  %v11590_v53 = vpop.eup %11589 }
 0x12e   :  { %v745_v58 = vadd.f32 1.0, %v11590_v53 }
 0x12f   :  { %v741_v54 = vmul.f32 0.5, %v740_v50 }
 0x130   :  { %v735_v13 = vpop.f32.mrf.mxu0  ;;  %v746_v59 = vmul.f32 0.5, %v745_v58  ;;  %v12025_v58 = vld [vmem:[%s12828_s3] sm:$0xff] }
 0x131   :  { %v747_v57 = vmul.f32 %v741_v54, %v734_v48 }
 0x132   :  { %v750_v60 = vsub.f32 1.0, %v746_v59  ;;  %v752_v61 = vmul.f32 %v746_v59, %v11923_v2  ;;  %v10908_v2 = vld [vmem:[%s12836_s11 + $0x38] sm:$0xff] }
 0x133   :  { %v748_v49 = vadd.f32 %v747_v57, %v528_v55  ;;  %1259 = vmatpush.bf16.msrb.mxu3 %v10908_v2 }
 0x135   :  { %11591 = vtanh.f32 %v748_v49  ;;  %v12030_v49 = vld [vmem:[%s12828_s3 + $0x8] sm:$0x3] }
 0x137   :  { %1260 = vmatpush.bf16.msrb.mxu3 %v10907_v5 }
 0x13b   :  { %v11592_v36 = vpop.eup %11591  ;;  %1261 = vmatpush.bf16.msrb.mxu3 %v10906_v6  ;;  %v12052_v6 = vld [vmem:[%s12828_s3 + $0x10] sm:$0xff] }
 0x13c   :  { %v751_v63 = vmul.f32 %v11592_v36, %v750_v60  ;;  %v12041_v36 = vld [vmem:[%s12828_s3 + $0x18] sm:$0x3] }
 0x13e   :  { %v11978_v1 = vadd.f32 %v752_v61, %v751_v63 }
 0x140   :  { %v11982_v3 = vpack.c.bf16 %v11978_v1, %v11978_v1 }
 0x142   :  { %933 = vmatmul.bf16.vlgmr.msra.gmra.mxu1 %v11982_v3  ;;  %946 = vmatmul.bf16.vlgmr.msra.gmra.mxu2 %v11982_v3 }
 0x143   :  { %959 = vmatmul.bf16.vlgmr.msra.gmra.mxu3 %v11982_v3 }
 0x148   :  { %v1144_v52 = vpop.f32.mrf.mxu0 }
 0x149   :  { %v1145_v15 = vadd.f32 %v1144_v52, %v1001_v9 }
 0x150   :  { %v1146_v4 = vpop.f32.mrf.mxu0 }
 0x152   :  { %1156 = vmatmul.bf16.vlgmr.msrb.gmra.mxu1 %v11969_v7  ;;  %1169 = vmatmul.bf16.vlgmr.msrb.gmra.mxu2 %v11969_v7  ;;  %v10905_v7 = vld [vmem:[%s12836_s11 + $0x20] sm:$0xff] }
 0x153   :  { %1262 = vmatpush.bf16.msrb.mxu3 %v10905_v7 }
 0x157   :  { %1263 = vmatpush.bf16.msrb.mxu3 %v10904_v8 }
 0x15b   :  { %1264 = vmatpush.bf16.msrb.mxu3 %v10903_v14 }
 0x15f   :  { %1265 = vmatpush.bf16.msrb.mxu3 %v10902_v18 }
 0x163   :  { %1266 = vmatpush.bf16.msrb.mxu3 %v10901_v22 }
 0x1bf   :  { %v934_v16 = vpop.f32.mrf.mxu1 }
 0x1c0   :  { %v935_v17 = vadd.f32 %v934_v16, %v791_v12 }
 0x1c2   :  { %v1174_v19 = vadd.f32 %v1145_v15, %v935_v17  ;;  %v12063_v15 = vld [vmem:[%s12829_s4] sm:$0x3] }
 0x1c3   :  { %vm1294_vm5 = vcmp.eq.f32.partialorder %v12063_v15, 0.0 }
 0x1c4   :  { %v1175_v20 = vmul.f32 0.5, %v1174_v19  ;;  %v11586_v19 = vld [vmem:[%s12837_s12] ss:$0 sm:$0xff] }
 0x1c5   :  { %v947_v21 = vpop.f32.mrf.mxu2 }
 0x1c6   :  { %v960_v27 = vpop.f32.mrf.mxu3  ;;  %11593 = vtanh.f32 %v1175_v20  ;;  %v948_v32 = vadd.f32 %v947_v21, %v792_v24 }
 0x1c7   :  { %v936_v23 = vpop.f32.mrf.mxu1  ;;  %v961_v45 = vadd.f32 %v960_v27, %v793_v39 }
 0x1cc   :  { %v11594_v30 = vpop.eup %11593 }
 0x1cd   :  { %v949_v26 = vpop.f32.mrf.mxu2  ;;  %v1177_v37 = vadd.f32 1.0, %v11594_v30 }
 0x1ce   :  { %v962_v29 = vpop.f32.mrf.mxu3 }
 0x1cf   :  { %v1157_v31 = vpop.f32.mrf.mxu1  ;;  %v1178_v43 = vmul.f32 0.5, %v1177_v37 }
 0x1d0   :  { %v1158_v33 = vadd.f32 %v1157_v31, %v1002_v25 }
 0x1d2   :  { %v1179_v34 = vadd.f32 %v1158_v33, %v948_v32  ;;  %v12079_v33 = vcvt.s32.f32 %v11928_v11 }
 0x1d4   :  { %v1180_v40 = vmul.f32 0.5, %v1179_v34 }
 0x1d5   :  { %v1170_v41 = vpop.f32.mrf.mxu2 }
 0x1d6   :  { %11595 = vtanh.f32 %v1180_v40  ;;  %v1171_v62 = vadd.f32 %v1170_v41, %v1003_v35  ;;  %v12085_v41 = vshrl.u32 %v104_v10, 7 }
 0x1d7   :  { %v1159_v44 = vpop.f32.mrf.mxu1 }
 0x1d8   :  { %v1184_v46 = vmul.f32 %v1178_v43, %v1171_v62  ;;  %v12088_v62 = vadd.s32 8, %v12085_v41  ;;  %v8281_v44 = vld [vmem:[#allocation4 + $0xa8] sm:$0xf] }
 0x1da   :  { %v1185_v47 = vadd.f32 %v1184_v46, %v961_v45  ;;  %11563 = vset.pattern.permute.xlu2 %v12088_v62  ;;  %11562 = vset.pattern.permute.xlu1 %v12088_v62  ;;  %v10931_v45 = vld [vmem:[#allocation4 + $0xb0] sm:$0xf0] }
 0x1db   :  { %11567 = vset.pattern.permute.xlu0 %v12088_v62  ;;  %v8282_v46 = vor.u32 %v10931_v45, %v8281_v44  ;;  %v10954_v45 = vld [vmem:[#allocation7 + $0xac] sm:$0xf] }
 0x1dc   :  { %v11596_v48 = vpop.eup %11595  ;;  %11597 = vtanh.f32 %v1185_v47  ;;  %v8269_v47 = vld [vmem:[#allocation4 + $0x90] sm:$0xf] }
 0x1dd   :  { %v1182_v50 = vadd.f32 1.0, %v11596_v48  ;;  %v1172_v42 = vpop.f32.mrf.mxu2  ;;  %v10928_v48 = vld [vmem:[#allocation4 + $0x98] sm:$0xf0]  ;;  %1559 = vmatpush.bf16.msra.mxu0 %v8282_v46  ;;  %v8379_v46 = vld [vmem:[#allocation7 + $0xb4] sm:$0xf0] }
 0x1de   :  { %v8289_v42 = vld [vmem:[#allocation4 + $0xb0] sm:$0xf] }
 0x1df   :  { %v1183_v51 = vmul.f32 0.5, %v1182_v50 }
 0x1e1   :  { %v1187_v53 = vsub.f32 1.0, %v1183_v51  ;;  %v1189_v13 = vmul.f32 %v11965_v38, %v1183_v51  ;;  %v10932_v51 = vld [vmem:[#allocation4 + $0xb8] sm:$0xf0] }
 0x1e2   :  { %v11598_v54 = vpop.eup %11597 }
 0x1e3   :  { %v1188_v55 = vmul.f32 %v11598_v54, %v1187_v53  ;;  %v8270_v53 = vor.u32 %v10928_v48, %v8269_v47  ;;  %v8290_v54 = vor.u32 %v10932_v51, %v8289_v42  ;;  %v8229_v47 = vld [vmem:[#allocation4 + $0x38] sm:$0xf]  ;;  %v8382_v48 = vor.u32 %v10954_v45, %v8379_v46  ;;  %v10924_v42 = vld [vmem:[#allocation4 + $0x7c] sm:$0xf]  ;;  %v10951_v51 = vld [vmem:[#allocation7 + $0x94] sm:$0xf] }
 0x1e4   :  { %v8211_v45 = vld [vmem:[#allocation4 + $0x24] sm:$0xf0]  ;;  %v10939_v46 = vld [vmem:[#allocation7 + $0x34] sm:$0xf] }
 0x1e5   :  { %v12020_v57 = vadd.f32 %v1189_v13, %v1188_v55  ;;  %v8277_v13 = vld [vmem:[#allocation4 + $0x98] sm:$0xf]  ;;  %v10929_v55 = vld [vmem:[#allocation4 + $0xa0] sm:$0xf0]  ;;  %1585 = vmatpush.bf16.msra.mxu2 %v8290_v54  ;;  %1560 = vmatpush.bf16.msra.mxu0 %v8270_v53  ;;  %v8367_v53 = vld [vmem:[#allocation7 + $0x9c] sm:$0xf0] }
 0x1e7   :  { %v12034_v59 = vpack.c.bf16 %v12020_v57, %v12020_v57  ;;  %v1275_v60 = vperm.slane %v12020_v57, 0  ;;  %v1274_v38 = vrot.slane %v12020_v57, 1 }
 0x1e9   :  { %1267 = vmatmul.bf16.vlgmr.msrb.gmra.mxu3 %v12034_v59  ;;  %v1279_v61 = vmul.f32 %v1275_v60, %v12025_v58  ;;  %v1280_v63 = vmul.f32 %v1275_v60, %v12030_v49  ;;  %v1276_v52 = vperm.slane %v1274_v38, 0 }
 0x1eb   :  { %1283 = vadd.xlane.f32.xlu0 %v1279_v61  ;;  %v1286_v2 = vsel %vm1285_vm2, %v1280_v63, 0.0  ;;  %v1282_v4 = vmul.f32 %v1276_v52, %v12041_v36  ;;  %v1281_v7 = vmul.f32 %v1276_v52, %v12052_v6  ;;  %v8257_v61 = vld [vmem:[#allocation4 + $0x78] sm:$0xf]  ;;  %v10925_v63 = vld [vmem:[#allocation4 + $0x80] sm:$0xf0]  ;;  %v8278_v52 = vor.u32 %v10929_v55, %v8277_v13 }
 0x1ec   :  { %1287 = vadd.xlane.f32.xlu1 %v1286_v2  ;;  %v8265_v2 = vld [vmem:[#allocation4 + $0x80] sm:$0xf] }
 0x1ed   :  { %v1291_v5 = vsel %vm1285_vm2, %v1282_v4, 0.0  ;;  %v10926_v4 = vld [vmem:[#allocation4 + $0x88] sm:$0xf0]  ;;  %1586 = vmatpush.bf16.msra.mxu2 %v8278_v52  ;;  %v8217_v55 = vld [vmem:[#allocation4 + $0x20] sm:$0xf] }
 0x1ee   :  { %1292 = vadd.xlane.f32.xlu2 %v1291_v5  ;;  %v8258_v5 = vor.u32 %v10925_v63, %v8257_v61  ;;  %v10921_v61 = vld [vmem:[#allocation4 + $0x64] sm:$0xf]  ;;  %v8247_v63 = vld [vmem:[#allocation4 + $0x6c] sm:$0xf0]  ;;  %v10948_v52 = vld [vmem:[#allocation7 + $0x7c] sm:$0xf] }
 0x1f0   :  { %1561 = vmatpush.bf16.msra.mxu0 %v8258_v5  ;;  %v8250_v5 = vor.u32 %v10921_v61, %v8247_v63  ;;  %v8307_v63 = vld [vmem:[#allocation7 + $0x24] sm:$0xf0] }
 0x1f4   :  { %1289 = vadd.xlane.f32.xlu1 %v1281_v7  ;;  %v8245_v7 = vld [vmem:[#allocation4 + $0x60] sm:$0xf] }
 0x25e   :  { %v1284_v8 = vpop.xlane.xlu0 %1283 }
 0x25f   :  { %v1288_v56 = vpop.xlane.xlu1 %1287  ;;  %v1299_v12 = vperm.slane %v1284_v8, %v11928_v11  ;;  %v8266_v8 = vor.u32 %v10926_v4, %v8265_v2  ;;  %v8355_v2 = vld [vmem:[#allocation7 + $0x84] sm:$0xf0] }
 0x260   :  { %v1301_v14 = vperm.slane %v1288_v56, %v12056_v28  ;;  %v10922_v56 = vld [vmem:[#allocation4 + $0x68] sm:$0xf0] }
 0x261   :  { %v1293_v9 = vpop.xlane.xlu2 %1292  ;;  %1587 = vmatpush.bf16.msra.mxu2 %v8266_v8  ;;  %v10911_v8 = vld [vmem:[#allocation4 + $0x10] sm:$0xf0] }
 0x262   :  { %v1305_v17 = vperm.slane %v1293_v9, %v12056_v28  ;;  %v1303_v20 = vsel %vm1302_vm3, %v1301_v14, %v1299_v12  ;;  %v8246_v9 = vor.u32 %v10922_v56, %v8245_v7  ;;  %v8233_v12 = vld [vmem:[#allocation4 + $0x48] sm:$0xf]  ;;  %v10919_v14 = vld [vmem:[#allocation4 + $0x50] sm:$0xf0]  ;;  %v8358_v7 = vor.u32 %v10948_v52, %v8355_v2  ;;  %v8437_v52 = vld [vmem:[#allocation9 + $0x60] sm:$0xf] }
 0x263   :  { %v8205_v56 = vld [vmem:[#allocation4 + $0x8] sm:$0xf]  ;;  %v10970_v2 = vld [vmem:[#allocation9 + $0x68] sm:$0xf0] }
 0x264   :  { %1562 = vmatpush.bf16.msra.mxu0 %v8246_v9  ;;  %v8206_v9 = vor.u32 %v10911_v8, %v8205_v56  ;;  %v10946_v56 = vld [vmem:[#allocation7 + $0x68] sm:$0xf0]  ;;  %v8385_v8 = vld [vmem:[#allocation7 + $0xb0] sm:$0xf] }
 0x267   :  { %v1290_v16 = vpop.xlane.xlu1 %1289 }
 0x268   :  { %v1304_v18 = vperm.slane %v1290_v16, %v11928_v11  ;;  %v8234_v16 = vor.u32 %v10919_v14, %v8233_v12  ;;  %v10918_v12 = vld [vmem:[#allocation4 + $0x4c] sm:$0xf]  ;;  %v8235_v14 = vld [vmem:[#allocation4 + $0x54] sm:$0xf0] }
 0x26a   :  { %v1306_v21 = vsel %vm1302_vm3, %v1305_v17, %v1304_v18  ;;  %v8221_v17 = vld [vmem:[#allocation4 + $0x30] sm:$0xf]  ;;  %v10916_v18 = vld [vmem:[#allocation4 + $0x38] sm:$0xf0]  ;;  %1563 = vmatpush.bf16.msra.mxu0 %v8234_v16  ;;  %v10945_v16 = vld [vmem:[#allocation7 + $0x64] sm:$0xf] }
 0x26b   :  { %v1308_v22 = vsel %vm1307_vm4, %v1306_v21, %v1303_v20  ;;  %v8191_v20 = vld [vmem:[%s12826_s1 + $0x2] sm:$0x3]  ;;  %v8209_v21 = vld [vmem:[#allocation4 + $0x18] sm:$0xf] }
 0x26c   :  { %v1268_v27 = vpop.f32.mrf.mxu3  ;;  %v1310_v23 = vsel %vm1294_vm5, -9000.0, %v1308_v22  ;;  %v10913_v22 = vld [vmem:[#allocation4 + $0x20] sm:$0xf0] }
 0x26d   :  { %v1269_v24 = vadd.f32 %v11586_v19, %v1268_v27  ;;  %v1312_v25 = vsel %vm1311_vm6, %v1310_v23, -inf  ;;  %v8222_v19 = vor.u32 %v10916_v18, %v8221_v17  ;;  %v8253_v27 = vld [vmem:[#allocation4 + $0x68] sm:$0xf]  ;;  %v8238_v17 = vor.u32 %v10918_v12, %v8235_v14  ;;  %v8343_v18 = vld [vmem:[#allocation7 + $0x6c] sm:$0xf0] }
 0x26e   :  { %1313 = vmax.xlane.f32.xlu2 %v1312_v25  ;;  %v10930_v25 = vld [vmem:[#allocation4 + $0xac] sm:$0xf]  ;;  %v10956_v12 = vld [vmem:[#allocation7 + $0xb8] sm:$0xf0] }
 0x26f   :  { %1272 = vst [vmem:[#allocation10] sm:$0x3] %v1269_v24  ;;  %v1377_v29 = vsel %vm1285_vm2, %v1269_v24, -inf  ;;  %1564 = vmatpush.bf16.msra.mxu0 %v8222_v19  ;;  %v8473_v19 = vld [vmem:[#allocation9 + $0xa8] sm:$0xf]  ;;  %v8386_v14 = vor.u32 %v10956_v12, %v8385_v8 }
 0x270   :  { %v8325_v8 = vld [vmem:[#allocation7 + $0x38] sm:$0xf]  ;;  %v10975_v12 = vld [vmem:[#allocation9 + $0x94] sm:$0xf] }
 0x274   :  { %v1270_v26 = vpop.f32.mrf.mxu3 }
 0x275   :  { %v8283_v26 = vld [vmem:[#allocation4 + $0xb4] sm:$0xf0] }
 0x276   :  { %1378 = vmax.xlane.f32.xlu2 %v1377_v29 }
 0x2e1   :  { %v1314_v30 = vpop.xlane.xlu2 %1313 }
 0x2e2   :  { %v1315_v31 = vsub.f32 %v1310_v23, %v1314_v30  ;;  %v8210_v23 = vor.u32 %v10913_v22, %v8209_v21  ;;  %v8286_v30 = vor.u32 %v10930_v25, %v8283_v26  ;;  %v8346_v21 = vor.u32 %v10945_v16, %v8343_v18  ;;  %v8223_v26 = vld [vmem:[#allocation4 + $0x3c] sm:$0xf0]  ;;  %v10933_v16 = vld [vmem:[#allocation7 + $0x4] sm:$0xf]  ;;  %v8425_v18 = vld [vmem:[#allocation9 + $0x48] sm:$0xf] }
 0x2e4   :  { %v1316_v32 = vmul.f32 1.442695, %v1315_v31  ;;  %1565 = vmatpush.bf16.msra.mxu0 %v8210_v23  ;;  %v8197_v31 = vld [vmem:[#allocation4] sm:$0xf]  ;;  %1572 = vmatpush.bf16.msra.mxu1 %v8286_v30  ;;  %v10955_v23 = vld [vmem:[#allocation7 + $0xb0] sm:$0xf0] }
 0x2e5   :  { %v8331_v30 = vld [vmem:[#allocation7 + $0x54] sm:$0xf0] }
 0x2e6   :  { %11599 = vpow2.f32 %v1316_v32  ;;  %v10910_v32 = vld [vmem:[#allocation4 + $0x8] sm:$0xf0] }
 0x2e9   :  { %v1379_v34 = vpop.xlane.xlu2 %1378 }
 0x2ea   :  { %vm1380_vm7 = vcmp.eq.f32.partialorder %v1269_v24, %v1379_v34  ;;  %v10923_v24 = vld [vmem:[#allocation4 + $0x70] sm:$0xf0]  ;;  %v8241_v34 = vld [vmem:[#allocation4 + $0x50] sm:$0xf] }
 0x2eb   :  { %v1381_v35 = vsel %vm1380_vm7, %v12079_v33, 128.0  ;;  %v8254_v29 = vor.u32 %v10923_v24, %v8253_v27  ;;  %v8377_v27 = vld [vmem:[#allocation7 + $0xa8] sm:$0xf]  ;;  %v10915_v24 = vld [vmem:[#allocation4 + $0x34] sm:$0xf] }
 0x2ec   :  { %v11600_v37 = vpop.eup %11599  ;;  %v1382_v39 = vsel %vm1285_vm2, %v1381_v35, inf  ;;  %v8198_v35 = vor.u32 %v10910_v32, %v8197_v31  ;;  %v8378_v25 = vor.u32 %v10955_v23, %v8377_v27  ;;  %v8226_v31 = vor.u32 %v10915_v24, %v8223_v26  ;;  %v8373_v24 = vld [vmem:[#allocation7 + $0x98] sm:$0xf] }
 0x2ed   :  { %1383 = vmin.xlane.f32.xlu0 %v1382_v39  ;;  %v1318_v40 = vsel %vm1311_vm6, %v11600_v37, 0.0  ;;  %1588 = vmatpush.bf16.msra.mxu2 %v8254_v29  ;;  %v10927_v39 = vld [vmem:[#allocation4 + $0x94] sm:$0xf]  ;;  %v10942_v29 = vld [vmem:[#allocation7 + $0x4c] sm:$0xf] }
 0x2ee   :  { %1319 = vadd.xlane.f32.xlu1 %v1318_v40  ;;  %v8271_v40 = vld [vmem:[#allocation4 + $0x9c] sm:$0xf0]  ;;  %1566 = vmatpush.bf16.msra.mxu0 %v8198_v35  ;;  %v8334_v32 = vor.u32 %v10942_v29, %v8331_v30  ;;  %v10976_v35 = vld [vmem:[#allocation9 + $0x98] sm:$0xf0]  ;;  %v8413_v29 = vld [vmem:[#allocation9 + $0x30] sm:$0xf] }
 0x2ef   :  { %v8274_v44 = vor.u32 %v10927_v39, %v8271_v40  ;;  %1775 = vmatpush.bf16.msra.mxu3 %v8378_v25  ;;  %v10952_v40 = vld [vmem:[#allocation7 + $0x98] sm:$0xf0]  ;;  %v10953_v25 = vld [vmem:[#allocation7 + $0xa0] sm:$0xf0] }
 0x2f0   :  { %v8374_v26 = vor.u32 %v10953_v25, %v8373_v24  ;;  %v10964_v30 = vld [vmem:[#allocation9 + $0x38] sm:$0xf0]  ;;  %v11824_v24 = vmov 0.0  }
 0x2f1   :  { %1573 = vmatpush.bf16.msra.mxu1 %v8274_v44  ;;  %v10912_v44 = vld [vmem:[#allocation4 + $0x1c] sm:$0xf] }
 0x2f2   :  { %1788 = vmatpush.bf16.msrb.mxu0 %v8382_v48  ;;  %v8319_v48 = vld [vmem:[#allocation7 + $0x3c] sm:$0xf0] }
 0x361   :  { %v1320_v43 = vpop.xlane.xlu1 %1319 }
 0x362   :  { %11601 = vrcp.f32 %v1320_v43 }
 0x368   :  { %v11602_v50 = vpop.eup %11601 }
 0x369   :  { %v1322_v10 = vmul.f32 %v11602_v50, %v11600_v37  ;;  %v10920_v37 = vld [vmem:[#allocation4 + $0x58] sm:$0xf0]  ;;  %v10917_v50 = vld [vmem:[#allocation4 + $0x40] sm:$0xf0] }
 0x36a   :  { %v8242_v43 = vor.u32 %v10920_v37, %v8241_v34  ;;  %v8230_v54 = vor.u32 %v10917_v50, %v8229_v47  ;;  %v8461_v34 = vld [vmem:[#allocation9 + $0x90] sm:$0xf]  ;;  %v8214_v47 = vor.u32 %v10912_v44, %v8211_v45  ;;  %v8449_v50 = vld [vmem:[#allocation9 + $0x78] sm:$0xf]  ;;  %v10961_v45 = vld [vmem:[#allocation9 + $0x20] sm:$0xf0] }
 0x36b   :  { %v1336_v60 = vperm.slane %v1322_v10, 1  ;;  %v1323_v38 = vperm.slane %v1322_v10, 0  ;;  %v8259_v10 = vld [vmem:[#allocation4 + $0x84] sm:$0xf0]  ;;  %v8365_v37 = vld [vmem:[#allocation7 + $0x90] sm:$0xf]  ;;  %v8462_v39 = vor.u32 %v10976_v35, %v8461_v34 }
 0x36c   :  { %1589 = vmatpush.bf16.msra.mxu2 %v8242_v43  ;;  %v8262_v13 = vor.u32 %v10924_v42, %v8259_v10  ;;  %v8366_v43 = vor.u32 %v10952_v40, %v8365_v37  ;;  %v10973_v42 = vld [vmem:[#allocation9 + $0x80] sm:$0xf0]  ;;  %v8322_v10 = vor.u32 %v10939_v46, %v8319_v48  ;;  %v10940_v34 = vld [vmem:[#allocation7 + $0x38] sm:$0xf0]  ;;  %v8361_v37 = vld [vmem:[#allocation7 + $0x80] sm:$0xf] }
 0x36d   :  { %1347 = vperm.xlu2 %11563, %v1336_v60   ;;  %1334 = vperm.xlu1 %11562, %v1323_v38   ;;  %v8401_v44 = vld [vmem:[#allocation9 + $0x18] sm:$0xf]  ;;  %v10937_v48 = vld [vmem:[#allocation7 + $0x20] sm:$0xf0] }
 0x36e   :  { %1574 = vmatpush.bf16.msra.mxu1 %v8262_v13  ;;  %1776 = vmatpush.bf16.msra.mxu3 %v8366_v43  ;;  %v8402_v46 = vor.u32 %v10961_v45, %v8401_v44 }
 0x370   :  { %1590 = vmatpush.bf16.msra.mxu2 %v8230_v54  ;;  %v10949_v54 = vld [vmem:[#allocation7 + $0x80] sm:$0xf0] }
 0x372   :  { %1575 = vmatpush.bf16.msra.mxu1 %v8250_v5  ;;  %v8438_v5 = vor.u32 %v10970_v2, %v8437_v52 }
 0x375   :  { %11564 = vset.pattern.permute.xlu2 %v12085_v41  ;;  %11565 = vset.pattern.permute.xlu1 %v12085_v41 }
 0x376   :  { %1576 = vmatpush.bf16.msra.mxu1 %v8238_v17  ;;  %v8295_v17 = vld [vmem:[#allocation7 + $0xc] sm:$0xf0] }
 0x37a   :  { %1577 = vmatpush.bf16.msra.mxu1 %v8226_v31  ;;  %v8414_v31 = vor.u32 %v10964_v30, %v8413_v29  ;;  %v1392_v29 = vstv %s1391_s27  ;;  %s5213_s27 = scvt.s32.f32 %s5212_s6 }
 0x37d   :  { %1328 = vperm.xlu2 %11564, %v1323_v38   ;;  %1341 = vperm.xlu1 %11565, %v1336_v60   ;;  %v8370_v60 = vor.u32 %v10951_v51, %v8367_v53  ;;  %v10914_v38 = vld [vmem:[#allocation4 + $0x28] sm:$0xf0]  ;;  %v8450_v51 = vor.u32 %v10973_v42, %v8449_v50  ;;  %v8353_v53 = vld [vmem:[#allocation7 + $0x78] sm:$0xf]  ;;  %v8349_v42 = vld [vmem:[#allocation7 + $0x68] sm:$0xf] }
 0x37e   :  { %v8218_v4 = vor.u32 %v10914_v38, %v8217_v55  ;;  %1578 = vmatpush.bf16.msra.mxu1 %v8214_v47  ;;  %v8354_v13 = vor.u32 %v10949_v54, %v8353_v53  ;;  %v10909_v55 = vld [vmem:[#allocation4 + $0x4] sm:$0xf]  ;;  %v10936_v38 = vld [vmem:[#allocation7 + $0x1c] sm:$0xf]  ;;  %v8305_v47 = vld [vmem:[#allocation7 + $0x18] sm:$0xf] }
 0x37f   :  { %1789 = vmatpush.bf16.msrb.mxu0 %v8370_v60  ;;  %v8199_v60 = vld [vmem:[#allocation4 + $0xc] sm:$0xf0]  ;;  %v8306_v50 = vor.u32 %v10937_v48, %v8305_v47  ;;  %v8389_v53 = vld [vmem:[#allocation9] sm:$0xf]  ;;  %v10958_v54 = vld [vmem:[#allocation9 + $0x8] sm:$0xf0] }
 0x380   :  { %1591 = vmatpush.bf16.msra.mxu2 %v8218_v4  ;;  %1777 = vmatpush.bf16.msra.mxu3 %v8354_v13  ;;  %v8202_v61 = vor.u32 %v10909_v55, %v8199_v60  ;;  %v8310_v4 = vor.u32 %v10936_v38, %v8307_v63  ;;  %v8390_v13 = vor.u32 %v10958_v54, %v8389_v53  ;;  %v8293_v55 = vld [vmem:[#allocation7] sm:$0xf]  ;;  %v10934_v60 = vld [vmem:[#allocation7 + $0x8] sm:$0xf0]  ;;  %v10944_v63 = vld [vmem:[#allocation7 + $0x58] sm:$0xf0] }
 0x381   :  { %v8294_v38 = vor.u32 %v10934_v60, %v8293_v55  ;;  %v10969_v48 = vld [vmem:[#allocation9 + $0x64] sm:$0xf]  ;;  %v10966_v53 = vld [vmem:[#allocation9 + $0x4c] sm:$0xf]  ;;  %v8427_v54 = vld [vmem:[#allocation9 + $0x54] sm:$0xf0] }
 0x382   :  { %1579 = vmatpush.bf16.msra.mxu1 %v8202_v61  ;;  %v8337_v61 = vld [vmem:[#allocation7 + $0x50] sm:$0xf]  ;;  %v8469_v55 = vld [vmem:[#allocation9 + $0x98] sm:$0xf]  ;;  %v10977_v60 = vld [vmem:[#allocation9 + $0xa0] sm:$0xf0] }
 0x383   :  { %1790 = vmatpush.bf16.msrb.mxu0 %v8358_v7  ;;  %v8341_v7 = vld [vmem:[#allocation7 + $0x60] sm:$0xf]  ;;  %v8338_v2 = vor.u32 %v10944_v63, %v8337_v61  ;;  %v10963_v61 = vld [vmem:[#allocation9 + $0x34] sm:$0xf] }
 0x384   :  { %1592 = vmatpush.bf16.msra.mxu2 %v8206_v9  ;;  %v8342_v9 = vor.u32 %v10946_v56, %v8341_v7  ;;  %v1384_v56 = vpop.xlane.xlu0 %1383  ;;  %v8415_v63 = vld [vmem:[#allocation9 + $0x3c] sm:$0xf0] }
 0x385   :  { %11566 = vset.pattern.permute.xlu2 %v11822_v0  ;;  %11568 = vset.pattern.permute.xlu1 %v12088_v62  ;;  %vm1385_vm8 = vcmp.eq.f32.partialorder %v12079_v33, %v1384_v56  ;;  %v10960_v56 = vld [vmem:[#allocation9 + $0x1c] sm:$0xf] }
 0x386   :  { %1372 = vperm.xlu2 %11566, %v8191_v20   ;;  %v10979_v20 = vld [vmem:[#allocation9 + $0xb0] sm:$0xf0]  ;;  %1778 = vmatpush.bf16.msra.mxu3 %v8342_v9  ;;  %v10941_v9 = vld [vmem:[#allocation7 + $0x40] sm:$0xf0]  ;;  %v8193_v25 = vsel %vm1385_vm8, 1.0, %v11824_v24 }
 0x387   :  { %v8474_v22 = vor.u32 %v10979_v20, %v8473_v19  ;;  %1791 = vmatpush.bf16.msrb.mxu0 %v8346_v21  ;;  %v8298_v19 = vor.u32 %v10933_v16, %v8295_v17  ;;  %v10967_v20 = vld [vmem:[#allocation9 + $0x50] sm:$0xf0]  ;;  %v8329_v21 = vld [vmem:[#allocation7 + $0x48] sm:$0xf]  ;;  %1801 = vmatpush.bf16.msrb.mxu1 %v8386_v14  ;;  %v8326_v14 = vor.u32 %v10941_v9, %v8325_v8  ;;  %v8463_v16 = vld [vmem:[#allocation9 + $0x9c] sm:$0xf0] }
 0x388   :  { %v8426_v27 = vor.u32 %v10967_v20, %v8425_v18  ;;  %v8466_v17 = vor.u32 %v10975_v12, %v8463_v16  ;;  %v8313_v18 = vld [vmem:[#allocation7 + $0x20] sm:$0xf]  ;;  %v10972_v20 = vld [vmem:[#allocation9 + $0x7c] sm:$0xf]  ;;  %v8403_v8 = vld [vmem:[#allocation9 + $0x24] sm:$0xf0] }
 0x389   :  { %1985 = vmatpush.bf16.msrb.mxu2 %v8474_v22  ;;  %v10943_v22 = vld [vmem:[#allocation7 + $0x50] sm:$0xf0] }
 0x38a   :  { %v8330_v23 = vor.u32 %v10943_v22, %v8329_v21  ;;  %v1395_v21 = vstv %s1394_s8  ;;  %s5216_s8 = ssub.f32 1.0, %s5213_s27 }
 0x38b   :  { %1792 = vmatpush.bf16.msrb.mxu0 %v8334_v32  ;;  %v8317_v32 = vld [vmem:[#allocation7 + $0x30] sm:$0xf]  ;;  %1802 = vmatpush.bf16.msrb.mxu1 %v8374_v26  ;;  %v1396_v44 = vmul.f32 %v8193_v25, %v1395_v21  ;;  %v10957_v21 = vld [vmem:[#allocation9 + $0x4] sm:$0xf] }
 0x38c   :  { %1779 = vmatpush.bf16.msra.mxu3 %v8330_v23  ;;  %v8318_v35 = vor.u32 %v10940_v34, %v8317_v32  ;;  %v8451_v23 = vld [vmem:[#allocation9 + $0x84] sm:$0xf0]  ;;  %v8481_v34 = vld [vmem:[#allocation9 + $0xb0] sm:$0xf] }
 0x38d   :  { %1986 = vmatpush.bf16.msrb.mxu2 %v8462_v39  ;;  %v10950_v39 = vld [vmem:[#allocation7 + $0x88] sm:$0xf0] }
 0x38e   :  { %11569 = vset.pattern.permute.xlu2 %v12085_v41  ;;  %v8362_v43 = vor.u32 %v10950_v39, %v8361_v37  ;;  %v8301_v39 = vld [vmem:[#allocation7 + $0x8] sm:$0xf] }
 0x38f   :  { %1793 = vmatpush.bf16.msrb.mxu0 %v8322_v10  ;;  %v10947_v10 = vld [vmem:[#allocation7 + $0x70] sm:$0xf0] }
 0x390   :  { %1780 = vmatpush.bf16.msra.mxu3 %v8318_v35  ;;  %1803 = vmatpush.bf16.msrb.mxu1 %v8362_v43  ;;  %v10935_v43 = vld [vmem:[#allocation7 + $0x10] sm:$0xf0] }
 0x391   :  { %1987 = vmatpush.bf16.msrb.mxu2 %v8450_v51  ;;  %v8350_v51 = vor.u32 %v10947_v10, %v8349_v42  ;;  %v8302_v47 = vor.u32 %v10935_v43, %v8301_v39 }
 0x393   :  { %1794 = vmatpush.bf16.msrb.mxu0 %v8310_v4  ;;  %v10978_v4 = vld [vmem:[#allocation9 + $0xac] sm:$0xf] }
 0x394   :  { %1781 = vmatpush.bf16.msra.mxu3 %v8306_v50  ;;  %1804 = vmatpush.bf16.msrb.mxu1 %v8350_v51  ;;  %v8439_v50 = vld [vmem:[#allocation9 + $0x6c] sm:$0xf0] }
 0x395   :  { %1988 = vmatpush.bf16.msrb.mxu2 %v8438_v5  ;;  %v8475_v5 = vld [vmem:[#allocation9 + $0xb4] sm:$0xf0]  ;;  %v8442_v42 = vor.u32 %v10969_v48, %v8439_v50 }
 0x396   :  { %v8478_v7 = vor.u32 %v10978_v4, %v8475_v5  ;;  %v8457_v4 = vld [vmem:[#allocation9 + $0x80] sm:$0xf]  ;;  %v10974_v5 = vld [vmem:[#allocation9 + $0x88] sm:$0xf0] }
 0x397   :  { %1795 = vmatpush.bf16.msrb.mxu0 %v8298_v19  ;;  %v10938_v19 = vld [vmem:[#allocation7 + $0x28] sm:$0xf0] }
 0x398   :  { %1782 = vmatpush.bf16.msra.mxu3 %v8294_v38  ;;  %1805 = vmatpush.bf16.msrb.mxu1 %v8338_v2  ;;  %v8430_v38 = vor.u32 %v10966_v53, %v8427_v54  ;;  %v8470_v2 = vor.u32 %v10977_v60, %v8469_v55  ;;  %v11027_v53 = vld [vmem:[#allocation9 + $0x170] sm:$0xf0] }
 0x399   :  { %1989 = vmatpush.bf16.msrb.mxu2 %v8426_v27  ;;  %v8314_v27 = vor.u32 %v10938_v19, %v8313_v18  ;;  %v10971_v18 = vld [vmem:[#allocation9 + $0x70] sm:$0xf0]  ;;  %v8406_v19 = vor.u32 %v10960_v56, %v8403_v8  ;;  %v8631_v56 = vld [vmem:[#allocation9 + $0x120] sm:$0xf]  ;;  %v11018_v8 = vld [vmem:[#allocation9 + $0x128] sm:$0xf0] }
 0x39c   :  { %1998 = vmatpush.bf16.msrb.mxu3 %v8478_v7  ;;  %1806 = vmatpush.bf16.msrb.mxu1 %v8326_v14  ;;  %v8418_v7 = vor.u32 %v10963_v61, %v8415_v63  ;;  %v8458_v14 = vor.u32 %v10974_v5, %v8457_v4  ;;  %v8655_v63 = vld [vmem:[#allocation9 + $0x150] sm:$0xf]  ;;  %v8643_v4 = vld [vmem:[#allocation9 + $0x138] sm:$0xf]  ;;  %v11021_v5 = vld [vmem:[#allocation9 + $0x140] sm:$0xf0] }
 0x39d   :  { %1990 = vmatpush.bf16.msrb.mxu2 %v8414_v31  ;;  %v8454_v31 = vor.u32 %v10972_v20, %v8451_v23 }
 0x3a0   :  { %1999 = vmatpush.bf16.msrb.mxu3 %v8466_v17  ;;  %1807 = vmatpush.bf16.msrb.mxu1 %v8314_v27  ;;  %v8445_v17 = vld [vmem:[#allocation9 + $0x68] sm:$0xf] }
 0x3a1   :  { %1991 = vmatpush.bf16.msrb.mxu2 %v8402_v46  ;;  %v10980_v46 = vld [vmem:[#allocation9 + $0xb8] sm:$0xf0] }
 0x3a2   :  { %v8482_v51 = vor.u32 %v10980_v46, %v8481_v34 }
 0x3a4   :  { %2000 = vmatpush.bf16.msrb.mxu3 %v8454_v31  ;;  %1808 = vmatpush.bf16.msrb.mxu1 %v8302_v47 }
 0x3a5   :  { %1992 = vmatpush.bf16.msrb.mxu2 %v8390_v13 }
 0x3a8   :  { %2001 = vmatpush.bf16.msrb.mxu3 %v8442_v42  ;;  %v8397_v42 = vld [vmem:[#allocation9 + $0x8] sm:$0xf] }
 0x3ac   :  { %2002 = vmatpush.bf16.msrb.mxu3 %v8430_v38 }
 0x3b0   :  { %2003 = vmatpush.bf16.msrb.mxu3 %v8418_v7  ;;  %v8644_v7 = vor.u32 %v11021_v5, %v8643_v4  ;;  %v10990_v4 = vld [vmem:[#allocation7 + $0x10c] sm:$0xf] }
 0x3b4   :  { %2004 = vmatpush.bf16.msrb.mxu3 %v8406_v19 }
 0x3c7   :  { %v12104_v40 = vpop.permute.xlu2 %1347 }
 0x3c8   :  { %v1352_v9 = vmul.f32 %v12104_v40, %v12041_v36  ;;  %v10968_v36 = vld [vmem:[#allocation9 + $0x58] sm:$0xf0] }
 0x3ca   :  { %v1361_v27 = vsel %vm1285_vm2, %v1352_v9, 0.0  ;;  %v8632_v9 = vor.u32 %v11018_v8, %v8631_v56  ;;  %v8566_v56 = vld [vmem:[#allocation7 + $0x158] sm:$0xf]  ;;  %v11001_v8 = vld [vmem:[#allocation7 + $0x160] sm:$0xf0] }
 0x3d7   :  { %v1329_v52 = vpop.permute.xlu2 %1328 }
 0x3d8   :  { %v1349_v32 = vmul.f32 %v1329_v52, %v12025_v58 }
 0x3df   :  { %v1335_v22 = vpop.permute.xlu1 %1334 }
 0x3e0   :  { %v1350_v26 = vmul.f32 %v1335_v22, %v12030_v49  ;;  %v1373_v30 = vpop.permute.xlu2 %1372  ;;  %v8391_v22 = vld [vmem:[#allocation9 + $0xc] sm:$0xf0] }
 0x3e1   :  { %vm1374_vm9 = vcmp.eq.s32.totalorder %v11928_v11, %v1373_v30  ;;  %v8394_v40 = vor.u32 %v10957_v21, %v8391_v22  ;;  %v11009_v21 = vld [vmem:[#allocation9 + $0xe0] sm:$0xf0] }
 0x3e2   :  { %v1353_v35 = vsel %vm1285_vm2, %v1350_v26, 0.0  ;;  %v8192_v37 = vsel %vm1374_vm9, 1.0, %v11824_v24  ;;  %v8446_v26 = vor.u32 %v10971_v18, %v8445_v17  ;;  %v8607_v17 = vld [vmem:[#allocation9 + $0xf0] sm:$0xf]  ;;  %v11012_v18 = vld [vmem:[#allocation9 + $0xf8] sm:$0xf0] }
 0x3e3   :  { %v1354_v45 = vadd.f32 %v1353_v35, %v1349_v32  ;;  %v1393_v49 = vmul.f32 %v8192_v37, %v1392_v29  ;;  %v8433_v29 = vld [vmem:[#allocation9 + $0x50] sm:$0xf]  ;;  %v8421_v35 = vld [vmem:[#allocation9 + $0x38] sm:$0xf]  ;;  %v10965_v37 = vld [vmem:[#allocation9 + $0x40] sm:$0xf0]  ;;  %2005 = vmatpush.bf16.msrb.mxu3 %v8394_v40  ;;  %v8608_v19 = vor.u32 %v11012_v18, %v8607_v17 }
 0x3e4   :  { %v8434_v34 = vor.u32 %v10968_v36, %v8433_v29  ;;  %v8570_v36 = vld [vmem:[#allocation7 + $0x168] sm:$0xf]  ;;  %v11003_v40 = vld [vmem:[#allocation7 + $0x170] sm:$0xf0] }
 0x3e5   :  { %v1397_v58 = vadd.f32 %v1396_v44, %v1393_v49  ;;  %v1355_v10 = vrot.slane %v1354_v45, 4  ;;  %v8422_v44 = vor.u32 %v10965_v37, %v8421_v35  ;;  %v10962_v49 = vld [vmem:[#allocation9 + $0x28] sm:$0xf0]  ;;  %v11000_v35 = vld [vmem:[#allocation7 + $0x158] sm:$0xf0] }
 0x3e6   :  { %v10999_v37 = vld [vmem:[#allocation7 + $0x154] sm:$0xf] }
 0x3e7   :  { %v1398_v13 = vpack.c.bf16 %v1397_v58, %v1397_v58  ;;  %v1356_v52 = vadd.f32 %v1355_v10, %v1354_v45  ;;  %v8409_v45 = vld [vmem:[#allocation9 + $0x20] sm:$0xf]  ;;  %v10959_v58 = vld [vmem:[#allocation9 + $0x10] sm:$0xf0] }
 0x3e8   :  { %v8410_v50 = vor.u32 %v10962_v49, %v8409_v45  ;;  %v8398_v55 = vor.u32 %v10959_v58, %v8397_v42  ;;  %v8548_v42 = vld [vmem:[#allocation7 + $0x144] sm:$0xf0]  ;;  %v10987_v18 = vld [vmem:[#allocation7 + $0xf4] sm:$0xf] }
 0x3e9   :  { %1567 = vmatmul.bf16.vlgmr.msra.gmra.mxu0 %v1398_v13  ;;  %1580 = vmatmul.bf16.vlgmr.msra.gmra.mxu1 %v1398_v13  ;;  %v1357_v12 = vrot.slane %v1356_v52, 2 }
 0x3ea   :  { %1593 = vmatmul.bf16.vlgmr.msra.gmra.mxu2 %v1398_v13  ;;  %2011 = vmatpush.bf16.msra.mxu0 %v8482_v51  ;;  %v8667_v51 = vld [vmem:[#allocation9 + $0x168] sm:$0xf] }
 0x3eb   :  { %v1358_v23 = vadd.f32 %v1357_v12, %v1356_v52  ;;  %v8668_v38 = vor.u32 %v11027_v53, %v8667_v51  ;;  %v11024_v52 = vld [vmem:[#allocation9 + $0x158] sm:$0xf0]  ;;  %v8619_v12 = vld [vmem:[#allocation9 + $0x108] sm:$0xf]  ;;  %v10994_v51 = vld [vmem:[#allocation7 + $0x128] sm:$0xf0] }
 0x3ec   :  { %v10993_v53 = vld [vmem:[#allocation7 + $0x124] sm:$0xf] }
 0x3ed   :  { %v1359_v31 = vrot.slane %v1358_v23, 1 }
 0x3ee   :  { %2012 = vmatpush.bf16.msra.mxu0 %v8470_v2  ;;  %v8656_v2 = vor.u32 %v11024_v52, %v8655_v63  ;;  %v8522_v52 = vld [vmem:[#allocation7 + $0x108] sm:$0xf] }
 0x3ef   :  { %v1342_v16 = vpop.permute.xlu1 %1341  ;;  %v1360_v39 = vadd.f32 %v1359_v31, %v1358_v23  ;;  %v11006_v23 = vld [vmem:[#allocation9 + $0xc8] sm:$0xf0]  ;;  %v8572_v31 = vld [vmem:[#allocation7 + $0x174] sm:$0xf0] }
 0x3f0   :  { %v1351_v20 = vmul.f32 %v1342_v16, %v12052_v6 }
 0x3f1   :  { %v1598_v47 = vpack.c.bf16 %v1360_v39, %v1360_v39  ;;  %v8560_v39 = vld [vmem:[#allocation7 + $0x15c] sm:$0xf0] }
 0x3f2   :  { %v1362_v25 = vadd.f32 %v1361_v27, %v1351_v20  ;;  %2013 = vmatpush.bf16.msra.mxu0 %v8458_v14  ;;  %v11015_v14 = vld [vmem:[#allocation9 + $0x110] sm:$0xf0]  ;;  %v8595_v20 = vld [vmem:[#allocation9 + $0xd8] sm:$0xf]  ;;  %v8583_v27 = vld [vmem:[#allocation9 + $0xc0] sm:$0xf] }
 0x3f3   :  { %v1642_v54 = vunpack.c.l.b16 %v1598_v47  ;;  %v8620_v16 = vor.u32 %v11015_v14, %v8619_v12  ;;  %v8596_v22 = vor.u32 %v11009_v21, %v8595_v20  ;;  %v10997_v47 = vld [vmem:[#allocation7 + $0x140] sm:$0xf0]  ;;  %v8567_v12 = vor.u32 %v11001_v8, %v8566_v56  ;;  %v8510_v14 = vld [vmem:[#allocation7 + $0xf0] sm:$0xf]  ;;  %v8554_v20 = vld [vmem:[#allocation7 + $0x140] sm:$0xf] }
 0x3f4   :  { %v1363_v30 = vrot.slane %v1362_v25, 4  ;;  %v11025_v56 = vld [vmem:[#allocation9 + $0x160] sm:$0xf0] }
 0x3f6   :  { %v1364_v32 = vadd.f32 %v1363_v30, %v1362_v25  ;;  %2014 = vmatpush.bf16.msra.mxu0 %v8446_v26  ;;  %v8584_v25 = vor.u32 %v11006_v23, %v8583_v27  ;;  %v8571_v30 = vor.u32 %v11003_v40, %v8570_v36  ;;  %v10985_v36 = vld [vmem:[#allocation7 + $0xe0] sm:$0xf0]  ;;  %v10984_v40 = vld [vmem:[#allocation7 + $0xdc] sm:$0xf] }
 0x3f8   :  { %v1365_v6 = vrot.slane %v1364_v32, 2  ;;  %2210 = vmatpush.bf16.msra.mxu1 %v8571_v30  ;;  %v8500_v30 = vld [vmem:[#allocation7 + $0xe4] sm:$0xf0] }
 0x3fa   :  { %v1366_v43 = vadd.f32 %v1365_v6, %v1364_v32  ;;  %1993 = vmatmul.bf16.vlgmr.msrb.gmra.mxu2 %v11982_v3  ;;  %2015 = vmatpush.bf16.msra.mxu0 %v8434_v34  ;;  %v8558_v34 = vld [vmem:[#allocation7 + $0x150] sm:$0xf] }
 0x3fb   :  { %v8559_v6 = vor.u32 %v11000_v35, %v8558_v34  ;;  %v8503_v34 = vor.u32 %v10984_v40, %v8500_v30 }
 0x3fc   :  { %v1367_v46 = vrot.slane %v1366_v43, 1 }
 0x3fd   :  { %2211 = vmatpush.bf16.msra.mxu1 %v8559_v6  ;;  %v10982_v6 = vld [vmem:[#allocation7 + $0xc8] sm:$0xf0] }
 0x3fe   :  { %v1368_v48 = vadd.f32 %v1367_v46, %v1366_v43  ;;  %2016 = vmatpush.bf16.msra.mxu0 %v8422_v44  ;;  %v8563_v43 = vor.u32 %v10999_v37, %v8560_v39  ;;  %v8546_v46 = vld [vmem:[#allocation7 + $0x138] sm:$0xf]  ;;  %v8486_v37 = vld [vmem:[#allocation7 + $0xc0] sm:$0xf]  ;;  %v10981_v39 = vld [vmem:[#allocation7 + $0xc4] sm:$0xf] }
 0x400   :  { %v1599_v10 = vpack.c.bf16 %v1368_v48, %v1368_v48  ;;  %v10996_v48 = vld [vmem:[#allocation7 + $0x13c] sm:$0xf] }
 0x401   :  { %v8551_v58 = vor.u32 %v10996_v48, %v8548_v42  ;;  %v11026_v42 = vld [vmem:[#allocation9 + $0x16c] sm:$0xf] }
 0x402   :  { %v1643_v13 = vunpack.c.l.b16 %v1599_v10  ;;  %2017 = vmatpush.bf16.msra.mxu0 %v8410_v50  ;;  %v8547_v50 = vor.u32 %v10997_v47, %v8546_v46  ;;  %v8534_v10 = vld [vmem:[#allocation7 + $0x120] sm:$0xf] }
 0x403   :  { %v12142_v46 = vld [vmem:[%s12834_s9] sm:$0x7] }
 0x404   :  { %v1644_v60 = vsel %vm1307_vm4, %v1643_v13, %v1642_v54  ;;  %2212 = vmatpush.bf16.msra.mxu1 %v8547_v50  ;;  %v8535_v54 = vor.u32 %v10994_v51, %v8534_v10  ;;  %v8536_v13 = vld [vmem:[#allocation7 + $0x12c] sm:$0xf0]  ;;  %v10992_v50 = vld [vmem:[#allocation7 + $0x118] sm:$0xf0] }
 0x405   :  { %v1645_v61 = vpack.c.b16 %v1644_v60, %v1644_v60  ;;  %v8539_v60 = vor.u32 %v10993_v53, %v8536_v13  ;;  %v8669_v53 = vld [vmem:[#allocation9 + $0x174] sm:$0xf0]  ;;  %v11028_v13 = vld [vmem:[#allocation9 + $0x178] sm:$0xf0] }
 0x406   :  { %2018 = vmatpush.bf16.msra.mxu0 %v8398_v55  ;;  %v8578_v55 = vld [vmem:[#allocation7 + $0x170] sm:$0xf] }
 0x407   :  { %1783 = vmatmul.bf16.vlgmr.msra.gmra.mxu3 %v1645_v61  ;;  %1796 = vmatmul.bf16.vlgmr.msrb.gmra.mxu0 %v1645_v61 }
 0x408   :  { %1809 = vmatmul.bf16.vlgmr.msrb.gmra.mxu1 %v1645_v61 }
 0x409   :  { %2213 = vmatpush.bf16.msra.mxu1 %v8535_v54  ;;  %v8675_v54 = vld [vmem:[#allocation9 + $0x170] sm:$0xf] }
 0x40a   :  { %2417 = vmatpush.bf16.msrb.mxu0 %v8668_v38  ;;  %v11004_v38 = vld [vmem:[#allocation7 + $0x178] sm:$0xf0] }
 0x40b   :  { %v8579_v63 = vor.u32 %v11004_v38, %v8578_v55  ;;  %v12151_v55 = vld [vmem:[%s12835_s10] sm:$0x7]  ;;  %v8672_v38 = vor.u32 %v11026_v42, %v8669_v53  ;;  %v11014_v42 = vld [vmem:[#allocation9 + $0x10c] sm:$0xf] }
 0x40c   :  { %v1851_v8 = vperm.slane %v12151_v55, 0 }
 0x40d   :  { %2236 = vmatpush.bf16.msra.mxu3 %v8579_v63  ;;  %v8518_v63 = vld [vmem:[#allocation7 + $0xf8] sm:$0xf] }
 0x40e   :  { %2418 = vmatpush.bf16.msrb.mxu0 %v8656_v2  ;;  %v10991_v2 = vld [vmem:[#allocation7 + $0x110] sm:$0xf0] }
 0x40f   :  { %v8523_v5 = vor.u32 %v10991_v2, %v8522_v52  ;;  %v10989_v52 = vld [vmem:[#allocation7 + $0x100] sm:$0xf0]  ;;  %v11023_v2 = vld [vmem:[#allocation9 + $0x154] sm:$0xf] }
 0x411   :  { %2214 = vmatpush.bf16.msra.mxu1 %v8523_v5  ;;  %2237 = vmatpush.bf16.msra.mxu3 %v8567_v12  ;;  %v8657_v5 = vld [vmem:[#allocation9 + $0x15c] sm:$0xf0] }
 0x412   :  { %2419 = vmatpush.bf16.msrb.mxu0 %v8644_v7  ;;  %v8524_v7 = vld [vmem:[#allocation7 + $0x114] sm:$0xf0] }
 0x416   :  { %2420 = vmatpush.bf16.msrb.mxu0 %v8632_v9  ;;  %v8527_v9 = vor.u32 %v10990_v4, %v8524_v7  ;;  %v8519_v4 = vor.u32 %v10989_v52, %v8518_v63  ;;  %v8663_v7 = vld [vmem:[#allocation9 + $0x158] sm:$0xf]  ;;  %v11013_v52 = vld [vmem:[#allocation9 + $0x100] sm:$0xf0] }
 0x417   :  { %2006 = vmatmul.bf16.vlgmr.msrb.gmra.mxu3 %v11982_v3  ;;  %2019 = vmatmul.bf16.vlgmr.msra.gmra.mxu0 %v11982_v3  ;;  %v11002_v3 = vld [vmem:[#allocation7 + $0x16c] sm:$0xf]  ;;  %v8664_v12 = vor.u32 %v11025_v56, %v8663_v7  ;;  %v8615_v63 = vld [vmem:[#allocation9 + $0xf8] sm:$0xf]  ;;  %v1853_v7 = vperm.slane %v12151_v55, 2 }
 0x418   :  { %v8575_v32 = vor.u32 %v11002_v3, %v8572_v31  ;;  %v8542_v31 = vld [vmem:[#allocation7 + $0x128] sm:$0xf] }
 0x41a   :  { %2421 = vmatpush.bf16.msrb.mxu0 %v8620_v16  ;;  %2223 = vmatpush.bf16.msra.mxu2 %v8575_v32  ;;  %v10988_v16 = vld [vmem:[#allocation7 + $0xf8] sm:$0xf0]  ;;  %v10995_v32 = vld [vmem:[#allocation7 + $0x130] sm:$0xf0] }
 0x41b   :  { %v8511_v17 = vor.u32 %v10988_v16, %v8510_v14  ;;  %v8543_v35 = vor.u32 %v10995_v32, %v8542_v31 }
 0x41d   :  { %2215 = vmatpush.bf16.msra.mxu1 %v8511_v17  ;;  %v8506_v17 = vld [vmem:[#allocation7 + $0xe0] sm:$0xf] }
 0x41e   :  { %2422 = vmatpush.bf16.msrb.mxu0 %v8608_v19  ;;  %2224 = vmatpush.bf16.msra.mxu2 %v8563_v43  ;;  %v8512_v19 = vld [vmem:[#allocation7 + $0xfc] sm:$0xf0]  ;;  %v8487_v43 = vor.u32 %v10982_v6, %v8486_v37  ;;  %v11017_v37 = vld [vmem:[#allocation9 + $0x124] sm:$0xf] }
 0x41f   :  { %v8515_v21 = vor.u32 %v10987_v18, %v8512_v19  ;;  %v10986_v18 = vld [vmem:[#allocation7 + $0xe8] sm:$0xf0]  ;;  %v11020_v19 = vld [vmem:[#allocation9 + $0x13c] sm:$0xf] }
 0x422   :  { %2423 = vmatpush.bf16.msrb.mxu0 %v8596_v22  ;;  %2225 = vmatpush.bf16.msra.mxu2 %v8551_v58  ;;  %v10998_v22 = vld [vmem:[#allocation7 + $0x148] sm:$0xf0] }
 0x423   :  { %v8555_v23 = vor.u32 %v10998_v22, %v8554_v20  ;;  %v8645_v22 = vld [vmem:[#allocation9 + $0x144] sm:$0xf0] }
 0x424   :  { %v8648_v30 = vor.u32 %v11020_v19, %v8645_v22 }
 0x425   :  { %2238 = vmatpush.bf16.msra.mxu3 %v8555_v23  ;;  %v8651_v23 = vld [vmem:[#allocation9 + $0x140] sm:$0xf] }
 0x426   :  { %2424 = vmatpush.bf16.msrb.mxu0 %v8584_v25  ;;  %2226 = vmatpush.bf16.msra.mxu2 %v8539_v60  ;;  %v8498_v25 = vld [vmem:[#allocation7 + $0xd8] sm:$0xf]  ;;  %v1634_v60 = vperm.slane %v12142_v46, 0 }
 0x427   :  { %v8499_v3 = vor.u32 %v10985_v36, %v8498_v25  ;;  %v11022_v25 = vld [vmem:[#allocation9 + $0x148] sm:$0xf0] }
 0x428   :  { %v8652_v31 = vor.u32 %v11022_v25, %v8651_v23  ;;  %v11005_v23 = vld [vmem:[#allocation9 + $0xc4] sm:$0xf] }
 0x429   :  { %2425 = vmatmul.bf16.vlgmr.msrb.gmra.mxu0 %v12034_v59  ;;  %2216 = vmatpush.bf16.msra.mxu1 %v8499_v3 }
 0x42a   :  { %2227 = vmatpush.bf16.msra.mxu2 %v8527_v9  ;;  %2239 = vmatpush.bf16.msra.mxu3 %v8543_v35  ;;  %v8660_v9 = vor.u32 %v11023_v2, %v8657_v5  ;;  %v10983_v35 = vld [vmem:[#allocation7 + $0xd0] sm:$0xf0]  ;;  %v1636_v5 = vperm.slane %v12142_v46, 2 }
 0x42d   :  { %2217 = vmatpush.bf16.msra.mxu1 %v8487_v43  ;;  %v8639_v43 = vld [vmem:[#allocation9 + $0x128] sm:$0xf] }
 0x42e   :  { %2228 = vmatpush.bf16.msra.mxu2 %v8515_v21  ;;  %v8507_v21 = vor.u32 %v10986_v18, %v8506_v17  ;;  %v11010_v17 = vld [vmem:[#allocation9 + $0xe8] sm:$0xf0] }
 0x431   :  { %2430 = vmatpush.bf16.msrb.mxu1 %v8672_v38  ;;  %v11011_v38 = vld [vmem:[#allocation9 + $0xf4] sm:$0xf] }
 0x432   :  { %2229 = vmatpush.bf16.msra.mxu2 %v8503_v34  ;;  %v8494_v34 = vld [vmem:[#allocation7 + $0xc8] sm:$0xf] }
 0x433   :  { %v8495_v6 = vor.u32 %v10983_v35, %v8494_v34 }
 0x435   :  { %2431 = vmatpush.bf16.msrb.mxu1 %v8660_v9  ;;  %v11008_v9 = vld [vmem:[#allocation9 + $0xdc] sm:$0xf] }
 0x439   :  { %2432 = vmatpush.bf16.msrb.mxu1 %v8648_v30  ;;  %v8591_v30 = vld [vmem:[#allocation9 + $0xc8] sm:$0xf] }
 0x466   :  { %v12131_v26 = vpop.f32.mrf.mxu0  ;;  %v12133_v29 = vpop.f32.mrf.mxu1 }
 0x46d   :  { %v12135_v44 = vpop.f32.mrf.mxu2 }
 0x46e   :  { %v1570_v45 = vpop.f32.mrf.mxu0  ;;  %v1583_v49 = vpop.f32.mrf.mxu1 }
 0x46f   :  { %v8488_v45 = vld [vmem:[#allocation7 + $0xcc] sm:$0xf0] }
 0x470   :  { %v8530_v49 = vld [vmem:[#allocation7 + $0x110] sm:$0xf]  ;;  %v8491_v48 = vor.u32 %v10981_v39, %v8488_v45  ;;  %v11019_v45 = vld [vmem:[#allocation9 + $0x130] sm:$0xf0] }
 0x471   :  { %v8531_v51 = vor.u32 %v10992_v50, %v8530_v49  ;;  %v8633_v39 = vld [vmem:[#allocation9 + $0x12c] sm:$0xf0]  ;;  %v8640_v50 = vor.u32 %v11019_v45, %v8639_v43 }
 0x472   :  { %2230 = vmatpush.bf16.msra.mxu2 %v8491_v48  ;;  %v8636_v48 = vor.u32 %v11017_v37, %v8633_v39 }
 0x473   :  { %2240 = vmatpush.bf16.msra.mxu3 %v8531_v51  ;;  %v8627_v51 = vld [vmem:[#allocation9 + $0x110] sm:$0xf] }
 0x474   :  { %2433 = vmatpush.bf16.msrb.mxu1 %v8636_v48 }
 0x475   :  { %v1596_v61 = vpop.f32.mrf.mxu2 }
 0x476   :  { %v8676_v61 = vor.u32 %v11028_v13, %v8675_v54  ;;  %v11016_v13 = vld [vmem:[#allocation9 + $0x118] sm:$0xf0] }
 0x477   :  { %2241 = vmatpush.bf16.msra.mxu3 %v8519_v4  ;;  %v1852_v4 = vperm.slane %v12151_v55, 1 }
 0x478   :  { %2443 = vmatpush.bf16.msrb.mxu2 %v8676_v61  ;;  %v8609_v61 = vld [vmem:[#allocation9 + $0xfc] sm:$0xf0] }
 0x479   :  { %v8612_v56 = vor.u32 %v11011_v38, %v8609_v61 }
 0x47b   :  { %2242 = vmatpush.bf16.msra.mxu3 %v8507_v21 }
 0x47c   :  { %2444 = vmatpush.bf16.msrb.mxu2 %v8664_v12 }
 0x47d   :  { %v12137_v27 = vpop.f32.mrf.mxu2 }
 0x47e   :  { %v1995_v36 = vadd.f32 %v12137_v27, %v1851_v8  ;;  %v1635_v27 = vperm.slane %v12142_v46, 1  ;;  %v8616_v8 = vor.u32 %v11013_v52, %v8615_v63  ;;  %v11031_v63 = vld [vmem:[%s12836_s11 + $0x10] sm:$0xff] }
 0x47f   :  { %2243 = vmatpush.bf16.msra.mxu3 %v8495_v6 }
 0x480   :  { %2445 = vmatpush.bf16.msrb.mxu2 %v8652_v31  ;;  %v11007_v31 = vld [vmem:[#allocation9 + $0xd0] sm:$0xf0] }
 0x481   :  { %v8592_v35 = vor.u32 %v11007_v31, %v8591_v30 }
 0x484   :  { %v12144_v47 = vpop.f32.mrf.mxu0  ;;  %2446 = vmatpush.bf16.msrb.mxu2 %v8640_v50 }
 0x485   :  { %v12146_v58 = vpop.f32.mrf.mxu1  ;;  %v1996_v10 = vpop.f32.mrf.mxu2  ;;  %v1798_v2 = vadd.f32 %v12144_v47, %v1635_v27 }
 0x486   :  { %v8621_v10 = vld [vmem:[#allocation9 + $0x114] sm:$0xf0]  ;;  %v1811_v25 = vadd.f32 %v12146_v58, %v1636_v5  ;;  %v11030_v5 = vld [vmem:[%s12836_s11 + $0x8] sm:$0xff] }
 0x487   :  { %v8624_v54 = vor.u32 %v11014_v42, %v8621_v10 }
 0x488   :  { %v1816_v37 = vadd.f32 %v1811_v25, %v12135_v44 }
 0x489   :  { %2434 = vmatpush.bf16.msrb.mxu1 %v8624_v54  ;;  %v11033_v54 = vld [vmem:[%s12836_s11 + $0x20] sm:$0xff] }
 0x48a   :  { %v1784_v14 = vpop.f32.mrf.mxu3 }
 0x48b   :  { %v1785_v16 = vadd.f32 %v1784_v14, %v1634_v60  ;;  %v8628_v60 = vor.u32 %v11016_v13, %v8627_v51  ;;  %v8597_v14 = vld [vmem:[#allocation9 + $0xe4] sm:$0xf0]  ;;  %v11035_v51 = vld [vmem:[%s12836_s11 + $0x30] sm:$0xff]  ;;  %v8483_v13 = vld [vmem:[%s12834_s9 + $0x3] sm:$0x7] }
 0x48c   :  { %v1799_v20 = vpop.f32.mrf.mxu0  ;;  %v8600_v46 = vor.u32 %v11008_v9, %v8597_v14  ;;  %v2076_v61 = vperm.slane %v8483_v13, 0  ;;  %v11029_v9 = vld [vmem:[%s12836_s11] sm:$0xff]  ;;  %v2078_v25 = vperm.slane %v8483_v13, 2 }
 0x48d   :  { %v1814_v40 = vadd.f32 %v1785_v16, %v12131_v26  ;;  %v1812_v3 = vpop.f32.mrf.mxu1  ;;  %2447 = vmatpush.bf16.msrb.mxu2 %v8628_v60  ;;  %v8603_v16 = vld [vmem:[#allocation9 + $0xe0] sm:$0xf]  ;;  %v1815_v20 = vadd.f32 %v1798_v2, %v12133_v29  ;;  %2435 = vmatpush.bf16.msrb.mxu1 %v8612_v56  ;;  %v11032_v60 = vld [vmem:[%s12836_s11 + $0x18] sm:$0xff] }
 0x48e   :  { %v8604_v55 = vor.u32 %v11010_v17, %v8603_v16  ;;  %v8585_v3 = vld [vmem:[#allocation9 + $0xcc] sm:$0xf0]  ;;  %v2077_v16 = vperm.slane %v8483_v13, 1 }
 0x48f   :  { %v2024_v32 = vadd.f32 %v1995_v36, %v1814_v40  ;;  %v8588_v29 = vor.u32 %v11005_v23, %v8585_v3 }
 0x491   :  { %v2025_v49 = vmul.f32 0.5, %v2024_v32  ;;  %2448 = vmatpush.bf16.msrb.mxu2 %v8616_v8  ;;  %2436 = vmatpush.bf16.msrb.mxu1 %v8600_v46 }
 0x492   :  { %v1786_v26 = vpop.f32.mrf.mxu3 }
 0x493   :  { %11603 = vtanh.f32 %v2025_v49 }
 0x494   :  { %v2020_v53 = vpop.f32.mrf.mxu0 }
 0x495   :  { %v2021_v36 = vadd.f32 %v2020_v53, %v1853_v7  ;;  %2449 = vmatpush.bf16.msrb.mxu2 %v8604_v55  ;;  %2437 = vmatpush.bf16.msrb.mxu1 %v8588_v29  ;;  %v11034_v53 = vld [vmem:[%s12836_s11 + $0x28] sm:$0xff] }
 0x499   :  { %v11604_v12 = vpop.eup %11603  ;;  %2450 = vmatpush.bf16.msrb.mxu2 %v8592_v35 }
 0x49a   :  { %v2027_v18 = vadd.f32 1.0, %v11604_v12  ;;  %v2007_v19 = vpop.f32.mrf.mxu3 }
 0x49b   :  { %v2008_v47 = vadd.f32 %v2007_v19, %v1852_v4 }
 0x49c   :  { %v2028_v21 = vmul.f32 0.5, %v2027_v18  ;;  %v2022_v22 = vpop.f32.mrf.mxu0 }
 0x49d   :  { %v2029_v40 = vadd.f32 %v2008_v47, %v1815_v20 }
 0x49e   :  { %v2034_v32 = vmul.f32 %v2028_v21, %v2021_v36 }
 0x49f   :  { %v2030_v34 = vmul.f32 0.5, %v2029_v40 }
 0x4a0   :  { %v2035_v39 = vadd.f32 %v2034_v32, %v1816_v37 }
 0x4a1   :  { %11605 = vtanh.f32 %v2030_v34 }
 0x4a2   :  { %v2009_v6 = vpop.f32.mrf.mxu3  ;;  %11607 = vtanh.f32 %v2035_v39 }
 0x4a6   :  { %v2426_v43 = vpop.f32.mrf.mxu0 }
 0x4a7   :  { %v11606_v58 = vpop.eup %11605 }
 0x4a8   :  { %v2032_v45 = vadd.f32 1.0, %v11606_v58  ;;  %v11608_v27 = vpop.eup %11607 }
 0x4aa   :  { %v2033_v49 = vmul.f32 0.5, %v2032_v45 }
 0x4ac   :  { %v2037_v48 = vsub.f32 1.0, %v2033_v49  ;;  %v2039_v42 = vmul.f32 %v2033_v49, %v11978_v1  ;;  %v11036_v1 = vld [vmem:[%s12836_s11 + $0x38] sm:$0xff] }
 0x4ad   :  { %2538 = vmatpush.bf16.msrb.mxu3 %v11036_v1  ;;  %v12226_v1 = vld [vmem:[%s12828_s3 + $0x8] sm:$0x3] }
 0x4ae   :  { %v2428_v50 = vpop.f32.mrf.mxu0  ;;  %v2038_v26 = vmul.f32 %v11608_v27, %v2037_v48 }
 0x4b0   :  { %v12166_v10 = vadd.f32 %v2039_v42, %v2038_v26  ;;  %v12220_v42 = vld [vmem:[%s12828_s3] sm:$0xff] }
 0x4b1   :  { %2539 = vmatpush.bf16.msrb.mxu3 %v11035_v51 }
 0x4b2   :  { %v12170_v44 = vpack.c.bf16 %v12166_v10, %v12166_v10 }
 0x4b4   :  { %2218 = vmatmul.bf16.vlgmr.msra.gmra.mxu1 %v12170_v44  ;;  %2231 = vmatmul.bf16.vlgmr.msra.gmra.mxu2 %v12170_v44 }
 0x4b5   :  { %2244 = vmatmul.bf16.vlgmr.msra.gmra.mxu3 %v12170_v44 }
 0x4b6   :  { %2540 = vmatpush.bf16.msrb.mxu3 %v11034_v53 }
 0x4ba   :  { %2541 = vmatpush.bf16.msrb.mxu3 %v11033_v54 }
 0x4be   :  { %2542 = vmatpush.bf16.msrb.mxu3 %v11032_v60  ;;  %v12239_v60 = vld [vmem:[%s12828_s3 + $0x18] sm:$0x3] }
 0x4c2   :  { %2543 = vmatpush.bf16.msrb.mxu3 %v11031_v63 }
 0x4c4   :  { %2438 = vmatmul.bf16.vlgmr.msrb.gmra.mxu1 %v12034_v59  ;;  %2451 = vmatmul.bf16.vlgmr.msrb.gmra.mxu2 %v12034_v59  ;;  %v8580_v59 = vld [vmem:[%s12835_s10 + $0x3] sm:$0x7] }
 0x4c5   :  { %v2283_v38 = vperm.slane %v8580_v59, 0  ;;  %v2284_v17 = vperm.slane %v8580_v59, 1  ;;  %v2285_v55 = vperm.slane %v8580_v59, 2  ;;  %v12233_v59 = vld [vmem:[%s12828_s3 + $0x10] sm:$0xff] }
 0x4c6   :  { %2544 = vmatpush.bf16.msrb.mxu3 %v11030_v5 }
 0x4c7   :  { %v2427_v2 = vadd.f32 %v2426_v43, %v2283_v38 }
 0x4ca   :  { %2545 = vmatpush.bf16.msrb.mxu3 %v11029_v9 }
 0x531   :  { %v2219_v52 = vpop.f32.mrf.mxu1 }
 0x532   :  { %v2220_v4 = vadd.f32 %v2219_v52, %v2076_v61 }
 0x534   :  { %v2456_v7 = vadd.f32 %v2427_v2, %v2220_v4 }
 0x536   :  { %v2457_v56 = vmul.f32 0.5, %v2456_v7 }
 0x537   :  { %v2232_v8 = vpop.f32.mrf.mxu2 }
 0x538   :  { %v2245_v12 = vpop.f32.mrf.mxu3  ;;  %11609 = vtanh.f32 %v2457_v56  ;;  %v2233_v21 = vadd.f32 %v2232_v8, %v2077_v16 }
 0x539   :  { %v2221_v14 = vpop.f32.mrf.mxu1  ;;  %v2246_v32 = vadd.f32 %v2245_v12, %v2078_v25 }
 0x53e   :  { %v11610_v20 = vpop.eup %11609 }
 0x53f   :  { %v2234_v18 = vpop.f32.mrf.mxu2  ;;  %v2459_v23 = vadd.f32 1.0, %v11610_v20 }
 0x540   :  { %v2247_v19 = vpop.f32.mrf.mxu3  ;;  %v11683_v18 = vld [vmem:[%s12837_s12] ss:$0 sm:$0xff] }
 0x541   :  { %v2439_v47 = vpop.f32.mrf.mxu1  ;;  %v2460_v30 = vmul.f32 0.5, %v2459_v23 }
 0x542   :  { %v2440_v22 = vadd.f32 %v2439_v47, %v2284_v17 }
 0x544   :  { %v2461_v46 = vadd.f32 %v2440_v22, %v2233_v21 }
 0x546   :  { %v2462_v36 = vmul.f32 0.5, %v2461_v46 }
 0x547   :  { %v2452_v40 = vpop.f32.mrf.mxu2 }
 0x548   :  { %11611 = vtanh.f32 %v2462_v36  ;;  %v2453_v3 = vadd.f32 %v2452_v40, %v2285_v55 }
 0x549   :  { %v2441_v31 = vpop.f32.mrf.mxu1 }
 0x54a   :  { %v2466_v34 = vmul.f32 %v2460_v30, %v2453_v3 }
 0x54c   :  { %v2467_v29 = vadd.f32 %v2466_v34, %v2246_v32  ;;  %v8709_v32 = vld [vmem:[%s12826_s1 + $0x4] sm:$0x3] }
 0x54e   :  { %v11612_v35 = vpop.eup %11611  ;;  %11613 = vtanh.f32 %v2467_v29 }
 0x54f   :  { %v2464_v37 = vadd.f32 1.0, %v11612_v35  ;;  %v2454_v6 = vpop.f32.mrf.mxu2 }
 0x550   :  { %v11059_v6 = vld [vmem:[#allocation4 + $0xb0] sm:$0xf0] }
 0x551   :  { %v2465_v39 = vmul.f32 0.5, %v2464_v37  ;;  %v8799_v37 = vld [vmem:[#allocation4 + $0xa8] sm:$0xf] }
 0x553   :  { %v2469_v43 = vsub.f32 1.0, %v2465_v39  ;;  %v2471_v45 = vmul.f32 %v2465_v39, %v12020_v57  ;;  %v8895_v39 = vld [vmem:[#allocation7 + $0xa8] sm:$0xf] }
 0x554   :  { %v11614_v58 = vpop.eup %11613 }
 0x555   :  { %v2470_v49 = vmul.f32 %v11614_v58, %v2469_v43  ;;  %v8800_v43 = vor.u32 %v11059_v6, %v8799_v37  ;;  %v11083_v58 = vld [vmem:[#allocation7 + $0xb0] sm:$0xf0]  ;;  %v11054_v6 = vld [vmem:[#allocation4 + $0x88] sm:$0xf0] }
 0x557   :  { %v12208_v48 = vadd.f32 %v2471_v45, %v2470_v49  ;;  %v8787_v45 = vld [vmem:[#allocation4 + $0x90] sm:$0xf]  ;;  %v11056_v49 = vld [vmem:[#allocation4 + $0x98] sm:$0xf0]  ;;  %2833 = vmatpush.bf16.msra.mxu0 %v8800_v43 }
 0x558   :  { %v11068_v43 = vld [vmem:[#allocation7 + $0x38] sm:$0xf0] }
 0x559   :  { %v12212_v50 = vpack.c.bf16 %v12208_v48, %v12208_v48  ;;  %v2555_v27 = vperm.slane %v12208_v48, 0  ;;  %v2554_v26 = vrot.slane %v12208_v48, 1 }
 0x55b   :  { %2546 = vmatmul.bf16.vlgmr.msrb.gmra.mxu3 %v12212_v50  ;;  %v2559_v57 = vmul.f32 %v12220_v42, %v2555_v27  ;;  %v2560_v51 = vmul.f32 %v12226_v1, %v2555_v27  ;;  %v2556_v53 = vperm.slane %v2554_v26, 0  ;;  %v8896_v27 = vor.u32 %v11083_v58, %v8895_v39  ;;  %v8883_v26 = vld [vmem:[#allocation7 + $0x90] sm:$0xf] }
 0x55c   :  { %v8835_v39 = vld [vmem:[#allocation7 + $0x30] sm:$0xf] }
 0x55d   :  { %2563 = vadd.xlane.f32.xlu1 %v2559_v57  ;;  %v2565_v54 = vsel %vm1285_vm2, %v2560_v51, 0.0  ;;  %v2561_v13 = vmul.f32 %v12233_v59, %v2556_v53  ;;  %v2562_v38 = vmul.f32 %v12239_v60, %v2556_v53  ;;  %v11080_v57 = vld [vmem:[#allocation7 + $0x98] sm:$0xf0]  ;;  %v8788_v51 = vor.u32 %v11056_v49, %v8787_v45  ;;  %3049 = vmatpush.bf16.msra.mxu3 %v8896_v27  ;;  %v8727_v49 = vld [vmem:[#allocation4 + $0x18] sm:$0xf] }
 0x55e   :  { %2566 = vadd.xlane.f32.xlu0 %v2565_v54  ;;  %v8884_v53 = vor.u32 %v11080_v57, %v8883_v26  ;;  %v8775_v54 = vld [vmem:[#allocation4 + $0x78] sm:$0xf]  ;;  %v8836_v45 = vor.u32 %v11068_v43, %v8835_v39  ;;  %v11041_v27 = vld [vmem:[#allocation4 + $0x20] sm:$0xf0]  ;;  %v11040_v43 = vld [vmem:[#allocation4 + $0x1c] sm:$0xf] }
 0x55f   :  { %2568 = vadd.xlane.f32.xlu2 %v2561_v13  ;;  %v2570_v61 = vsel %vm1285_vm2, %v2562_v38, 0.0  ;;  %2834 = vmatpush.bf16.msra.mxu0 %v8788_v51  ;;  %v11053_v13 = vld [vmem:[#allocation4 + $0x80] sm:$0xf0]  ;;  %v8728_v26 = vor.u32 %v11041_v27, %v8727_v49  ;;  %v8765_v51 = vld [vmem:[#allocation4 + $0x6c] sm:$0xf0] }
 0x560   :  { %v8776_v38 = vor.u32 %v11053_v13, %v8775_v54  ;;  %v11049_v57 = vld [vmem:[#allocation4 + $0x64] sm:$0xf]  ;;  %v11051_v13 = vld [vmem:[#allocation4 + $0x70] sm:$0xf0]  ;;  %v11042_v27 = vld [vmem:[#allocation4 + $0x28] sm:$0xf0] }
 0x561   :  { %3050 = vmatpush.bf16.msra.mxu3 %v8884_v53  ;;  %v8771_v53 = vld [vmem:[#allocation4 + $0x68] sm:$0xf]  ;;  %v8768_v54 = vor.u32 %v11049_v57, %v8765_v51  ;;  %v11100_v57 = vld [vmem:[#allocation9 + $0x7c] sm:$0xf] }
 0x562   :  { %v8969_v51 = vld [vmem:[#allocation9 + $0x84] sm:$0xf0] }
 0x563   :  { %2835 = vmatpush.bf16.msra.mxu0 %v8776_v38  ;;  %v8823_v38 = vld [vmem:[#allocation7 + $0x18] sm:$0xf] }
 0x566   :  { %2571 = vadd.xlane.f32.xlu0 %v2570_v61  ;;  %v8871_v61 = vld [vmem:[#allocation7 + $0x78] sm:$0xf] }
 0x5d0   :  { %v2564_v52 = vpop.xlane.xlu1 %2563 }
 0x5d1   :  { %v2567_v63 = vpop.xlane.xlu0 %2566  ;;  %v2577_v4 = vperm.slane %v2564_v52, %v11928_v11 }
 0x5d2   :  { %v2569_v2 = vpop.xlane.xlu2 %2568  ;;  %v2578_v5 = vperm.slane %v2567_v63, %v12056_v28  ;;  %v11077_v63 = vld [vmem:[#allocation7 + $0x80] sm:$0xf0] }
 0x5d3   :  { %v2580_v56 = vperm.slane %v2569_v2, %v11928_v11  ;;  %v8872_v52 = vor.u32 %v11077_v63, %v8871_v61  ;;  %v8763_v2 = vld [vmem:[#allocation4 + $0x60] sm:$0xf]  ;;  %v11065_v61 = vld [vmem:[#allocation7 + $0x20] sm:$0xf0]  ;;  %v8772_v63 = vor.u32 %v11051_v13, %v8771_v53 }
 0x5d4   :  { %v2579_v9 = vsel %vm1302_vm3, %v2578_v5, %v2577_v4  ;;  %v11050_v4 = vld [vmem:[#allocation4 + $0x68] sm:$0xf0]  ;;  %v11073_v13 = vld [vmem:[#allocation7 + $0x64] sm:$0xf] }
 0x5d5   :  { %v8764_v5 = vor.u32 %v11050_v4, %v8763_v2  ;;  %3051 = vmatpush.bf16.msra.mxu3 %v8872_v52  ;;  %v8824_v52 = vor.u32 %v11065_v61, %v8823_v38  ;;  %v8715_v2 = vld [vmem:[#allocation4] sm:$0xf]  ;;  %v11038_v4 = vld [vmem:[#allocation4 + $0x8] sm:$0xf0]  ;;  %v8861_v38 = vld [vmem:[#allocation7 + $0x6c] sm:$0xf0] }
 0x5d7   :  { %2836 = vmatpush.bf16.msra.mxu0 %v8764_v5  ;;  %v8716_v5 = vor.u32 %v11038_v4, %v8715_v2  ;;  %v8717_v2 = vld [vmem:[#allocation4 + $0xc] sm:$0xf0]  ;;  %v8723_v4 = vld [vmem:[#allocation4 + $0x8] sm:$0xf] }
 0x5d9   :  { %v2572_v7 = vpop.xlane.xlu0 %2571 }
 0x5da   :  { %v2581_v8 = vperm.slane %v2572_v7, %v12056_v28  ;;  %v11058_v7 = vld [vmem:[#allocation4 + $0xac] sm:$0xf] }
 0x5dc   :  { %v2582_v12 = vsel %vm1302_vm3, %v2581_v8, %v2580_v56  ;;  %v8801_v56 = vld [vmem:[#allocation4 + $0xb4] sm:$0xf0]  ;;  %v8807_v8 = vld [vmem:[#allocation4 + $0xb0] sm:$0xf] }
 0x5dd   :  { %v2583_v14 = vsel %vm1307_vm4, %v2582_v12, %v2579_v9  ;;  %v8804_v9 = vor.u32 %v11058_v7, %v8801_v56  ;;  %v11060_v12 = vld [vmem:[#allocation4 + $0xb8] sm:$0xf0]  ;;  %v11082_v7 = vld [vmem:[#allocation7 + $0xac] sm:$0xf]  ;;  %v8897_v56 = vld [vmem:[#allocation7 + $0xb4] sm:$0xf0] }
 0x5de   :  { %v2547_v16 = vpop.f32.mrf.mxu3  ;;  %v2585_v17 = vsel %vm1294_vm5, -9000.0, %v2583_v14  ;;  %v8859_v14 = vld [vmem:[#allocation7 + $0x60] sm:$0xf] }
 0x5df   :  { %v2548_v19 = vadd.f32 %v11683_v18, %v2547_v16  ;;  %v2586_v20 = vsel %vm1311_vm6, %v2585_v17, -inf  ;;  %v11074_v16 = vld [vmem:[#allocation7 + $0x68] sm:$0xf0]  ;;  %2846 = vmatpush.bf16.msra.mxu1 %v8804_v9 }
 0x5e0   :  { %2587 = vmax.xlane.f32.xlu0 %v2586_v20  ;;  %v8860_v18 = vor.u32 %v11074_v16, %v8859_v14  ;;  %v11047_v20 = vld [vmem:[#allocation4 + $0x50] sm:$0xf0]  ;;  %v11046_v9 = vld [vmem:[#allocation4 + $0x4c] sm:$0xf]  ;;  %v8759_v14 = vld [vmem:[#allocation4 + $0x50] sm:$0xf] }
 0x5e1   :  { %2552 = vst [vmem:[#allocation10 + $0x2] sm:$0x3] %v2548_v19  ;;  %v2651_v25 = vsel %vm1285_vm2, %v2548_v19, -inf }
 0x5e2   :  { %3052 = vmatpush.bf16.msra.mxu3 %v8860_v18  ;;  %v8811_v18 = vld [vmem:[#allocation7] sm:$0xf] }
 0x5e6   :  { %v2549_v47 = vpop.f32.mrf.mxu3 }
 0x653   :  { %v2588_v21 = vpop.xlane.xlu0 %2587 }
 0x654   :  { %v2589_v22 = vsub.f32 %v2585_v17, %v2588_v21  ;;  %v8808_v17 = vor.u32 %v11060_v12, %v8807_v8  ;;  %v11055_v21 = vld [vmem:[#allocation4 + $0x94] sm:$0xf]  ;;  %v8900_v8 = vor.u32 %v11082_v7, %v8897_v56  ;;  %v8753_v12 = vld [vmem:[#allocation4 + $0x54] sm:$0xf0] }
 0x655   :  { %v8756_v16 = vor.u32 %v11046_v9, %v8753_v12  ;;  %v11039_v56 = vld [vmem:[#allocation4 + $0x10] sm:$0xf0]  ;;  %v11084_v9 = vld [vmem:[#allocation7 + $0xb8] sm:$0xf0] }
 0x656   :  { %v2590_v46 = vmul.f32 1.442695, %v2589_v22  ;;  %2859 = vmatpush.bf16.msra.mxu2 %v8808_v17  ;;  %v8789_v22 = vld [vmem:[#allocation4 + $0x9c] sm:$0xf0]  ;;  %v11048_v17 = vld [vmem:[#allocation4 + $0x58] sm:$0xf0] }
 0x658   :  { %11615 = vpow2.f32 %v2590_v46  ;;  %v8795_v46 = vld [vmem:[#allocation4 + $0x98] sm:$0xf] }
 0x65e   :  { %v11616_v55 = vpop.eup %11615 }
 0x65f   :  { %v2592_v23 = vsel %vm1311_vm6, %v11616_v55, 0.0 }
 0x660   :  { %2593 = vadd.xlane.f32.xlu0 %v2592_v23  ;;  %v11057_v23 = vld [vmem:[#allocation4 + $0xa0] sm:$0xf0] }
 0x668   :  { %2652 = vmax.xlane.f32.xlu0 %v2651_v25  ;;  %v8847_v25 = vld [vmem:[#allocation7 + $0x48] sm:$0xf] }
 0x6d3   :  { %v2594_v36 = vpop.xlane.xlu0 %2593 }
 0x6d4   :  { %11617 = vrcp.f32 %v2594_v36  ;;  %v11071_v36 = vld [vmem:[#allocation7 + $0x50] sm:$0xf0] }
 0x6da   :  { %v11618_v40 = vpop.eup %11617 }
 0x6db   :  { %v2596_v3 = vmul.f32 %v11618_v40, %v11616_v55  ;;  %v2653_v34 = vpop.xlane.xlu0 %2652  ;;  %v8792_v55 = vor.u32 %v11055_v21, %v8789_v22  ;;  %v8796_v40 = vor.u32 %v11057_v23, %v8795_v46  ;;  %v11106_v21 = vld [vmem:[#allocation9 + $0xac] sm:$0xf]  ;;  %v8993_v22 = vld [vmem:[#allocation9 + $0xb4] sm:$0xf0]  ;;  %v8885_v23 = vld [vmem:[#allocation7 + $0x9c] sm:$0xf0] }
 0x6dc   :  { %vm2654_vm10 = vcmp.eq.f32.partialorder %v2548_v19, %v2653_v34  ;;  %v8751_v19 = vld [vmem:[#allocation4 + $0x48] sm:$0xf]  ;;  %v11052_v34 = vld [vmem:[#allocation4 + $0x7c] sm:$0xf]  ;;  %v8996_v46 = vor.u32 %v11106_v21, %v8993_v22  ;;  %v8957_v21 = vld [vmem:[#allocation9 + $0x6c] sm:$0xf0] }
 0x6dd   :  { %v2610_v30 = vperm.slane %v2596_v3, 1  ;;  %v2597_v31 = vperm.slane %v2596_v3, 0  ;;  %v2655_v29 = vsel %vm2654_vm10, %v12079_v33, 128.0  ;;  %v8752_v47 = vor.u32 %v11047_v20, %v8751_v19  ;;  %2847 = vmatpush.bf16.msra.mxu1 %v8792_v55  ;;  %2860 = vmatpush.bf16.msra.mxu2 %v8796_v40  ;;  %v11062_v19 = vld [vmem:[#allocation7 + $0x8] sm:$0xf0] }
 0x6de   :  { %v2656_v35 = vsel %vm1285_vm2, %v2655_v29, inf  ;;  %v8848_v3 = vor.u32 %v11071_v36, %v8847_v25  ;;  %v8777_v29 = vld [vmem:[#allocation4 + $0x84] sm:$0xf0]  ;;  %v8760_v20 = vor.u32 %v11048_v17, %v8759_v14  ;;  %v11079_v55 = vld [vmem:[#allocation7 + $0x94] sm:$0xf]  ;;  %v8724_v14 = vor.u32 %v11039_v56, %v8723_v4 }
 0x6df   :  { %2621 = vperm.xlu1 %11568, %v2610_v30   ;;  %2602 = vperm.xlu2 %11569, %v2597_v31   ;;  %v8780_v37 = vor.u32 %v11052_v34, %v8777_v29  ;;  %v8888_v25 = vor.u32 %v11079_v55, %v8885_v23  ;;  %v11043_v36 = vld [vmem:[#allocation4 + $0x34] sm:$0xf]  ;;  %v8741_v40 = vld [vmem:[#allocation4 + $0x3c] sm:$0xf0]  ;;  %v8991_v17 = vld [vmem:[#allocation9 + $0xa8] sm:$0xf] }
 0x6e0   :  { %2608 = vperm.xlu0 %11567, %v2597_v31   ;;  %2837 = vmatpush.bf16.msra.mxu0 %v8752_v47  ;;  %v11044_v31 = vld [vmem:[#allocation4 + $0x38] sm:$0xf0]  ;;  %v8812_v47 = vor.u32 %v11062_v19, %v8811_v18  ;;  %v11103_v34 = vld [vmem:[#allocation9 + $0x94] sm:$0xf]  ;;  %v8981_v29 = vld [vmem:[#allocation9 + $0x9c] sm:$0xf0] }
 0x6e1   :  { %3053 = vmatpush.bf16.msra.mxu3 %v8848_v3  ;;  %2848 = vmatpush.bf16.msra.mxu1 %v8780_v37  ;;  %v8747_v3 = vld [vmem:[#allocation4 + $0x38] sm:$0xf]  ;;  %v11076_v37 = vld [vmem:[#allocation7 + $0x7c] sm:$0xf]  ;;  %v11107_v18 = vld [vmem:[#allocation9 + $0xb0] sm:$0xf0] }
 0x6e2   :  { %v8849_v55 = vld [vmem:[#allocation7 + $0x54] sm:$0xf0]  ;;  %v8955_v4 = vld [vmem:[#allocation9 + $0x60] sm:$0xf]  ;;  %v11098_v56 = vld [vmem:[#allocation9 + $0x68] sm:$0xf0] }
 0x6e5   :  { %3054 = vmatpush.bf16.msra.mxu3 %v8836_v45  ;;  %2849 = vmatpush.bf16.msra.mxu1 %v8768_v54  ;;  %v8735_v45 = vld [vmem:[#allocation4 + $0x20] sm:$0xf]  ;;  %v8972_v54 = vor.u32 %v11100_v57, %v8969_v51  ;;  %v11091_v57 = vld [vmem:[#allocation9 + $0x34] sm:$0xf] }
 0x6e7   :  { %11570 = vset.pattern.permute.xlu1 %v12085_v41 }
 0x6e9   :  { %3055 = vmatpush.bf16.msra.mxu3 %v8824_v52  ;;  %2850 = vmatpush.bf16.msra.mxu1 %v8756_v16  ;;  %v11037_v52 = vld [vmem:[#allocation4 + $0x4] sm:$0xf] }
 0x6ea   :  { %v8720_v7 = vor.u32 %v11037_v52, %v8717_v2  ;;  %v8867_v52 = vld [vmem:[#allocation7 + $0x68] sm:$0xf]  ;;  %v11075_v2 = vld [vmem:[#allocation7 + $0x70] sm:$0xf0] }
 0x6ed   :  { %3056 = vmatpush.bf16.msra.mxu3 %v8812_v47  ;;  %v11097_v47 = vld [vmem:[#allocation9 + $0x64] sm:$0xf] }
 0x6ef   :  { %2615 = vperm.xlu1 %11570, %v2610_v30   ;;  %v8739_v30 = vld [vmem:[#allocation4 + $0x30] sm:$0xf] }
 0x6f1   :  { %3272 = vmatpush.bf16.msrb.mxu3 %v8996_v46  ;;  %v11070_v46 = vld [vmem:[#allocation7 + $0x4c] sm:$0xf] }
 0x6f2   :  { %v8852_v23 = vor.u32 %v11070_v46, %v8849_v55 }
 0x6f7   :  { %11571 = vset.pattern.permute.xlu1 %v11822_v0 }
 0x6f8   :  { %2646 = vperm.xlu1 %11571, %v8709_v32   ;;  %v8740_v32 = vor.u32 %v11044_v31, %v8739_v30  ;;  %v8744_v30 = vor.u32 %v11043_v36, %v8741_v40  ;;  %v11045_v31 = vld [vmem:[#allocation4 + $0x40] sm:$0xf0]  ;;  %v8979_v36 = vld [vmem:[#allocation9 + $0x90] sm:$0xf] }
 0x6fa   :  { %2838 = vmatpush.bf16.msra.mxu0 %v8740_v32  ;;  %v8748_v32 = vor.u32 %v11045_v31, %v8747_v3  ;;  %2851 = vmatpush.bf16.msra.mxu1 %v8744_v30  ;;  %v11104_v30 = vld [vmem:[#allocation9 + $0x98] sm:$0xf0]  ;;  %v11094_v31 = vld [vmem:[#allocation9 + $0x4c] sm:$0xf] }
 0x6fe   :  { %2839 = vmatpush.bf16.msra.mxu0 %v8728_v26  ;;  %v8736_v26 = vor.u32 %v11042_v27, %v8735_v45  ;;  %v8967_v45 = vld [vmem:[#allocation9 + $0x78] sm:$0xf] }
 0x700   :  { %11572 = vset.pattern.permute.xlu1 %v12088_v62 }
 0x702   :  { %2840 = vmatpush.bf16.msra.mxu0 %v8716_v5 }
 0x706   :  { %3062 = vmatpush.bf16.msrb.mxu0 %v8900_v8  ;;  %v8903_v8 = vld [vmem:[#allocation7 + $0xb0] sm:$0xf] }
 0x707   :  { %v8904_v16 = vor.u32 %v11084_v9, %v8903_v8  ;;  %v11088_v8 = vld [vmem:[#allocation9 + $0x1c] sm:$0xf] }
 0x708   :  { %2657 = vmin.xlane.f32.xlu2 %v2656_v35  ;;  %v8783_v35 = vld [vmem:[#allocation4 + $0x80] sm:$0xf] }
 0x709   :  { %v8784_v58 = vor.u32 %v11054_v6, %v8783_v35  ;;  %v8984_v35 = vor.u32 %v11103_v34, %v8981_v29  ;;  %v8873_v6 = vld [vmem:[#allocation7 + $0x84] sm:$0xf0]  ;;  %v8980_v34 = vor.u32 %v11104_v30, %v8979_v36  ;;  %v8945_v29 = vld [vmem:[#allocation9 + $0x54] sm:$0xf0]  ;;  %v11069_v30 = vld [vmem:[#allocation7 + $0x40] sm:$0xf0] }
 0x70a   :  { %3063 = vmatpush.bf16.msrb.mxu0 %v8888_v25  ;;  %v8876_v39 = vor.u32 %v11076_v37, %v8873_v6  ;;  %v11081_v25 = vld [vmem:[#allocation7 + $0xa0] sm:$0xf0]  ;;  %v8837_v37 = vld [vmem:[#allocation7 + $0x3c] sm:$0xf0]  ;;  %v8948_v6 = vor.u32 %v11094_v31, %v8945_v29  ;;  %v8931_v31 = vld [vmem:[#allocation9 + $0x30] sm:$0xf] }
 0x70b   :  { %2861 = vmatpush.bf16.msra.mxu2 %v8784_v58  ;;  %v8729_v58 = vld [vmem:[#allocation4 + $0x24] sm:$0xf0]  ;;  %3273 = vmatpush.bf16.msrb.mxu3 %v8984_v35  ;;  %v11067_v35 = vld [vmem:[#allocation7 + $0x34] sm:$0xf] }
 0x70c   :  { %v8732_v49 = vor.u32 %v11040_v43, %v8729_v58  ;;  %v8879_v43 = vld [vmem:[#allocation7 + $0x80] sm:$0xf]  ;;  %v11078_v58 = vld [vmem:[#allocation7 + $0x88] sm:$0xf0] }
 0x70d   :  { %v8880_v27 = vor.u32 %v11078_v58, %v8879_v43  ;;  %v11066_v43 = vld [vmem:[#allocation7 + $0x28] sm:$0xf0]  ;;  %v8919_v58 = vld [vmem:[#allocation9 + $0x18] sm:$0xf] }
 0x70e   :  { %3064 = vmatpush.bf16.msrb.mxu0 %v8876_v39  ;;  %2852 = vmatpush.bf16.msra.mxu1 %v8732_v49  ;;  %v8840_v39 = vor.u32 %v11067_v35, %v8837_v37  ;;  %v11092_v35 = vld [vmem:[#allocation9 + $0x38] sm:$0xf0] }
 0x70f   :  { %2862 = vmatpush.bf16.msra.mxu2 %v8772_v63  ;;  %v8864_v63 = vor.u32 %v11073_v13, %v8861_v38  ;;  %3274 = vmatpush.bf16.msrb.mxu3 %v8972_v54  ;;  %v11064_v54 = vld [vmem:[#allocation7 + $0x1c] sm:$0xf]  ;;  %v8825_v13 = vld [vmem:[#allocation7 + $0x24] sm:$0xf0]  ;;  %v8932_v37 = vor.u32 %v11092_v35, %v8931_v31 }
 0x710   :  { %v11096_v31 = vld [vmem:[#allocation9 + $0x58] sm:$0xf0] }
 0x712   :  { %3065 = vmatpush.bf16.msrb.mxu0 %v8864_v63  ;;  %2853 = vmatpush.bf16.msra.mxu1 %v8720_v7  ;;  %v8828_v63 = vor.u32 %v11064_v54, %v8825_v13  ;;  %v8868_v7 = vor.u32 %v11075_v2, %v8867_v52  ;;  %v11063_v54 = vld [vmem:[#allocation7 + $0x10] sm:$0xf0]  ;;  %v8907_v13 = vld [vmem:[#allocation9] sm:$0xf]  ;;  %v11086_v52 = vld [vmem:[#allocation9 + $0x8] sm:$0xf0] }
 0x713   :  { %2863 = vmatpush.bf16.msra.mxu2 %v8760_v20  ;;  %v8992_v20 = vor.u32 %v11107_v18, %v8991_v17  ;;  %v8813_v17 = vld [vmem:[#allocation7 + $0xc] sm:$0xf0]  ;;  %v8908_v2 = vor.u32 %v11086_v52, %v8907_v13  ;;  %v11149_v13 = vld [vmem:[#allocation9 + $0x140] sm:$0xf0] }
 0x716   :  { %3075 = vmatpush.bf16.msrb.mxu1 %v8904_v16  ;;  %3066 = vmatpush.bf16.msrb.mxu0 %v8852_v23  ;;  %v11061_v16 = vld [vmem:[#allocation7 + $0x4] sm:$0xf]  ;;  %v11095_v23 = vld [vmem:[#allocation9 + $0x50] sm:$0xf0] }
 0x717   :  { %2864 = vmatpush.bf16.msra.mxu2 %v8748_v32 }
 0x71a   :  { %3067 = vmatpush.bf16.msrb.mxu0 %v8840_v39  ;;  %v8831_v39 = vld [vmem:[#allocation7 + $0x20] sm:$0xf] }
 0x71b   :  { %2865 = vmatpush.bf16.msra.mxu2 %v8736_v26  ;;  %v11101_v26 = vld [vmem:[#allocation9 + $0x80] sm:$0xf0] }
 0x71c   :  { %v8968_v51 = vor.u32 %v11101_v26, %v8967_v45  ;;  %v11089_v26 = vld [vmem:[#allocation9 + $0x20] sm:$0xf0] }
 0x71e   :  { %3068 = vmatpush.bf16.msrb.mxu0 %v8828_v63 }
 0x71f   :  { %2866 = vmatpush.bf16.msra.mxu2 %v8724_v14  ;;  %v8921_v14 = vld [vmem:[#allocation9 + $0x24] sm:$0xf0] }
 0x723   :  { %3259 = vmatpush.bf16.msrb.mxu2 %v8992_v20  ;;  %v8816_v20 = vor.u32 %v11061_v16, %v8813_v17  ;;  %v2669_v16 = vstv %s2668_s23 }
 0x725   :  { %3069 = vmatpush.bf16.msrb.mxu0 %v8816_v20  ;;  %v8999_v20 = vld [vmem:[#allocation9 + $0xb0] sm:$0xf] }
 0x727   :  { %3260 = vmatpush.bf16.msrb.mxu2 %v8980_v34 }
 0x72b   :  { %3261 = vmatpush.bf16.msrb.mxu2 %v8968_v51 }
 0x739   :  { %v2603_v53 = vpop.permute.xlu2 %2602 }
 0x73a   :  { %v2623_v12 = vmul.f32 %v12220_v42, %v2603_v53  ;;  %v8891_v42 = vld [vmem:[#allocation7 + $0x98] sm:$0xf]  ;;  %v8933_v53 = vld [vmem:[#allocation9 + $0x3c] sm:$0xf0] }
 0x73b   :  { %v8892_v3 = vor.u32 %v11081_v25, %v8891_v42  ;;  %v11085_v42 = vld [vmem:[#allocation9 + $0x4] sm:$0xf]  ;;  %v8909_v25 = vld [vmem:[#allocation9 + $0xc] sm:$0xf0] }
 0x73d   :  { %3076 = vmatpush.bf16.msrb.mxu1 %v8892_v3  ;;  %v8843_v3 = vld [vmem:[#allocation7 + $0x38] sm:$0xf] }
 0x73e   :  { %v8844_v29 = vor.u32 %v11069_v30, %v8843_v3  ;;  %v8951_v30 = vld [vmem:[#allocation9 + $0x50] sm:$0xf] }
 0x741   :  { %3077 = vmatpush.bf16.msrb.mxu1 %v8880_v27  ;;  %v8832_v27 = vor.u32 %v11066_v43, %v8831_v39  ;;  %v8915_v43 = vld [vmem:[#allocation9 + $0x8] sm:$0xf] }
 0x745   :  { %3078 = vmatpush.bf16.msrb.mxu1 %v8868_v7 }
 0x751   :  { %v2622_v32 = vpop.permute.xlu1 %2621 }
 0x752   :  { %v2609_v61 = vpop.permute.xlu0 %2608  ;;  %v2626_v38 = vmul.f32 %v12239_v60, %v2622_v32 }
 0x753   :  { %v2624_v5 = vmul.f32 %v12226_v1, %v2609_v61  ;;  %v8960_v1 = vor.u32 %v11097_v47, %v8957_v21  ;;  %v8936_v61 = vor.u32 %v11091_v57, %v8933_v53  ;;  %v8855_v47 = vld [vmem:[#allocation7 + $0x50] sm:$0xf]  ;;  %v11072_v21 = vld [vmem:[#allocation7 + $0x58] sm:$0xf0]  ;;  %v8920_v57 = vor.u32 %v11089_v26, %v8919_v58  ;;  %v8819_v53 = vld [vmem:[#allocation7 + $0x8] sm:$0xf] }
 0x754   :  { %v2635_v60 = vsel %vm1285_vm2, %v2626_v38, 0.0  ;;  %v8856_v55 = vor.u32 %v11072_v21, %v8855_v47  ;;  %v8820_v63 = vor.u32 %v11063_v54, %v8819_v53  ;;  %v11108_v47 = vld [vmem:[#allocation9 + $0xb8] sm:$0xf0]  ;;  %v11087_v58 = vld [vmem:[#allocation9 + $0x10] sm:$0xf0] }
 0x755   :  { %v2627_v19 = vsel %vm1285_vm2, %v2624_v5, 0.0  ;;  %3275 = vmatpush.bf16.msrb.mxu3 %v8960_v1  ;;  %v9161_v54 = vld [vmem:[#allocation9 + $0x138] sm:$0xf] }
 0x756   :  { %v2628_v22 = vadd.f32 %v2627_v19, %v2623_v12  ;;  %v8956_v12 = vor.u32 %v11098_v56, %v8955_v4  ;;  %v8924_v19 = vor.u32 %v11088_v8, %v8921_v14  ;;  %3079 = vmatpush.bf16.msrb.mxu1 %v8856_v55  ;;  %v11105_v55 = vld [vmem:[#allocation9 + $0xa0] sm:$0xf0] }
 0x758   :  { %v2629_v40 = vrot.slane %v2628_v22, 4  ;;  %3262 = vmatpush.bf16.msrb.mxu2 %v8956_v12  ;;  %v2666_v12 = vstv %s2665_s22 }
 0x759   :  { %3276 = vmatpush.bf16.msrb.mxu3 %v8948_v6 }
 0x75a   :  { %v2630_v49 = vadd.f32 %v2629_v40, %v2628_v22  ;;  %v8943_v22 = vld [vmem:[#allocation9 + $0x48] sm:$0xf]  ;;  %3080 = vmatpush.bf16.msrb.mxu1 %v8844_v29  ;;  %v11093_v29 = vld [vmem:[#allocation9 + $0x40] sm:$0xf0] }
 0x75b   :  { %v8944_v36 = vor.u32 %v11095_v23, %v8943_v22  ;;  %v9000_v22 = vor.u32 %v11108_v47, %v8999_v20  ;;  %v9090_v47 = vld [vmem:[#allocation7 + $0x174] sm:$0xf0] }
 0x75c   :  { %v2631_v5 = vrot.slane %v2630_v49, 2 }
 0x75d   :  { %3277 = vmatpush.bf16.msrb.mxu3 %v8936_v61  ;;  %3263 = vmatpush.bf16.msrb.mxu2 %v8944_v36 }
 0x75e   :  { %v2632_v1 = vadd.f32 %v2631_v5, %v2630_v49  ;;  %3081 = vmatpush.bf16.msrb.mxu1 %v8832_v27  ;;  %v8916_v27 = vor.u32 %v11087_v58, %v8915_v43 }
 0x760   :  { %v2633_v32 = vrot.slane %v2632_v1, 1 }
 0x761   :  { %v2616_v9 = vpop.permute.xlu1 %2615  ;;  %3278 = vmatpush.bf16.msrb.mxu3 %v8924_v19  ;;  %3264 = vmatpush.bf16.msrb.mxu2 %v8932_v37  ;;  %v8927_v37 = vld [vmem:[#allocation9 + $0x20] sm:$0xf] }
 0x762   :  { %v2625_v18 = vmul.f32 %v12233_v59, %v2616_v9  ;;  %v8912_v59 = vor.u32 %v11085_v42, %v8909_v25  ;;  %v2634_v45 = vadd.f32 %v2633_v32, %v2632_v1  ;;  %3082 = vmatpush.bf16.msrb.mxu1 %v8820_v63  ;;  %v8975_v42 = vld [vmem:[#allocation9 + $0x80] sm:$0xf]  ;;  %v11102_v25 = vld [vmem:[#allocation9 + $0x88] sm:$0xf0]  ;;  %v8952_v32 = vor.u32 %v11096_v31, %v8951_v30 }
 0x763   :  { %v8976_v36 = vor.u32 %v11102_v25, %v8975_v42  ;;  %v11146_v63 = vld [vmem:[#allocation9 + $0x128] sm:$0xf0]  ;;  %v9064_v25 = vld [vmem:[#allocation7 + $0x138] sm:$0xf]  ;;  %v9052_v31 = vld [vmem:[#allocation7 + $0x120] sm:$0xf] }
 0x764   :  { %v2636_v46 = vadd.f32 %v2635_v60, %v2625_v18  ;;  %v2872_v38 = vpack.c.bf16 %v2634_v45, %v2634_v45  ;;  %v9185_v45 = vld [vmem:[#allocation9 + $0x168] sm:$0xf] }
 0x765   :  { %3279 = vmatpush.bf16.msrb.mxu3 %v8912_v59  ;;  %3265 = vmatpush.bf16.msrb.mxu2 %v8920_v57  ;;  %v8963_v59 = vld [vmem:[#allocation9 + $0x68] sm:$0xf]  ;;  %v9173_v57 = vld [vmem:[#allocation9 + $0x150] sm:$0xf] }
 0x766   :  { %v2637_v40 = vrot.slane %v2636_v46, 4  ;;  %v2916_v7 = vunpack.c.l.b16 %v2872_v38  ;;  %v9162_v38 = vor.u32 %v11149_v13, %v9161_v54 }
 0x768   :  { %v2638_v34 = vadd.f32 %v2637_v40, %v2636_v46  ;;  %v8987_v46 = vld [vmem:[#allocation9 + $0x98] sm:$0xf]  ;;  %v11099_v40 = vld [vmem:[#allocation9 + $0x70] sm:$0xf0] }
 0x769   :  { %3266 = vmatpush.bf16.msrb.mxu2 %v8908_v2  ;;  %v8988_v23 = vor.u32 %v11105_v55, %v8987_v46  ;;  %v8964_v3 = vor.u32 %v11099_v40, %v8963_v59  ;;  %v9137_v2 = vld [vmem:[#allocation9 + $0x108] sm:$0xf]  ;;  %v11127_v55 = vld [vmem:[#allocation7 + $0x154] sm:$0xf]  ;;  %v11124_v59 = vld [vmem:[#allocation7 + $0x13c] sm:$0xf] }
 0x76a   :  { %v2639_v6 = vrot.slane %v2638_v34, 2  ;;  %v2647_v5 = vpop.permute.xlu1 %2646 }
 0x76b   :  { %vm2648_vm11 = vcmp.eq.s32.totalorder %v11928_v11, %v2647_v5 }
 0x76c   :  { %v2640_v49 = vadd.f32 %v2639_v6, %v2638_v34  ;;  %v8710_v14 = vsel %vm2648_vm11, 1.0, %v11824_v24  ;;  %v8939_v34 = vld [vmem:[#allocation9 + $0x38] sm:$0xf]  ;;  %v11090_v6 = vld [vmem:[#allocation9 + $0x28] sm:$0xf0] }
 0x76d   :  { %v2667_v60 = vmul.f32 %v8710_v14, %v2666_v12  ;;  %v8940_v35 = vor.u32 %v11093_v29, %v8939_v34  ;;  %v8928_v39 = vor.u32 %v11090_v6, %v8927_v37  ;;  %v11137_v12 = vld [vmem:[#allocation9 + $0xe0] sm:$0xf0]  ;;  %v9096_v37 = vld [vmem:[#allocation7 + $0x170] sm:$0xf]  ;;  %v11132_v6 = vld [vmem:[#allocation7 + $0x178] sm:$0xf0] }
 0x76e   :  { %v2641_v51 = vrot.slane %v2640_v49, 1  ;;  %v11121_v34 = vld [vmem:[#allocation7 + $0x124] sm:$0xf]  ;;  %v9097_v43 = vor.u32 %v11132_v6, %v9096_v37 }
 0x770   :  { %v2642_v61 = vadd.f32 %v2641_v51, %v2640_v49  ;;  %v11155_v49 = vld [vmem:[#allocation9 + $0x170] sm:$0xf0]  ;;  %v11152_v51 = vld [vmem:[#allocation9 + $0x158] sm:$0xf0] }
 0x771   :  { %v9186_v26 = vor.u32 %v11155_v49, %v9185_v45  ;;  %v9174_v53 = vor.u32 %v11152_v51, %v9173_v57  ;;  %v9040_v45 = vld [vmem:[#allocation7 + $0x108] sm:$0xf]  ;;  %v11119_v49 = vld [vmem:[#allocation7 + $0x110] sm:$0xf0]  ;;  %v9042_v57 = vld [vmem:[#allocation7 + $0x114] sm:$0xf0] }
 0x772   :  { %v2873_v4 = vpack.c.bf16 %v2642_v61, %v2642_v61  ;;  %v9149_v61 = vld [vmem:[#allocation9 + $0x120] sm:$0xf]  ;;  %v9084_v51 = vld [vmem:[#allocation7 + $0x158] sm:$0xf] }
 0x773   :  { %v9150_v52 = vor.u32 %v11146_v63, %v9149_v61  ;;  %v11116_v61 = vld [vmem:[#allocation7 + $0xf8] sm:$0xf0]  ;;  %v11115_v63 = vld [vmem:[#allocation7 + $0xf4] sm:$0xf] }
 0x774   :  { %v2917_v56 = vunpack.c.l.b16 %v2873_v4  ;;  %v11143_v4 = vld [vmem:[#allocation9 + $0x110] sm:$0xf0] }
 0x775   :  { %v9138_v5 = vor.u32 %v11143_v4, %v9137_v2 }
 0x776   :  { %v2918_v8 = vsel %vm1307_vm4, %v2917_v56, %v2916_v7  ;;  %v9125_v7 = vld [vmem:[#allocation9 + $0xf0] sm:$0xf]  ;;  %v11140_v56 = vld [vmem:[#allocation9 + $0xf8] sm:$0xf0] }
 0x777   :  { %v2919_v9 = vpack.c.b16 %v2918_v8, %v2918_v8  ;;  %v9126_v8 = vor.u32 %v11140_v56, %v9125_v7  ;;  %v9072_v7 = vld [vmem:[#allocation7 + $0x140] sm:$0xf] }
 0x779   :  { %3057 = vmatmul.bf16.vlgmr.msra.gmra.mxu3 %v2919_v9 }
 0x77a   :  { %3510 = vmatpush.bf16.msra.mxu3 %v9097_v43  ;;  %v9036_v43 = vld [vmem:[#allocation7 + $0xf8] sm:$0xf] }
 0x77b   :  { %v2658_v17 = vpop.xlane.xlu2 %2657 }
 0x77c   :  { %vm2659_vm12 = vcmp.eq.f32.partialorder %v12079_v33, %v2658_v17 }
 0x77d   :  { %v8711_v18 = vsel %vm2659_vm12, 1.0, %v11824_v24 }
 0x77e   :  { %v2670_v19 = vmul.f32 %v8711_v18, %v2669_v16  ;;  %v9101_v16 = vld [vmem:[#allocation9 + $0xc0] sm:$0xf]  ;;  %v11131_v18 = vld [vmem:[#allocation7 + $0x170] sm:$0xf0] }
 0x780   :  { %v2671_v21 = vadd.f32 %v2670_v19, %v2667_v60  ;;  %v9088_v60 = vld [vmem:[#allocation7 + $0x168] sm:$0xf]  ;;  %v11130_v19 = vld [vmem:[#allocation7 + $0x16c] sm:$0xf] }
 0x781   :  { %v9089_v20 = vor.u32 %v11131_v18, %v9088_v60  ;;  %v9018_v60 = vld [vmem:[#allocation7 + $0xe4] sm:$0xf0] }
 0x782   :  { %v2672_v1 = vpack.c.bf16 %v2671_v21, %v2671_v21  ;;  %v9093_v21 = vor.u32 %v11130_v19, %v9090_v47  ;;  %v9060_v18 = vld [vmem:[#allocation7 + $0x128] sm:$0xf]  ;;  %v11123_v19 = vld [vmem:[#allocation7 + $0x130] sm:$0xf0] }
 0x783   :  { %v9061_v47 = vor.u32 %v11123_v19, %v9060_v18 }
 0x784   :  { %2841 = vmatmul.bf16.vlgmr.msra.gmra.mxu0 %v2672_v1  ;;  %2854 = vmatmul.bf16.vlgmr.msra.gmra.mxu1 %v2672_v1 }
 0x785   :  { %2867 = vmatmul.bf16.vlgmr.msra.gmra.mxu2 %v2672_v1  ;;  %3285 = vmatpush.bf16.msra.mxu0 %v9000_v22  ;;  %v9076_v22 = vld [vmem:[#allocation7 + $0x150] sm:$0xf]  ;;  %v11128_v1 = vld [vmem:[#allocation7 + $0x158] sm:$0xf0] }
 0x786   :  { %3484 = vmatpush.bf16.msra.mxu1 %v9089_v20  ;;  %3497 = vmatpush.bf16.msra.mxu2 %v9093_v21  ;;  %v9077_v46 = vor.u32 %v11128_v1, %v9076_v22  ;;  %v9004_v22 = vld [vmem:[#allocation7 + $0xc0] sm:$0xf]  ;;  %v11110_v1 = vld [vmem:[#allocation7 + $0xc8] sm:$0xf0] }
 0x789   :  { %3286 = vmatpush.bf16.msra.mxu0 %v8988_v23  ;;  %3280 = vmatmul.bf16.vlgmr.msrb.gmra.mxu3 %v12170_v44  ;;  %v9078_v23 = vld [vmem:[#allocation7 + $0x15c] sm:$0xf0] }
 0x78a   :  { %v9081_v42 = vor.u32 %v11127_v55, %v9078_v23  ;;  %3485 = vmatpush.bf16.msra.mxu1 %v9077_v46  ;;  %v11109_v46 = vld [vmem:[#allocation7 + $0xc4] sm:$0xf] }
 0x78c   :  { %3498 = vmatpush.bf16.msra.mxu2 %v9081_v42  ;;  %v9005_v42 = vor.u32 %v11110_v1, %v9004_v22  ;;  %v11111_v22 = vld [vmem:[#allocation7 + $0xd0] sm:$0xf0]  ;;  %v11145_v1 = vld [vmem:[#allocation9 + $0x124] sm:$0xf] }
 0x78d   :  { %3287 = vmatpush.bf16.msra.mxu0 %v8976_v36  ;;  %v11125_v36 = vld [vmem:[#allocation7 + $0x140] sm:$0xf0] }
 0x78e   :  { %v9065_v40 = vor.u32 %v11125_v36, %v9064_v25  ;;  %v9006_v25 = vld [vmem:[#allocation7 + $0xcc] sm:$0xf0] }
 0x78f   :  { %v9048_v36 = vld [vmem:[#allocation7 + $0x110] sm:$0xf] }
 0x790   :  { %3486 = vmatpush.bf16.msra.mxu1 %v9065_v40  ;;  %v9009_v40 = vor.u32 %v11109_v46, %v9006_v25 }
 0x791   :  { %3288 = vmatpush.bf16.msra.mxu0 %v8964_v3  ;;  %v9066_v3 = vld [vmem:[#allocation7 + $0x144] sm:$0xf0] }
 0x792   :  { %v9069_v30 = vor.u32 %v11124_v59, %v9066_v3  ;;  %v11120_v59 = vld [vmem:[#allocation7 + $0x118] sm:$0xf0] }
 0x793   :  { %v9049_v3 = vor.u32 %v11120_v59, %v9048_v36 }
 0x794   :  { %3070 = vmatmul.bf16.vlgmr.msrb.gmra.mxu0 %v2919_v9  ;;  %3083 = vmatmul.bf16.vlgmr.msrb.gmra.mxu1 %v2919_v9  ;;  %v9113_v9 = vld [vmem:[#allocation9 + $0xd8] sm:$0xf] }
 0x795   :  { %3267 = vmatmul.bf16.vlgmr.msrb.gmra.mxu2 %v12170_v44  ;;  %3289 = vmatpush.bf16.msra.mxu0 %v8952_v32  ;;  %v9114_v14 = vor.u32 %v11137_v12, %v9113_v9  ;;  %v11122_v32 = vld [vmem:[#allocation7 + $0x128] sm:$0xf0] }
 0x796   :  { %3499 = vmatpush.bf16.msra.mxu2 %v9069_v30  ;;  %v9053_v29 = vor.u32 %v11122_v32, %v9052_v31  ;;  %v11154_v30 = vld [vmem:[#allocation9 + $0x16c] sm:$0xf]  ;;  %v9187_v31 = vld [vmem:[#allocation9 + $0x174] sm:$0xf0]  ;;  %v9193_v32 = vld [vmem:[#allocation9 + $0x170] sm:$0xf] }
 0x798   :  { %3487 = vmatpush.bf16.msra.mxu1 %v9053_v29  ;;  %v9190_v29 = vor.u32 %v11154_v30, %v9187_v31 }
 0x799   :  { %3290 = vmatpush.bf16.msra.mxu0 %v8940_v35  ;;  %v9054_v35 = vld [vmem:[#allocation7 + $0x12c] sm:$0xf0] }
 0x79d   :  { %3291 = vmatpush.bf16.msra.mxu0 %v8928_v39  ;;  %v9057_v39 = vor.u32 %v11121_v34, %v9054_v35  ;;  %v12295_v34 = vld [vmem:[%s12834_s9] sm:$0x7]  ;;  %v11156_v35 = vld [vmem:[#allocation9 + $0x178] sm:$0xf0] }
 0x79e   :  { %v2909_v6 = vperm.slane %v12295_v34, 1 }
 0x79f   :  { %3500 = vmatpush.bf16.msra.mxu2 %v9057_v39  ;;  %v9194_v39 = vor.u32 %v11156_v35, %v9193_v32  ;;  %v11142_v35 = vld [vmem:[#allocation9 + $0x10c] sm:$0xf] }
 0x7a1   :  { %3292 = vmatpush.bf16.msra.mxu0 %v8916_v27  ;;  %v11118_v27 = vld [vmem:[#allocation7 + $0x10c] sm:$0xf] }
 0x7a2   :  { %v9045_v54 = vor.u32 %v11118_v27, %v9042_v57  ;;  %v9181_v57 = vld [vmem:[#allocation9 + $0x158] sm:$0xf] }
 0x7a4   :  { %3293 = vmatmul.bf16.vlgmr.msra.gmra.mxu0 %v12170_v44  ;;  %v11134_v44 = vld [vmem:[#allocation9 + $0xc8] sm:$0xf0]  ;;  %3501 = vmatpush.bf16.msra.mxu2 %v9045_v54 }
 0x7a5   :  { %3691 = vmatpush.bf16.msrb.mxu0 %v9186_v26  ;;  %v9102_v17 = vor.u32 %v11134_v44, %v9101_v16  ;;  %v9041_v26 = vor.u32 %v11119_v49, %v9040_v45  ;;  %v11113_v16 = vld [vmem:[#allocation7 + $0xe0] sm:$0xf0]  ;;  %v11112_v44 = vld [vmem:[#allocation7 + $0xdc] sm:$0xf]  ;;  %v11151_v49 = vld [vmem:[#allocation9 + $0x154] sm:$0xf] }
 0x7a6   :  { %v9021_v20 = vor.u32 %v11112_v44, %v9018_v60  ;;  %v11117_v45 = vld [vmem:[#allocation7 + $0x100] sm:$0xf0] }
 0x7a7   :  { %3488 = vmatpush.bf16.msra.mxu1 %v9041_v26  ;;  %v9037_v27 = vor.u32 %v11117_v45, %v9036_v43  ;;  %v9175_v26 = vld [vmem:[#allocation9 + $0x15c] sm:$0xf0] }
 0x7a9   :  { %3692 = vmatpush.bf16.msrb.mxu0 %v9174_v53  ;;  %v11129_v53 = vld [vmem:[#allocation7 + $0x160] sm:$0xf0] }
 0x7aa   :  { %v9085_v13 = vor.u32 %v11129_v53, %v9084_v51  ;;  %v11153_v51 = vld [vmem:[#allocation9 + $0x160] sm:$0xf0]  ;;  %v9178_v53 = vor.u32 %v11151_v49, %v9175_v26  ;;  %v11144_v49 = vld [vmem:[#allocation9 + $0x118] sm:$0xf0]  ;;  %v11139_v26 = vld [vmem:[#allocation9 + $0xf4] sm:$0xf] }
 0x7ab   :  { %v9182_v54 = vor.u32 %v11153_v51, %v9181_v57  ;;  %v9133_v57 = vld [vmem:[#allocation9 + $0xf8] sm:$0xf] }
 0x7ac   :  { %3511 = vmatpush.bf16.msra.mxu3 %v9085_v13  ;;  %v12301_v13 = vld [vmem:[%s12835_s10] sm:$0x7] }
 0x7ad   :  { %3693 = vmatpush.bf16.msrb.mxu0 %v9162_v38  ;;  %v9028_v38 = vld [vmem:[#allocation7 + $0xf0] sm:$0xf]  ;;  %v3126_v44 = vperm.slane %v12301_v13, 1  ;;  %v3125_v19 = vperm.slane %v12301_v13, 0 }
 0x7ae   :  { %v9029_v4 = vor.u32 %v11116_v61, %v9028_v38 }
 0x7b0   :  { %3489 = vmatpush.bf16.msra.mxu1 %v9029_v4  ;;  %v9024_v4 = vld [vmem:[#allocation7 + $0xe0] sm:$0xf] }
 0x7b1   :  { %3694 = vmatpush.bf16.msrb.mxu0 %v9150_v52 }
 0x7b5   :  { %3695 = vmatpush.bf16.msrb.mxu0 %v9138_v5  ;;  %v9030_v5 = vld [vmem:[#allocation7 + $0xfc] sm:$0xf0] }
 0x7b6   :  { %v9033_v56 = vor.u32 %v11115_v63, %v9030_v5  ;;  %v11114_v5 = vld [vmem:[#allocation7 + $0xe8] sm:$0xf0] }
 0x7b8   :  { %3502 = vmatpush.bf16.msra.mxu2 %v9033_v56 }
 0x7b9   :  { %3696 = vmatpush.bf16.msrb.mxu0 %v9126_v8  ;;  %v11126_v8 = vld [vmem:[#allocation7 + $0x148] sm:$0xf0] }
 0x7ba   :  { %v9073_v9 = vor.u32 %v11126_v8, %v9072_v7  ;;  %v11148_v7 = vld [vmem:[#allocation9 + $0x13c] sm:$0xf]  ;;  %v9025_v8 = vor.u32 %v11114_v5, %v9024_v4  ;;  %v9121_v5 = vld [vmem:[#allocation9 + $0xe0] sm:$0xf] }
 0x7bc   :  { %3512 = vmatpush.bf16.msra.mxu3 %v9073_v9  ;;  %3503 = vmatpush.bf16.msra.mxu2 %v9021_v20  ;;  %v9163_v9 = vld [vmem:[#allocation9 + $0x144] sm:$0xf0] }
 0x7bd   :  { %3697 = vmatpush.bf16.msrb.mxu0 %v9114_v14  ;;  %v9016_v14 = vld [vmem:[#allocation7 + $0xd8] sm:$0xf] }
 0x7c0   :  { %3513 = vmatpush.bf16.msra.mxu3 %v9061_v47  ;;  %3504 = vmatpush.bf16.msra.mxu2 %v9009_v40  ;;  %v9012_v47 = vld [vmem:[#allocation7 + $0xc8] sm:$0xf] }
 0x7c1   :  { %3698 = vmatpush.bf16.msrb.mxu0 %v9102_v17  ;;  %v9017_v17 = vor.u32 %v11113_v16, %v9016_v14  ;;  %v11150_v14 = vld [vmem:[#allocation9 + $0x148] sm:$0xf0]  ;;  %v2908_v16 = vperm.slane %v12295_v34, 0  ;;  %v9013_v46 = vor.u32 %v11111_v22, %v9012_v47  ;;  %v11135_v47 = vld [vmem:[#allocation9 + $0xd0] sm:$0xf0] }
 0x7c3   :  { %3490 = vmatpush.bf16.msra.mxu1 %v9017_v17  ;;  %v9166_v17 = vor.u32 %v11148_v7, %v9163_v9  ;;  %v11138_v7 = vld [vmem:[#allocation9 + $0xe8] sm:$0xf0]  ;;  %v2910_v9 = vperm.slane %v12295_v34, 2 }
 0x7c4   :  { %3699 = vmatmul.bf16.vlgmr.msrb.gmra.mxu0 %v12212_v50  ;;  %3514 = vmatpush.bf16.msra.mxu3 %v9049_v3 }
 0x7c5   :  { %3717 = vmatpush.bf16.msrb.mxu2 %v9194_v39  ;;  %v9145_v39 = vld [vmem:[#allocation9 + $0x110] sm:$0xf] }
 0x7c7   :  { %3491 = vmatpush.bf16.msra.mxu1 %v9005_v42  ;;  %v11147_v42 = vld [vmem:[#allocation9 + $0x130] sm:$0xf0] }
 0x7c8   :  { %3515 = vmatpush.bf16.msra.mxu3 %v9037_v27 }
 0x7c9   :  { %3718 = vmatpush.bf16.msrb.mxu2 %v9182_v54  ;;  %v11136_v54 = vld [vmem:[#allocation9 + $0xdc] sm:$0xf] }
 0x7cb   :  { %3704 = vmatpush.bf16.msrb.mxu1 %v9190_v29 }
 0x7cc   :  { %3516 = vmatpush.bf16.msra.mxu3 %v9025_v8 }
 0x7cf   :  { %3705 = vmatpush.bf16.msrb.mxu1 %v9178_v53  ;;  %v11141_v53 = vld [vmem:[#allocation9 + $0x100] sm:$0xf0] }
 0x7d0   :  { %3517 = vmatpush.bf16.msra.mxu3 %v9013_v46  ;;  %v9134_v4 = vor.u32 %v11141_v53, %v9133_v57  ;;  %v11157_v53 = vld [vmem:[%s12836_s11] sm:$0xff] }
 0x7d3   :  { %3706 = vmatpush.bf16.msrb.mxu1 %v9166_v17 }
 0x7fc   :  { %v12284_v58 = vpop.f32.mrf.mxu3 }
 0x7fd   :  { %v3059_v25 = vadd.f32 %v12284_v58, %v2908_v16  ;;  %v9146_v58 = vor.u32 %v11144_v49, %v9145_v39  ;;  %v11160_v39 = vld [vmem:[%s12836_s11 + $0x18] sm:$0xff]  ;;  %v11159_v49 = vld [vmem:[%s12836_s11 + $0x10] sm:$0xff] }
 0x801   :  { %v12286_v52 = vpop.f32.mrf.mxu0  ;;  %v12288_v2 = vpop.f32.mrf.mxu1 }
 0x802   :  { %v3088_v30 = vadd.f32 %v3059_v25, %v12286_v52  ;;  %v9127_v52 = vld [vmem:[#allocation9 + $0xfc] sm:$0xf0] }
 0x803   :  { %v9130_v51 = vor.u32 %v11139_v26, %v9127_v52  ;;  %v11158_v26 = vld [vmem:[%s12836_s11 + $0x8] sm:$0xff] }
 0x804   :  { %v3060_v12 = vpop.f32.mrf.mxu3 }
 0x805   :  { %v9169_v12 = vld [vmem:[#allocation9 + $0x140] sm:$0xf] }
 0x806   :  { %v9170_v60 = vor.u32 %v11150_v14, %v9169_v12  ;;  %v9122_v12 = vor.u32 %v11138_v7, %v9121_v5  ;;  %v3127_v14 = vperm.slane %v12301_v13, 2 }
 0x808   :  { %v12290_v21 = vpop.f32.mrf.mxu2  ;;  %3719 = vmatpush.bf16.msrb.mxu2 %v9170_v60  ;;  %v11133_v60 = vld [vmem:[#allocation9 + $0xc4] sm:$0xf] }
 0x809   :  { %v2844_v55 = vpop.f32.mrf.mxu0  ;;  %v2857_v23 = vpop.f32.mrf.mxu1 }
 0x80a   :  { %v9151_v55 = vld [vmem:[#allocation9 + $0x12c] sm:$0xf0]  ;;  %v9157_v23 = vld [vmem:[#allocation9 + $0x128] sm:$0xf] }
 0x80b   :  { %v9154_v59 = vor.u32 %v11145_v1, %v9151_v55  ;;  %v9158_v40 = vor.u32 %v11147_v42, %v9157_v23 }
 0x80c   :  { %v3281_v37 = vpop.f32.mrf.mxu3 }
 0x80d   :  { %v3282_v36 = vadd.f32 %v3281_v37, %v3126_v44  ;;  %3707 = vmatpush.bf16.msrb.mxu1 %v9154_v59  ;;  %3720 = vmatpush.bf16.msrb.mxu2 %v9158_v40 }
 0x810   :  { %v2870_v38 = vpop.f32.mrf.mxu2 }
 0x811   :  { %v3071_v61 = vpop.f32.mrf.mxu0  ;;  %v12303_v63 = vpop.f32.mrf.mxu1  ;;  %3721 = vmatpush.bf16.msrb.mxu2 %v9146_v58  ;;  %v9115_v38 = vld [vmem:[#allocation9 + $0xe4] sm:$0xf0] }
 0x812   :  { %v3072_v56 = vadd.f32 %v3071_v61, %v2909_v6  ;;  %v9139_v6 = vld [vmem:[#allocation9 + $0x114] sm:$0xf0]  ;;  %v9118_v8 = vor.u32 %v11136_v54, %v9115_v38  ;;  %v3085_v44 = vadd.f32 %v12303_v63, %v2910_v9 }
 0x813   :  { %v9142_v45 = vor.u32 %v11142_v35, %v9139_v6  ;;  %v11161_v35 = vld [vmem:[%s12836_s11 + $0x20] sm:$0xff] }
 0x814   :  { %v3283_v18 = vpop.f32.mrf.mxu3  ;;  %v3089_v20 = vadd.f32 %v3072_v56, %v12288_v2  ;;  %v3090_v23 = vadd.f32 %v3085_v44, %v12290_v21  ;;  %v9001_v6 = vld [vmem:[%s12834_s9 + $0x3] sm:$0x7] }
 0x815   :  { %3708 = vmatpush.bf16.msrb.mxu1 %v9142_v45  ;;  %3722 = vmatpush.bf16.msrb.mxu2 %v9134_v4  ;;  %v9103_v18 = vld [vmem:[#allocation9 + $0xcc] sm:$0xf0]  ;;  %v3350_v45 = vperm.slane %v9001_v6, 0 }
 0x816   :  { %v3303_v31 = vadd.f32 %v3282_v36, %v3089_v20  ;;  %v9109_v20 = vld [vmem:[#allocation9 + $0xc8] sm:$0xf] }
 0x817   :  { %v9110_v55 = vor.u32 %v11135_v47, %v9109_v20 }
 0x818   :  { %v3268_v3 = vpop.f32.mrf.mxu2  ;;  %v3304_v37 = vmul.f32 0.5, %v3303_v31 }
 0x819   :  { %v3269_v2 = vadd.f32 %v3268_v3, %v3125_v19  ;;  %v3073_v32 = vpop.f32.mrf.mxu0  ;;  %v3086_v29 = vpop.f32.mrf.mxu1  ;;  %3709 = vmatpush.bf16.msrb.mxu1 %v9130_v51  ;;  %3723 = vmatpush.bf16.msrb.mxu2 %v9122_v12  ;;  %v9106_v19 = vor.u32 %v11133_v60, %v9103_v18 }
 0x81a   :  { %v11163_v32 = vld [vmem:[%s12836_s11 + $0x30] sm:$0xff]  ;;  %v11162_v29 = vld [vmem:[%s12836_s11 + $0x28] sm:$0xff] }
 0x81b   :  { %v3298_v43 = vadd.f32 %v3269_v2, %v3088_v30 }
 0x81d   :  { %v3299_v27 = vmul.f32 0.5, %v3298_v43  ;;  %3710 = vmatpush.bf16.msrb.mxu1 %v9118_v8  ;;  %3724 = vmatpush.bf16.msrb.mxu2 %v9110_v55 }
 0x81f   :  { %11619 = vtanh.f32 %v3299_v27 }
 0x820   :  { %v3270_v61 = vpop.f32.mrf.mxu2  ;;  %11621 = vtanh.f32 %v3304_v37 }
 0x821   :  { %v3294_v56 = vpop.f32.mrf.mxu0  ;;  %3711 = vmatpush.bf16.msrb.mxu1 %v9106_v19  ;;  %v3351_v61 = vperm.slane %v9001_v6, 1 }
 0x822   :  { %v3295_v1 = vadd.f32 %v3294_v56, %v3127_v14 }
 0x825   :  { %v11620_v16 = vpop.eup %11619 }
 0x826   :  { %v3301_v17 = vadd.f32 1.0, %v11620_v16  ;;  %v11622_v22 = vpop.eup %11621 }
 0x827   :  { %v3306_v42 = vadd.f32 1.0, %v11622_v22 }
 0x828   :  { %v3302_v46 = vmul.f32 0.5, %v3301_v17  ;;  %v3352_v17 = vperm.slane %v9001_v6, 2 }
 0x829   :  { %v3296_v34 = vpop.f32.mrf.mxu0  ;;  %v3307_v63 = vmul.f32 0.5, %v3306_v42 }
 0x82a   :  { %v3308_v13 = vmul.f32 %v3302_v46, %v3295_v1 }
 0x82b   :  { %v3311_v36 = vsub.f32 1.0, %v3307_v63  ;;  %v3313_v40 = vmul.f32 %v3307_v63, %v12166_v10  ;;  %v11164_v10 = vld [vmem:[%s12836_s11 + $0x38] sm:$0xff] }
 0x82c   :  { %v3309_v25 = vadd.f32 %v3308_v13, %v3090_v23  ;;  %3812 = vmatpush.bf16.msrb.mxu3 %v11164_v10  ;;  %v12376_v10 = vld [vmem:[%s12828_s3 + $0x8] sm:$0x3] }
 0x82e   :  { %11623 = vtanh.f32 %v3309_v25 }
 0x830   :  { %3813 = vmatpush.bf16.msrb.mxu3 %v11163_v32 }
 0x834   :  { %v11624_v59 = vpop.eup %11623  ;;  %3814 = vmatpush.bf16.msrb.mxu3 %v11162_v29 }
 0x835   :  { %v3312_v3 = vmul.f32 %v11624_v59, %v3311_v36 }
 0x837   :  { %v12316_v30 = vadd.f32 %v3313_v40, %v3312_v3 }
 0x838   :  { %3815 = vmatpush.bf16.msrb.mxu3 %v11161_v35 }
 0x839   :  { %v12320_v31 = vpack.c.bf16 %v12316_v30, %v12316_v30 }
 0x83b   :  { %3492 = vmatmul.bf16.vlgmr.msra.gmra.mxu1 %v12320_v31  ;;  %3505 = vmatmul.bf16.vlgmr.msra.gmra.mxu2 %v12320_v31 }
 0x83c   :  { %3518 = vmatmul.bf16.vlgmr.msra.gmra.mxu3 %v12320_v31 }
 0x83d   :  { %3816 = vmatpush.bf16.msrb.mxu3 %v11160_v39  ;;  %v12389_v39 = vld [vmem:[%s12828_s3 + $0x18] sm:$0x3] }
 0x841   :  { %v3700_v21 = vpop.f32.mrf.mxu0  ;;  %3817 = vmatpush.bf16.msrb.mxu3 %v11159_v49 }
 0x845   :  { %3818 = vmatpush.bf16.msrb.mxu3 %v11158_v26 }
 0x849   :  { %v3702_v2 = vpop.f32.mrf.mxu0  ;;  %3819 = vmatpush.bf16.msrb.mxu3 %v11157_v53 }
 0x84a   :  { %v12370_v2 = vld [vmem:[%s12828_s3] sm:$0xff] }
 0x84b   :  { %3712 = vmatmul.bf16.vlgmr.msrb.gmra.mxu1 %v12212_v50  ;;  %3725 = vmatmul.bf16.vlgmr.msrb.gmra.mxu2 %v12212_v50  ;;  %v9098_v50 = vld [vmem:[%s12835_s10 + $0x3] sm:$0x7] }
 0x84c   :  { %v3557_v43 = vperm.slane %v9098_v50, 0  ;;  %v3558_v4 = vperm.slane %v9098_v50, 1  ;;  %v3559_v16 = vperm.slane %v9098_v50, 2  ;;  %v12383_v50 = vld [vmem:[%s12828_s3 + $0x10] sm:$0xff] }
 0x84e   :  { %v3701_v37 = vadd.f32 %v3700_v21, %v3557_v43 }
 0x8b8   :  { %v3493_v58 = vpop.f32.mrf.mxu1 }
 0x8b9   :  { %v3494_v27 = vadd.f32 %v3493_v58, %v3350_v45 }
 0x8bb   :  { %v3730_v52 = vadd.f32 %v3701_v37, %v3494_v27 }
 0x8bd   :  { %v3731_v57 = vmul.f32 0.5, %v3730_v52 }
 0x8be   :  { %v3506_v51 = vpop.f32.mrf.mxu2 }
 0x8bf   :  { %v3519_v54 = vpop.f32.mrf.mxu3  ;;  %11625 = vtanh.f32 %v3731_v57  ;;  %v3507_v9 = vadd.f32 %v3506_v51, %v3351_v61 }
 0x8c0   :  { %v3495_v38 = vpop.f32.mrf.mxu1  ;;  %v3520_v22 = vadd.f32 %v3519_v54, %v3352_v17 }
 0x8c5   :  { %v11626_v56 = vpop.eup %11625 }
 0x8c6   :  { %v3508_v5 = vpop.f32.mrf.mxu2  ;;  %v3733_v44 = vadd.f32 1.0, %v11626_v56 }
 0x8c7   :  { %v3521_v7 = vpop.f32.mrf.mxu3 }
 0x8c8   :  { %v3713_v8 = vpop.f32.mrf.mxu1  ;;  %v3734_v20 = vmul.f32 0.5, %v3733_v44 }
 0x8c9   :  { %v3714_v12 = vadd.f32 %v3713_v8, %v3558_v4  ;;  %v11688_v4 = vld [vmem:[%s12837_s12] ss:$0 sm:$0xff] }
 0x8cb   :  { %v3735_v14 = vadd.f32 %v3714_v12, %v3507_v9 }
 0x8cd   :  { %v3736_v60 = vmul.f32 0.5, %v3735_v14 }
 0x8ce   :  { %v3726_v18 = vpop.f32.mrf.mxu2 }
 0x8cf   :  { %11627 = vtanh.f32 %v3736_v60  ;;  %v3727_v19 = vadd.f32 %v3726_v18, %v3559_v16 }
 0x8d0   :  { %v3715_v47 = vpop.f32.mrf.mxu1 }
 0x8d1   :  { %v3740_v1 = vmul.f32 %v3734_v20, %v3727_v19 }
 0x8d3   :  { %v3741_v46 = vadd.f32 %v3740_v1, %v3520_v22  ;;  %v9227_v22 = vld [vmem:[%s12826_s1 + $0x6] sm:$0x3] }
 0x8d5   :  { %v11628_v55 = vpop.eup %11627  ;;  %11629 = vtanh.f32 %v3741_v46 }
 0x8d6   :  { %v3738_v34 = vadd.f32 1.0, %v11628_v55  ;;  %v3728_v23 = vpop.f32.mrf.mxu2 }
 0x8d7   :  { %v11187_v23 = vld [vmem:[#allocation4 + $0xb0] sm:$0xf0] }
 0x8d8   :  { %v3739_v13 = vmul.f32 0.5, %v3738_v34  ;;  %v9317_v34 = vld [vmem:[#allocation4 + $0xa8] sm:$0xf] }
 0x8da   :  { %v3743_v42 = vsub.f32 1.0, %v3739_v13  ;;  %v3745_v63 = vmul.f32 %v3739_v13, %v12208_v48  ;;  %v9413_v13 = vld [vmem:[#allocation7 + $0xa8] sm:$0xf] }
 0x8db   :  { %v11630_v25 = vpop.eup %11629 }
 0x8dc   :  { %v3744_v36 = vmul.f32 %v11630_v25, %v3743_v42  ;;  %v9318_v42 = vor.u32 %v11187_v23, %v9317_v34  ;;  %v11211_v25 = vld [vmem:[#allocation7 + $0xb0] sm:$0xf0]  ;;  %v11182_v23 = vld [vmem:[#allocation4 + $0x88] sm:$0xf0] }
 0x8de   :  { %v12358_v59 = vadd.f32 %v3745_v63, %v3744_v36  ;;  %v9305_v63 = vld [vmem:[#allocation4 + $0x90] sm:$0xf]  ;;  %v11184_v36 = vld [vmem:[#allocation4 + $0x98] sm:$0xf0]  ;;  %4107 = vmatpush.bf16.msra.mxu0 %v9318_v42 }
 0x8df   :  { %v11196_v42 = vld [vmem:[#allocation7 + $0x38] sm:$0xf0] }
 0x8e0   :  { %v12362_v40 = vpack.c.bf16 %v12358_v59, %v12358_v59  ;;  %v3829_v3 = vperm.slane %v12358_v59, 0  ;;  %v3828_v21 = vrot.slane %v12358_v59, 1 }
 0x8e2   :  { %3820 = vmatmul.bf16.vlgmr.msrb.gmra.mxu3 %v12362_v40  ;;  %v3833_v48 = vmul.f32 %v12370_v2, %v3829_v3  ;;  %v3834_v32 = vmul.f32 %v12376_v10, %v3829_v3  ;;  %v3830_v29 = vperm.slane %v3828_v21, 0  ;;  %v9414_v3 = vor.u32 %v11211_v25, %v9413_v13  ;;  %v9401_v21 = vld [vmem:[#allocation7 + $0x90] sm:$0xf] }
 0x8e3   :  { %v9353_v13 = vld [vmem:[#allocation7 + $0x30] sm:$0xf] }
 0x8e4   :  { %3837 = vadd.xlane.f32.xlu0 %v3833_v48  ;;  %v3839_v35 = vsel %vm1285_vm2, %v3834_v32, 0.0  ;;  %v3835_v6 = vmul.f32 %v12383_v50, %v3830_v29  ;;  %v3836_v43 = vmul.f32 %v12389_v39, %v3830_v29  ;;  %v11208_v48 = vld [vmem:[#allocation7 + $0x98] sm:$0xf0]  ;;  %v9306_v32 = vor.u32 %v11184_v36, %v9305_v63  ;;  %4323 = vmatpush.bf16.msra.mxu3 %v9414_v3  ;;  %v9245_v36 = vld [vmem:[#allocation4 + $0x18] sm:$0xf] }
 0x8e5   :  { %3840 = vadd.xlane.f32.xlu1 %v3839_v35  ;;  %v9402_v29 = vor.u32 %v11208_v48, %v9401_v21  ;;  %v9293_v35 = vld [vmem:[#allocation4 + $0x78] sm:$0xf]  ;;  %v9354_v63 = vor.u32 %v11196_v42, %v9353_v13  ;;  %v11169_v3 = vld [vmem:[#allocation4 + $0x20] sm:$0xf0]  ;;  %v11168_v42 = vld [vmem:[#allocation4 + $0x1c] sm:$0xf] }
 0x8e6   :  { %3842 = vadd.xlane.f32.xlu2 %v3835_v6  ;;  %v3844_v45 = vsel %vm1285_vm2, %v3836_v43, 0.0  ;;  %4108 = vmatpush.bf16.msra.mxu0 %v9306_v32  ;;  %v11181_v6 = vld [vmem:[#allocation4 + $0x80] sm:$0xf0]  ;;  %v9246_v21 = vor.u32 %v11169_v3, %v9245_v36  ;;  %v9283_v32 = vld [vmem:[#allocation4 + $0x6c] sm:$0xf0] }
 0x8e7   :  { %v9294_v43 = vor.u32 %v11181_v6, %v9293_v35  ;;  %v11177_v48 = vld [vmem:[#allocation4 + $0x64] sm:$0xf]  ;;  %v11179_v6 = vld [vmem:[#allocation4 + $0x70] sm:$0xf0] }
 0x8e8   :  { %4324 = vmatpush.bf16.msra.mxu3 %v9402_v29  ;;  %v9289_v29 = vld [vmem:[#allocation4 + $0x68] sm:$0xf]  ;;  %v9286_v35 = vor.u32 %v11177_v48, %v9283_v32  ;;  %v11228_v48 = vld [vmem:[#allocation9 + $0x7c] sm:$0xf] }
 0x8e9   :  { %v9487_v32 = vld [vmem:[#allocation9 + $0x84] sm:$0xf0] }
 0x8ea   :  { %4109 = vmatpush.bf16.msra.mxu0 %v9294_v43  ;;  %v9341_v43 = vld [vmem:[#allocation7 + $0x18] sm:$0xf] }
 0x8ee   :  { %3845 = vadd.xlane.f32.xlu2 %v3844_v45  ;;  %v9389_v45 = vld [vmem:[#allocation7 + $0x78] sm:$0xf] }
 0x957   :  { %v3838_v58 = vpop.xlane.xlu0 %3837 }
 0x958   :  { %v3841_v37 = vpop.xlane.xlu1 %3840  ;;  %v3851_v27 = vperm.slane %v3838_v58, %v11928_v11 }
 0x959   :  { %v3843_v49 = vpop.xlane.xlu2 %3842  ;;  %v3852_v26 = vperm.slane %v3841_v37, %v12056_v28  ;;  %v9281_v37 = vld [vmem:[#allocation4 + $0x60] sm:$0xf] }
 0x95a   :  { %v3854_v57 = vperm.slane %v3843_v49, %v11928_v11  ;;  %v11205_v49 = vld [vmem:[#allocation7 + $0x80] sm:$0xf0] }
 0x95b   :  { %v3853_v53 = vsel %vm1302_vm3, %v3852_v26, %v3851_v27  ;;  %v9390_v58 = vor.u32 %v11205_v49, %v9389_v45  ;;  %v11178_v27 = vld [vmem:[#allocation4 + $0x68] sm:$0xf0]  ;;  %v11193_v45 = vld [vmem:[#allocation7 + $0x20] sm:$0xf0]  ;;  %v9290_v49 = vor.u32 %v11179_v6, %v9289_v29  ;;  %v9490_v6 = vor.u32 %v11228_v48, %v9487_v32  ;;  %v11219_v48 = vld [vmem:[#allocation9 + $0x34] sm:$0xf] }
 0x95c   :  { %v9282_v26 = vor.u32 %v11178_v27, %v9281_v37  ;;  %v9233_v37 = vld [vmem:[#allocation4] sm:$0xf]  ;;  %v11166_v27 = vld [vmem:[#allocation4 + $0x8] sm:$0xf0] }
 0x95d   :  { %4325 = vmatpush.bf16.msra.mxu3 %v9390_v58  ;;  %v9342_v58 = vor.u32 %v11193_v45, %v9341_v43  ;;  %v11201_v45 = vld [vmem:[#allocation7 + $0x64] sm:$0xf]  ;;  %v9451_v32 = vld [vmem:[#allocation9 + $0x3c] sm:$0xf0] }
 0x95e   :  { %4110 = vmatpush.bf16.msra.mxu0 %v9282_v26  ;;  %v9234_v26 = vor.u32 %v11166_v27, %v9233_v37  ;;  %v11165_v27 = vld [vmem:[#allocation4 + $0x4] sm:$0xf] }
 0x961   :  { %v3846_v52 = vpop.xlane.xlu2 %3845 }
 0x962   :  { %v3855_v51 = vperm.slane %v3846_v52, %v12056_v28  ;;  %v11186_v52 = vld [vmem:[#allocation4 + $0xac] sm:$0xf] }
 0x964   :  { %v3856_v54 = vsel %vm1302_vm3, %v3855_v51, %v3854_v57  ;;  %v9319_v57 = vld [vmem:[#allocation4 + $0xb4] sm:$0xf0]  ;;  %v9325_v51 = vld [vmem:[#allocation4 + $0xb0] sm:$0xf] }
 0x965   :  { %v3821_v38 = vpop.f32.mrf.mxu3  ;;  %v3857_v61 = vsel %vm1307_vm4, %v3856_v54, %v3853_v53  ;;  %v9322_v53 = vor.u32 %v11186_v52, %v9319_v57  ;;  %v11188_v54 = vld [vmem:[#allocation4 + $0xb8] sm:$0xf0]  ;;  %v11210_v52 = vld [vmem:[#allocation7 + $0xac] sm:$0xf]  ;;  %v9415_v57 = vld [vmem:[#allocation7 + $0xb4] sm:$0xf0] }
 0x966   :  { %v3822_v5 = vadd.f32 %v11688_v4, %v3821_v38  ;;  %v3859_v7 = vsel %vm1294_vm5, -9000.0, %v3857_v61  ;;  %v9377_v38 = vld [vmem:[#allocation7 + $0x60] sm:$0xf]  ;;  %v11202_v61 = vld [vmem:[#allocation7 + $0x68] sm:$0xf0]  ;;  %v9326_v4 = vor.u32 %v11188_v54, %v9325_v51  ;;  %v9418_v51 = vor.u32 %v11210_v52, %v9415_v57 }
 0x967   :  { %v3860_v56 = vsel %vm1311_vm6, %v3859_v7, -inf  ;;  %4120 = vmatpush.bf16.msra.mxu1 %v9322_v53  ;;  %v11174_v53 = vld [vmem:[#allocation4 + $0x4c] sm:$0xf]  ;;  %v9271_v54 = vld [vmem:[#allocation4 + $0x54] sm:$0xf0] }
 0x968   :  { %3826 = vst [vmem:[#allocation10 + $0x4] sm:$0x3] %v3822_v5  ;;  %3861 = vmax.xlane.f32.xlu0 %v3860_v56  ;;  %v3925_v8 = vsel %vm1285_vm2, %v3822_v5, -inf  ;;  %v11175_v56 = vld [vmem:[#allocation4 + $0x50] sm:$0xf0]  ;;  %4133 = vmatpush.bf16.msra.mxu2 %v9326_v4 }
 0x969   :  { %3926 = vmax.xlane.f32.xlu2 %v3925_v8  ;;  %v11176_v4 = vld [vmem:[#allocation4 + $0x58] sm:$0xf0]  ;;  %v9241_v52 = vld [vmem:[#allocation4 + $0x8] sm:$0xf] }
 0x96d   :  { %v3823_v9 = vpop.f32.mrf.mxu3 }
 0x96e   :  { %v11183_v9 = vld [vmem:[#allocation4 + $0x94] sm:$0xf] }
 0x9db   :  { %v3862_v12 = vpop.xlane.xlu0 %3861 }
 0x9dc   :  { %v3863_v14 = vsub.f32 %v3859_v7, %v3862_v12  ;;  %v3927_v1 = vpop.xlane.xlu2 %3926  ;;  %v9269_v7 = vld [vmem:[#allocation4 + $0x48] sm:$0xf]  ;;  %v9307_v12 = vld [vmem:[#allocation4 + $0x9c] sm:$0xf0] }
 0x9dd   :  { %vm3928_vm13 = vcmp.eq.f32.partialorder %v3822_v5, %v3927_v1  ;;  %v9378_v5 = vor.u32 %v11202_v61, %v9377_v38  ;;  %v9270_v8 = vor.u32 %v11175_v56, %v9269_v7  ;;  %v11180_v1 = vld [vmem:[#allocation4 + $0x7c] sm:$0xf]  ;;  %v9277_v38 = vld [vmem:[#allocation4 + $0x50] sm:$0xf]  ;;  %v9274_v61 = vor.u32 %v11174_v53, %v9271_v54  ;;  %v11190_v7 = vld [vmem:[#allocation7 + $0x8] sm:$0xf0] }
 0x9de   :  { %v3864_v16 = vmul.f32 1.442695, %v3863_v14  ;;  %v3929_v46 = vsel %vm3928_vm13, %v12079_v33, 128.0  ;;  %v9313_v14 = vld [vmem:[#allocation4 + $0x98] sm:$0xf]  ;;  %v9278_v56 = vor.u32 %v11176_v4, %v9277_v38 }
 0x9df   :  { %v3930_v55 = vsel %vm1285_vm2, %v3929_v46, inf  ;;  %4326 = vmatpush.bf16.msra.mxu3 %v9378_v5  ;;  %4111 = vmatpush.bf16.msra.mxu0 %v9270_v8  ;;  %v9295_v46 = vld [vmem:[#allocation4 + $0x84] sm:$0xf0]  ;;  %v9329_v5 = vld [vmem:[#allocation7] sm:$0xf] }
 0x9e0   :  { %11631 = vpow2.f32 %v3864_v16  ;;  %v9310_v16 = vor.u32 %v11183_v9, %v9307_v12  ;;  %v9298_v34 = vor.u32 %v11180_v1, %v9295_v46  ;;  %v9330_v8 = vor.u32 %v11190_v7, %v9329_v5  ;;  %v11234_v9 = vld [vmem:[#allocation9 + $0xac] sm:$0xf]  ;;  %v9511_v12 = vld [vmem:[#allocation9 + $0xb4] sm:$0xf0]  ;;  %v9499_v1 = vld [vmem:[#allocation9 + $0x9c] sm:$0xf0] }
 0x9e1   :  { %v11167_v53 = vld [vmem:[#allocation4 + $0x10] sm:$0xf0]  ;;  %v9421_v54 = vld [vmem:[#allocation7 + $0xb0] sm:$0xf]  ;;  %v9509_v4 = vld [vmem:[#allocation9 + $0xa8] sm:$0xf] }
 0x9e2   :  { %4121 = vmatpush.bf16.msra.mxu1 %v9310_v16  ;;  %v11207_v16 = vld [vmem:[#allocation7 + $0x94] sm:$0xf] }
 0x9e3   :  { %v11235_v5 = vld [vmem:[#allocation9 + $0xb0] sm:$0xf0] }
 0x9e6   :  { %v11632_v44 = vpop.eup %11631  ;;  %4122 = vmatpush.bf16.msra.mxu1 %v9298_v34  ;;  %v11204_v34 = vld [vmem:[#allocation7 + $0x7c] sm:$0xf] }
 0x9e7   :  { %v3866_v17 = vsel %vm1311_vm6, %v11632_v44, 0.0 }
 0x9e8   :  { %3867 = vadd.xlane.f32.xlu1 %v3866_v17  ;;  %v9365_v17 = vld [vmem:[#allocation7 + $0x48] sm:$0xf] }
 0x9ea   :  { %4123 = vmatpush.bf16.msra.mxu1 %v9286_v35 }
 0x9ee   :  { %4124 = vmatpush.bf16.msra.mxu1 %v9274_v61  ;;  %v9242_v61 = vor.u32 %v11167_v53, %v9241_v52  ;;  %v11216_v53 = vld [vmem:[#allocation9 + $0x1c] sm:$0xf] }
 0xa5b   :  { %v3868_v60 = vpop.xlane.xlu1 %3867 }
 0xa5c   :  { %11633 = vrcp.f32 %v3868_v60  ;;  %v11199_v60 = vld [vmem:[#allocation7 + $0x50] sm:$0xf0] }
 0xa62   :  { %v11634_v18 = vpop.eup %11633 }
 0xa63   :  { %v3870_v19 = vmul.f32 %v11634_v18, %v11632_v44  ;;  %v11185_v44 = vld [vmem:[#allocation4 + $0xa0] sm:$0xf0] }
 0xa64   :  { %v9314_v18 = vor.u32 %v11185_v44, %v9313_v14  ;;  %v9514_v14 = vor.u32 %v11234_v9, %v9511_v12  ;;  %v9403_v44 = vld [vmem:[#allocation7 + $0x9c] sm:$0xf0]  ;;  %v11198_v9 = vld [vmem:[#allocation7 + $0x4c] sm:$0xf] }
 0xa65   :  { %v3884_v20 = vperm.slane %v3870_v19, 1  ;;  %v3871_v47 = vperm.slane %v3870_v19, 0  ;;  %v9366_v19 = vor.u32 %v11199_v60, %v9365_v17  ;;  %v9406_v17 = vor.u32 %v11207_v16, %v9403_v44  ;;  %v11171_v60 = vld [vmem:[#allocation4 + $0x34] sm:$0xf]  ;;  %v9367_v16 = vld [vmem:[#allocation7 + $0x54] sm:$0xf0] }
 0xa66   :  { %4134 = vmatpush.bf16.msra.mxu2 %v9314_v18  ;;  %v9259_v18 = vld [vmem:[#allocation4 + $0x3c] sm:$0xf0]  ;;  %v9370_v44 = vor.u32 %v11198_v9, %v9367_v16  ;;  %v11200_v9 = vld [vmem:[#allocation7 + $0x58] sm:$0xf0]  ;;  %v11213_v16 = vld [vmem:[#allocation9 + $0x4] sm:$0xf] }
 0xa67   :  { %3895 = vperm.xlu1 %11572, %v3884_v20   ;;  %3882 = vperm.xlu0 %11567, %v3871_v47  }
 0xa68   :  { %3876 = vperm.xlu2 %11569, %v3871_v47   ;;  %v11172_v47 = vld [vmem:[#allocation4 + $0x38] sm:$0xf0]  ;;  %4327 = vmatpush.bf16.msra.mxu3 %v9366_v19  ;;  %v9265_v19 = vld [vmem:[#allocation4 + $0x38] sm:$0xf] }
 0xa6c   :  { %4328 = vmatpush.bf16.msra.mxu3 %v9354_v63  ;;  %v9253_v63 = vld [vmem:[#allocation4 + $0x20] sm:$0xf] }
 0xa6f   :  { %11573 = vset.pattern.permute.xlu0 %v12085_v41  ;;  %11577 = vset.pattern.permute.xlu1 %v12085_v41 }
 0xa70   :  { %11574 = vset.pattern.permute.xlu2 %v11822_v0  ;;  %4329 = vmatpush.bf16.msra.mxu3 %v9342_v58 }
 0xa71   :  { %3920 = vperm.xlu2 %11574, %v9227_v22  }
 0xa74   :  { %4330 = vmatpush.bf16.msra.mxu3 %v9330_v8  ;;  %v9475_v8 = vld [vmem:[#allocation9 + $0x6c] sm:$0xf0] }
 0xa77   :  { %3889 = vperm.xlu0 %11573, %v3884_v20   ;;  %v9257_v20 = vld [vmem:[#allocation4 + $0x30] sm:$0xf] }
 0xa78   :  { %v9258_v22 = vor.u32 %v11172_v47, %v9257_v20  ;;  %4546 = vmatpush.bf16.msrb.mxu3 %v9514_v14  ;;  %v9262_v20 = vor.u32 %v11171_v60, %v9259_v18  ;;  %v11173_v47 = vld [vmem:[#allocation4 + $0x40] sm:$0xf0]  ;;  %v9497_v18 = vld [vmem:[#allocation9 + $0x90] sm:$0xf] }
 0xa79   :  { %11576 = vset.pattern.permute.xlu2 %v12088_v62  ;;  %v9266_v46 = vor.u32 %v11173_v47, %v9265_v19  ;;  %v11209_v60 = vld [vmem:[#allocation7 + $0xa0] sm:$0xf0]  ;;  %v11222_v47 = vld [vmem:[#allocation9 + $0x4c] sm:$0xf] }
 0xa7a   :  { %4112 = vmatpush.bf16.msra.mxu0 %v9258_v22  ;;  %v11231_v22 = vld [vmem:[#allocation9 + $0x94] sm:$0xf]  ;;  %4125 = vmatpush.bf16.msra.mxu1 %v9262_v20  ;;  %v11232_v20 = vld [vmem:[#allocation9 + $0x98] sm:$0xf0] }
 0xa7e   :  { %4113 = vmatpush.bf16.msra.mxu0 %v9246_v21  ;;  %v11170_v21 = vld [vmem:[#allocation4 + $0x28] sm:$0xf0] }
 0xa7f   :  { %11575 = vset.pattern.permute.xlu0 %v12088_v62  ;;  %v9254_v35 = vor.u32 %v11170_v21, %v9253_v63  ;;  %v11206_v63 = vld [vmem:[#allocation7 + $0x88] sm:$0xf0]  ;;  %v11229_v21 = vld [vmem:[#allocation9 + $0x80] sm:$0xf0] }
 0xa82   :  { %4114 = vmatpush.bf16.msra.mxu0 %v9234_v26  ;;  %v9235_v26 = vld [vmem:[#allocation4 + $0xc] sm:$0xf0] }
 0xa86   :  { %4336 = vmatpush.bf16.msrb.mxu0 %v9418_v51  ;;  %v9238_v51 = vor.u32 %v11165_v27, %v9235_v26  ;;  %v11203_v27 = vld [vmem:[#allocation7 + $0x70] sm:$0xf0]  ;;  %v9473_v26 = vld [vmem:[#allocation9 + $0x60] sm:$0xf] }
 0xa8a   :  { %4337 = vmatpush.bf16.msrb.mxu0 %v9406_v17  ;;  %v9409_v17 = vld [vmem:[#allocation7 + $0x98] sm:$0xf] }
 0xa8b   :  { %v9410_v19 = vor.u32 %v11209_v60, %v9409_v17 }
 0xa91   :  { %3931 = vmin.xlane.f32.xlu1 %v3930_v55  ;;  %v9301_v55 = vld [vmem:[#allocation4 + $0x80] sm:$0xf] }
 0xa92   :  { %v9302_v25 = vor.u32 %v11182_v23, %v9301_v55  ;;  %v9502_v55 = vor.u32 %v11231_v22, %v9499_v1  ;;  %v9391_v23 = vld [vmem:[#allocation7 + $0x84] sm:$0xf0]  ;;  %v9463_v22 = vld [vmem:[#allocation9 + $0x54] sm:$0xf0]  ;;  %v9498_v1 = vor.u32 %v11232_v20, %v9497_v18 }
 0xa93   :  { %v9394_v13 = vor.u32 %v11204_v34, %v9391_v23  ;;  %v9355_v34 = vld [vmem:[#allocation7 + $0x3c] sm:$0xf0] }
 0xa94   :  { %4135 = vmatpush.bf16.msra.mxu2 %v9302_v25  ;;  %v9247_v25 = vld [vmem:[#allocation4 + $0x24] sm:$0xf0]  ;;  %4547 = vmatpush.bf16.msrb.mxu3 %v9502_v55  ;;  %v11195_v55 = vld [vmem:[#allocation7 + $0x34] sm:$0xf] }
 0xa95   :  { %v9250_v3 = vor.u32 %v11168_v42, %v9247_v25  ;;  %4338 = vmatpush.bf16.msrb.mxu0 %v9394_v13  ;;  %v9358_v13 = vor.u32 %v11195_v55, %v9355_v34  ;;  %v9397_v25 = vld [vmem:[#allocation7 + $0x80] sm:$0xf]  ;;  %v11220_v55 = vld [vmem:[#allocation9 + $0x38] sm:$0xf0] }
 0xa97   :  { %4126 = vmatpush.bf16.msra.mxu1 %v9250_v3  ;;  %v9398_v3 = vor.u32 %v11206_v63, %v9397_v25  ;;  %v9349_v25 = vld [vmem:[#allocation7 + $0x20] sm:$0xf]  ;;  %v11194_v63 = vld [vmem:[#allocation7 + $0x28] sm:$0xf0] }
 0xa98   :  { %4136 = vmatpush.bf16.msra.mxu2 %v9290_v49  ;;  %v9379_v49 = vld [vmem:[#allocation7 + $0x6c] sm:$0xf0]  ;;  %4548 = vmatpush.bf16.msrb.mxu3 %v9490_v6  ;;  %v11192_v6 = vld [vmem:[#allocation7 + $0x1c] sm:$0xf] }
 0xa99   :  { %v9382_v37 = vor.u32 %v11201_v45, %v9379_v49 }
 0xa9b   :  { %4339 = vmatpush.bf16.msrb.mxu0 %v9382_v37  ;;  %4127 = vmatpush.bf16.msra.mxu1 %v9238_v51  ;;  %v9385_v37 = vld [vmem:[#allocation7 + $0x68] sm:$0xf]  ;;  %v11226_v51 = vld [vmem:[#allocation9 + $0x68] sm:$0xf0] }
 0xa9c   :  { %4137 = vmatpush.bf16.msra.mxu2 %v9278_v56  ;;  %v11225_v56 = vld [vmem:[#allocation9 + $0x64] sm:$0xf] }
 0xa9d   :  { %v9478_v14 = vor.u32 %v11225_v56, %v9475_v8  ;;  %v9373_v8 = vld [vmem:[#allocation7 + $0x50] sm:$0xf] }
 0xa9f   :  { %4549 = vmatpush.bf16.msrb.mxu3 %v9478_v14  ;;  %4340 = vmatpush.bf16.msrb.mxu0 %v9370_v44  ;;  %v9374_v14 = vor.u32 %v11200_v9, %v9373_v8  ;;  %v9427_v44 = vld [vmem:[#allocation9 + $0xc] sm:$0xf0] }
 0xaa0   :  { %4138 = vmatpush.bf16.msra.mxu2 %v9266_v46  ;;  %v9466_v46 = vor.u32 %v11222_v47, %v9463_v22  ;;  %v9430_v18 = vor.u32 %v11213_v16, %v9427_v44  ;;  %v9361_v47 = vld [vmem:[#allocation7 + $0x38] sm:$0xf]  ;;  %v11197_v22 = vld [vmem:[#allocation7 + $0x40] sm:$0xf0]  ;;  %v9493_v16 = vld [vmem:[#allocation9 + $0x80] sm:$0xf] }
 0xaa1   :  { %v11230_v44 = vld [vmem:[#allocation9 + $0x88] sm:$0xf0] }
 0xaa3   :  { %4550 = vmatpush.bf16.msrb.mxu3 %v9466_v46  ;;  %4341 = vmatpush.bf16.msrb.mxu0 %v9358_v13  ;;  %v9362_v46 = vor.u32 %v11197_v22, %v9361_v47  ;;  %v11224_v47 = vld [vmem:[#allocation9 + $0x58] sm:$0xf0] }
 0xaa4   :  { %4139 = vmatpush.bf16.msra.mxu2 %v9254_v35  ;;  %v9454_v35 = vor.u32 %v11219_v48, %v9451_v32 }
 0xaa7   :  { %4551 = vmatpush.bf16.msrb.mxu3 %v9454_v35 }
 0xaa8   :  { %4140 = vmatpush.bf16.msra.mxu2 %v9242_v61  ;;  %v9474_v61 = vor.u32 %v11226_v51, %v9473_v26 }
 0xac2   :  { %v3877_v36 = vpop.permute.xlu2 %3876 }
 0xac3   :  { %v3897_v58 = vmul.f32 %v12370_v2, %v3877_v36  ;;  %v9510_v2 = vor.u32 %v11235_v5, %v9509_v4  ;;  %v9485_v36 = vld [vmem:[#allocation9 + $0x78] sm:$0xf]  ;;  %v11189_v4 = vld [vmem:[#allocation7 + $0x4] sm:$0xf] }
 0xac5   :  { %4533 = vmatpush.bf16.msrb.mxu2 %v9510_v2 }
 0xac9   :  { %4534 = vmatpush.bf16.msrb.mxu2 %v9498_v1  ;;  %v9449_v1 = vld [vmem:[#allocation9 + $0x30] sm:$0xf] }
 0xad9   :  { %v3883_v29 = vpop.permute.xlu0 %3882  ;;  %v3896_v42 = vpop.permute.xlu1 %3895 }
 0xada   :  { %v3898_v43 = vmul.f32 %v12376_v10, %v3883_v29  ;;  %v11212_v10 = vld [vmem:[#allocation7 + $0xb8] sm:$0xf0]  ;;  %v9486_v29 = vor.u32 %v11229_v21, %v9485_v36  ;;  %v3900_v45 = vmul.f32 %v12389_v39, %v3896_v42  ;;  %v9331_v39 = vld [vmem:[#allocation7 + $0xc] sm:$0xf0]  ;;  %v9437_v36 = vld [vmem:[#allocation9 + $0x18] sm:$0xf] }
 0xadb   :  { %v9422_v7 = vor.u32 %v11212_v10, %v9421_v54  ;;  %v9439_v54 = vld [vmem:[#allocation9 + $0x24] sm:$0xf0]  ;;  %v9334_v2 = vor.u32 %v11189_v4, %v9331_v39  ;;  %v11217_v21 = vld [vmem:[#allocation9 + $0x20] sm:$0xf0] }
 0xadc   :  { %v3901_v57 = vsel %vm1285_vm2, %v3898_v43, 0.0  ;;  %v9343_v43 = vld [vmem:[#allocation7 + $0x24] sm:$0xf0]  ;;  %4535 = vmatpush.bf16.msrb.mxu2 %v9486_v29  ;;  %v9442_v10 = vor.u32 %v11216_v53, %v9439_v54  ;;  %v3909_v5 = vsel %vm1285_vm2, %v3900_v45, 0.0  ;;  %v9438_v32 = vor.u32 %v11217_v21, %v9437_v36  ;;  %v9425_v45 = vld [vmem:[#allocation9] sm:$0xf] }
 0xadd   :  { %v3902_v38 = vadd.f32 %v3901_v57, %v3897_v58  ;;  %4349 = vmatpush.bf16.msrb.mxu1 %v9422_v7  ;;  %v9346_v58 = vor.u32 %v11192_v6, %v9343_v43  ;;  %v9386_v57 = vor.u32 %v11203_v27, %v9385_v37  ;;  %v9337_v6 = vld [vmem:[#allocation7 + $0x8] sm:$0xf]  ;;  %v11191_v43 = vld [vmem:[#allocation7 + $0x10] sm:$0xf0]  ;;  %v3940_v54 = vstv %s3939_s16 }
 0xade   :  { %4552 = vmatpush.bf16.msrb.mxu3 %v9442_v10  ;;  %v11283_v36 = vld [vmem:[#allocation9 + $0x170] sm:$0xf0] }
 0xadf   :  { %v3903_v12 = vrot.slane %v3902_v38, 4  ;;  %4342 = vmatpush.bf16.msrb.mxu0 %v9346_v58  ;;  %v11214_v58 = vld [vmem:[#allocation9 + $0x8] sm:$0xf0] }
 0xae0   :  { %4536 = vmatpush.bf16.msrb.mxu2 %v9474_v61  ;;  %v9426_v27 = vor.u32 %v11214_v58, %v9425_v45  ;;  %v3943_v61 = vstv %s3942_s17  ;;  %v9667_v45 = vld [vmem:[#allocation9 + $0x120] sm:$0xf] }
 0xae1   :  { %v3904_v23 = vadd.f32 %v3903_v12, %v3902_v38  ;;  %4350 = vmatpush.bf16.msrb.mxu1 %v9410_v19  ;;  %v9461_v12 = vld [vmem:[#allocation9 + $0x48] sm:$0xf] }
 0xae2   :  { %4553 = vmatpush.bf16.msrb.mxu3 %v9430_v18  ;;  %v11227_v18 = vld [vmem:[#allocation9 + $0x70] sm:$0xf0] }
 0xae3   :  { %v3905_v49 = vrot.slane %v3904_v23, 2  ;;  %4343 = vmatpush.bf16.msrb.mxu0 %v9334_v2  ;;  %v11236_v2 = vld [vmem:[#allocation9 + $0xb8] sm:$0xf0] }
 0xae5   :  { %4351 = vmatpush.bf16.msrb.mxu1 %v9398_v3  ;;  %v3906_v7 = vadd.f32 %v3905_v49, %v3904_v23  ;;  %v9450_v23 = vor.u32 %v11220_v55, %v9449_v1  ;;  %v9350_v3 = vor.u32 %v11194_v63, %v9349_v25  ;;  %v9338_v49 = vor.u32 %v11191_v43, %v9337_v6  ;;  %v9457_v1 = vld [vmem:[#allocation9 + $0x38] sm:$0xf]  ;;  %v11215_v25 = vld [vmem:[#allocation9 + $0x10] sm:$0xf0]  ;;  %v9703_v63 = vld [vmem:[#allocation9 + $0x168] sm:$0xf] }
 0xae6   :  { %v9704_v21 = vor.u32 %v11283_v36, %v9703_v63  ;;  %v11277_v6 = vld [vmem:[#allocation9 + $0x140] sm:$0xf0]  ;;  %v9558_v63 = vld [vmem:[#allocation7 + $0x108] sm:$0xf]  ;;  %v11247_v36 = vld [vmem:[#allocation7 + $0x110] sm:$0xf0] }
 0xae7   :  { %v3907_v19 = vrot.slane %v3906_v7, 1 }
 0xae9   :  { %v3890_v52 = vpop.permute.xlu0 %3889  ;;  %4352 = vmatpush.bf16.msrb.mxu1 %v9386_v57  ;;  %v3908_v13 = vadd.f32 %v3907_v19, %v3906_v7  ;;  %v3921_v57 = vpop.permute.xlu2 %3920  ;;  %v9517_v7 = vld [vmem:[#allocation9 + $0xb0] sm:$0xf] }
 0xaea   :  { %v3899_v38 = vmul.f32 %v12383_v50, %v3890_v52  ;;  %v11223_v50 = vld [vmem:[#allocation9 + $0x50] sm:$0xf0]  ;;  %vm3922_vm14 = vcmp.eq.s32.totalorder %v11928_v11, %v3921_v57  ;;  %v9518_v8 = vor.u32 %v11236_v2, %v9517_v7  ;;  %v11268_v57 = vld [vmem:[#allocation9 + $0xf8] sm:$0xf0]  ;;  %v9608_v2 = vld [vmem:[#allocation7 + $0x174] sm:$0xf0] }
 0xaeb   :  { %v9462_v60 = vor.u32 %v11223_v50, %v9461_v12  ;;  %v4146_v29 = vpack.c.bf16 %v3908_v13, %v3908_v13  ;;  %v9505_v12 = vld [vmem:[#allocation9 + $0x98] sm:$0xf] }
 0xaec   :  { %v3910_v56 = vadd.f32 %v3909_v5, %v3899_v38  ;;  %v9228_v38 = vsel %vm3922_vm14, 1.0, %v11824_v24 }
 0xaed   :  { %4353 = vmatpush.bf16.msrb.mxu1 %v9374_v14  ;;  %4537 = vmatpush.bf16.msrb.mxu2 %v9462_v60  ;;  %v4190_v26 = vunpack.c.l.b16 %v4146_v29  ;;  %v3941_v4 = vmul.f32 %v9228_v38, %v3940_v54  ;;  %v11233_v14 = vld [vmem:[#allocation9 + $0xa0] sm:$0xf0]  ;;  %v9481_v60 = vld [vmem:[#allocation9 + $0x68] sm:$0xf] }
 0xaee   :  { %v3911_v17 = vrot.slane %v3910_v56, 4  ;;  %v9506_v50 = vor.u32 %v11233_v14, %v9505_v12  ;;  %v9482_v19 = vor.u32 %v11227_v18, %v9481_v60  ;;  %v11265_v54 = vld [vmem:[#allocation9 + $0xe0] sm:$0xf0]  ;;  %v11255_v14 = vld [vmem:[#allocation7 + $0x154] sm:$0xf] }
 0xaef   :  { %v11252_v60 = vld [vmem:[#allocation7 + $0x13c] sm:$0xf] }
 0xaf0   :  { %v3912_v20 = vadd.f32 %v3911_v17, %v3910_v56  ;;  %v9494_v17 = vor.u32 %v11230_v44, %v9493_v16  ;;  %v9582_v44 = vld [vmem:[#allocation7 + $0x138] sm:$0xf] }
 0xaf1   :  { %4354 = vmatpush.bf16.msrb.mxu1 %v9362_v46  ;;  %4538 = vmatpush.bf16.msrb.mxu2 %v9450_v23  ;;  %v11221_v46 = vld [vmem:[#allocation9 + $0x40] sm:$0xf0]  ;;  %v11218_v23 = vld [vmem:[#allocation9 + $0x28] sm:$0xf0] }
 0xaf2   :  { %v3913_v34 = vrot.slane %v3912_v20, 2  ;;  %v9458_v55 = vor.u32 %v11221_v46, %v9457_v1  ;;  %v11249_v1 = vld [vmem:[#allocation7 + $0x124] sm:$0xf] }
 0xaf4   :  { %v3914_v42 = vadd.f32 %v3913_v34, %v3912_v20  ;;  %v9469_v20 = vld [vmem:[#allocation9 + $0x50] sm:$0xf]  ;;  %v9445_v34 = vld [vmem:[#allocation9 + $0x20] sm:$0xf] }
 0xaf5   :  { %4355 = vmatpush.bf16.msrb.mxu1 %v9350_v3  ;;  %4539 = vmatpush.bf16.msrb.mxu2 %v9438_v32  ;;  %v9470_v22 = vor.u32 %v11224_v47, %v9469_v20  ;;  %v9446_v13 = vor.u32 %v11218_v23, %v9445_v34  ;;  %v11280_v32 = vld [vmem:[#allocation9 + $0x158] sm:$0xf0]  ;;  %v9570_v47 = vld [vmem:[#allocation7 + $0x120] sm:$0xf]  ;;  %v9614_v34 = vld [vmem:[#allocation7 + $0x170] sm:$0xf] }
 0xaf6   :  { %v3915_v48 = vrot.slane %v3914_v42, 1  ;;  %v11260_v23 = vld [vmem:[#allocation7 + $0x178] sm:$0xf0] }
 0xaf8   :  { %v3916_v35 = vadd.f32 %v3915_v48, %v3914_v42  ;;  %v9433_v42 = vld [vmem:[#allocation9 + $0x8] sm:$0xf]  ;;  %v9691_v48 = vld [vmem:[#allocation9 + $0x150] sm:$0xf] }
 0xaf9   :  { %4356 = vmatpush.bf16.msrb.mxu1 %v9338_v49  ;;  %4540 = vmatpush.bf16.msrb.mxu2 %v9426_v27  ;;  %v9434_v3 = vor.u32 %v11215_v25, %v9433_v42  ;;  %v9692_v29 = vor.u32 %v11280_v32, %v9691_v48  ;;  %v11274_v49 = vld [vmem:[#allocation9 + $0x128] sm:$0xf0]  ;;  %v11271_v27 = vld [vmem:[#allocation9 + $0x110] sm:$0xf0]  ;;  %v9615_v42 = vor.u32 %v11260_v23, %v9614_v34  ;;  %v9560_v48 = vld [vmem:[#allocation7 + $0x114] sm:$0xf0] }
 0xafa   :  { %v4147_v37 = vpack.c.bf16 %v3916_v35, %v3916_v35  ;;  %v9679_v35 = vld [vmem:[#allocation9 + $0x138] sm:$0xf]  ;;  %v9668_v58 = vor.u32 %v11274_v49, %v9667_v45  ;;  %v11244_v45 = vld [vmem:[#allocation7 + $0xf8] sm:$0xf0]  ;;  %v11243_v49 = vld [vmem:[#allocation7 + $0xf4] sm:$0xf] }
 0xafb   :  { %v9680_v43 = vor.u32 %v11277_v6, %v9679_v35  ;;  %v9602_v32 = vld [vmem:[#allocation7 + $0x158] sm:$0xf]  ;;  %v11284_v34 = vld [vmem:[#allocation9 + $0x178] sm:$0xf0] }
 0xafc   :  { %v4191_v52 = vunpack.c.l.b16 %v4147_v37  ;;  %v9655_v37 = vld [vmem:[#allocation9 + $0x108] sm:$0xf] }
 0xafe   :  { %v4192_v51 = vsel %vm1307_vm4, %v4191_v52, %v4190_v26  ;;  %v9656_v26 = vor.u32 %v11271_v27, %v9655_v37  ;;  %v9643_v52 = vld [vmem:[#allocation9 + $0xf0] sm:$0xf] }
 0xaff   :  { %v4193_v53 = vpack.c.b16 %v4192_v51, %v4192_v51  ;;  %v9644_v51 = vor.u32 %v11268_v57, %v9643_v52  ;;  %v9590_v52 = vld [vmem:[#allocation7 + $0x140] sm:$0xf] }
 0xb01   :  { %4331 = vmatmul.bf16.vlgmr.msra.gmra.mxu3 %v4193_v53 }
 0xb02   :  { %4784 = vmatpush.bf16.msra.mxu3 %v9615_v42  ;;  %v9554_v42 = vld [vmem:[#allocation7 + $0xf8] sm:$0xf] }
 0xb04   :  { %v3932_v10 = vpop.xlane.xlu1 %3931 }
 0xb05   :  { %vm3933_vm15 = vcmp.eq.f32.partialorder %v12079_v33, %v3932_v10 }
 0xb06   :  { %v9229_v39 = vsel %vm3933_vm15, 1.0, %v11824_v24 }
 0xb07   :  { %v3944_v5 = vmul.f32 %v9229_v39, %v3943_v61  ;;  %v9619_v61 = vld [vmem:[#allocation9 + $0xc0] sm:$0xf]  ;;  %v11259_v39 = vld [vmem:[#allocation7 + $0x170] sm:$0xf0] }
 0xb09   :  { %v3945_v56 = vadd.f32 %v3944_v5, %v3941_v4  ;;  %v9606_v4 = vld [vmem:[#allocation7 + $0x168] sm:$0xf]  ;;  %v11258_v5 = vld [vmem:[#allocation7 + $0x16c] sm:$0xf] }
 0xb0a   :  { %v9607_v7 = vor.u32 %v11259_v39, %v9606_v4  ;;  %v9536_v4 = vld [vmem:[#allocation7 + $0xe4] sm:$0xf0] }
 0xb0b   :  { %v3946_v9 = vpack.c.bf16 %v3945_v56, %v3945_v56  ;;  %v9611_v56 = vor.u32 %v11258_v5, %v9608_v2  ;;  %v9578_v39 = vld [vmem:[#allocation7 + $0x128] sm:$0xf]  ;;  %v11251_v5 = vld [vmem:[#allocation7 + $0x130] sm:$0xf0] }
 0xb0c   :  { %v9579_v2 = vor.u32 %v11251_v5, %v9578_v39 }
 0xb0d   :  { %4115 = vmatmul.bf16.vlgmr.msra.gmra.mxu0 %v3946_v9  ;;  %4128 = vmatmul.bf16.vlgmr.msra.gmra.mxu1 %v3946_v9 }
 0xb0e   :  { %4141 = vmatmul.bf16.vlgmr.msra.gmra.mxu2 %v3946_v9  ;;  %4559 = vmatpush.bf16.msra.mxu0 %v9518_v8  ;;  %v9594_v8 = vld [vmem:[#allocation7 + $0x150] sm:$0xf]  ;;  %v11256_v9 = vld [vmem:[#allocation7 + $0x158] sm:$0xf0] }
 0xb0f   :  { %4758 = vmatpush.bf16.msra.mxu1 %v9607_v7  ;;  %4771 = vmatpush.bf16.msra.mxu2 %v9611_v56  ;;  %v9595_v12 = vor.u32 %v11256_v9, %v9594_v8  ;;  %v9522_v8 = vld [vmem:[#allocation7 + $0xc0] sm:$0xf]  ;;  %v11238_v9 = vld [vmem:[#allocation7 + $0xc8] sm:$0xf0] }
 0xb11   :  { %4554 = vmatmul.bf16.vlgmr.msrb.gmra.mxu3 %v12320_v31 }
 0xb12   :  { %4560 = vmatpush.bf16.msra.mxu0 %v9506_v50  ;;  %v9596_v50 = vld [vmem:[#allocation7 + $0x15c] sm:$0xf0] }
 0xb13   :  { %v9599_v16 = vor.u32 %v11255_v14, %v9596_v50  ;;  %4759 = vmatpush.bf16.msra.mxu1 %v9595_v12  ;;  %v11237_v12 = vld [vmem:[#allocation7 + $0xc4] sm:$0xf] }
 0xb15   :  { %4772 = vmatpush.bf16.msra.mxu2 %v9599_v16  ;;  %v9523_v16 = vor.u32 %v11238_v9, %v9522_v8  ;;  %v11239_v8 = vld [vmem:[#allocation7 + $0xd0] sm:$0xf0]  ;;  %v11273_v9 = vld [vmem:[#allocation9 + $0x124] sm:$0xf] }
 0xb16   :  { %4561 = vmatpush.bf16.msra.mxu0 %v9494_v17  ;;  %v11253_v17 = vld [vmem:[#allocation7 + $0x140] sm:$0xf0] }
 0xb17   :  { %v9583_v18 = vor.u32 %v11253_v17, %v9582_v44  ;;  %v9524_v44 = vld [vmem:[#allocation7 + $0xcc] sm:$0xf0] }
 0xb18   :  { %v9566_v17 = vld [vmem:[#allocation7 + $0x110] sm:$0xf] }
 0xb19   :  { %4760 = vmatpush.bf16.msra.mxu1 %v9583_v18  ;;  %v9527_v18 = vor.u32 %v11237_v12, %v9524_v44 }
 0xb1a   :  { %4562 = vmatpush.bf16.msra.mxu0 %v9482_v19  ;;  %v9584_v19 = vld [vmem:[#allocation7 + $0x144] sm:$0xf0] }
 0xb1b   :  { %v9587_v20 = vor.u32 %v11252_v60, %v9584_v19  ;;  %v11248_v60 = vld [vmem:[#allocation7 + $0x118] sm:$0xf0] }
 0xb1c   :  { %v9567_v19 = vor.u32 %v11248_v60, %v9566_v17 }
 0xb1d   :  { %4344 = vmatmul.bf16.vlgmr.msrb.gmra.mxu0 %v4193_v53  ;;  %4357 = vmatmul.bf16.vlgmr.msrb.gmra.mxu1 %v4193_v53  ;;  %v9631_v53 = vld [vmem:[#allocation9 + $0xd8] sm:$0xf] }
 0xb1e   :  { %4541 = vmatmul.bf16.vlgmr.msrb.gmra.mxu2 %v12320_v31  ;;  %4563 = vmatpush.bf16.msra.mxu0 %v9470_v22  ;;  %v9632_v38 = vor.u32 %v11265_v54, %v9631_v53  ;;  %v11250_v22 = vld [vmem:[#allocation7 + $0x128] sm:$0xf0] }
 0xb1f   :  { %4773 = vmatpush.bf16.msra.mxu2 %v9587_v20  ;;  %v9571_v46 = vor.u32 %v11250_v22, %v9570_v47  ;;  %v11282_v20 = vld [vmem:[#allocation9 + $0x16c] sm:$0xf]  ;;  %v9705_v47 = vld [vmem:[#allocation9 + $0x174] sm:$0xf0]  ;;  %v9711_v22 = vld [vmem:[#allocation9 + $0x170] sm:$0xf] }
 0xb21   :  { %4761 = vmatpush.bf16.msra.mxu1 %v9571_v46 }
 0xb22   :  { %4564 = vmatpush.bf16.msra.mxu0 %v9458_v55  ;;  %v9572_v55 = vld [vmem:[#allocation7 + $0x12c] sm:$0xf0] }
 0xb26   :  { %4565 = vmatpush.bf16.msra.mxu0 %v9446_v13  ;;  %v9575_v13 = vor.u32 %v11249_v1, %v9572_v55  ;;  %v12447_v1 = vld [vmem:[%s12834_s9] sm:$0x7]  ;;  %v9708_v55 = vor.u32 %v11282_v20, %v9705_v47 }
 0xb27   :  { %v4183_v23 = vperm.slane %v12447_v1, 1 }
 0xb28   :  { %4774 = vmatpush.bf16.msra.mxu2 %v9575_v13  ;;  %v9712_v13 = vor.u32 %v11284_v34, %v9711_v22  ;;  %v11270_v34 = vld [vmem:[#allocation9 + $0x10c] sm:$0xf] }
 0xb2a   :  { %4566 = vmatpush.bf16.msra.mxu0 %v9434_v3  ;;  %v11246_v3 = vld [vmem:[#allocation7 + $0x10c] sm:$0xf] }
 0xb2b   :  { %v9563_v35 = vor.u32 %v11246_v3, %v9560_v48  ;;  %v9699_v48 = vld [vmem:[#allocation9 + $0x158] sm:$0xf] }
 0xb2d   :  { %4567 = vmatmul.bf16.vlgmr.msra.gmra.mxu0 %v12320_v31  ;;  %v11262_v31 = vld [vmem:[#allocation9 + $0xc8] sm:$0xf0]  ;;  %4775 = vmatpush.bf16.msra.mxu2 %v9563_v35 }
 0xb2e   :  { %4965 = vmatpush.bf16.msrb.mxu0 %v9704_v21  ;;  %v9620_v10 = vor.u32 %v11262_v31, %v9619_v61  ;;  %v9559_v21 = vor.u32 %v11247_v36, %v9558_v63  ;;  %v11241_v61 = vld [vmem:[#allocation7 + $0xe0] sm:$0xf0]  ;;  %v11240_v31 = vld [vmem:[#allocation7 + $0xdc] sm:$0xf]  ;;  %v11279_v36 = vld [vmem:[#allocation9 + $0x154] sm:$0xf] }
 0xb2f   :  { %v9539_v7 = vor.u32 %v11240_v31, %v9536_v4  ;;  %v11245_v63 = vld [vmem:[#allocation7 + $0x100] sm:$0xf0] }
 0xb30   :  { %4762 = vmatpush.bf16.msra.mxu1 %v9559_v21  ;;  %v9555_v3 = vor.u32 %v11245_v63, %v9554_v42  ;;  %v9693_v21 = vld [vmem:[#allocation9 + $0x15c] sm:$0xf0] }
 0xb32   :  { %4966 = vmatpush.bf16.msrb.mxu0 %v9692_v29  ;;  %v11257_v29 = vld [vmem:[#allocation7 + $0x160] sm:$0xf0] }
 0xb33   :  { %v9603_v6 = vor.u32 %v11257_v29, %v9602_v32  ;;  %v11281_v32 = vld [vmem:[#allocation9 + $0x160] sm:$0xf0]  ;;  %v9696_v29 = vor.u32 %v11279_v36, %v9693_v21  ;;  %v11272_v36 = vld [vmem:[#allocation9 + $0x118] sm:$0xf0]  ;;  %v11267_v21 = vld [vmem:[#allocation9 + $0xf4] sm:$0xf] }
 0xb34   :  { %v9700_v35 = vor.u32 %v11281_v32, %v9699_v48  ;;  %v9651_v48 = vld [vmem:[#allocation9 + $0xf8] sm:$0xf] }
 0xb35   :  { %4785 = vmatpush.bf16.msra.mxu3 %v9603_v6  ;;  %v12453_v6 = vld [vmem:[%s12835_s10] sm:$0x7] }
 0xb36   :  { %4967 = vmatpush.bf16.msrb.mxu0 %v9680_v43  ;;  %v9546_v43 = vld [vmem:[#allocation7 + $0xf0] sm:$0xf]  ;;  %v4400_v31 = vperm.slane %v12453_v6, 1  ;;  %v4399_v5 = vperm.slane %v12453_v6, 0 }
 0xb37   :  { %v9547_v27 = vor.u32 %v11244_v45, %v9546_v43 }
 0xb39   :  { %4763 = vmatpush.bf16.msra.mxu1 %v9547_v27  ;;  %v9542_v27 = vld [vmem:[#allocation7 + $0xe0] sm:$0xf] }
 0xb3a   :  { %4968 = vmatpush.bf16.msrb.mxu0 %v9668_v58 }
 0xb3e   :  { %4969 = vmatpush.bf16.msrb.mxu0 %v9656_v26  ;;  %v9548_v26 = vld [vmem:[#allocation7 + $0xfc] sm:$0xf0] }
 0xb3f   :  { %v9551_v57 = vor.u32 %v11243_v49, %v9548_v26  ;;  %v11242_v26 = vld [vmem:[#allocation7 + $0xe8] sm:$0xf0] }
 0xb41   :  { %4776 = vmatpush.bf16.msra.mxu2 %v9551_v57 }
 0xb42   :  { %4970 = vmatpush.bf16.msrb.mxu0 %v9644_v51  ;;  %v11254_v51 = vld [vmem:[#allocation7 + $0x148] sm:$0xf0] }
 0xb43   :  { %v9591_v54 = vor.u32 %v11254_v51, %v9590_v52  ;;  %v11276_v52 = vld [vmem:[#allocation9 + $0x13c] sm:$0xf]  ;;  %v9543_v51 = vor.u32 %v11242_v26, %v9542_v27  ;;  %v9639_v26 = vld [vmem:[#allocation9 + $0xe0] sm:$0xf] }
 0xb45   :  { %4786 = vmatpush.bf16.msra.mxu3 %v9591_v54  ;;  %4777 = vmatpush.bf16.msra.mxu2 %v9539_v7  ;;  %v9687_v54 = vld [vmem:[#allocation9 + $0x140] sm:$0xf] }
 0xb46   :  { %4971 = vmatpush.bf16.msrb.mxu0 %v9632_v38  ;;  %v9534_v38 = vld [vmem:[#allocation7 + $0xd8] sm:$0xf] }
 0xb49   :  { %4787 = vmatpush.bf16.msra.mxu3 %v9579_v2  ;;  %4778 = vmatpush.bf16.msra.mxu2 %v9527_v18  ;;  %v9530_v2 = vld [vmem:[#allocation7 + $0xc8] sm:$0xf] }
 0xb4a   :  { %4972 = vmatpush.bf16.msrb.mxu0 %v9620_v10  ;;  %v9535_v10 = vor.u32 %v11241_v61, %v9534_v38  ;;  %v11278_v38 = vld [vmem:[#allocation9 + $0x148] sm:$0xf0]  ;;  %v4182_v61 = vperm.slane %v12447_v1, 0  ;;  %v9531_v12 = vor.u32 %v11239_v8, %v9530_v2  ;;  %v11263_v2 = vld [vmem:[#allocation9 + $0xd0] sm:$0xf0] }
 0xb4b   :  { %v9688_v39 = vor.u32 %v11278_v38, %v9687_v54  ;;  %v4401_v38 = vperm.slane %v12453_v6, 2 }
 0xb4c   :  { %4764 = vmatpush.bf16.msra.mxu1 %v9535_v10 }
 0xb4d   :  { %4973 = vmatmul.bf16.vlgmr.msrb.gmra.mxu0 %v12362_v40  ;;  %4788 = vmatpush.bf16.msra.mxu3 %v9567_v19 }
 0xb4e   :  { %4991 = vmatpush.bf16.msrb.mxu2 %v9712_v13  ;;  %v9663_v13 = vld [vmem:[#allocation9 + $0x110] sm:$0xf] }
 0xb50   :  { %4765 = vmatpush.bf16.msra.mxu1 %v9523_v16  ;;  %v11275_v16 = vld [vmem:[#allocation9 + $0x130] sm:$0xf0] }
 0xb51   :  { %4789 = vmatpush.bf16.msra.mxu3 %v9555_v3 }
 0xb52   :  { %4992 = vmatpush.bf16.msrb.mxu2 %v9700_v35  ;;  %v11264_v35 = vld [vmem:[#allocation9 + $0xdc] sm:$0xf] }
 0xb54   :  { %4978 = vmatpush.bf16.msrb.mxu1 %v9708_v55 }
 0xb55   :  { %4790 = vmatpush.bf16.msra.mxu3 %v9543_v51 }
 0xb56   :  { %4993 = vmatpush.bf16.msrb.mxu2 %v9688_v39  ;;  %v9621_v39 = vld [vmem:[#allocation9 + $0xcc] sm:$0xf0] }
 0xb58   :  { %4979 = vmatpush.bf16.msrb.mxu1 %v9696_v29  ;;  %v11269_v29 = vld [vmem:[#allocation9 + $0x100] sm:$0xf0] }
 0xb59   :  { %4791 = vmatpush.bf16.msra.mxu3 %v9531_v12  ;;  %v9652_v27 = vor.u32 %v11269_v29, %v9651_v48  ;;  %v11285_v29 = vld [vmem:[%s12836_s11] sm:$0xff] }
 0xb84   :  { %v12436_v25 = vpop.f32.mrf.mxu3 }
 0xb85   :  { %v4333_v44 = vadd.f32 %v12436_v25, %v4182_v61  ;;  %v9664_v25 = vor.u32 %v11272_v36, %v9663_v13  ;;  %v11288_v13 = vld [vmem:[%s12836_s11 + $0x18] sm:$0xff]  ;;  %v11287_v36 = vld [vmem:[%s12836_s11 + $0x10] sm:$0xff] }
 0xb8a   :  { %v12438_v58 = vpop.f32.mrf.mxu0  ;;  %v12440_v37 = vpop.f32.mrf.mxu1 }
 0xb8b   :  { %v4362_v20 = vadd.f32 %v4333_v44, %v12438_v58  ;;  %v9645_v58 = vld [vmem:[#allocation9 + $0xfc] sm:$0xf0] }
 0xb8c   :  { %v4334_v53 = vpop.f32.mrf.mxu3  ;;  %v9648_v32 = vor.u32 %v11267_v21, %v9645_v58  ;;  %v11286_v21 = vld [vmem:[%s12836_s11 + $0x8] sm:$0xff] }
 0xb8d   :  { %v9681_v53 = vld [vmem:[#allocation9 + $0x144] sm:$0xf0] }
 0xb8e   :  { %v9684_v4 = vor.u32 %v11276_v52, %v9681_v53  ;;  %v11266_v52 = vld [vmem:[#allocation9 + $0xe8] sm:$0xf0]  ;;  %v4184_v53 = vperm.slane %v12447_v1, 2 }
 0xb8f   :  { %v9640_v54 = vor.u32 %v11266_v52, %v9639_v26 }
 0xb90   :  { %4980 = vmatpush.bf16.msrb.mxu1 %v9684_v4  ;;  %v11261_v4 = vld [vmem:[#allocation9 + $0xc4] sm:$0xf] }
 0xb91   :  { %v12442_v56 = vpop.f32.mrf.mxu2 }
 0xb92   :  { %v4118_v14 = vpop.f32.mrf.mxu0  ;;  %v4131_v50 = vpop.f32.mrf.mxu1 }
 0xb93   :  { %v9669_v14 = vld [vmem:[#allocation9 + $0x12c] sm:$0xf0]  ;;  %v9675_v50 = vld [vmem:[#allocation9 + $0x128] sm:$0xf] }
 0xb94   :  { %v4555_v46 = vpop.f32.mrf.mxu3  ;;  %v9672_v60 = vor.u32 %v11273_v9, %v9669_v14  ;;  %v9676_v18 = vor.u32 %v11275_v16, %v9675_v50 }
 0xb95   :  { %v4556_v17 = vadd.f32 %v4555_v46, %v4400_v31 }
 0xb96   :  { %4981 = vmatpush.bf16.msrb.mxu1 %v9672_v60  ;;  %4994 = vmatpush.bf16.msrb.mxu2 %v9676_v18 }
 0xb99   :  { %v4144_v43 = vpop.f32.mrf.mxu2 }
 0xb9a   :  { %v4345_v45 = vpop.f32.mrf.mxu0  ;;  %v12455_v49 = vpop.f32.mrf.mxu1  ;;  %4995 = vmatpush.bf16.msrb.mxu2 %v9664_v25  ;;  %v9633_v43 = vld [vmem:[#allocation9 + $0xe4] sm:$0xf0] }
 0xb9b   :  { %v4346_v57 = vadd.f32 %v4345_v45, %v4183_v23  ;;  %v9657_v23 = vld [vmem:[#allocation9 + $0x114] sm:$0xf0]  ;;  %v9636_v51 = vor.u32 %v11264_v35, %v9633_v43  ;;  %v4359_v31 = vadd.f32 %v12455_v49, %v4184_v53 }
 0xb9c   :  { %v4557_v10 = vpop.f32.mrf.mxu3  ;;  %v9660_v63 = vor.u32 %v11270_v34, %v9657_v23  ;;  %v11289_v34 = vld [vmem:[%s12836_s11 + $0x20] sm:$0xff] }
 0xb9d   :  { %v4363_v7 = vadd.f32 %v4346_v57, %v12440_v37  ;;  %v4364_v50 = vadd.f32 %v4359_v31, %v12442_v56  ;;  %v9519_v23 = vld [vmem:[%s12834_s9 + $0x3] sm:$0x7] }
 0xb9e   :  { %4982 = vmatpush.bf16.msrb.mxu1 %v9660_v63  ;;  %4996 = vmatpush.bf16.msrb.mxu2 %v9652_v27  ;;  %v4624_v63 = vperm.slane %v9519_v23, 0 }
 0xb9f   :  { %v4577_v47 = vadd.f32 %v4556_v17, %v4363_v7  ;;  %v9627_v7 = vld [vmem:[#allocation9 + $0xc8] sm:$0xf] }
 0xba0   :  { %v9628_v14 = vor.u32 %v11263_v2, %v9627_v7 }
 0xba1   :  { %v4542_v19 = vpop.f32.mrf.mxu2  ;;  %v4578_v46 = vmul.f32 0.5, %v4577_v47 }
 0xba2   :  { %v4543_v37 = vadd.f32 %v4542_v19, %v4399_v5  ;;  %v4347_v22 = vpop.f32.mrf.mxu0  ;;  %v4360_v55 = vpop.f32.mrf.mxu1  ;;  %4983 = vmatpush.bf16.msrb.mxu1 %v9648_v32  ;;  %4997 = vmatpush.bf16.msrb.mxu2 %v9640_v54  ;;  %v9624_v5 = vor.u32 %v11261_v4, %v9621_v39 }
 0xba3   :  { %v11291_v22 = vld [vmem:[%s12836_s11 + $0x30] sm:$0xff]  ;;  %v11290_v55 = vld [vmem:[%s12836_s11 + $0x28] sm:$0xff] }
 0xba4   :  { %v4572_v42 = vadd.f32 %v4543_v37, %v4362_v20 }
 0xba6   :  { %v4573_v3 = vmul.f32 0.5, %v4572_v42  ;;  %4984 = vmatpush.bf16.msrb.mxu1 %v9636_v51  ;;  %4998 = vmatpush.bf16.msrb.mxu2 %v9628_v14 }
 0xba8   :  { %11635 = vtanh.f32 %v4573_v3 }
 0xba9   :  { %v4544_v45 = vpop.f32.mrf.mxu2  ;;  %11637 = vtanh.f32 %v4578_v46 }
 0xbaa   :  { %v4568_v57 = vpop.f32.mrf.mxu0  ;;  %4985 = vmatpush.bf16.msrb.mxu1 %v9624_v5  ;;  %v4625_v45 = vperm.slane %v9519_v23, 1 }
 0xbab   :  { %v4569_v9 = vadd.f32 %v4568_v57, %v4401_v38 }
 0xbae   :  { %v11636_v61 = vpop.eup %11635 }
 0xbaf   :  { %v4575_v10 = vadd.f32 1.0, %v11636_v61  ;;  %v11638_v8 = vpop.eup %11637 }
 0xbb0   :  { %v4580_v16 = vadd.f32 1.0, %v11638_v8 }
 0xbb1   :  { %v4576_v12 = vmul.f32 0.5, %v4575_v10  ;;  %v4626_v10 = vperm.slane %v9519_v23, 2 }
 0xbb2   :  { %v4570_v1 = vpop.f32.mrf.mxu0  ;;  %v4581_v49 = vmul.f32 0.5, %v4580_v16 }
 0xbb3   :  { %v4582_v6 = vmul.f32 %v4576_v12, %v4569_v9 }
 0xbb4   :  { %v4585_v17 = vsub.f32 1.0, %v4581_v49  ;;  %v4587_v18 = vmul.f32 %v4581_v49, %v12316_v30  ;;  %v11292_v30 = vld [vmem:[%s12836_s11 + $0x38] sm:$0xff] }
 0xbb5   :  { %v4583_v44 = vadd.f32 %v4582_v6, %v4364_v50  ;;  %5086 = vmatpush.bf16.msrb.mxu3 %v11292_v30  ;;  %v12528_v30 = vld [vmem:[%s12828_s3 + $0x8] sm:$0x3] }
 0xbb7   :  { %11639 = vtanh.f32 %v4583_v44 }
 0xbb9   :  { %5087 = vmatpush.bf16.msrb.mxu3 %v11291_v22 }
 0xbbd   :  { %v11640_v60 = vpop.eup %11639  ;;  %5088 = vmatpush.bf16.msrb.mxu3 %v11290_v55 }
 0xbbe   :  { %v4586_v19 = vmul.f32 %v11640_v60, %v4585_v17 }
 0xbc0   :  { %v12468_v20 = vadd.f32 %v4587_v18, %v4586_v19 }
 0xbc1   :  { %5089 = vmatpush.bf16.msrb.mxu3 %v11289_v34 }
 0xbc2   :  { %v12472_v47 = vpack.c.bf16 %v12468_v20, %v12468_v20 }
 0xbc4   :  { %4766 = vmatmul.bf16.vlgmr.msra.gmra.mxu1 %v12472_v47  ;;  %4779 = vmatmul.bf16.vlgmr.msra.gmra.mxu2 %v12472_v47 }
 0xbc5   :  { %4792 = vmatmul.bf16.vlgmr.msra.gmra.mxu3 %v12472_v47 }
 0xbc6   :  { %5090 = vmatpush.bf16.msrb.mxu3 %v11288_v13  ;;  %v12541_v13 = vld [vmem:[%s12828_s3 + $0x18] sm:$0x3] }
 0xbca   :  { %v4974_v56 = vpop.f32.mrf.mxu0  ;;  %5091 = vmatpush.bf16.msrb.mxu3 %v11287_v36 }
 0xbce   :  { %5092 = vmatpush.bf16.msrb.mxu3 %v11286_v21 }
 0xbd2   :  { %v4976_v37 = vpop.f32.mrf.mxu0  ;;  %5093 = vmatpush.bf16.msrb.mxu3 %v11285_v29 }
 0xbd3   :  { %v12522_v37 = vld [vmem:[%s12828_s3] sm:$0xff] }
 0xbd4   :  { %4986 = vmatmul.bf16.vlgmr.msrb.gmra.mxu1 %v12362_v40  ;;  %4999 = vmatmul.bf16.vlgmr.msrb.gmra.mxu2 %v12362_v40  ;;  %v9616_v40 = vld [vmem:[%s12835_s10 + $0x3] sm:$0x7] }
 0xbd5   :  { %v4831_v42 = vperm.slane %v9616_v40, 0  ;;  %v4832_v27 = vperm.slane %v9616_v40, 1  ;;  %v4833_v61 = vperm.slane %v9616_v40, 2  ;;  %v12535_v40 = vld [vmem:[%s12828_s3 + $0x10] sm:$0xff] }
 0xbd7   :  { %v4975_v46 = vadd.f32 %v4974_v56, %v4831_v42 }
 0xc41   :  { %v4767_v25 = vpop.f32.mrf.mxu1 }
 0xc42   :  { %v4768_v3 = vadd.f32 %v4767_v25, %v4624_v63 }
 0xc44   :  { %v5004_v58 = vadd.f32 %v4975_v46, %v4768_v3 }
 0xc46   :  { %v5005_v48 = vmul.f32 0.5, %v5004_v58 }
 0xc47   :  { %v4780_v32 = vpop.f32.mrf.mxu2 }
 0xc48   :  { %v4793_v35 = vpop.f32.mrf.mxu3  ;;  %11641 = vtanh.f32 %v5005_v48  ;;  %v4781_v53 = vadd.f32 %v4780_v32, %v4625_v45 }
 0xc49   :  { %v4769_v43 = vpop.f32.mrf.mxu1  ;;  %v4794_v8 = vadd.f32 %v4793_v35, %v4626_v10 }
 0xc4e   :  { %v11642_v57 = vpop.eup %11641 }
 0xc4f   :  { %v4782_v26 = vpop.f32.mrf.mxu2  ;;  %v5007_v31 = vadd.f32 1.0, %v11642_v57 }
 0xc50   :  { %v4795_v52 = vpop.f32.mrf.mxu3 }
 0xc51   :  { %v4987_v51 = vpop.f32.mrf.mxu1  ;;  %v5008_v7 = vmul.f32 0.5, %v5007_v31 }
 0xc52   :  { %v4988_v54 = vadd.f32 %v4987_v51, %v4832_v27  ;;  %v11693_v27 = vld [vmem:[%s12837_s12] ss:$0 sm:$0xff] }
 0xc54   :  { %v5009_v38 = vadd.f32 %v4988_v54, %v4781_v53 }
 0xc56   :  { %v5010_v4 = vmul.f32 0.5, %v5009_v38 }
 0xc57   :  { %v5000_v39 = vpop.f32.mrf.mxu2 }
 0xc58   :  { %11643 = vtanh.f32 %v5010_v4  ;;  %v5001_v5 = vadd.f32 %v5000_v39, %v4833_v61 }
 0xc59   :  { %v4989_v2 = vpop.f32.mrf.mxu1 }
 0xc5a   :  { %v5014_v9 = vmul.f32 %v5008_v7, %v5001_v5 }
 0xc5c   :  { %v5015_v12 = vadd.f32 %v5014_v9, %v4794_v8  ;;  %v9745_v8 = vld [vmem:[%s12826_s1 + $0x8] sm:$0x3] }
 0xc5e   :  { %v11644_v14 = vpop.eup %11643  ;;  %11645 = vtanh.f32 %v5015_v12 }
 0xc5f   :  { %v5012_v1 = vadd.f32 1.0, %v11644_v14  ;;  %v5002_v50 = vpop.f32.mrf.mxu2 }
 0xc60   :  { %v11339_v50 = vld [vmem:[#allocation7 + $0xb0] sm:$0xf0] }
 0xc61   :  { %v5013_v6 = vmul.f32 0.5, %v5012_v1  ;;  %v9931_v1 = vld [vmem:[#allocation7 + $0xa8] sm:$0xf] }
 0xc63   :  { %v5017_v16 = vsub.f32 1.0, %v5013_v6  ;;  %v5019_v49 = vmul.f32 %v5013_v6, %v12358_v59  ;;  %v9919_v6 = vld [vmem:[#allocation7 + $0x90] sm:$0xf] }
 0xc64   :  { %v11646_v44 = vpop.eup %11645 }
 0xc65   :  { %v5018_v17 = vmul.f32 %v11646_v44, %v5017_v16  ;;  %v9932_v16 = vor.u32 %v11339_v50, %v9931_v1  ;;  %v11336_v44 = vld [vmem:[#allocation7 + $0x98] sm:$0xf0]  ;;  %v9825_v1 = vld [vmem:[#allocation4 + $0x9c] sm:$0xf0]  ;;  %v9831_v50 = vld [vmem:[#allocation4 + $0x98] sm:$0xf] }
 0xc67   :  { %v12510_v60 = vadd.f32 %v5019_v49, %v5018_v17  ;;  %5597 = vmatpush.bf16.msra.mxu3 %v9932_v16  ;;  %v9920_v49 = vor.u32 %v11336_v44, %v9919_v6  ;;  %v9907_v17 = vld [vmem:[#allocation7 + $0x78] sm:$0xf]  ;;  %v11313_v16 = vld [vmem:[#allocation4 + $0xa0] sm:$0xf0] }
 0xc68   :  { %v9832_v44 = vor.u32 %v11313_v16, %v9831_v50  ;;  %v9921_v16 = vld [vmem:[#allocation7 + $0x9c] sm:$0xf0] }
 0xc69   :  { %v12514_v18 = vpack.c.bf16 %v12510_v60, %v12510_v60  ;;  %v5103_v19 = vperm.slane %v12510_v60, 0  ;;  %v5102_v56 = vrot.slane %v12510_v60, 1 }
 0xc6b   :  { %5094 = vmatmul.bf16.vlgmr.msrb.gmra.mxu3 %v12514_v18  ;;  %v5107_v59 = vmul.f32 %v12522_v37, %v5103_v19  ;;  %v5108_v22 = vmul.f32 %v12528_v30, %v5103_v19  ;;  %v5104_v55 = vperm.slane %v5102_v56, 0  ;;  %v11333_v19 = vld [vmem:[#allocation7 + $0x80] sm:$0xf0] }
 0xc6c   :  { %5598 = vmatpush.bf16.msra.mxu3 %v9920_v49  ;;  %v9908_v56 = vor.u32 %v11333_v19, %v9907_v17  ;;  %v9775_v49 = vld [vmem:[#allocation4 + $0x30] sm:$0xf]  ;;  %v11300_v17 = vld [vmem:[#allocation4 + $0x38] sm:$0xf0]  ;;  %v11359_v19 = vld [vmem:[#allocation9 + $0x94] sm:$0xf] }
 0xc6d   :  { %5111 = vadd.xlane.f32.xlu0 %v5107_v59  ;;  %v5113_v34 = vsel %vm1285_vm2, %v5108_v22, 0.0  ;;  %v5109_v23 = vmul.f32 %v12535_v40, %v5104_v55  ;;  %v5110_v42 = vmul.f32 %v12541_v13, %v5104_v55  ;;  %v9895_v59 = vld [vmem:[#allocation7 + $0x60] sm:$0xf]  ;;  %v9835_v55 = vld [vmem:[#allocation4 + $0xa8] sm:$0xf] }
 0xc6e   :  { %5114 = vadd.xlane.f32.xlu2 %v5113_v34  ;;  %v11315_v34 = vld [vmem:[#allocation4 + $0xb0] sm:$0xf0] }
 0xc6f   :  { %5116 = vadd.xlane.f32.xlu1 %v5109_v23  ;;  %v5118_v63 = vsel %vm1285_vm2, %v5110_v42, 0.0  ;;  %v9836_v23 = vor.u32 %v11315_v34, %v9835_v55  ;;  %v9883_v42 = vld [vmem:[#allocation7 + $0x48] sm:$0xf]  ;;  %v9819_v34 = vld [vmem:[#allocation4 + $0x80] sm:$0xf] }
 0xc70   :  { %5599 = vmatpush.bf16.msra.mxu3 %v9908_v56  ;;  %v9776_v56 = vor.u32 %v11300_v17, %v9775_v49  ;;  %v9813_v55 = vld [vmem:[#allocation4 + $0x84] sm:$0xf0]  ;;  %v9777_v17 = vld [vmem:[#allocation4 + $0x3c] sm:$0xf0] }
 0xc71   :  { %5381 = vmatpush.bf16.msra.mxu0 %v9836_v23 }
 0xc77   :  { %5119 = vadd.xlane.f32.xlu1 %v5118_v63  ;;  %v11327_v63 = vld [vmem:[#allocation7 + $0x50] sm:$0xf0] }
 0xce0   :  { %v5112_v25 = vpop.xlane.xlu0 %5111 }
 0xce1   :  { %v5115_v46 = vpop.xlane.xlu2 %5114  ;;  %v5125_v3 = vperm.slane %v5112_v25, %v11928_v11  ;;  %v9823_v25 = vld [vmem:[#allocation4 + $0x90] sm:$0xf] }
 0xce2   :  { %v5117_v36 = vpop.xlane.xlu1 %5116  ;;  %v5126_v21 = vperm.slane %v5115_v46, %v12056_v28  ;;  %v11312_v46 = vld [vmem:[#allocation4 + $0x98] sm:$0xf0] }
 0xce3   :  { %v5128_v48 = vperm.slane %v5117_v36, %v11928_v11  ;;  %v9884_v36 = vor.u32 %v11327_v63, %v9883_v42  ;;  %v11310_v42 = vld [vmem:[#allocation4 + $0x88] sm:$0xf0] }
 0xce4   :  { %v5127_v29 = vsel %vm1302_vm3, %v5126_v21, %v5125_v3  ;;  %v9824_v3 = vor.u32 %v11312_v46, %v9823_v25  ;;  %v9871_v21 = vld [vmem:[#allocation7 + $0x30] sm:$0xf]  ;;  %v9763_v25 = vld [vmem:[#allocation4 + $0x18] sm:$0xf]  ;;  %v11297_v46 = vld [vmem:[#allocation4 + $0x20] sm:$0xf0] }
 0xce6   :  { %5382 = vmatpush.bf16.msra.mxu0 %v9824_v3  ;;  %v11356_v3 = vld [vmem:[#allocation9 + $0x7c] sm:$0xf] }
 0xcea   :  { %v5120_v58 = vpop.xlane.xlu1 %5119 }
 0xceb   :  { %v5129_v32 = vperm.slane %v5120_v58, %v12056_v28  ;;  %v11324_v58 = vld [vmem:[#allocation7 + $0x38] sm:$0xf0] }
 0xced   :  { %v5130_v35 = vsel %vm1302_vm3, %v5129_v32, %v5128_v48  ;;  %v9872_v48 = vor.u32 %v11324_v58, %v9871_v21  ;;  %v9811_v32 = vld [vmem:[#allocation4 + $0x78] sm:$0xf]  ;;  %v9764_v21 = vor.u32 %v11297_v46, %v9763_v25  ;;  %v10005_v58 = vld [vmem:[#allocation9 + $0x84] sm:$0xf0] }
 0xcee   :  { %v5095_v43 = vpop.f32.mrf.mxu3  ;;  %v5131_v45 = vsel %vm1307_vm4, %v5130_v35, %v5127_v29  ;;  %v11309_v29 = vld [vmem:[#allocation4 + $0x80] sm:$0xf0] }
 0xcef   :  { %v5096_v26 = vadd.f32 %v11693_v27, %v5095_v43  ;;  %v5133_v52 = vsel %vm1294_vm5, -9000.0, %v5131_v45  ;;  %v9812_v35 = vor.u32 %v11309_v29, %v9811_v32  ;;  %v9859_v43 = vld [vmem:[#allocation7 + $0x18] sm:$0xf]  ;;  %v11321_v45 = vld [vmem:[#allocation7 + $0x20] sm:$0xf0] }
 0xcf0   :  { %v5134_v57 = vsel %vm1311_vm6, %v5133_v52, -inf  ;;  %v9860_v27 = vor.u32 %v11321_v45, %v9859_v43  ;;  %v11305_v32 = vld [vmem:[#allocation4 + $0x64] sm:$0xf]  ;;  %v9801_v29 = vld [vmem:[#allocation4 + $0x6c] sm:$0xf0] }
 0xcf1   :  { %5100 = vst [vmem:[#allocation10 + $0x6] sm:$0x3] %v5096_v26  ;;  %5135 = vmax.xlane.f32.xlu0 %v5134_v57  ;;  %v5199_v51 = vsel %vm1285_vm2, %v5096_v26, -inf  ;;  %5383 = vmatpush.bf16.msra.mxu0 %v9812_v35  ;;  %v9807_v35 = vld [vmem:[#allocation4 + $0x68] sm:$0xf]  ;;  %v9804_v43 = vor.u32 %v11305_v32, %v9801_v29 }
 0xcf2   :  { %5200 = vmax.xlane.f32.xlu1 %v5199_v51  ;;  %v11314_v51 = vld [vmem:[#allocation4 + $0xac] sm:$0xf]  ;;  %v11307_v45 = vld [vmem:[#allocation4 + $0x70] sm:$0xf0]  ;;  %v11344_v32 = vld [vmem:[#allocation9 + $0x1c] sm:$0xf] }
 0xcf3   :  { %v9957_v29 = vld [vmem:[#allocation9 + $0x24] sm:$0xf0] }
 0xcf6   :  { %v5097_v53 = vpop.f32.mrf.mxu3 }
 0xcf7   :  { %v9837_v53 = vld [vmem:[#allocation4 + $0xb4] sm:$0xf0] }
 0xd64   :  { %v5136_v54 = vpop.xlane.xlu0 %5135 }
 0xd65   :  { %v5137_v38 = vsub.f32 %v5133_v52, %v5136_v54  ;;  %v5201_v9 = vpop.xlane.xlu1 %5200  ;;  %v11306_v52 = vld [vmem:[#allocation4 + $0x68] sm:$0xf0]  ;;  %v9843_v54 = vld [vmem:[#allocation4 + $0xb0] sm:$0xf] }
 0xd66   :  { %vm5202_vm0 = vcmp.eq.f32.partialorder %v5096_v26, %v5201_v9  ;;  %v9799_v26 = vld [vmem:[#allocation4 + $0x60] sm:$0xf]  ;;  %v10029_v9 = vld [vmem:[#allocation9 + $0xb4] sm:$0xf0] }
 0xd67   :  { %v5138_v61 = vmul.f32 1.442695, %v5137_v38  ;;  %v5203_v12 = vsel %vm5202_vm0, %v12079_v33, 128.0  ;;  %v9800_v57 = vor.u32 %v11306_v52, %v9799_v26  ;;  %v9840_v38 = vor.u32 %v11314_v51, %v9837_v53  ;;  %v9751_v52 = vld [vmem:[#allocation4] sm:$0xf] }
 0xd68   :  { %v5204_v14 = vsel %vm1285_vm2, %v5203_v12, inf  ;;  %v9808_v26 = vor.u32 %v11307_v45, %v9807_v35  ;;  %v11353_v51 = vld [vmem:[#allocation9 + $0x64] sm:$0xf]  ;;  %v9897_v45 = vld [vmem:[#allocation7 + $0x6c] sm:$0xf0] }
 0xd69   :  { %11647 = vpow2.f32 %v5138_v61  ;;  %5384 = vmatpush.bf16.msra.mxu0 %v9800_v57  ;;  %v11316_v61 = vld [vmem:[#allocation4 + $0xb8] sm:$0xf0]  ;;  %5394 = vmatpush.bf16.msra.mxu1 %v9840_v38  ;;  %v11294_v57 = vld [vmem:[#allocation4 + $0x8] sm:$0xf0]  ;;  %v11329_v35 = vld [vmem:[#allocation7 + $0x64] sm:$0xf] }
 0xd6a   :  { %v9752_v53 = vor.u32 %v11294_v57, %v9751_v52  ;;  %v11338_v38 = vld [vmem:[#allocation7 + $0xac] sm:$0xf]  ;;  %v9960_v57 = vor.u32 %v11344_v32, %v9957_v29  ;;  %v11320_v29 = vld [vmem:[#allocation7 + $0x1c] sm:$0xf] }
 0xd6f   :  { %v11648_v31 = vpop.eup %11647 }
 0xd70   :  { %v5140_v10 = vsel %vm1311_vm6, %v11648_v31, 0.0 }
 0xd71   :  { %5141 = vadd.xlane.f32.xlu2 %v5140_v10  ;;  %v11318_v10 = vld [vmem:[#allocation7 + $0x8] sm:$0xf0] }
 0xde4   :  { %v5142_v4 = vpop.xlane.xlu2 %5141 }
 0xde5   :  { %11649 = vrcp.f32 %v5142_v4  ;;  %v9844_v4 = vor.u32 %v11316_v61, %v9843_v54  ;;  %v9993_v54 = vld [vmem:[#allocation9 + $0x6c] sm:$0xf0]  ;;  %v9933_v61 = vld [vmem:[#allocation7 + $0xb4] sm:$0xf0] }
 0xde7   :  { %5407 = vmatpush.bf16.msra.mxu2 %v9844_v4  ;;  %v11302_v4 = vld [vmem:[#allocation4 + $0x4c] sm:$0xf] }
 0xdeb   :  { %v11650_v39 = vpop.eup %11649  ;;  %5408 = vmatpush.bf16.msra.mxu2 %v9832_v44  ;;  %v11299_v44 = vld [vmem:[#allocation4 + $0x34] sm:$0xf] }
 0xdec   :  { %v5144_v5 = vmul.f32 %v11650_v39, %v11648_v31  ;;  %v9847_v31 = vld [vmem:[#allocation7] sm:$0xf] }
 0xded   :  { %v9848_v39 = vor.u32 %v11318_v10, %v9847_v31  ;;  %v9996_v31 = vor.u32 %v11353_v51, %v9993_v54  ;;  %v9936_v10 = vor.u32 %v11338_v38, %v9933_v61  ;;  %v9900_v51 = vor.u32 %v11329_v35, %v9897_v45  ;;  %v11295_v54 = vld [vmem:[#allocation4 + $0x10] sm:$0xf0]  ;;  %v9939_v38 = vld [vmem:[#allocation7 + $0xb0] sm:$0xf]  ;;  %v9861_v35 = vld [vmem:[#allocation7 + $0x24] sm:$0xf0] }
 0xdee   :  { %v5158_v7 = vperm.slane %v5144_v5, 1  ;;  %v5145_v2 = vperm.slane %v5144_v5, 0  ;;  %v9787_v5 = vld [vmem:[#allocation4 + $0x48] sm:$0xf]  ;;  %v9864_v45 = vor.u32 %v11320_v29, %v9861_v35  ;;  %v11364_v29 = vld [vmem:[#allocation9 + $0xb8] sm:$0xf0] }
 0xdf0   :  { %5169 = vperm.xlu2 %11576, %v5158_v7   ;;  %5156 = vperm.xlu0 %11575, %v5145_v2  }
 0xdf1   :  { %5150 = vperm.xlu1 %11577, %v5145_v2   ;;  %v11362_v2 = vld [vmem:[#allocation9 + $0xac] sm:$0xf] }
 0xdf2   :  { %v10032_v12 = vor.u32 %v11362_v2, %v10029_v9  ;;  %v11304_v2 = vld [vmem:[#allocation4 + $0x58] sm:$0xf0] }
 0xdf8   :  { %11578 = vset.pattern.permute.xlu2 %v12085_v41  ;;  %11582 = vset.pattern.permute.xlu0 %v12085_v41 }
 0xdf9   :  { %11580 = vset.pattern.permute.xlu1 %v12088_v62 }
 0xe00   :  { %5163 = vperm.xlu2 %11578, %v5158_v7   ;;  %v11303_v7 = vld [vmem:[#allocation4 + $0x50] sm:$0xf0] }
 0xe08   :  { %11579 = vset.pattern.permute.xlu2 %v11822_v0 }
 0xe09   :  { %5194 = vperm.xlu2 %11579, %v9745_v8   ;;  %v9788_v8 = vor.u32 %v11303_v7, %v9787_v5  ;;  %v9795_v5 = vld [vmem:[#allocation4 + $0x50] sm:$0xf] }
 0xe0a   :  { %v9796_v9 = vor.u32 %v11304_v2, %v9795_v5  ;;  %v10027_v5 = vld [vmem:[#allocation9 + $0xa8] sm:$0xf] }
 0xe0b   :  { %5385 = vmatpush.bf16.msra.mxu0 %v9788_v8 }
 0xe0f   :  { %5386 = vmatpush.bf16.msra.mxu0 %v9776_v56  ;;  %v11301_v56 = vld [vmem:[#allocation4 + $0x40] sm:$0xf0] }
 0xe11   :  { %11581 = vset.pattern.permute.xlu2 %v12088_v62  ;;  %v11330_v62 = vld [vmem:[#allocation7 + $0x68] sm:$0xf0] }
 0xe12   :  { %v9896_v22 = vor.u32 %v11330_v62, %v9895_v59  ;;  %v10017_v59 = vld [vmem:[#allocation9 + $0x9c] sm:$0xf0] }
 0xe13   :  { %v10020_v62 = vor.u32 %v11359_v19, %v10017_v59  ;;  %5387 = vmatpush.bf16.msra.mxu0 %v9764_v21  ;;  %v9783_v19 = vld [vmem:[#allocation4 + $0x38] sm:$0xf]  ;;  %v9771_v21 = vld [vmem:[#allocation4 + $0x20] sm:$0xf] }
 0xe14   :  { %5600 = vmatpush.bf16.msra.mxu3 %v9896_v22  ;;  %v11308_v22 = vld [vmem:[#allocation4 + $0x7c] sm:$0xf] }
 0xe15   :  { %v9816_v23 = vor.u32 %v11308_v22, %v9813_v55  ;;  %v9784_v22 = vor.u32 %v11301_v56, %v9783_v19  ;;  %v11347_v55 = vld [vmem:[#allocation9 + $0x34] sm:$0xf]  ;;  %v11337_v19 = vld [vmem:[#allocation7 + $0xa0] sm:$0xf0]  ;;  %v11360_v56 = vld [vmem:[#allocation9 + $0x98] sm:$0xf0] }
 0xe17   :  { %5388 = vmatpush.bf16.msra.mxu0 %v9752_v53  ;;  %v9759_v53 = vld [vmem:[#allocation4 + $0x8] sm:$0xf] }
 0xe18   :  { %5601 = vmatpush.bf16.msra.mxu3 %v9884_v36  ;;  %v9820_v36 = vor.u32 %v11310_v42, %v9819_v34  ;;  %v9969_v34 = vld [vmem:[#allocation9 + $0x3c] sm:$0xf0]  ;;  %v9760_v2 = vor.u32 %v11295_v54, %v9759_v53  ;;  %v11354_v54 = vld [vmem:[#allocation9 + $0x68] sm:$0xf0] }
 0xe19   :  { %v9972_v42 = vor.u32 %v11347_v55, %v9969_v34 }
 0xe1a   :  { %5409 = vmatpush.bf16.msra.mxu2 %v9820_v36  ;;  %v9765_v36 = vld [vmem:[#allocation4 + $0x24] sm:$0xf0] }
 0xe1b   :  { %5205 = vmin.xlane.f32.xlu1 %v5204_v14  ;;  %v11311_v14 = vld [vmem:[#allocation4 + $0x94] sm:$0xf]  ;;  %5610 = vmatpush.bf16.msrb.mxu0 %v9936_v10 }
 0xe1c   :  { %5602 = vmatpush.bf16.msra.mxu3 %v9872_v48  ;;  %v9828_v6 = vor.u32 %v11311_v14, %v9825_v1  ;;  %v10008_v48 = vor.u32 %v11356_v3, %v10005_v58  ;;  %v9981_v14 = vld [vmem:[#allocation9 + $0x54] sm:$0xf0]  ;;  %v11298_v58 = vld [vmem:[#allocation4 + $0x28] sm:$0xf0] }
 0xe1e   :  { %5395 = vmatpush.bf16.msra.mxu1 %v9828_v6  ;;  %5410 = vmatpush.bf16.msra.mxu2 %v9808_v26  ;;  %v11335_v6 = vld [vmem:[#allocation7 + $0x94] sm:$0xf]  ;;  %v9753_v26 = vld [vmem:[#allocation4 + $0xc] sm:$0xf0] }
 0xe1f   :  { %v9924_v49 = vor.u32 %v11335_v6, %v9921_v16  ;;  %v11326_v6 = vld [vmem:[#allocation7 + $0x4c] sm:$0xf]  ;;  %v9885_v16 = vld [vmem:[#allocation7 + $0x54] sm:$0xf0] }
 0xe20   :  { %5603 = vmatpush.bf16.msra.mxu3 %v9860_v27 }
 0xe21   :  { %5611 = vmatpush.bf16.msrb.mxu0 %v9924_v49  ;;  %v9888_v49 = vor.u32 %v11326_v6, %v9885_v16  ;;  %v11325_v6 = vld [vmem:[#allocation7 + $0x40] sm:$0xf0]  ;;  %v9967_v16 = vld [vmem:[#allocation9 + $0x30] sm:$0xf] }
 0xe22   :  { %5396 = vmatpush.bf16.msra.mxu1 %v9816_v23  ;;  %5411 = vmatpush.bf16.msra.mxu2 %v9796_v9  ;;  %v11332_v23 = vld [vmem:[#allocation7 + $0x7c] sm:$0xf]  ;;  %v11341_v9 = vld [vmem:[#allocation9 + $0x4] sm:$0xf] }
 0xe24   :  { %5604 = vmatpush.bf16.msra.mxu3 %v9848_v39  ;;  %v9789_v39 = vld [vmem:[#allocation4 + $0x54] sm:$0xf0] }
 0xe25   :  { %v9792_v7 = vor.u32 %v11302_v4, %v9789_v39  ;;  %v11340_v39 = vld [vmem:[#allocation7 + $0xb8] sm:$0xf0] }
 0xe26   :  { %5397 = vmatpush.bf16.msra.mxu1 %v9804_v43  ;;  %5412 = vmatpush.bf16.msra.mxu2 %v9784_v22 }
 0xe28   :  { %5820 = vmatpush.bf16.msrb.mxu3 %v10032_v12  ;;  %v11350_v12 = vld [vmem:[#allocation9 + $0x4c] sm:$0xf] }
 0xe29   :  { %v9984_v50 = vor.u32 %v11350_v12, %v9981_v14  ;;  %v9945_v12 = vld [vmem:[#allocation9 + $0xc] sm:$0xf0] }
 0xe2a   :  { %5398 = vmatpush.bf16.msra.mxu1 %v9792_v7 }
 0xe2c   :  { %5821 = vmatpush.bf16.msrb.mxu3 %v10020_v62  ;;  %v9780_v62 = vor.u32 %v11299_v44, %v9777_v17  ;;  %v9948_v44 = vor.u32 %v11341_v9, %v9945_v12  ;;  %v9927_v17 = vld [vmem:[#allocation7 + $0x98] sm:$0xf]  ;;  %v11351_v9 = vld [vmem:[#allocation9 + $0x50] sm:$0xf0] }
 0xe2e   :  { %5399 = vmatpush.bf16.msra.mxu1 %v9780_v62  ;;  %v9928_v62 = vor.u32 %v11337_v19, %v9927_v17  ;;  %v9867_v17 = vld [vmem:[#allocation7 + $0x20] sm:$0xf]  ;;  %v11322_v19 = vld [vmem:[#allocation7 + $0x28] sm:$0xf0] }
 0xe30   :  { %5822 = vmatpush.bf16.msrb.mxu3 %v10008_v48  ;;  %v9772_v48 = vor.u32 %v11298_v58, %v9771_v21  ;;  %v10003_v58 = vld [vmem:[#allocation9 + $0x78] sm:$0xf] }
 0xe32   :  { %5413 = vmatpush.bf16.msra.mxu2 %v9772_v48  ;;  %v11357_v48 = vld [vmem:[#allocation9 + $0x80] sm:$0xf0] }
 0xe33   :  { %v10004_v32 = vor.u32 %v11357_v48, %v10003_v58 }
 0xe34   :  { %5823 = vmatpush.bf16.msrb.mxu3 %v9996_v31 }
 0xe36   :  { %5414 = vmatpush.bf16.msra.mxu2 %v9760_v2  ;;  %v11328_v2 = vld [vmem:[#allocation7 + $0x58] sm:$0xf0] }
 0xe38   :  { %5824 = vmatpush.bf16.msrb.mxu3 %v9984_v50 }
 0xe3c   :  { %5825 = vmatpush.bf16.msrb.mxu3 %v9972_v42  ;;  %v9873_v42 = vld [vmem:[#allocation7 + $0x3c] sm:$0xf0] }
 0xe40   :  { %5826 = vmatpush.bf16.msrb.mxu3 %v9960_v57 }
 0xe44   :  { %5827 = vmatpush.bf16.msrb.mxu3 %v9948_v44  ;;  %v11348_v44 = vld [vmem:[#allocation9 + $0x38] sm:$0xf0] }
 0xe4a   :  { %v5170_v63 = vpop.permute.xlu2 %5169 }
 0xe4b   :  { %v5174_v27 = vmul.f32 %v12541_v13, %v5170_v63  ;;  %v11296_v63 = vld [vmem:[#allocation4 + $0x1c] sm:$0xf] }
 0xe4c   :  { %v9768_v3 = vor.u32 %v11296_v63, %v9765_v36  ;;  %v9915_v36 = vld [vmem:[#allocation7 + $0x80] sm:$0xf] }
 0xe4d   :  { %v5183_v13 = vsel %vm1285_vm2, %v5174_v27, 0.0  ;;  %v11293_v27 = vld [vmem:[#allocation4 + $0x4] sm:$0xf] }
 0xe4e   :  { %5400 = vmatpush.bf16.msra.mxu1 %v9768_v3  ;;  %v9756_v4 = vor.u32 %v11293_v27, %v9753_v26  ;;  %v9903_v27 = vld [vmem:[#allocation7 + $0x68] sm:$0xf]  ;;  %v11331_v26 = vld [vmem:[#allocation7 + $0x70] sm:$0xf0] }
 0xe4f   :  { %v9904_v53 = vor.u32 %v11331_v26, %v9903_v27  ;;  %v10023_v27 = vld [vmem:[#allocation9 + $0x98] sm:$0xf]  ;;  %v11361_v26 = vld [vmem:[#allocation9 + $0xa0] sm:$0xf0] }
 0xe52   :  { %5401 = vmatpush.bf16.msra.mxu1 %v9756_v4 }
 0xe5a   :  { %v5164_v8 = vpop.permute.xlu2 %5163 }
 0xe5b   :  { %v5173_v1 = vmul.f32 %v12535_v40, %v5164_v8  ;;  %v9909_v40 = vld [vmem:[#allocation7 + $0x84] sm:$0xf0]  ;;  %v11363_v8 = vld [vmem:[#allocation9 + $0xb0] sm:$0xf0] }
 0xe5c   :  { %v9912_v46 = vor.u32 %v11332_v23, %v9909_v40  ;;  %v10028_v50 = vor.u32 %v11363_v8, %v10027_v5  ;;  %v11323_v23 = vld [vmem:[#allocation7 + $0x34] sm:$0xf] }
 0xe5d   :  { %v5184_v59 = vadd.f32 %v5183_v13, %v5173_v1  ;;  %v9940_v13 = vor.u32 %v11340_v39, %v9939_v38  ;;  %v9876_v63 = vor.u32 %v11323_v23, %v9873_v42  ;;  %v11342_v42 = vld [vmem:[#allocation9 + $0x8] sm:$0xf0] }
 0xe5e   :  { %5612 = vmatpush.bf16.msrb.mxu0 %v9912_v46  ;;  %5807 = vmatpush.bf16.msrb.mxu2 %v10028_v50  ;;  %v9879_v50 = vld [vmem:[#allocation7 + $0x38] sm:$0xf] }
 0xe5f   :  { %v5185_v25 = vrot.slane %v5184_v59, 4  ;;  %5623 = vmatpush.bf16.msrb.mxu1 %v9940_v13  ;;  %v9979_v13 = vld [vmem:[#allocation9 + $0x48] sm:$0xf] }
 0xe61   :  { %v5186_v43 = vadd.f32 %v5185_v25, %v5184_v59  ;;  %v11334_v25 = vld [vmem:[#allocation7 + $0x88] sm:$0xf0] }
 0xe62   :  { %v5157_v52 = vpop.permute.xlu0 %5156  ;;  %5613 = vmatpush.bf16.msrb.mxu0 %v9900_v51  ;;  %v9916_v21 = vor.u32 %v11334_v25, %v9915_v36  ;;  %v5214_v36 = vstv %s5213_s27 }
 0xe63   :  { %v5187_v61 = vrot.slane %v5186_v43, 2  ;;  %v5172_v31 = vmul.f32 %v12528_v30, %v5157_v52  ;;  %v5151_v10 = vpop.permute.xlu1 %5150  ;;  %5624 = vmatpush.bf16.msrb.mxu1 %v9928_v62  ;;  %v9991_v52 = vld [vmem:[#allocation9 + $0x60] sm:$0xf] }
 0xe64   :  { %v5171_v7 = vmul.f32 %v12522_v37, %v5151_v10  ;;  %v10015_v37 = vld [vmem:[#allocation9 + $0x90] sm:$0xf]  ;;  %v9992_v38 = vor.u32 %v11354_v54, %v9991_v52  ;;  %v10024_v52 = vor.u32 %v11361_v26, %v10023_v27  ;;  %v9999_v54 = vld [vmem:[#allocation9 + $0x68] sm:$0xf]  ;;  %v11383_v26 = vld [vmem:[#allocation7 + $0x154] sm:$0xf] }
 0xe65   :  { %v5188_v14 = vadd.f32 %v5187_v61, %v5186_v43  ;;  %v5175_v1 = vsel %vm1285_vm2, %v5172_v31, 0.0  ;;  %v10016_v22 = vor.u32 %v11360_v56, %v10015_v37  ;;  %v11317_v61 = vld [vmem:[#allocation7 + $0x4] sm:$0xf]  ;;  %v9849_v31 = vld [vmem:[#allocation7 + $0xc] sm:$0xf0]  ;;  %v9868_v56 = vor.u32 %v11322_v19, %v9867_v17 }
 0xe66   :  { %v5176_v30 = vadd.f32 %v5175_v1, %v5171_v7  ;;  %5614 = vmatpush.bf16.msrb.mxu0 %v9888_v49  ;;  %v9852_v4 = vor.u32 %v11317_v61, %v9849_v31  ;;  %v9891_v7 = vld [vmem:[#allocation7 + $0x50] sm:$0xf]  ;;  %v9968_v49 = vor.u32 %v11348_v44, %v9967_v16  ;;  %v9955_v37 = vld [vmem:[#allocation9 + $0x18] sm:$0xf]  ;;  %v11408_v44 = vld [vmem:[#allocation9 + $0x158] sm:$0xf0] }
 0xe67   :  { %v5189_v55 = vrot.slane %v5188_v14, 1  ;;  %5808 = vmatpush.bf16.msrb.mxu2 %v10016_v22  ;;  %5625 = vmatpush.bf16.msrb.mxu1 %v9916_v21  ;;  %v9892_v8 = vor.u32 %v11328_v2, %v9891_v7  ;;  %v9855_v22 = vld [vmem:[#allocation7 + $0x8] sm:$0xf]  ;;  %v9987_v31 = vld [vmem:[#allocation9 + $0x50] sm:$0xf] }
 0xe68   :  { %v5177_v59 = vrot.slane %v5176_v30, 4  ;;  %v9963_v2 = vld [vmem:[#allocation9 + $0x20] sm:$0xf]  ;;  %v11405_v17 = vld [vmem:[#allocation9 + $0x140] sm:$0xf0] }
 0xe69   :  { %v5190_v46 = vadd.f32 %v5189_v55, %v5188_v14  ;;  %v9980_v14 = vor.u32 %v11351_v9, %v9979_v13  ;;  %v11319_v55 = vld [vmem:[#allocation7 + $0x10] sm:$0xf0]  ;;  %v11346_v13 = vld [vmem:[#allocation9 + $0x28] sm:$0xf0]  ;;  %v9951_v9 = vld [vmem:[#allocation9 + $0x8] sm:$0xf] }
 0xe6a   :  { %v5178_v34 = vadd.f32 %v5177_v59, %v5176_v30  ;;  %5615 = vmatpush.bf16.msrb.mxu0 %v9876_v63  ;;  %v9880_v30 = vor.u32 %v11325_v6, %v9879_v50  ;;  %v11345_v59 = vld [vmem:[#allocation9 + $0x20] sm:$0xf0]  ;;  %v9856_v23 = vor.u32 %v11319_v55, %v9855_v22  ;;  %v5195_v63 = vpop.permute.xlu2 %5194  ;;  %v11411_v50 = vld [vmem:[#allocation9 + $0x170] sm:$0xf0] }
 0xe6b   :  { %5809 = vmatpush.bf16.msrb.mxu2 %v10004_v32  ;;  %v5421_v57 = vpack.c.bf16 %v5190_v46, %v5190_v46  ;;  %5626 = vmatpush.bf16.msrb.mxu1 %v9904_v53  ;;  %v9956_v62 = vor.u32 %v11345_v59, %v9955_v37  ;;  %vm5196_vm1 = vcmp.eq.s32.totalorder %v11928_v11, %v5195_v63  ;;  %v5217_v46 = vstv %s5216_s8  ;;  %v10035_v32 = vld [vmem:[#allocation9 + $0xb0] sm:$0xf]  ;;  %v10185_v37 = vld [vmem:[#allocation9 + $0x120] sm:$0xf]  ;;  %v11399_v22 = vld [vmem:[#allocation9 + $0x110] sm:$0xf0] }
 0xe6c   :  { %v5179_v40 = vrot.slane %v5178_v34, 2  ;;  %v9746_v25 = vsel %vm5196_vm1, 1.0, %v11824_v24  ;;  %v11393_v63 = vld [vmem:[#allocation9 + $0xe0] sm:$0xf0] }
 0xe6d   :  { %v5465_v39 = vunpack.c.l.b16 %v5421_v57  ;;  %v5215_v21 = vmul.f32 %v9746_v25, %v5214_v36  ;;  %v10011_v57 = vld [vmem:[#allocation9 + $0x80] sm:$0xf] }
 0xe6e   :  { %v5180_v3 = vadd.f32 %v5179_v40, %v5178_v34  ;;  %5616 = vmatpush.bf16.msrb.mxu0 %v9864_v45  ;;  %v9943_v34 = vld [vmem:[#allocation9] sm:$0xf] }
 0xe6f   :  { %5810 = vmatpush.bf16.msrb.mxu2 %v9992_v38  ;;  %5627 = vmatpush.bf16.msrb.mxu1 %v9892_v8  ;;  %v9944_v40 = vor.u32 %v11342_v42, %v9943_v34  ;;  %v11355_v38 = vld [vmem:[#allocation9 + $0x70] sm:$0xf0]  ;;  %v9964_v8 = vor.u32 %v11346_v13, %v9963_v2  ;;  %v10161_v34 = vld [vmem:[#allocation9 + $0xf0] sm:$0xf]  ;;  %v10137_v25 = vld [vmem:[#allocation9 + $0xc0] sm:$0xf] }
 0xe70   :  { %v5181_v43 = vrot.slane %v5180_v3, 1  ;;  %v10000_v61 = vor.u32 %v11355_v38, %v9999_v54  ;;  %v11381_v54 = vld [vmem:[#allocation7 + $0x140] sm:$0xf0]  ;;  %v11380_v38 = vld [vmem:[#allocation7 + $0x13c] sm:$0xf] }
 0xe71   :  { %v10090_v2 = vld [vmem:[#allocation7 + $0x12c] sm:$0xf0] }
 0xe72   :  { %v5182_v51 = vadd.f32 %v5181_v43, %v5180_v3  ;;  %5617 = vmatpush.bf16.msrb.mxu0 %v9852_v4  ;;  %v10036_v43 = vor.u32 %v11364_v29, %v10035_v32  ;;  %v10126_v32 = vld [vmem:[#allocation7 + $0x174] sm:$0xf0]  ;;  %v10132_v13 = vld [vmem:[#allocation7 + $0x170] sm:$0xf] }
 0xe73   :  { %5811 = vmatpush.bf16.msrb.mxu2 %v9980_v14  ;;  %5628 = vmatpush.bf16.msrb.mxu1 %v9880_v30  ;;  %v10221_v14 = vld [vmem:[#allocation9 + $0x168] sm:$0xf]  ;;  %v10209_v30 = vld [vmem:[#allocation9 + $0x150] sm:$0xf] }
 0xe74   :  { %v5420_v10 = vpack.c.bf16 %v5182_v51, %v5182_v51  ;;  %v11358_v51 = vld [vmem:[#allocation9 + $0x88] sm:$0xf0]  ;;  %v10222_v16 = vor.u32 %v11411_v50, %v10221_v14  ;;  %v10076_v50 = vld [vmem:[#allocation7 + $0x108] sm:$0xf] }
 0xe75   :  { %v10012_v53 = vor.u32 %v11358_v51, %v10011_v57 }
 0xe76   :  { %v5464_v5 = vunpack.c.l.b16 %v5420_v10  ;;  %v11352_v10 = vld [vmem:[#allocation9 + $0x58] sm:$0xf0] }
 0xe77   :  { %5812 = vmatpush.bf16.msrb.mxu2 %v9968_v49  ;;  %5629 = vmatpush.bf16.msrb.mxu1 %v9868_v56  ;;  %v9988_v4 = vor.u32 %v11352_v10, %v9987_v31  ;;  %v10197_v49 = vld [vmem:[#allocation9 + $0x138] sm:$0xf]  ;;  %v11402_v56 = vld [vmem:[#allocation9 + $0x128] sm:$0xf0]  ;;  %v10102_v31 = vld [vmem:[#allocation7 + $0x144] sm:$0xf0] }
 0xe78   :  { %v5466_v12 = vsel %vm1307_vm4, %v5465_v39, %v5464_v5  ;;  %v9975_v39 = vld [vmem:[#allocation9 + $0x38] sm:$0xf]  ;;  %v11349_v5 = vld [vmem:[#allocation9 + $0x40] sm:$0xf0]  ;;  %v10198_v19 = vor.u32 %v11405_v17, %v10197_v49  ;;  %v10186_v59 = vor.u32 %v11402_v56, %v10185_v37  ;;  %v10105_v10 = vor.u32 %v11380_v38, %v10102_v31  ;;  %v10064_v37 = vld [vmem:[#allocation7 + $0xf0] sm:$0xf] }
 0xe79   :  { %v12579_v1 = vpack.c.b16 %v5466_v12, %v5466_v12  ;;  %v9976_v7 = vor.u32 %v11349_v5, %v9975_v39  ;;  %v11343_v12 = vld [vmem:[#allocation9 + $0x10] sm:$0xf0]  ;;  %v11378_v39 = vld [vmem:[#allocation7 + $0x128] sm:$0xf0]  ;;  %v11377_v5 = vld [vmem:[#allocation7 + $0x124] sm:$0xf] }
 0xe7a   :  { %v9952_v6 = vor.u32 %v11343_v12, %v9951_v9  ;;  %v10093_v9 = vor.u32 %v11377_v5, %v10090_v2  ;;  %v11385_v49 = vld [vmem:[#allocation7 + $0x160] sm:$0xf0]  ;;  %v11372_v56 = vld [vmem:[#allocation7 + $0xf8] sm:$0xf0]  ;;  %v12606_v5 = vld [vmem:[%s12834_s9] sm:$0x7] }
 0xe7b   :  { %5605 = vmatmul.bf16.vlgmr.msra.gmra.mxu3 %v12579_v1  ;;  %5813 = vmatpush.bf16.msrb.mxu2 %v9956_v62  ;;  %v10173_v62 = vld [vmem:[#allocation9 + $0x108] sm:$0xf]  ;;  %v11376_v38 = vld [vmem:[#allocation7 + $0x118] sm:$0xf0] }
 0xe7c   :  { %5630 = vmatpush.bf16.msrb.mxu1 %v9856_v23  ;;  %v10174_v55 = vor.u32 %v11399_v22, %v10173_v62  ;;  %v11396_v23 = vld [vmem:[#allocation9 + $0xf8] sm:$0xf0] }
 0xe7d   :  { %v10162_v42 = vor.u32 %v11396_v23, %v10161_v34  ;;  %v10066_v34 = vld [vmem:[#allocation7 + $0xfc] sm:$0xf0]  ;;  %v11412_v2 = vld [vmem:[#allocation9 + $0x178] sm:$0xf0] }
 0xe7e   :  { %v10108_v23 = vld [vmem:[#allocation7 + $0x140] sm:$0xf] }
 0xe7f   :  { %5814 = vmatpush.bf16.msrb.mxu2 %v9944_v40  ;;  %v10149_v40 = vld [vmem:[#allocation9 + $0xd8] sm:$0xf] }
 0xe80   :  { %v10150_v36 = vor.u32 %v11393_v63, %v10149_v40  ;;  %v11382_v40 = vld [vmem:[#allocation7 + $0x148] sm:$0xf0] }
 0xe8b   :  { %5828 = vmatmul.bf16.vlgmr.msrb.gmra.mxu3 %v12472_v47 }
 0xe8e   :  { %v5206_v3 = vpop.xlane.xlu1 %5205 }
 0xe8f   :  { %vm5207_vm7 = vcmp.eq.f32.partialorder %v12079_v33, %v5206_v3  ;;  %v10124_v3 = vld [vmem:[#allocation7 + $0x168] sm:$0xf] }
 0xe90   :  { %v9747_v58 = vsel %vm5207_vm7, 1.0, %v11824_v24 }
 0xe91   :  { %v5218_v48 = vmul.f32 %v9747_v58, %v5217_v46  ;;  %v11386_v58 = vld [vmem:[#allocation7 + $0x16c] sm:$0xf] }
 0xe93   :  { %v5219_v35 = vadd.f32 %v5218_v48, %v5215_v21  ;;  %v11387_v21 = vld [vmem:[#allocation7 + $0x170] sm:$0xf0] }
 0xe94   :  { %v10125_v48 = vor.u32 %v11387_v21, %v10124_v3  ;;  %v10054_v21 = vld [vmem:[#allocation7 + $0xe4] sm:$0xf0] }
 0xe95   :  { %v5220_v45 = vpack.c.bf16 %v5219_v35, %v5219_v35  ;;  %v10129_v35 = vor.u32 %v11386_v58, %v10126_v32  ;;  %v10096_v58 = vld [vmem:[#allocation7 + $0x128] sm:$0xf] }
 0xe97   :  { %5389 = vmatmul.bf16.vlgmr.msra.gmra.mxu0 %v5220_v45  ;;  %5402 = vmatmul.bf16.vlgmr.msra.gmra.mxu1 %v5220_v45 }
 0xe98   :  { %5415 = vmatmul.bf16.vlgmr.msra.gmra.mxu2 %v5220_v45  ;;  %5833 = vmatpush.bf16.msra.mxu0 %v10036_v43  ;;  %v10112_v43 = vld [vmem:[#allocation7 + $0x150] sm:$0xf]  ;;  %v11384_v45 = vld [vmem:[#allocation7 + $0x158] sm:$0xf0] }
 0xe99   :  { %6032 = vmatpush.bf16.msra.mxu1 %v10125_v48  ;;  %6045 = vmatpush.bf16.msra.mxu2 %v10129_v35  ;;  %v10113_v27 = vor.u32 %v11384_v45, %v10112_v43  ;;  %v11379_v48 = vld [vmem:[#allocation7 + $0x130] sm:$0xf0]  ;;  %v10040_v45 = vld [vmem:[#allocation7 + $0xc0] sm:$0xf] }
 0xe9a   :  { %v10097_v35 = vor.u32 %v11379_v48, %v10096_v58  ;;  %v10048_v48 = vld [vmem:[#allocation7 + $0xc8] sm:$0xf] }
 0xe9c   :  { %5834 = vmatpush.bf16.msra.mxu0 %v10024_v52  ;;  %v10114_v52 = vld [vmem:[#allocation7 + $0x15c] sm:$0xf0] }
 0xe9d   :  { %v10117_v57 = vor.u32 %v11383_v26, %v10114_v52  ;;  %6033 = vmatpush.bf16.msra.mxu1 %v10113_v27  ;;  %v11366_v27 = vld [vmem:[#allocation7 + $0xc8] sm:$0xf0]  ;;  %v11365_v26 = vld [vmem:[#allocation7 + $0xc4] sm:$0xf] }
 0xe9f   :  { %6046 = vmatpush.bf16.msra.mxu2 %v10117_v57 }
 0xea0   :  { %5835 = vmatpush.bf16.msra.mxu0 %v10012_v53  ;;  %v10100_v53 = vld [vmem:[#allocation7 + $0x138] sm:$0xf] }
 0xea3   :  { %6047 = vmatpush.bf16.msra.mxu2 %v10105_v10  ;;  %v11410_v10 = vld [vmem:[#allocation9 + $0x16c] sm:$0xf] }
 0xea4   :  { %5836 = vmatpush.bf16.msra.mxu0 %v10000_v61  ;;  %v10101_v61 = vor.u32 %v11381_v54, %v10100_v53  ;;  %v10042_v53 = vld [vmem:[#allocation7 + $0xcc] sm:$0xf0] }
 0xea5   :  { %v10084_v54 = vld [vmem:[#allocation7 + $0x110] sm:$0xf] }
 0xea6   :  { %6034 = vmatpush.bf16.msra.mxu1 %v10101_v61  ;;  %v10045_v61 = vor.u32 %v11365_v26, %v10042_v53  ;;  %v10085_v31 = vor.u32 %v11376_v38, %v10084_v54  ;;  %v10193_v26 = vld [vmem:[#allocation9 + $0x128] sm:$0xf] }
 0xea7   :  { %5618 = vmatmul.bf16.vlgmr.msrb.gmra.mxu0 %v12579_v1  ;;  %5631 = vmatmul.bf16.vlgmr.msrb.gmra.mxu1 %v12579_v1  ;;  %v10210_v1 = vor.u32 %v11408_v44, %v10209_v30  ;;  %v10078_v44 = vld [vmem:[#allocation7 + $0x114] sm:$0xf0] }
 0xea8   :  { %5815 = vmatmul.bf16.vlgmr.msrb.gmra.mxu2 %v12472_v47  ;;  %5837 = vmatpush.bf16.msra.mxu0 %v9988_v4  ;;  %v10088_v4 = vld [vmem:[#allocation7 + $0x120] sm:$0xf] }
 0xea9   :  { %6048 = vmatpush.bf16.msra.mxu2 %v10093_v9  ;;  %v10072_v9 = vld [vmem:[#allocation7 + $0xf8] sm:$0xf] }
 0xeac   :  { %5838 = vmatpush.bf16.msra.mxu0 %v9976_v7  ;;  %v10089_v7 = vor.u32 %v11378_v39, %v10088_v4  ;;  %v10223_v4 = vld [vmem:[#allocation9 + $0x174] sm:$0xf0]  ;;  %v10229_v39 = vld [vmem:[#allocation9 + $0x170] sm:$0xf] }
 0xeae   :  { %6035 = vmatpush.bf16.msra.mxu1 %v10089_v7  ;;  %v10226_v7 = vor.u32 %v11410_v10, %v10223_v4 }
 0xeb0   :  { %5839 = vmatpush.bf16.msra.mxu0 %v9964_v8  ;;  %v11388_v8 = vld [vmem:[#allocation7 + $0x178] sm:$0xf0] }
 0xeb1   :  { %v10133_v12 = vor.u32 %v11388_v8, %v10132_v13  ;;  %v5457_v13 = vperm.slane %v12606_v5, 1  ;;  %v10230_v8 = vor.u32 %v11412_v2, %v10229_v39  ;;  %v11398_v39 = vld [vmem:[#allocation9 + $0x10c] sm:$0xf]  ;;  %v10181_v2 = vld [vmem:[#allocation9 + $0x110] sm:$0xf] }
 0xeb3   :  { %6058 = vmatpush.bf16.msra.mxu3 %v10133_v12  ;;  %v11373_v12 = vld [vmem:[#allocation7 + $0x100] sm:$0xf0] }
 0xeb4   :  { %5840 = vmatpush.bf16.msra.mxu0 %v9952_v6  ;;  %v11375_v6 = vld [vmem:[#allocation7 + $0x110] sm:$0xf0] }
 0xeb5   :  { %v10077_v30 = vor.u32 %v11375_v6, %v10076_v50  ;;  %v11407_v50 = vld [vmem:[#allocation9 + $0x154] sm:$0xf]  ;;  %v10073_v6 = vor.u32 %v11373_v12, %v10072_v9 }
 0xeb7   :  { %5841 = vmatmul.bf16.vlgmr.msra.gmra.mxu0 %v12472_v47  ;;  %v11390_v47 = vld [vmem:[#allocation9 + $0xc8] sm:$0xf0]  ;;  %6036 = vmatpush.bf16.msra.mxu1 %v10077_v30  ;;  %v10217_v30 = vld [vmem:[#allocation9 + $0x158] sm:$0xf] }
 0xeb8   :  { %6239 = vmatpush.bf16.msrb.mxu0 %v10222_v16  ;;  %v10138_v46 = vor.u32 %v11390_v47, %v10137_v25  ;;  %v11374_v16 = vld [vmem:[#allocation7 + $0x10c] sm:$0xf]  ;;  %v10052_v25 = vld [vmem:[#allocation7 + $0xd8] sm:$0xf]  ;;  %v11369_v47 = vld [vmem:[#allocation7 + $0xe0] sm:$0xf0] }
 0xeb9   :  { %v10081_v17 = vor.u32 %v11374_v16, %v10078_v44  ;;  %v10053_v3 = vor.u32 %v11369_v47, %v10052_v25  ;;  %v10211_v16 = vld [vmem:[#allocation9 + $0x15c] sm:$0xf0]  ;;  %v11409_v44 = vld [vmem:[#allocation9 + $0x160] sm:$0xf0]  ;;  %v5456_v25 = vperm.slane %v12606_v5, 0 }
 0xebb   :  { %6049 = vmatpush.bf16.msra.mxu2 %v10081_v17  ;;  %v12612_v17 = vld [vmem:[%s12835_s10] sm:$0x7] }
 0xebc   :  { %6240 = vmatpush.bf16.msrb.mxu0 %v10210_v1  ;;  %v10120_v1 = vld [vmem:[#allocation7 + $0x158] sm:$0xf]  ;;  %v5674_v47 = vperm.slane %v12612_v17, 1 }
 0xec0   :  { %6241 = vmatpush.bf16.msrb.mxu0 %v10198_v19  ;;  %v10121_v19 = vor.u32 %v11385_v49, %v10120_v1  ;;  %v10214_v1 = vor.u32 %v11407_v50, %v10211_v16  ;;  %v10218_v49 = vor.u32 %v11409_v44, %v10217_v30  ;;  %v11395_v50 = vld [vmem:[#allocation9 + $0xf4] sm:$0xf]  ;;  %v11397_v30 = vld [vmem:[#allocation9 + $0x100] sm:$0xf0]  ;;  %v11392_v44 = vld [vmem:[#allocation9 + $0xdc] sm:$0xf] }
 0xec2   :  { %6059 = vmatpush.bf16.msra.mxu3 %v10121_v19 }
 0xec4   :  { %6242 = vmatpush.bf16.msrb.mxu0 %v10186_v59  ;;  %v11371_v59 = vld [vmem:[#allocation7 + $0xf4] sm:$0xf] }
 0xec8   :  { %6243 = vmatpush.bf16.msrb.mxu0 %v10174_v55  ;;  %v10065_v55 = vor.u32 %v11372_v56, %v10064_v37 }
 0xeca   :  { %6037 = vmatpush.bf16.msra.mxu1 %v10065_v55  ;;  %v11370_v55 = vld [vmem:[#allocation7 + $0xe8] sm:$0xf0] }
 0xecc   :  { %6244 = vmatpush.bf16.msrb.mxu0 %v10162_v42  ;;  %v10069_v42 = vor.u32 %v11371_v59, %v10066_v34  ;;  %v10060_v59 = vld [vmem:[#allocation7 + $0xe0] sm:$0xf]  ;;  %v11404_v34 = vld [vmem:[#allocation9 + $0x13c] sm:$0xf] }
 0xece   :  { %6050 = vmatpush.bf16.msra.mxu2 %v10069_v42  ;;  %6038 = vmatpush.bf16.msra.mxu1 %v10053_v3  ;;  %v10061_v42 = vor.u32 %v11370_v55, %v10060_v59  ;;  %v11394_v59 = vld [vmem:[#allocation9 + $0xe8] sm:$0xf0] }
 0xed0   :  { %6245 = vmatpush.bf16.msrb.mxu0 %v10150_v36  ;;  %v10109_v36 = vor.u32 %v11382_v40, %v10108_v23  ;;  %v10199_v40 = vld [vmem:[#allocation9 + $0x144] sm:$0xf0] }
 0xed2   :  { %6060 = vmatpush.bf16.msra.mxu3 %v10109_v36  ;;  %v11406_v36 = vld [vmem:[#allocation9 + $0x148] sm:$0xf0] }
 0xed4   :  { %6246 = vmatpush.bf16.msrb.mxu0 %v10138_v46  ;;  %v11368_v46 = vld [vmem:[#allocation7 + $0xdc] sm:$0xf] }
 0xed5   :  { %v10057_v32 = vor.u32 %v11368_v46, %v10054_v21  ;;  %v10202_v46 = vor.u32 %v11404_v34, %v10199_v40  ;;  %v5673_v21 = vperm.slane %v12612_v17, 0  ;;  %v5675_v40 = vperm.slane %v12612_v17, 2 }
 0xed6   :  { %6061 = vmatpush.bf16.msra.mxu3 %v10097_v35  ;;  %v11401_v35 = vld [vmem:[#allocation9 + $0x124] sm:$0xf] }
 0xed7   :  { %6247 = vmatmul.bf16.vlgmr.msrb.gmra.mxu0 %v12514_v18  ;;  %6051 = vmatpush.bf16.msra.mxu2 %v10057_v32  ;;  %v11367_v32 = vld [vmem:[#allocation7 + $0xd0] sm:$0xf0] }
 0xeda   :  { %6062 = vmatpush.bf16.msra.mxu3 %v10085_v31 }
 0xedb   :  { %6052 = vmatpush.bf16.msra.mxu2 %v10045_v61 }
 0xede   :  { %6063 = vmatpush.bf16.msra.mxu3 %v10073_v6  ;;  %v10169_v6 = vld [vmem:[#allocation9 + $0xf8] sm:$0xf] }
 0xedf   :  { %6265 = vmatpush.bf16.msrb.mxu2 %v10230_v8 }
 0xee2   :  { %6064 = vmatpush.bf16.msra.mxu3 %v10061_v42 }
 0xee3   :  { %6266 = vmatpush.bf16.msrb.mxu2 %v10218_v49 }
 0xefe   :  { %v12593_v29 = vpop.f32.mrf.mxu3 }
 0xf06   :  { %v5608_v51 = vpop.f32.mrf.mxu3 }
 0xf07   :  { %v10041_v51 = vor.u32 %v11366_v27, %v10040_v45  ;;  %v10049_v45 = vor.u32 %v11367_v32, %v10048_v48  ;;  %v10187_v27 = vld [vmem:[#allocation9 + $0x12c] sm:$0xf0] }
 0xf08   :  { %v10190_v53 = vor.u32 %v11401_v35, %v10187_v27 }
 0xf09   :  { %6039 = vmatpush.bf16.msra.mxu1 %v10041_v51  ;;  %6065 = vmatpush.bf16.msra.mxu3 %v10049_v45 }
 0xf0d   :  { %6252 = vmatpush.bf16.msrb.mxu1 %v10226_v7  ;;  %v10175_v7 = vld [vmem:[#allocation9 + $0x114] sm:$0xf0] }
 0xf0e   :  { %v12595_v14 = vpop.f32.mrf.mxu3  ;;  %v10178_v8 = vor.u32 %v11398_v39, %v10175_v7  ;;  %v10037_v39 = vld [vmem:[%s12834_s9 + $0x3] sm:$0x7]  ;;  %v11416_v7 = vld [vmem:[%s12836_s11 + $0x18] sm:$0xff] }
 0xf0f   :  { %v5830_v51 = vadd.f32 %v12595_v14, %v5674_v47  ;;  %v11389_v47 = vld [vmem:[#allocation9 + $0xc4] sm:$0xf] }
 0xf11   :  { %6253 = vmatpush.bf16.msrb.mxu1 %v10214_v1  ;;  %v10151_v1 = vld [vmem:[#allocation9 + $0xe4] sm:$0xf0] }
 0xf12   :  { %v10154_v34 = vor.u32 %v11392_v44, %v10151_v1  ;;  %v5899_v1 = vperm.slane %v10037_v39, 1 }
 0xf14   :  { %v12597_v62 = vpop.f32.mrf.mxu0  ;;  %v12599_v22 = vpop.f32.mrf.mxu1 }
 0xf15   :  { %6254 = vmatpush.bf16.msrb.mxu1 %v10202_v46  ;;  %v10139_v46 = vld [vmem:[#allocation9 + $0xcc] sm:$0xf0] }
 0xf16   :  { %v5831_v63 = vpop.f32.mrf.mxu3 }
 0xf17   :  { %v10205_v63 = vld [vmem:[#allocation9 + $0x140] sm:$0xf] }
 0xf18   :  { %v10206_v3 = vor.u32 %v11406_v36, %v10205_v63 }
 0xf19   :  { %6255 = vmatpush.bf16.msrb.mxu1 %v10190_v53 }
 0xf1a   :  { %6267 = vmatpush.bf16.msrb.mxu2 %v10206_v3  ;;  %v10142_v3 = vor.u32 %v11389_v47, %v10139_v46 }
 0xf1b   :  { %v12601_v43 = vpop.f32.mrf.mxu2 }
 0xf1c   :  { %v5392_v52 = vpop.f32.mrf.mxu0  ;;  %v5405_v57 = vpop.f32.mrf.mxu1 }
 0xf1d   :  { %v11403_v52 = vld [vmem:[#allocation9 + $0x130] sm:$0xf0]  ;;  %v5607_v57 = vadd.f32 %v12593_v29, %v5456_v25  ;;  %v11400_v29 = vld [vmem:[#allocation9 + $0x118] sm:$0xf0]  ;;  %6256 = vmatpush.bf16.msrb.mxu1 %v10178_v8 }
 0xf1e   :  { %v10194_v54 = vor.u32 %v11403_v52, %v10193_v26  ;;  %v10182_v9 = vor.u32 %v11400_v29, %v10181_v2  ;;  %v11415_v8 = vld [vmem:[%s12836_s11 + $0x10] sm:$0xff] }
 0xf1f   :  { %v5636_v61 = vadd.f32 %v5607_v57, %v12597_v62  ;;  %v10163_v62 = vld [vmem:[#allocation9 + $0xfc] sm:$0xf0] }
 0xf20   :  { %6268 = vmatpush.bf16.msrb.mxu2 %v10194_v54  ;;  %v10166_v16 = vor.u32 %v11395_v50, %v10163_v62 }
 0xf22   :  { %6257 = vmatpush.bf16.msrb.mxu1 %v10166_v16  ;;  %v11413_v16 = vld [vmem:[%s12836_s11] sm:$0xff] }
 0xf23   :  { %v5418_v19 = vpop.f32.mrf.mxu2 }
 0xf24   :  { %v5619_v37 = vpop.f32.mrf.mxu0  ;;  %v12614_v56 = vpop.f32.mrf.mxu1  ;;  %6269 = vmatpush.bf16.msrb.mxu2 %v10182_v9  ;;  %v10170_v19 = vor.u32 %v11397_v30, %v10169_v6 }
 0xf25   :  { %v5620_v23 = vadd.f32 %v5619_v37, %v5457_v13  ;;  %v10157_v37 = vld [vmem:[#allocation9 + $0xe0] sm:$0xf] }
 0xf26   :  { %v10158_v42 = vor.u32 %v11394_v59, %v10157_v37  ;;  %6258 = vmatpush.bf16.msrb.mxu1 %v10154_v34 }
 0xf27   :  { %v5637_v58 = vadd.f32 %v5620_v23, %v12599_v22  ;;  %v5458_v23 = vperm.slane %v12606_v5, 2 }
 0xf28   :  { %6270 = vmatpush.bf16.msrb.mxu2 %v10170_v19 }
 0xf29   :  { %v5851_v22 = vadd.f32 %v5830_v51, %v5637_v58  ;;  %v5633_v36 = vadd.f32 %v12614_v56, %v5458_v23  ;;  %v11391_v58 = vld [vmem:[#allocation9 + $0xd0] sm:$0xf0] }
 0xf2a   :  { %6259 = vmatpush.bf16.msrb.mxu1 %v10142_v3 }
 0xf2b   :  { %v5816_v38 = vpop.f32.mrf.mxu2  ;;  %v5852_v14 = vmul.f32 0.5, %v5851_v22  ;;  %v5638_v27 = vadd.f32 %v5633_v36, %v12601_v43  ;;  %v5900_v36 = vperm.slane %v10037_v39, 2 }
 0xf2c   :  { %v5817_v31 = vadd.f32 %v5816_v38, %v5673_v21  ;;  %v5621_v10 = vpop.f32.mrf.mxu0  ;;  %v5634_v4 = vpop.f32.mrf.mxu1  ;;  %6271 = vmatpush.bf16.msrb.mxu2 %v10158_v42  ;;  %v10145_v21 = vld [vmem:[#allocation9 + $0xc8] sm:$0xf] }
 0xf2d   :  { %v10146_v45 = vor.u32 %v11391_v58, %v10145_v21  ;;  %v11418_v10 = vld [vmem:[%s12836_s11 + $0x28] sm:$0xff]  ;;  %v11417_v4 = vld [vmem:[%s12836_s11 + $0x20] sm:$0xff] }
 0xf2e   :  { %v5846_v13 = vadd.f32 %v5817_v31, %v5636_v61  ;;  %v11419_v31 = vld [vmem:[%s12836_s11 + $0x30] sm:$0xff] }
 0xf30   :  { %v5847_v12 = vmul.f32 0.5, %v5846_v13  ;;  %6272 = vmatpush.bf16.msrb.mxu2 %v10146_v45  ;;  %v5898_v13 = vperm.slane %v10037_v39, 0  ;;  %v12701_v39 = vld [vmem:[%s12828_s3 + $0x18] sm:$0x3] }
 0xf32   :  { %11651 = vtanh.f32 %v5847_v12  ;;  %v11414_v12 = vld [vmem:[%s12836_s11 + $0x8] sm:$0xff] }
 0xf33   :  { %v5818_v49 = vpop.f32.mrf.mxu2  ;;  %11653 = vtanh.f32 %v5852_v14 }
 0xf34   :  { %v5842_v55 = vpop.f32.mrf.mxu0 }
 0xf35   :  { %v5843_v32 = vadd.f32 %v5842_v55, %v5675_v40 }
 0xf38   :  { %v11652_v63 = vpop.eup %11651 }
 0xf39   :  { %v5849_v25 = vadd.f32 1.0, %v11652_v63  ;;  %v11654_v48 = vpop.eup %11653 }
 0xf3a   :  { %v5854_v26 = vadd.f32 1.0, %v11654_v48 }
 0xf3b   :  { %v5850_v35 = vmul.f32 0.5, %v5849_v25 }
 0xf3c   :  { %v5844_v5 = vpop.f32.mrf.mxu0  ;;  %v5855_v56 = vmul.f32 0.5, %v5854_v26 }
 0xf3d   :  { %v5856_v17 = vmul.f32 %v5850_v35, %v5843_v32 }
 0xf3e   :  { %v5859_v57 = vsub.f32 1.0, %v5855_v56  ;;  %v5861_v53 = vmul.f32 %v5855_v56, %v12468_v20  ;;  %v11420_v20 = vld [vmem:[%s12836_s11 + $0x38] sm:$0xff] }
 0xf3f   :  { %v5857_v52 = vadd.f32 %v5856_v17, %v5638_v27  ;;  %6360 = vmatpush.bf16.msrb.mxu3 %v11420_v20 }
 0xf41   :  { %11655 = vtanh.f32 %v5857_v52 }
 0xf43   :  { %6361 = vmatpush.bf16.msrb.mxu3 %v11419_v31 }
 0xf47   :  { %v11656_v51 = vpop.eup %11655  ;;  %6362 = vmatpush.bf16.msrb.mxu3 %v11418_v10 }
 0xf48   :  { %v5860_v54 = vmul.f32 %v11656_v51, %v5859_v57 }
 0xf4a   :  { %v12628_v38 = vadd.f32 %v5861_v53, %v5860_v54 }
 0xf4b   :  { %6363 = vmatpush.bf16.msrb.mxu3 %v11417_v4  ;;  %v12695_v4 = vld [vmem:[%s12828_s3 + $0x10] sm:$0xff] }
 0xf4c   :  { %v12632_v61 = vpack.c.bf16 %v12628_v38, %v12628_v38 }
 0xf4e   :  { %6040 = vmatmul.bf16.vlgmr.msra.gmra.mxu1 %v12632_v61  ;;  %6053 = vmatmul.bf16.vlgmr.msra.gmra.mxu2 %v12632_v61 }
 0xf4f   :  { %6066 = vmatmul.bf16.vlgmr.msra.gmra.mxu3 %v12632_v61 }
 0xf50   :  { %6364 = vmatpush.bf16.msrb.mxu3 %v11416_v7 }
 0xf54   :  { %v6248_v43 = vpop.f32.mrf.mxu0  ;;  %6365 = vmatpush.bf16.msrb.mxu3 %v11415_v8 }
 0xf58   :  { %6366 = vmatpush.bf16.msrb.mxu3 %v11414_v12 }
 0xf5c   :  { %v6250_v22 = vpop.f32.mrf.mxu0  ;;  %6367 = vmatpush.bf16.msrb.mxu3 %v11413_v16 }
 0xf5d   :  { %v12688_v22 = vld [vmem:[%s12828_s3 + $0x8] sm:$0x3] }
 0xf5e   :  { %6260 = vmatmul.bf16.vlgmr.msrb.gmra.mxu1 %v12514_v18  ;;  %6273 = vmatmul.bf16.vlgmr.msrb.gmra.mxu2 %v12514_v18  ;;  %v10134_v18 = vld [vmem:[%s12835_s10 + $0x3] sm:$0x7] }
 0xf5f   :  { %v6105_v2 = vperm.slane %v10134_v18, 0  ;;  %v6106_v49 = vperm.slane %v10134_v18, 1  ;;  %v6107_v40 = vperm.slane %v10134_v18, 2 }
 0xf61   :  { %v6249_v9 = vadd.f32 %v6248_v43, %v6105_v2  ;;  %v12682_v43 = vld [vmem:[%s12828_s3] sm:$0xff] }
 0xfcb   :  { %v6041_v29 = vpop.f32.mrf.mxu1 }
 0xfcc   :  { %v6042_v14 = vadd.f32 %v6041_v29, %v5898_v13 }
 0xfce   :  { %v6278_v50 = vadd.f32 %v6249_v9, %v6042_v14 }
 0xfd0   :  { %v6279_v62 = vmul.f32 0.5, %v6278_v50 }
 0xfd1   :  { %v6054_v6 = vpop.f32.mrf.mxu2 }
 0xfd2   :  { %v6067_v30 = vpop.f32.mrf.mxu3  ;;  %11657 = vtanh.f32 %v6279_v62  ;;  %v6055_v34 = vadd.f32 %v6054_v6, %v5899_v1 }
 0xfd3   :  { %v6043_v44 = vpop.f32.mrf.mxu1  ;;  %v6068_v58 = vadd.f32 %v6067_v30, %v5900_v36 }
 0xfd8   :  { %v11658_v59 = vpop.eup %11657 }
 0xfd9   :  { %v6056_v19 = vpop.f32.mrf.mxu2  ;;  %v6281_v63 = vadd.f32 1.0, %v11658_v59 }
 0xfda   :  { %v6069_v37 = vpop.f32.mrf.mxu3  ;;  %v11698_v19 = vld [vmem:[%s12837_s12] ss:$0 sm:$0xff] }
 0xfdb   :  { %v6261_v55 = vpop.f32.mrf.mxu1  ;;  %v6282_v3 = vmul.f32 0.5, %v6281_v63 }
 0xfdc   :  { %v6262_v23 = vadd.f32 %v6261_v55, %v6106_v49 }
 0xfde   :  { %v6283_v42 = vadd.f32 %v6262_v23, %v6055_v34 }
 0xfe0   :  { %v6284_v25 = vmul.f32 0.5, %v6283_v42 }
 0xfe1   :  { %v6274_v47 = vpop.f32.mrf.mxu2 }
 0xfe2   :  { %11659 = vtanh.f32 %v6284_v25  ;;  %v6275_v46 = vadd.f32 %v6274_v47, %v6107_v40 }
 0xfe3   :  { %v6263_v21 = vpop.f32.mrf.mxu1 }
 0xfe4   :  { %v6288_v48 = vmul.f32 %v6282_v3, %v6275_v46  ;;  %v10263_v46 = vld [vmem:[%s12826_s1 + $0xa] sm:$0x3]  ;;  %s12734_s1 = sld [smem:[#allocation3 + $0x5]] }
 0xfe6   :  { %v6289_v32 = vadd.f32 %v6288_v48, %v6068_v58  ;;  %v10449_v48 = vld [vmem:[#allocation7 + $0xa8] sm:$0xf] }
 0xfe8   :  { %v11660_v35 = vpop.eup %11659  ;;  %11661 = vtanh.f32 %v6289_v32  ;;  %v11467_v32 = vld [vmem:[#allocation7 + $0xb0] sm:$0xf0] }
 0xfe9   :  { %v6286_v45 = vadd.f32 1.0, %v11660_v35  ;;  %v6276_v5 = vpop.f32.mrf.mxu2  ;;  %v10450_v35 = vor.u32 %v11467_v32, %v10449_v48  ;;  %v10293_v32 = vld [vmem:[#allocation4 + $0x30] sm:$0xf] }
 0xfea   :  { %p6485_p4 = scmp.gt.s32.totalorder %s12734_s1, 0 }
 0xfeb   :  { %v6287_v27 = vmul.f32 0.5, %v6286_v45  ;;  %v11464_v45 = vld [vmem:[#allocation7 + $0x98] sm:$0xf0]  ;;  %6871 = vmatpush.bf16.msra.mxu3 %v10450_v35  ;;  %v11487_v35 = vld [vmem:[#allocation9 + $0x94] sm:$0xf] }
 0xfec   :  { %s6486_s19 = scalar_select %p6485_p4, 1, 0 }
 0xfed   :  { %v6291_v17 = vsub.f32 1.0, %v6287_v27  ;;  %v6293_v52 = vmul.f32 %v6287_v27, %v12510_v60  ;;  %v10425_v27 = vld [vmem:[#allocation7 + $0x78] sm:$0xf] }
 0xfee   :  { %v11662_v26 = vpop.eup %11661  ;;  %s6487_s20 = scvt.s32.f32 %s6486_s19 }
 0xfef   :  { %v6292_v56 = vmul.f32 %v11662_v26, %v6291_v17  ;;  %v11461_v17 = vld [vmem:[#allocation7 + $0x80] sm:$0xf0] }
 0xff0   :  { %v10426_v26 = vor.u32 %v11461_v17, %v10425_v27  ;;  %v11436_v17 = vld [vmem:[#allocation4 + $0x7c] sm:$0xf]  ;;  %s6490_s21 = ssub.f32 1.0, %s6487_s20 }
 0xff1   :  { %v12670_v57 = vadd.f32 %v6293_v52, %v6292_v56  ;;  %v11458_v52 = vld [vmem:[#allocation7 + $0x68] sm:$0xf0] }
 0xff3   :  { %v12674_v51 = vpack.c.bf16 %v12670_v57, %v12670_v57  ;;  %v6377_v53 = vperm.slane %v12670_v57, 0  ;;  %v6376_v54 = vrot.slane %v12670_v57, 1 }
 0xff5   :  { %6368 = vmatmul.bf16.vlgmr.msrb.gmra.mxu3 %v12674_v51  ;;  %v6381_v60 = vmul.f32 %v12682_v43, %v6377_v53  ;;  %v6382_v20 = vmul.f32 %v12688_v22, %v6377_v53  ;;  %v6378_v31 = vperm.slane %v6376_v54, 0  ;;  %v10353_v53 = vld [vmem:[#allocation4 + $0xa8] sm:$0xf]  ;;  %v11443_v54 = vld [vmem:[#allocation4 + $0xb0] sm:$0xf0] }
 0xff7   :  { %6385 = vadd.xlane.f32.xlu0 %v6381_v60  ;;  %v6387_v10 = vsel %vm1285_vm2, %v6382_v20, 0.0  ;;  %v6383_v18 = vmul.f32 %v12695_v4, %v6378_v31  ;;  %v6384_v7 = vmul.f32 %v12701_v39, %v6378_v31  ;;  %v10354_v60 = vor.u32 %v11443_v54, %v10353_v53  ;;  %v10401_v20 = vld [vmem:[#allocation7 + $0x48] sm:$0xf]  ;;  %v11455_v31 = vld [vmem:[#allocation7 + $0x50] sm:$0xf0] }
 0xff8   :  { %6388 = vadd.xlane.f32.xlu2 %v6387_v10  ;;  %v10402_v10 = vor.u32 %v11455_v31, %v10401_v20  ;;  %v11425_v20 = vld [vmem:[#allocation4 + $0x20] sm:$0xf0]  ;;  %v11484_v31 = vld [vmem:[#allocation9 + $0x7c] sm:$0xf] }
 0xff9   :  { %6390 = vadd.xlane.f32.xlu1 %v6383_v18  ;;  %v6392_v2 = vsel %vm1285_vm2, %v6384_v7, 0.0  ;;  %6655 = vmatpush.bf16.msra.mxu0 %v10354_v60  ;;  %v10341_v18 = vld [vmem:[#allocation4 + $0x90] sm:$0xf]  ;;  %v11440_v7 = vld [vmem:[#allocation4 + $0x98] sm:$0xf0] }
 0xffa   :  { %v10281_v60 = vld [vmem:[#allocation4 + $0x18] sm:$0xf] }
 0xfff   :  { %6393 = vadd.xlane.f32.xlu0 %v6392_v2  ;;  %v10342_v2 = vor.u32 %v11440_v7, %v10341_v18  ;;  %v10523_v18 = vld [vmem:[#allocation9 + $0x84] sm:$0xf0] }
0x1000   :  { %v10526_v7 = vor.u32 %v11484_v31, %v10523_v18  ;;  %v11472_v31 = vld [vmem:[#allocation9 + $0x1c] sm:$0xf]  ;;  %v11457_v18 = vld [vmem:[#allocation7 + $0x64] sm:$0xf] }
0x1001   :  { %6656 = vmatpush.bf16.msra.mxu0 %v10342_v2  ;;  %v11433_v2 = vld [vmem:[#allocation4 + $0x64] sm:$0xf] }
0x106a   :  { %v6386_v13 = vpop.xlane.xlu0 %6385 }
0x106b   :  { %v6389_v8 = vpop.xlane.xlu2 %6388  ;;  %v6399_v9 = vperm.slane %v6386_v13, %v11928_v11  ;;  %v10389_v13 = vld [vmem:[#allocation7 + $0x30] sm:$0xf] }
0x106c   :  { %v6391_v29 = vpop.xlane.xlu1 %6390  ;;  %v6400_v14 = vperm.slane %v6389_v8, %v12056_v28  ;;  %v11452_v8 = vld [vmem:[#allocation7 + $0x38] sm:$0xf0] }
0x106d   :  { %v6402_v50 = vperm.slane %v6391_v29, %v11928_v11  ;;  %v10390_v29 = vor.u32 %v11452_v8, %v10389_v13  ;;  %v10319_v13 = vld [vmem:[#allocation4 + $0x6c] sm:$0xf0]  ;;  %v10325_v8 = vld [vmem:[#allocation4 + $0x68] sm:$0xf] }
0x106e   :  { %v6401_v6 = vsel %vm1302_vm3, %v6400_v14, %v6399_v9  ;;  %v10329_v9 = vld [vmem:[#allocation4 + $0x78] sm:$0xf]  ;;  %v11437_v14 = vld [vmem:[#allocation4 + $0x80] sm:$0xf0] }
0x1072   :  { %v6394_v12 = vpop.xlane.xlu0 %6393 }
0x1073   :  { %v6403_v62 = vperm.slane %v6394_v12, %v12056_v28  ;;  %v10330_v12 = vor.u32 %v11437_v14, %v10329_v9  ;;  %v11435_v9 = vld [vmem:[#allocation4 + $0x70] sm:$0xf0] }
0x1075   :  { %v6404_v16 = vsel %vm1302_vm3, %v6403_v62, %v6402_v50  ;;  %6657 = vmatpush.bf16.msra.mxu0 %v10330_v12  ;;  %v10377_v50 = vld [vmem:[#allocation7 + $0x18] sm:$0xf]  ;;  %v11449_v62 = vld [vmem:[#allocation7 + $0x20] sm:$0xf0]  ;;  %v10326_v12 = vor.u32 %v11435_v9, %v10325_v8  ;;  %v10271_v8 = vld [vmem:[#allocation4 + $0xc] sm:$0xf0] }
0x1076   :  { %v6405_v30 = vsel %vm1307_vm4, %v6404_v16, %v6401_v6  ;;  %v10378_v6 = vor.u32 %v11449_v62, %v10377_v50  ;;  %v10317_v16 = vld [vmem:[#allocation4 + $0x60] sm:$0xf]  ;;  %v11422_v62 = vld [vmem:[#allocation4 + $0x8] sm:$0xf0] }
0x1077   :  { %v6407_v44 = vsel %vm1294_vm5, -9000.0, %v6405_v30  ;;  %v11434_v30 = vld [vmem:[#allocation4 + $0x68] sm:$0xf0]  ;;  %v10269_v50 = vld [vmem:[#allocation4] sm:$0xf] }
0x1078   :  { %v6369_v1 = vpop.f32.mrf.mxu3  ;;  %v6408_v49 = vsel %vm1311_vm6, %v6407_v44, -inf }
0x1079   :  { %v6370_v37 = vadd.f32 %v11698_v19, %v6369_v1  ;;  %6409 = vmax.xlane.f32.xlu1 %v6408_v49  ;;  %v11442_v1 = vld [vmem:[#allocation4 + $0xac] sm:$0xf]  ;;  %v10355_v49 = vld [vmem:[#allocation4 + $0xb4] sm:$0xf0]  ;;  %v10361_v19 = vld [vmem:[#allocation4 + $0xb0] sm:$0xf] }
0x107b   :  { %6374 = vst [vmem:[#allocation10 + $0x8] sm:$0x3] %v6370_v37  ;;  %v6473_v28 = vsel %vm1285_vm2, %v6370_v37, -inf }
0x107c   :  { %6474 = vmax.xlane.f32.xlu0 %v6473_v28  ;;  %v11444_v28 = vld [vmem:[#allocation4 + $0xb8] sm:$0xf0] }
0x1080   :  { %v6371_v59 = vpop.f32.mrf.mxu3 }
0x1081   :  { %v10365_v59 = vld [vmem:[#allocation7] sm:$0xf] }
0x10ec   :  { %v6410_v55 = vpop.xlane.xlu1 %6409 }
0x10ed   :  { %v6411_v34 = vsub.f32 %v6407_v44, %v6410_v55  ;;  %v10318_v44 = vor.u32 %v11434_v30, %v10317_v16  ;;  %v11446_v55 = vld [vmem:[#allocation7 + $0x8] sm:$0xf0]  ;;  %v10270_v16 = vor.u32 %v11422_v62, %v10269_v50  ;;  %v10511_v30 = vld [vmem:[#allocation9 + $0x6c] sm:$0xf0]  ;;  %v11423_v50 = vld [vmem:[#allocation4 + $0x10] sm:$0xf0] }
0x10ee   :  { %v10457_v62 = vld [vmem:[#allocation7 + $0xb0] sm:$0xf] }
0x10ef   :  { %v6412_v23 = vmul.f32 1.442695, %v6411_v34  ;;  %v6475_v3 = vpop.xlane.xlu0 %6474  ;;  %6658 = vmatpush.bf16.msra.mxu0 %v10318_v44  ;;  %v10362_v34 = vor.u32 %v11444_v28, %v10361_v19  ;;  %v11466_v44 = vld [vmem:[#allocation7 + $0xac] sm:$0xf]  ;;  %v10307_v28 = vld [vmem:[#allocation4 + $0x54] sm:$0xf0] }
0x10f0   :  { %vm6476_vm3 = vcmp.eq.f32.partialorder %v6370_v37, %v6475_v3  ;;  %v10358_v37 = vor.u32 %v11442_v1, %v10355_v49  ;;  %v10349_v3 = vld [vmem:[#allocation4 + $0x98] sm:$0xf] }
0x10f1   :  { %11663 = vpow2.f32 %v6412_v23  ;;  %v6477_v21 = vsel %vm6476_vm3, %v12079_v33, 128.0  ;;  %v10366_v23 = vor.u32 %v11446_v55, %v10365_v59  ;;  %6681 = vmatpush.bf16.msra.mxu2 %v10362_v34  ;;  %v10451_v1 = vld [vmem:[#allocation7 + $0xb4] sm:$0xf0]  ;;  %v10313_v59 = vld [vmem:[#allocation4 + $0x50] sm:$0xf] }
0x10f2   :  { %v6478_v58 = vsel %vm1285_vm2, %v6477_v21, inf  ;;  %6668 = vmatpush.bf16.msra.mxu1 %v10358_v37  ;;  %v10454_v19 = vor.u32 %v11466_v44, %v10451_v1  ;;  %v11430_v37 = vld [vmem:[#allocation4 + $0x4c] sm:$0xf]  ;;  %v11432_v34 = vld [vmem:[#allocation4 + $0x58] sm:$0xf0] }
0x10f3   :  { %v10310_v55 = vor.u32 %v11430_v37, %v10307_v28  ;;  %v11468_v1 = vld [vmem:[#allocation7 + $0xb8] sm:$0xf0] }
0x10f4   :  { %v10458_v28 = vor.u32 %v11468_v1, %v10457_v62 }
0x10f7   :  { %v11664_v15 = vpop.eup %11663 }
0x10f8   :  { %v6414_v42 = vsel %vm1311_vm6, %v11664_v15, 0.0 }
0x10f9   :  { %6415 = vadd.xlane.f32.xlu2 %v6414_v42  ;;  %v11431_v42 = vld [vmem:[#allocation4 + $0x50] sm:$0xf0] }
0x116c   :  { %v6416_v40 = vpop.xlane.xlu2 %6415 }
0x116d   :  { %11665 = vrcp.f32 %v6416_v40  ;;  %v11490_v40 = vld [vmem:[#allocation9 + $0xac] sm:$0xf] }
0x1173   :  { %v11666_v63 = vpop.eup %11665 }
0x1174   :  { %v6418_v36 = vmul.f32 %v11666_v63, %v11664_v15  ;;  %v10305_v15 = vld [vmem:[#allocation4 + $0x48] sm:$0xf] }
0x1175   :  { %v10306_v63 = vor.u32 %v11431_v42, %v10305_v15  ;;  %v10314_v15 = vor.u32 %v11432_v34, %v10313_v59  ;;  %v11478_v42 = vld [vmem:[#allocation9 + $0x4c] sm:$0xf]  ;;  %v11491_v59 = vld [vmem:[#allocation9 + $0xb0] sm:$0xf0]  ;;  %v10463_v34 = vld [vmem:[#allocation9 + $0xc] sm:$0xf0] }
0x1176   :  { %v6432_v25 = vperm.slane %v6418_v36, 1  ;;  %v6419_v47 = vperm.slane %v6418_v36, 0  ;;  %v10547_v36 = vld [vmem:[#allocation9 + $0xb4] sm:$0xf0] }
0x1177   :  { %6659 = vmatpush.bf16.msra.mxu0 %v10306_v63 }
0x1178   :  { %6443 = vperm.xlu2 %11581, %v6432_v25   ;;  %6430 = vperm.xlu1 %11580, %v6419_v47  }
0x1179   :  { %6424 = vperm.xlu0 %11582, %v6419_v47   ;;  %v11439_v47 = vld [vmem:[#allocation4 + $0x94] sm:$0xf] }
0x1180   :  { %11583 = vset.pattern.permute.xlu2 %v12085_v41  ;;  %v10437_v41 = vld [vmem:[#allocation7 + $0x90] sm:$0xf] }
0x1181   :  { %11585 = vset.pattern.permute.xlu0 %v11822_v0  ;;  %v10438_v5 = vor.u32 %v11464_v45, %v10437_v41  ;;  %v11428_v41 = vld [vmem:[#allocation4 + $0x38] sm:$0xf0] }
0x1182   :  { %v10294_v45 = vor.u32 %v11428_v41, %v10293_v32 }
0x1183   :  { %6872 = vmatpush.bf16.msra.mxu3 %v10438_v5  ;;  %v10535_v5 = vld [vmem:[#allocation9 + $0x9c] sm:$0xf0] }
0x1184   :  { %v10538_v27 = vor.u32 %v11487_v35, %v10535_v5  ;;  %6660 = vmatpush.bf16.msra.mxu0 %v10294_v45  ;;  %v11475_v45 = vld [vmem:[#allocation9 + $0x34] sm:$0xf]  ;;  %v10487_v5 = vld [vmem:[#allocation9 + $0x3c] sm:$0xf0] }
0x1187   :  { %6873 = vmatpush.bf16.msra.mxu3 %v10426_v26  ;;  %v10331_v26 = vld [vmem:[#allocation4 + $0x84] sm:$0xf0] }
0x1188   :  { %6437 = vperm.xlu2 %11583, %v6432_v25   ;;  %v10550_v25 = vor.u32 %v11490_v40, %v10547_v36  ;;  %v10499_v40 = vld [vmem:[#allocation9 + $0x54] sm:$0xf0] }
0x1189   :  { %v10502_v36 = vor.u32 %v11478_v42, %v10499_v40  ;;  %v11454_v42 = vld [vmem:[#allocation7 + $0x4c] sm:$0xf]  ;;  %v10403_v40 = vld [vmem:[#allocation7 + $0x54] sm:$0xf0] }
0x1190   :  { %11584 = vset.pattern.permute.xlu2 %v11822_v0  ;;  %v10413_v0 = vld [vmem:[#allocation7 + $0x60] sm:$0xf] }
0x1191   :  { %6468 = vperm.xlu2 %11584, %v10263_v46   ;;  %v10414_v56 = vor.u32 %v11458_v52, %v10413_v0  ;;  %v10343_v46 = vld [vmem:[#allocation4 + $0x9c] sm:$0xf0]  ;;  %v10334_v52 = vor.u32 %v11436_v17, %v10331_v26  ;;  %v10490_v17 = vor.u32 %v11475_v45, %v10487_v5  ;;  %v11424_v26 = vld [vmem:[#allocation4 + $0x1c] sm:$0xf] }
0x1192   :  { %v10346_v21 = vor.u32 %v11439_v47, %v10343_v46  ;;  %v10337_v0 = vld [vmem:[#allocation4 + $0x80] sm:$0xf]  ;;  %v11427_v46 = vld [vmem:[#allocation4 + $0x34] sm:$0xf] }
0x1193   :  { %6874 = vmatpush.bf16.msra.mxu3 %v10414_v56  ;;  %v11438_v56 = vld [vmem:[#allocation4 + $0x88] sm:$0xf0]  ;;  %v10439_v47 = vld [vmem:[#allocation7 + $0x9c] sm:$0xf0] }
0x1194   :  { %6669 = vmatpush.bf16.msra.mxu1 %v10346_v21  ;;  %v10338_v54 = vor.u32 %v11438_v56, %v10337_v0  ;;  %v10295_v21 = vld [vmem:[#allocation4 + $0x3c] sm:$0xf0]  ;;  %v10283_v0 = vld [vmem:[#allocation4 + $0x24] sm:$0xf0] }
0x1195   :  { %v10298_v41 = vor.u32 %v11427_v46, %v10295_v21  ;;  %v11488_v46 = vld [vmem:[#allocation9 + $0x98] sm:$0xf0] }
0x1197   :  { %6875 = vmatpush.bf16.msra.mxu3 %v10402_v10  ;;  %v10282_v10 = vor.u32 %v11425_v20, %v10281_v60  ;;  %v11426_v60 = vld [vmem:[#allocation4 + $0x28] sm:$0xf0] }
0x1198   :  { %6670 = vmatpush.bf16.msra.mxu1 %v10334_v52 }
0x1199   :  { %6661 = vmatpush.bf16.msra.mxu0 %v10282_v10  ;;  %v10475_v10 = vld [vmem:[#allocation9 + $0x24] sm:$0xf0] }
0x119a   :  { %v10478_v9 = vor.u32 %v11472_v31, %v10475_v10  ;;  %v10421_v10 = vld [vmem:[#allocation7 + $0x68] sm:$0xf] }
0x119b   :  { %6876 = vmatpush.bf16.msra.mxu3 %v10390_v29  ;;  %v10322_v29 = vor.u32 %v11433_v2, %v10319_v13  ;;  %v10415_v2 = vld [vmem:[#allocation7 + $0x6c] sm:$0xf0]  ;;  %v11421_v13 = vld [vmem:[#allocation4 + $0x4] sm:$0xf] }
0x119c   :  { %v10274_v44 = vor.u32 %v11421_v13, %v10271_v8 }
0x119d   :  { %6671 = vmatpush.bf16.msra.mxu1 %v10322_v29  ;;  %6662 = vmatpush.bf16.msra.mxu0 %v10270_v16 }
0x119f   :  { %6877 = vmatpush.bf16.msra.mxu3 %v10378_v6  ;;  %v11481_v6 = vld [vmem:[#allocation9 + $0x64] sm:$0xf] }
0x11a0   :  { %v10514_v49 = vor.u32 %v11481_v6, %v10511_v30 }
0x11a1   :  { %6884 = vmatpush.bf16.msrb.mxu0 %v10454_v19  ;;  %6672 = vmatpush.bf16.msra.mxu1 %v10310_v55  ;;  %v11469_v55 = vld [vmem:[#allocation9 + $0x4] sm:$0xf] }
0x11a2   :  { %6479 = vmin.xlane.f32.xlu1 %v6478_v58  ;;  %v11441_v58 = vld [vmem:[#allocation4 + $0xa0] sm:$0xf0] }
0x11a3   :  { %6878 = vmatpush.bf16.msra.mxu3 %v10366_v23  ;;  %v10350_v48 = vor.u32 %v11441_v58, %v10349_v3  ;;  %v10301_v58 = vld [vmem:[#allocation4 + $0x38] sm:$0xf] }
0x11a5   :  { %6682 = vmatpush.bf16.msra.mxu2 %v10350_v48  ;;  %v11429_v48 = vld [vmem:[#allocation4 + $0x40] sm:$0xf0]  ;;  %6673 = vmatpush.bf16.msra.mxu1 %v10298_v41  ;;  %v11451_v41 = vld [vmem:[#allocation7 + $0x34] sm:$0xf] }
0x11a6   :  { %v10302_v35 = vor.u32 %v11429_v48, %v10301_v58 }
0x11a7   :  { %7094 = vmatpush.bf16.msrb.mxu3 %v10550_v25  ;;  %v11463_v25 = vld [vmem:[#allocation7 + $0x94] sm:$0xf] }
0x11a8   :  { %v10442_v3 = vor.u32 %v11463_v25, %v10439_v47  ;;  %v10445_v25 = vld [vmem:[#allocation7 + $0x98] sm:$0xf]  ;;  %v11465_v47 = vld [vmem:[#allocation7 + $0xa0] sm:$0xf0] }
0x11a9   :  { %6683 = vmatpush.bf16.msra.mxu2 %v10338_v54  ;;  %v10289_v54 = vld [vmem:[#allocation4 + $0x20] sm:$0xf]  ;;  %v10446_v21 = vor.u32 %v11465_v47, %v10445_v25  ;;  %v11473_v25 = vld [vmem:[#allocation9 + $0x20] sm:$0xf0] }
0x11aa   :  { %6885 = vmatpush.bf16.msrb.mxu0 %v10442_v3  ;;  %v10290_v20 = vor.u32 %v11426_v60, %v10289_v54  ;;  %v11448_v54 = vld [vmem:[#allocation7 + $0x1c] sm:$0xf]  ;;  %v10379_v60 = vld [vmem:[#allocation7 + $0x24] sm:$0xf0] }
0x11ab   :  { %7095 = vmatpush.bf16.msrb.mxu3 %v10538_v27  ;;  %v11460_v27 = vld [vmem:[#allocation7 + $0x7c] sm:$0xf]  ;;  %v10382_v31 = vor.u32 %v11448_v54, %v10379_v60  ;;  %v11489_v54 = vld [vmem:[#allocation9 + $0xa0] sm:$0xf0] }
0x11ad   :  { %6684 = vmatpush.bf16.msra.mxu2 %v10326_v12  ;;  %v10277_v12 = vld [vmem:[#allocation4 + $0x8] sm:$0xf] }
0x11ae   :  { %v10278_v37 = vor.u32 %v11423_v50, %v10277_v12  ;;  %v10367_v12 = vld [vmem:[#allocation7 + $0xc] sm:$0xf0] }
0x11af   :  { %7096 = vmatpush.bf16.msrb.mxu3 %v10526_v7 }
0x11b1   :  { %6685 = vmatpush.bf16.msra.mxu2 %v10314_v15 }
0x11b3   :  { %7097 = vmatpush.bf16.msrb.mxu3 %v10514_v49  ;;  %v10545_v49 = vld [vmem:[#allocation9 + $0xa8] sm:$0xf] }
0x11b4   :  { %v10546_v15 = vor.u32 %v11491_v59, %v10545_v49 }
0x11b5   :  { %6686 = vmatpush.bf16.msra.mxu2 %v10302_v35  ;;  %v10391_v35 = vld [vmem:[#allocation7 + $0x3c] sm:$0xf0] }
0x11b6   :  { %v10394_v5 = vor.u32 %v11451_v41, %v10391_v35  ;;  %v6488_v41 = vstv %s6487_s20 }
0x11b7   :  { %7098 = vmatpush.bf16.msrb.mxu3 %v10502_v36  ;;  %v10406_v36 = vor.u32 %v11454_v42, %v10403_v40  ;;  %v10385_v40 = vld [vmem:[#allocation7 + $0x20] sm:$0xf] }
0x11b9   :  { %6687 = vmatpush.bf16.msra.mxu2 %v10290_v20 }
0x11bb   :  { %7099 = vmatpush.bf16.msrb.mxu3 %v10490_v17  ;;  %v11462_v17 = vld [vmem:[#allocation7 + $0x88] sm:$0xf0] }
0x11bd   :  { %6688 = vmatpush.bf16.msra.mxu2 %v10278_v37 }
0x11bf   :  { %7100 = vmatpush.bf16.msrb.mxu3 %v10478_v9 }
0x11c1   :  { %7081 = vmatpush.bf16.msrb.mxu2 %v10546_v15  ;;  %v11476_v15 = vld [vmem:[#allocation9 + $0x38] sm:$0xf0] }
0x11d2   :  { %v6444_v53 = vpop.permute.xlu2 %6443 }
0x11d3   :  { %v6448_v14 = vmul.f32 %v12701_v39, %v6444_v53  ;;  %v10286_v53 = vor.u32 %v11424_v26, %v10283_v0 }
0x11d5   :  { %v6457_v39 = vsel %vm1285_vm2, %v6448_v14, 0.0  ;;  %v10418_v14 = vor.u32 %v11457_v18, %v10415_v2  ;;  %6674 = vmatpush.bf16.msra.mxu1 %v10286_v53  ;;  %v11459_v18 = vld [vmem:[#allocation7 + $0x70] sm:$0xf0] }
0x11d6   :  { %v10422_v8 = vor.u32 %v11459_v18, %v10421_v10  ;;  %v11483_v18 = vld [vmem:[#allocation9 + $0x70] sm:$0xf0] }
0x11d9   :  { %6675 = vmatpush.bf16.msra.mxu1 %v10274_v44 }
0x11dd   :  { %6897 = vmatpush.bf16.msrb.mxu1 %v10458_v28 }
0x11e1   :  { %6898 = vmatpush.bf16.msrb.mxu1 %v10446_v21 }
0x11e2   :  { %v6438_v23 = vpop.permute.xlu2 %6437 }
0x11e3   :  { %v6447_v63 = vmul.f32 %v12695_v4, %v6438_v23  ;;  %v10427_v4 = vld [vmem:[#allocation7 + $0x84] sm:$0xf0] }
0x11e4   :  { %v10430_v56 = vor.u32 %v11460_v27, %v10427_v4  ;;  %v10433_v27 = vld [vmem:[#allocation7 + $0x80] sm:$0xf] }
0x11e5   :  { %v6458_v32 = vadd.f32 %v6457_v39, %v6447_v63  ;;  %v10466_v63 = vor.u32 %v11469_v55, %v10463_v34  ;;  %v10434_v0 = vor.u32 %v11462_v17, %v10433_v27  ;;  %v10397_v55 = vld [vmem:[#allocation7 + $0x38] sm:$0xf]  ;;  %v11453_v34 = vld [vmem:[#allocation7 + $0x40] sm:$0xf0] }
0x11e6   :  { %6886 = vmatpush.bf16.msrb.mxu0 %v10430_v56  ;;  %v11485_v56 = vld [vmem:[#allocation9 + $0x80] sm:$0xf0] }
0x11e7   :  { %v6459_v52 = vrot.slane %v6458_v32, 4  ;;  %7101 = vmatpush.bf16.msrb.mxu3 %v10466_v63  ;;  %6899 = vmatpush.bf16.msrb.mxu1 %v10434_v0  ;;  %v10473_v63 = vld [vmem:[#allocation9 + $0x18] sm:$0xf]  ;;  %v11492_v0 = vld [vmem:[#allocation9 + $0xb8] sm:$0xf0] }
0x11e8   :  { %v10474_v47 = vor.u32 %v11473_v25, %v10473_v63  ;;  %v11524_v63 = vld [vmem:[#allocation9 + $0xf8] sm:$0xf0]  ;;  %v10667_v25 = vld [vmem:[#allocation9 + $0xd8] sm:$0xf] }
0x11e9   :  { %v6460_v7 = vadd.f32 %v6459_v52, %v6458_v32  ;;  %v10521_v52 = vld [vmem:[#allocation9 + $0x78] sm:$0xf] }
0x11ea   :  { %v6431_v29 = vpop.permute.xlu1 %6430  ;;  %6887 = vmatpush.bf16.msrb.mxu0 %v10418_v14  ;;  %v10522_v53 = vor.u32 %v11485_v56, %v10521_v52  ;;  %v11445_v14 = vld [vmem:[#allocation7 + $0x4] sm:$0xf] }
0x11eb   :  { %v6461_v6 = vrot.slane %v6460_v7, 2  ;;  %v6446_v16 = vmul.f32 %v12688_v22, %v6431_v29  ;;  %v6425_v30 = vpop.permute.xlu0 %6424  ;;  %v11482_v29 = vld [vmem:[#allocation9 + $0x68] sm:$0xf0]  ;;  %6900 = vmatpush.bf16.msrb.mxu1 %v10422_v8  ;;  %v10370_v62 = vor.u32 %v11445_v14, %v10367_v12  ;;  %v10493_v8 = vld [vmem:[#allocation9 + $0x38] sm:$0xf] }
0x11ec   :  { %v6445_v19 = vmul.f32 %v12682_v43, %v6425_v30  ;;  %v10533_v43 = vld [vmem:[#allocation9 + $0x90] sm:$0xf]  ;;  %v10497_v30 = vld [vmem:[#allocation9 + $0x48] sm:$0xf]  ;;  %v10481_v14 = vld [vmem:[#allocation9 + $0x20] sm:$0xf] }
0x11ed   :  { %v6462_v39 = vadd.f32 %v6461_v6, %v6460_v7  ;;  %v6449_v23 = vsel %vm1285_vm2, %v6446_v16, 0.0  ;;  %v10534_v58 = vor.u32 %v11488_v46, %v10533_v43  ;;  %v10509_v7 = vld [vmem:[#allocation9 + $0x60] sm:$0xf]  ;;  %v10409_v6 = vld [vmem:[#allocation7 + $0x50] sm:$0xf] }
0x11ee   :  { %v6450_v22 = vadd.f32 %v6449_v23, %v6445_v19  ;;  %6888 = vmatpush.bf16.msrb.mxu0 %v10406_v36  ;;  %v10510_v9 = vor.u32 %v11482_v29, %v10509_v7  ;;  %v11456_v16 = vld [vmem:[#allocation7 + $0x58] sm:$0xf0]  ;;  %v11479_v19 = vld [vmem:[#allocation9 + $0x50] sm:$0xf0]  ;;  %v10398_v23 = vor.u32 %v11453_v34, %v10397_v55  ;;  %v10373_v43 = vld [vmem:[#allocation7 + $0x8] sm:$0xf] }
0x11ef   :  { %v6463_v48 = vrot.slane %v6462_v39, 1  ;;  %7082 = vmatpush.bf16.msrb.mxu2 %v10534_v58  ;;  %v10410_v49 = vor.u32 %v11456_v16, %v10409_v6  ;;  %v10498_v37 = vor.u32 %v11479_v19, %v10497_v30  ;;  %v11447_v46 = vld [vmem:[#allocation7 + $0x10] sm:$0xf0]  ;;  %v11470_v58 = vld [vmem:[#allocation9 + $0x8] sm:$0xf0] }
0x11f0   :  { %v6451_v3 = vrot.slane %v6450_v22, 4  ;;  %v10374_v21 = vor.u32 %v11447_v46, %v10373_v43  ;;  %v10505_v7 = vld [vmem:[#allocation9 + $0x50] sm:$0xf]  ;;  %v11477_v29 = vld [vmem:[#allocation9 + $0x40] sm:$0xf0] }
0x11f1   :  { %v6464_v4 = vadd.f32 %v6463_v48, %v6462_v39  ;;  %6901 = vmatpush.bf16.msrb.mxu1 %v10410_v49  ;;  %v10485_v39 = vld [vmem:[#allocation9 + $0x30] sm:$0xf]  ;;  %v11474_v12 = vld [vmem:[#allocation9 + $0x28] sm:$0xf0]  ;;  %v11471_v6 = vld [vmem:[#allocation9 + $0x10] sm:$0xf0] }
0x11f2   :  { %v6452_v32 = vadd.f32 %v6451_v3, %v6450_v22  ;;  %6889 = vmatpush.bf16.msrb.mxu0 %v10394_v5  ;;  %v10486_v42 = vor.u32 %v11476_v15, %v10485_v39  ;;  %v11450_v22 = vld [vmem:[#allocation7 + $0x28] sm:$0xf0]  ;;  %v10461_v3 = vld [vmem:[#allocation9] sm:$0xf]  ;;  %v10739_v16 = vld [vmem:[#allocation9 + $0x168] sm:$0xf] }
0x11f3   :  { %7083 = vmatpush.bf16.msrb.mxu2 %v10522_v53  ;;  %v6695_v2 = vpack.c.bf16 %v6464_v4, %v6464_v4  ;;  %v10386_v36 = vor.u32 %v11450_v22, %v10385_v40  ;;  %v10462_v48 = vor.u32 %v11470_v58, %v10461_v3  ;;  %v11539_v30 = vld [vmem:[#allocation9 + $0x170] sm:$0xf0]  ;;  %v10727_v49 = vld [vmem:[#allocation9 + $0x150] sm:$0xf]  ;;  %v11536_v19 = vld [vmem:[#allocation9 + $0x158] sm:$0xf0] }
0x11f4   :  { %v6453_v45 = vrot.slane %v6452_v32, 2  ;;  %v10703_v34 = vld [vmem:[#allocation9 + $0x120] sm:$0xf]  ;;  %v11530_v39 = vld [vmem:[#allocation9 + $0x128] sm:$0xf0] }
0x11f5   :  { %v6739_v44 = vunpack.c.l.b16 %v6695_v2  ;;  %6902 = vmatpush.bf16.msrb.mxu1 %v10398_v23  ;;  %v11480_v2 = vld [vmem:[#allocation9 + $0x58] sm:$0xf0]  ;;  %v10704_v23 = vor.u32 %v11530_v39, %v10703_v34  ;;  %v10691_v15 = vld [vmem:[#allocation9 + $0x108] sm:$0xf]  ;;  %v10679_v22 = vld [vmem:[#allocation9 + $0xf0] sm:$0xf] }
0x11f6   :  { %v6454_v26 = vadd.f32 %v6453_v45, %v6452_v32  ;;  %6890 = vmatpush.bf16.msrb.mxu0 %v10382_v31  ;;  %v6469_v32 = vpop.permute.xlu2 %6468  ;;  %v6491_v45 = vstv %s6490_s21  ;;  %v11486_v31 = vld [vmem:[#allocation9 + $0x88] sm:$0xf0]  ;;  %v10655_v46 = vld [vmem:[#allocation9 + $0xc0] sm:$0xf]  ;;  %v11515_v58 = vld [vmem:[#allocation7 + $0x170] sm:$0xf0] }
0x11f7   :  { %7084 = vmatpush.bf16.msrb.mxu2 %v10510_v9  ;;  %vm6470_vm2 = vcmp.eq.s32.totalorder %v11928_v11, %v6469_v32  ;;  %v10541_v11 = vld [vmem:[#allocation9 + $0x98] sm:$0xf]  ;;  %v10494_v9 = vor.u32 %v11477_v29, %v10493_v8  ;;  %v10626_v34 = vld [vmem:[#allocation7 + $0x140] sm:$0xf]  ;;  %s7655_s21 = sshll.u32 %s12838_s13, 4  ;;  %s7656_s21 = int_to_ptr.hbm [resolvable:$true] %s7655_s21 }
0x11f8   :  { %v6455_v20 = vrot.slane %v6454_v26, 1  ;;  %v10264_v35 = vsel %vm6470_vm2, 1.0, %v11824_v24  ;;  %v10542_v60 = vor.u32 %v11489_v54, %v10541_v11  ;;  %v11508_v11 = vld [vmem:[#allocation7 + $0x13c] sm:$0xf] }
0x11f9   :  { %6903 = vmatpush.bf16.msrb.mxu1 %v10386_v36  ;;  %v6489_v27 = vmul.f32 %v10264_v35, %v6488_v41  ;;  %v10680_v36 = vor.u32 %v11524_v63, %v10679_v22  ;;  %v10644_v41 = vld [vmem:[#allocation7 + $0x174] sm:$0xf0]  ;;  %v11497_v22 = vld [vmem:[#allocation7 + $0xe0] sm:$0xf0]  ;;  %v11496_v63 = vld [vmem:[#allocation7 + $0xdc] sm:$0xf] }
0x11fa   :  { %v6456_v13 = vadd.f32 %v6455_v20, %v6454_v26  ;;  %6891 = vmatpush.bf16.msrb.mxu0 %v10370_v62  ;;  %v10553_v26 = vld [vmem:[#allocation9 + $0xb0] sm:$0xf]  ;;  %v10529_v20 = vld [vmem:[#allocation9 + $0x80] sm:$0xf]  ;;  %v10469_v62 = vld [vmem:[#allocation9 + $0x8] sm:$0xf] }
0x11fb   :  { %7085 = vmatpush.bf16.msrb.mxu2 %v10498_v37  ;;  %v10554_v56 = vor.u32 %v11492_v0, %v10553_v26  ;;  %v10530_v10 = vor.u32 %v11486_v31, %v10529_v20  ;;  %v10728_v37 = vor.u32 %v11536_v19, %v10727_v49  ;;  %v10632_v26 = vld [vmem:[#allocation7 + $0x15c] sm:$0xf0]  ;;  %v11500_v49 = vld [vmem:[#allocation7 + $0xf8] sm:$0xf0]  ;;  %v11499_v19 = vld [vmem:[#allocation7 + $0xf4] sm:$0xf] }
0x11fc   :  { %v6694_v50 = vpack.c.bf16 %v6456_v13, %v6456_v13  ;;  %v10506_v13 = vor.u32 %v11480_v2, %v10505_v7  ;;  %v10606_v31 = vld [vmem:[#allocation7 + $0x120] sm:$0xf]  ;;  %v10650_v7 = vld [vmem:[#allocation7 + $0x170] sm:$0xf]  ;;  %v11516_v2 = vld [vmem:[#allocation7 + $0x178] sm:$0xf0] }
0x11fd   :  { %6904 = vmatpush.bf16.msrb.mxu1 %v10374_v21  ;;  %v10642_v21 = vld [vmem:[#allocation7 + $0x168] sm:$0xf]  ;;  %v10651_v8 = vor.u32 %v11516_v2, %v10650_v7  ;;  %v10735_v7 = vld [vmem:[#allocation9 + $0x158] sm:$0xf]  ;;  %v11537_v2 = vld [vmem:[#allocation9 + $0x160] sm:$0xf0] }
0x11fe   :  { %v6738_v1 = vunpack.c.l.b16 %v6694_v50  ;;  %v10482_v50 = vor.u32 %v11474_v12, %v10481_v14  ;;  %v10643_v32 = vor.u32 %v11515_v58, %v10642_v21  ;;  %v11503_v14 = vld [vmem:[#allocation7 + $0x110] sm:$0xf0]  ;;  %v11502_v12 = vld [vmem:[#allocation7 + $0x10c] sm:$0xf]  ;;  %v10558_v21 = vld [vmem:[#allocation7 + $0xc0] sm:$0xf] }
0x11ff   :  { %7086 = vmatpush.bf16.msrb.mxu2 %v10486_v42  ;;  %v11527_v42 = vld [vmem:[#allocation9 + $0x110] sm:$0xf0]  ;;  %v11494_v58 = vld [vmem:[#allocation7 + $0xc8] sm:$0xf0] }
0x1200   :  { %v6740_v28 = vsel %vm1307_vm4, %v6739_v44, %v6738_v1  ;;  %v10470_v44 = vor.u32 %v11471_v6, %v10469_v62  ;;  %v10740_v1 = vor.u32 %v11539_v30, %v10739_v16  ;;  %v10692_v40 = vor.u32 %v11527_v42, %v10691_v15  ;;  %v10596_v62 = vld [vmem:[#allocation7 + $0x114] sm:$0xf0]  ;;  %v11513_v16 = vld [vmem:[#allocation7 + $0x160] sm:$0xf0] }
0x1201   :  { %v12737_v59 = vpack.c.b16 %v6740_v28, %v6740_v28  ;;  %v10715_v28 = vld [vmem:[#allocation9 + $0x138] sm:$0xf]  ;;  %v10599_v30 = vor.u32 %v11502_v12, %v10596_v62  ;;  %v10578_v62 = vld [vmem:[#allocation7 + $0xe0] sm:$0xf] }
0x1202   :  { %v10638_v6 = vld [vmem:[#allocation7 + $0x158] sm:$0xf] }
0x1203   :  { %6879 = vmatmul.bf16.vlgmr.msra.gmra.mxu3 %v12737_v59  ;;  %7087 = vmatpush.bf16.msrb.mxu2 %v10474_v47  ;;  %v11521_v47 = vld [vmem:[#allocation9 + $0xe0] sm:$0xf0] }
0x1204   :  { %v10668_v43 = vor.u32 %v11521_v47, %v10667_v25  ;;  %7332 = vmatpush.bf16.msra.mxu3 %v10651_v8  ;;  %v10572_v25 = vld [vmem:[#allocation7 + $0xe4] sm:$0xf0]  ;;  %v10736_v8 = vor.u32 %v11537_v2, %v10735_v7 }
0x1205   :  { %v10614_v47 = vld [vmem:[#allocation7 + $0x128] sm:$0xf] }
0x1207   :  { %7088 = vmatpush.bf16.msrb.mxu2 %v10462_v48  ;;  %v11514_v48 = vld [vmem:[#allocation7 + $0x16c] sm:$0xf] }
0x1208   :  { %v10647_v35 = vor.u32 %v11514_v48, %v10644_v41  ;;  %v11493_v48 = vld [vmem:[#allocation7 + $0xc4] sm:$0xf] }
0x1213   :  { %7102 = vmatmul.bf16.vlgmr.msrb.gmra.mxu3 %v12632_v61 }
0x1215   :  { %v6480_v5 = vpop.xlane.xlu1 %6479 }
0x1216   :  { %vm6481_vm4 = vcmp.eq.f32.partialorder %v12079_v33, %v6480_v5  ;;  %v10517_v33 = vld [vmem:[#allocation9 + $0x68] sm:$0xf]  ;;  %v10630_v5 = vld [vmem:[#allocation7 + $0x150] sm:$0xf] }
0x1217   :  { %v10265_v17 = vsel %vm6481_vm4, 1.0, %v11824_v24  ;;  %v10518_v24 = vor.u32 %v11483_v18, %v10517_v33  ;;  %v11505_v33 = vld [vmem:[#allocation7 + $0x124] sm:$0xf] }
0x1218   :  { %v6492_v4 = vmul.f32 %v10265_v17, %v6491_v45 }
0x121a   :  { %v6493_v52 = vadd.f32 %v6492_v4, %v6489_v27  ;;  %v11512_v27 = vld [vmem:[#allocation7 + $0x158] sm:$0xf0]  ;;  %v11511_v4 = vld [vmem:[#allocation7 + $0x154] sm:$0xf] }
0x121b   :  { %v10631_v17 = vor.u32 %v11512_v27, %v10630_v5  ;;  %v10635_v0 = vor.u32 %v11511_v4, %v10632_v26  ;;  %v10560_v5 = vld [vmem:[#allocation7 + $0xcc] sm:$0xf0] }
0x121c   :  { %v6494_v53 = vpack.c.bf16 %v6493_v52, %v6493_v52  ;;  %v10602_v27 = vld [vmem:[#allocation7 + $0x110] sm:$0xf]  ;;  %v10563_v4 = vor.u32 %v11493_v48, %v10560_v5  ;;  %v11526_v5 = vld [vmem:[#allocation9 + $0x10c] sm:$0xf] }
0x121e   :  { %6663 = vmatmul.bf16.vlgmr.msra.gmra.mxu0 %v6494_v53  ;;  %6676 = vmatmul.bf16.vlgmr.msra.gmra.mxu1 %v6494_v53 }
0x121f   :  { %6689 = vmatmul.bf16.vlgmr.msra.gmra.mxu2 %v6494_v53  ;;  %7107 = vmatpush.bf16.msra.mxu0 %v10554_v56  ;;  %v10618_v56 = vld [vmem:[#allocation7 + $0x138] sm:$0xf]  ;;  %v11509_v53 = vld [vmem:[#allocation7 + $0x140] sm:$0xf0] }
0x1220   :  { %7306 = vmatpush.bf16.msra.mxu1 %v10643_v32  ;;  %7319 = vmatpush.bf16.msra.mxu2 %v10647_v35  ;;  %v10619_v54 = vor.u32 %v11509_v53, %v10618_v56  ;;  %v10559_v35 = vor.u32 %v11494_v58, %v10558_v21  ;;  %v10747_v56 = vld [vmem:[#allocation9 + $0x170] sm:$0xf]  ;;  %v12764_v53 = vld [vmem:[%s12834_s9] sm:$0x7] }
0x1223   :  { %7108 = vmatpush.bf16.msra.mxu0 %v10542_v60  ;;  %v10620_v60 = vld [vmem:[#allocation7 + $0x144] sm:$0xf0] }
0x1224   :  { %7307 = vmatpush.bf16.msra.mxu1 %v10631_v17  ;;  %7320 = vmatpush.bf16.msra.mxu2 %v10635_v0  ;;  %v10623_v20 = vor.u32 %v11508_v11, %v10620_v60  ;;  %v11504_v17 = vld [vmem:[#allocation7 + $0x118] sm:$0xf0]  ;;  %v11538_v0 = vld [vmem:[#allocation9 + $0x16c] sm:$0xf]  ;;  %v6731_v60 = vperm.slane %v12764_v53, 1 }
0x1225   :  { %v10603_v26 = vor.u32 %v11504_v17, %v10602_v27  ;;  %v10693_v27 = vld [vmem:[#allocation9 + $0x114] sm:$0xf0]  ;;  %v10699_v17 = vld [vmem:[#allocation9 + $0x110] sm:$0xf] }
0x1227   :  { %7109 = vmatpush.bf16.msra.mxu0 %v10530_v10  ;;  %v11506_v10 = vld [vmem:[#allocation7 + $0x128] sm:$0xf0] }
0x1228   :  { %7308 = vmatpush.bf16.msra.mxu1 %v10619_v54  ;;  %7321 = vmatpush.bf16.msra.mxu2 %v10623_v20  ;;  %v10607_v18 = vor.u32 %v11506_v10, %v10606_v31  ;;  %v11540_v54 = vld [vmem:[#allocation9 + $0x178] sm:$0xf0]  ;;  %v10590_v31 = vld [vmem:[#allocation7 + $0xf8] sm:$0xf]  ;;  %v11501_v10 = vld [vmem:[#allocation7 + $0x100] sm:$0xf0] }
0x1229   :  { %v10748_v20 = vor.u32 %v11540_v54, %v10747_v56  ;;  %v11523_v56 = vld [vmem:[#allocation9 + $0xf4] sm:$0xf] }
0x122b   :  { %7110 = vmatpush.bf16.msra.mxu0 %v10518_v24  ;;  %v10608_v24 = vld [vmem:[#allocation7 + $0x12c] sm:$0xf0] }
0x122c   :  { %7309 = vmatpush.bf16.msra.mxu1 %v10607_v18  ;;  %v10591_v18 = vor.u32 %v11501_v10, %v10590_v31  ;;  %v10669_v31 = vld [vmem:[#allocation9 + $0xe4] sm:$0xf0] }
0x122e   :  { %6892 = vmatmul.bf16.vlgmr.msrb.gmra.mxu0 %v12737_v59  ;;  %6905 = vmatmul.bf16.vlgmr.msrb.gmra.mxu1 %v12737_v59  ;;  %v11533_v59 = vld [vmem:[#allocation9 + $0x140] sm:$0xf0] }
0x122f   :  { %7089 = vmatmul.bf16.vlgmr.msrb.gmra.mxu2 %v12632_v61  ;;  %7111 = vmatpush.bf16.msra.mxu0 %v10506_v13  ;;  %v10716_v55 = vor.u32 %v11533_v59, %v10715_v28  ;;  %v10611_v13 = vor.u32 %v11505_v33, %v10608_v24  ;;  %v11535_v33 = vld [vmem:[#allocation9 + $0x154] sm:$0xf]  ;;  %v10729_v24 = vld [vmem:[#allocation9 + $0x15c] sm:$0xf0] }
0x1231   :  { %7322 = vmatpush.bf16.msra.mxu2 %v10611_v13  ;;  %v10732_v13 = vor.u32 %v11535_v33, %v10729_v24  ;;  %v11522_v24 = vld [vmem:[#allocation9 + $0xe8] sm:$0xf0] }
0x1233   :  { %7112 = vmatpush.bf16.msra.mxu0 %v10494_v9  ;;  %v10594_v9 = vld [vmem:[#allocation7 + $0x108] sm:$0xf] }
0x1235   :  { %7323 = vmatpush.bf16.msra.mxu2 %v10599_v30 }
0x1237   :  { %7113 = vmatpush.bf16.msra.mxu0 %v10482_v50  ;;  %v10595_v50 = vor.u32 %v11503_v14, %v10594_v9  ;;  %v12770_v9 = vld [vmem:[%s12835_s10] sm:$0x7] }
0x1239   :  { %7310 = vmatpush.bf16.msra.mxu1 %v10595_v50 }
0x123b   :  { %7114 = vmatpush.bf16.msra.mxu0 %v10470_v44  ;;  %v10639_v44 = vor.u32 %v11513_v16, %v10638_v6  ;;  %v11498_v6 = vld [vmem:[#allocation7 + $0xe8] sm:$0xf0]  ;;  %v11532_v16 = vld [vmem:[#allocation9 + $0x13c] sm:$0xf] }
0x123d   :  { %7333 = vmatpush.bf16.msra.mxu3 %v10639_v44  ;;  %v10579_v44 = vor.u32 %v11498_v6, %v10578_v62 }
0x123e   :  { %7115 = vmatmul.bf16.vlgmr.msra.gmra.mxu0 %v12632_v61  ;;  %v11518_v61 = vld [vmem:[#allocation9 + $0xc8] sm:$0xf0] }
0x123f   :  { %7513 = vmatpush.bf16.msrb.mxu0 %v10740_v1  ;;  %v10656_v3 = vor.u32 %v11518_v61, %v10655_v46  ;;  %v10582_v1 = vld [vmem:[#allocation7 + $0xf0] sm:$0xf]  ;;  %v10575_v46 = vor.u32 %v11496_v63, %v10572_v25  ;;  %v10711_v25 = vld [vmem:[#allocation9 + $0x128] sm:$0xf] }
0x1240   :  { %v10583_v59 = vor.u32 %v11500_v49, %v10582_v1  ;;  %v10717_v1 = vld [vmem:[#allocation9 + $0x144] sm:$0xf0]  ;;  %v10723_v49 = vld [vmem:[#allocation9 + $0x140] sm:$0xf] }
0x1242   :  { %7311 = vmatpush.bf16.msra.mxu1 %v10583_v59  ;;  %v6730_v59 = vperm.slane %v12764_v53, 0 }
0x1243   :  { %7514 = vmatpush.bf16.msrb.mxu0 %v10728_v37 }
0x1247   :  { %7515 = vmatpush.bf16.msrb.mxu0 %v10716_v55  ;;  %v10584_v55 = vld [vmem:[#allocation7 + $0xfc] sm:$0xf0] }
0x1248   :  { %v10587_v39 = vor.u32 %v11499_v19, %v10584_v55  ;;  %v11534_v19 = vld [vmem:[#allocation9 + $0x148] sm:$0xf0]  ;;  %v6948_v55 = vperm.slane %v12770_v9, 1 }
0x124a   :  { %7324 = vmatpush.bf16.msra.mxu2 %v10587_v39  ;;  %v10724_v39 = vor.u32 %v11534_v19, %v10723_v49  ;;  %v11519_v49 = vld [vmem:[#allocation9 + $0xd0] sm:$0xf0] }
0x124b   :  { %7516 = vmatpush.bf16.msrb.mxu0 %v10704_v23  ;;  %v11510_v23 = vld [vmem:[#allocation7 + $0x148] sm:$0xf0] }
0x124c   :  { %v10627_v15 = vor.u32 %v11510_v23, %v10626_v34  ;;  %v10720_v34 = vor.u32 %v11532_v16, %v10717_v1  ;;  %v6947_v23 = vperm.slane %v12770_v9, 0  ;;  %v11517_v16 = vld [vmem:[#allocation9 + $0xc4] sm:$0xf]  ;;  %v10663_v1 = vld [vmem:[#allocation9 + $0xc8] sm:$0xf] }
0x124e   :  { %7334 = vmatpush.bf16.msra.mxu3 %v10627_v15  ;;  %7325 = vmatpush.bf16.msra.mxu2 %v10575_v46 }
0x124f   :  { %7517 = vmatpush.bf16.msrb.mxu0 %v10692_v40  ;;  %v10570_v40 = vld [vmem:[#allocation7 + $0xd8] sm:$0xf] }
0x1252   :  { %7326 = vmatpush.bf16.msra.mxu2 %v10563_v4 }
0x1253   :  { %7518 = vmatpush.bf16.msrb.mxu0 %v10680_v36  ;;  %v10571_v36 = vor.u32 %v11497_v22, %v10570_v40  ;;  %v11495_v40 = vld [vmem:[#allocation7 + $0xd0] sm:$0xf0]  ;;  %v11529_v22 = vld [vmem:[#allocation9 + $0x124] sm:$0xf] }
0x1255   :  { %7312 = vmatpush.bf16.msra.mxu1 %v10571_v36  ;;  %v10705_v36 = vld [vmem:[#allocation9 + $0x12c] sm:$0xf0] }
0x1256   :  { %7539 = vmatpush.bf16.msrb.mxu2 %v10748_v20  ;;  %v11520_v20 = vld [vmem:[#allocation9 + $0xdc] sm:$0xf] }
0x1257   :  { %7519 = vmatpush.bf16.msrb.mxu0 %v10668_v43  ;;  %v11507_v43 = vld [vmem:[#allocation7 + $0x130] sm:$0xf0]  ;;  %v10672_v2 = vor.u32 %v11520_v20, %v10669_v31 }
0x1258   :  { %v10615_v61 = vor.u32 %v11507_v43, %v10614_v47  ;;  %v11531_v47 = vld [vmem:[#allocation9 + $0x130] sm:$0xf0] }
0x1259   :  { %7313 = vmatpush.bf16.msra.mxu1 %v10559_v35  ;;  %v10712_v21 = vor.u32 %v11531_v47, %v10711_v25 }
0x125a   :  { %7335 = vmatpush.bf16.msra.mxu3 %v10615_v61  ;;  %7540 = vmatpush.bf16.msrb.mxu2 %v10736_v8  ;;  %v10708_v61 = vor.u32 %v11529_v22, %v10705_v36 }
0x125b   :  { %7520 = vmatpush.bf16.msrb.mxu0 %v10656_v3 }
0x125e   :  { %7521 = vmatmul.bf16.vlgmr.msrb.gmra.mxu0 %v12674_v51  ;;  %7336 = vmatpush.bf16.msra.mxu3 %v10603_v26  ;;  %v10696_v26 = vor.u32 %v11526_v5, %v10693_v27  ;;  %v11542_v27 = vld [vmem:[%s12836_s11 + $0x8] sm:$0xff] }
0x125f   :  { %7541 = vmatpush.bf16.msrb.mxu2 %v10724_v39 }
0x1262   :  { %7337 = vmatpush.bf16.msra.mxu3 %v10591_v18  ;;  %v10675_v18 = vld [vmem:[#allocation9 + $0xe0] sm:$0xf] }
0x1263   :  { %7542 = vmatpush.bf16.msrb.mxu2 %v10712_v21  ;;  %v10676_v8 = vor.u32 %v11522_v24, %v10675_v18  ;;  %v10555_v21 = vld [vmem:[%s12834_s9 + $0x3] sm:$0x7] }
0x1264   :  { %v7174_v24 = vperm.slane %v10555_v21, 2 }
0x1266   :  { %7338 = vmatpush.bf16.msra.mxu3 %v10579_v44 }
0x1286   :  { %v12751_v45 = vpop.f32.mrf.mxu3 }
0x1287   :  { %v6881_v43 = vadd.f32 %v12751_v45, %v6730_v59  ;;  %v11528_v45 = vld [vmem:[#allocation9 + $0x118] sm:$0xf0] }
0x128e   :  { %v6882_v52 = vpop.f32.mrf.mxu3 }
0x128f   :  { %v10741_v52 = vld [vmem:[#allocation9 + $0x174] sm:$0xf0] }
0x1290   :  { %v10744_v11 = vor.u32 %v11538_v0, %v10741_v52  ;;  %v10700_v0 = vor.u32 %v11528_v45, %v10699_v17 }
0x1292   :  { %7526 = vmatpush.bf16.msrb.mxu1 %v10744_v11  ;;  %7543 = vmatpush.bf16.msrb.mxu2 %v10700_v0  ;;  %v10687_v11 = vld [vmem:[#allocation9 + $0xf8] sm:$0xf] }
0x1296   :  { %v12753_v29 = vpop.f32.mrf.mxu3  ;;  %7527 = vmatpush.bf16.msrb.mxu1 %v10732_v13  ;;  %v6732_v13 = vperm.slane %v12764_v53, 2 }
0x1297   :  { %v7104_v46 = vadd.f32 %v12753_v29, %v6948_v55 }
0x129a   :  { %7528 = vmatpush.bf16.msrb.mxu1 %v10720_v34  ;;  %v10664_v34 = vor.u32 %v11519_v49, %v10663_v1 }
0x129b   :  { %v12755_v37 = vpop.f32.mrf.mxu0  ;;  %v12757_v28 = vpop.f32.mrf.mxu1 }
0x129c   :  { %v6910_v48 = vadd.f32 %v6881_v43, %v12755_v37  ;;  %v10681_v37 = vld [vmem:[#allocation9 + $0xfc] sm:$0xf0] }
0x129d   :  { %v10684_v54 = vor.u32 %v11523_v56, %v10681_v37 }
0x129e   :  { %v7105_v42 = vpop.f32.mrf.mxu3  ;;  %7529 = vmatpush.bf16.msrb.mxu1 %v10708_v61  ;;  %v11545_v61 = vld [vmem:[%s12836_s11 + $0x20] sm:$0xff] }
0x129f   :  { %v10566_v42 = vld [vmem:[#allocation7 + $0xc8] sm:$0xf] }
0x12a0   :  { %v10567_v63 = vor.u32 %v11495_v40, %v10566_v42 }
0x12a2   :  { %v12759_v3 = vpop.f32.mrf.mxu2  ;;  %7339 = vmatpush.bf16.msra.mxu3 %v10567_v63  ;;  %7530 = vmatpush.bf16.msrb.mxu1 %v10696_v26 }
0x12a3   :  { %v6666_v32 = vpop.f32.mrf.mxu0  ;;  %v6679_v41 = vpop.f32.mrf.mxu1 }
0x12a6   :  { %7531 = vmatpush.bf16.msrb.mxu1 %v10684_v54 }
0x12aa   :  { %v6692_v14 = vpop.f32.mrf.mxu2  ;;  %7532 = vmatpush.bf16.msrb.mxu1 %v10672_v2 }
0x12ab   :  { %v6893_v12 = vpop.f32.mrf.mxu0  ;;  %v12772_v50 = vpop.f32.mrf.mxu1  ;;  %v6949_v14 = vperm.slane %v12770_v9, 2 }
0x12ac   :  { %v6894_v30 = vadd.f32 %v6893_v12, %v6731_v60  ;;  %v11525_v60 = vld [vmem:[#allocation9 + $0x100] sm:$0xf0]  ;;  %v6907_v62 = vadd.f32 %v12772_v50, %v6732_v13 }
0x12ad   :  { %v10688_v33 = vor.u32 %v11525_v60, %v10687_v11 }
0x12ae   :  { %v6911_v15 = vadd.f32 %v6894_v30, %v12757_v28  ;;  %v10657_v30 = vld [vmem:[#allocation9 + $0xcc] sm:$0xf0]  ;;  %v6912_v39 = vadd.f32 %v6907_v62, %v12759_v3  ;;  %v11548_v3 = vld [vmem:[%s12836_s11 + $0x38] sm:$0xff] }
0x12af   :  { %7544 = vmatpush.bf16.msrb.mxu2 %v10688_v33  ;;  %v10660_v44 = vor.u32 %v11517_v16, %v10657_v30  ;;  %7634 = vmatpush.bf16.msrb.mxu3 %v11548_v3 }
0x12b0   :  { %v7125_v28 = vadd.f32 %v7104_v46, %v6911_v15  ;;  %v11546_v46 = vld [vmem:[%s12836_s11 + $0x28] sm:$0xff] }
0x12b1   :  { %7533 = vmatpush.bf16.msrb.mxu1 %v10660_v44 }
0x12b2   :  { %v7090_v58 = vpop.f32.mrf.mxu2  ;;  %v7126_v29 = vmul.f32 0.5, %v7125_v28  ;;  %v7172_v28 = vperm.slane %v10555_v21, 0 }
0x12b3   :  { %v7091_v32 = vadd.f32 %v7090_v58, %v6947_v23  ;;  %v6895_v41 = vpop.f32.mrf.mxu0  ;;  %v6908_v35 = vpop.f32.mrf.mxu1  ;;  %7545 = vmatpush.bf16.msrb.mxu2 %v10676_v8  ;;  %v11544_v58 = vld [vmem:[%s12836_s11 + $0x18] sm:$0xff] }
0x12b5   :  { %v7120_v4 = vadd.f32 %v7091_v32, %v6910_v48  ;;  %v11543_v32 = vld [vmem:[%s12836_s11 + $0x10] sm:$0xff] }
0x12b7   :  { %v7121_v52 = vmul.f32 0.5, %v7120_v4  ;;  %7546 = vmatpush.bf16.msrb.mxu2 %v10664_v34  ;;  %v11541_v4 = vld [vmem:[%s12836_s11] sm:$0xff] }
0x12b9   :  { %11667 = vtanh.f32 %v7121_v52  ;;  %v7173_v52 = vperm.slane %v10555_v21, 1 }
0x12ba   :  { %v7092_v10 = vpop.f32.mrf.mxu2  ;;  %11669 = vtanh.f32 %v7126_v29 }
0x12bb   :  { %v7116_v7 = vpop.f32.mrf.mxu0 }
0x12bc   :  { %v7117_v59 = vadd.f32 %v7116_v7, %v6949_v14 }
0x12bf   :  { %v11668_v12 = vpop.eup %11667 }
0x12c0   :  { %v7123_v6 = vadd.f32 1.0, %v11668_v12  ;;  %v11670_v19 = vpop.eup %11669 }
0x12c1   :  { %v7128_v23 = vadd.f32 1.0, %v11670_v19 }
0x12c2   :  { %v7124_v55 = vmul.f32 0.5, %v7123_v6 }
0x12c3   :  { %v7118_v53 = vpop.f32.mrf.mxu0  ;;  %v7129_v50 = vmul.f32 0.5, %v7128_v23 }
0x12c4   :  { %v7130_v9 = vmul.f32 %v7124_v55, %v7117_v59 }
0x12c5   :  { %v7133_v42 = vsub.f32 1.0, %v7129_v50  ;;  %v7135_v22 = vmul.f32 %v7129_v50, %v12628_v38  ;;  %v11547_v38 = vld [vmem:[%s12836_s11 + $0x30] sm:$0xff]  ;;  %s11825_s11 = smov [#allocation10]  }
0x12c6   :  { %v7131_v15 = vadd.f32 %v7130_v9, %v6912_v39  ;;  %7635 = vmatpush.bf16.msrb.mxu3 %v11547_v38  ;;  %s7653_s1 = sshll.u32 %s11825_s11, 4  ;;  %v11699_v9 = vld [vmem:[%s12837_s12] ss:$0 sm:$0xff]  ;;  %s7654_s1 = int_to_ptr.vmem [resolvable:$true] %s7653_s1 }
0x12c8   :  { %11671 = vtanh.f32 %v7131_v15 }
0x12ca   :  { %7636 = vmatpush.bf16.msrb.mxu3 %v11546_v46 }
0x12ce   :  { %v11672_v40 = vpop.eup %11671  ;;  %7637 = vmatpush.bf16.msrb.mxu3 %v11545_v61 }
0x12cf   :  { %v7134_v63 = vmul.f32 %v11672_v40, %v7133_v42 }
0x12d1   :  { %v7136_v36 = vadd.f32 %v7135_v22, %v7134_v63 }
0x12d2   :  { %7638 = vmatpush.bf16.msrb.mxu3 %v11544_v58 }
0x12d3   :  { %v7137_v25 = vpack.c.bf16 %v7136_v36, %v7136_v36 }
0x12d5   :  { %7314 = vmatmul.bf16.vlgmr.msra.gmra.mxu1 %v7137_v25  ;;  %7327 = vmatmul.bf16.vlgmr.msra.gmra.mxu2 %v7137_v25 }
0x12d6   :  { %7340 = vmatmul.bf16.vlgmr.msra.gmra.mxu3 %v7137_v25 }
0x12d7   :  { %7639 = vmatpush.bf16.msrb.mxu3 %v11543_v32 }
0x12db   :  { %v7522_v47 = vpop.f32.mrf.mxu0  ;;  %7640 = vmatpush.bf16.msrb.mxu3 %v11542_v27 }
0x12df   :  { %7641 = vmatpush.bf16.msrb.mxu3 %v11541_v4 }
0x12e3   :  { %v7524_v43 = vpop.f32.mrf.mxu0 }
0x12e5   :  { %7534 = vmatmul.bf16.vlgmr.msrb.gmra.mxu1 %v12674_v51  ;;  %7547 = vmatmul.bf16.vlgmr.msrb.gmra.mxu2 %v12674_v51  ;;  %v10652_v51 = vld [vmem:[%s12835_s10 + $0x3] sm:$0x7] }
0x12e6   :  { %v7379_v48 = vperm.slane %v10652_v51, 0  ;;  %v7380_v56 = vperm.slane %v10652_v51, 1  ;;  %v7381_v33 = vperm.slane %v10652_v51, 2 }
0x12e8   :  { %v7523_v35 = vadd.f32 %v7522_v47, %v7379_v48 }
0x1352   :  { %v7315_v41 = vpop.f32.mrf.mxu1 }
0x1353   :  { %v7316_v5 = vadd.f32 %v7315_v41, %v7172_v28 }
0x1355   :  { %v7552_v17 = vadd.f32 %v7523_v35, %v7316_v5 }
0x1357   :  { %v7553_v26 = vmul.f32 0.5, %v7552_v17 }
0x1358   :  { %v7328_v45 = vpop.f32.mrf.mxu2 }
0x1359   :  { %v7341_v0 = vpop.f32.mrf.mxu3  ;;  %11673 = vtanh.f32 %v7553_v26  ;;  %v7329_v20 = vadd.f32 %v7328_v45, %v7173_v52 }
0x135a   :  { %v7317_v29 = vpop.f32.mrf.mxu1  ;;  %v7342_v12 = vadd.f32 %v7341_v0, %v7174_v24 }
0x135f   :  { %v11674_v54 = vpop.eup %11673 }
0x1360   :  { %v7330_v37 = vpop.f32.mrf.mxu2  ;;  %v7555_v18 = vadd.f32 1.0, %v11674_v54 }
0x1361   :  { %v7343_v11 = vpop.f32.mrf.mxu3 }
0x1362   :  { %v7535_v60 = vpop.f32.mrf.mxu1  ;;  %v7556_v8 = vmul.f32 0.5, %v7555_v18 }
0x1363   :  { %v7536_v31 = vadd.f32 %v7535_v60, %v7380_v56 }
0x1365   :  { %v7557_v10 = vadd.f32 %v7536_v31, %v7329_v20 }
0x1367   :  { %v7558_v7 = vmul.f32 0.5, %v7557_v10 }
0x1368   :  { %v7548_v2 = vpop.f32.mrf.mxu2 }
0x1369   :  { %11675 = vtanh.f32 %v7558_v7  ;;  %v7549_v13 = vadd.f32 %v7548_v2, %v7381_v33 }
0x136a   :  { %v7537_v14 = vpop.f32.mrf.mxu1 }
0x136b   :  { %v7562_v62 = vmul.f32 %v7556_v8, %v7549_v13 }
0x136d   :  { %v7563_v6 = vadd.f32 %v7562_v62, %v7342_v12 }
0x136f   :  { %v11676_v16 = vpop.eup %11675  ;;  %11677 = vtanh.f32 %v7563_v6 }
0x1370   :  { %v7560_v30 = vadd.f32 1.0, %v11676_v16  ;;  %v7550_v44 = vpop.f32.mrf.mxu2 }
0x1372   :  { %v7561_v1 = vmul.f32 0.5, %v7560_v30 }
0x1374   :  { %v7565_v49 = vsub.f32 1.0, %v7561_v1  ;;  %v7567_v59 = vmul.f32 %v7561_v1, %v12670_v57 }
0x1375   :  { %v11678_v19 = vpop.eup %11677 }
0x1376   :  { %v7566_v55 = vmul.f32 %v11678_v19, %v7565_v49 }
0x1378   :  { %v7568_v34 = vadd.f32 %v7567_v59, %v7566_v55 }
0x137a   :  { %v7569_v53 = vpack.c.bf16 %v7568_v34, %v7568_v34 }
0x137c   :  { %7642 = vmatmul.bf16.vlgmr.msrb.gmra.mxu3 %v7569_v53 }
0x13ff   :  { %v7643_v39 = vpop.f32.mrf.mxu3 }
0x1400   :  { %v7644_v23 = vadd.f32 %v11699_v9, %v7643_v39 }
0x1402   :  { %7648 = vst [vmem:[#allocation10 + $0xa] sm:$0x3] %v7644_v23 }
0x1403   :  { %7661 = dma.vmem_to_hbm [thread:$0]  %s7654_s1, 192, %s7656_s21, [#allocation6], %s11826_s24, %s11826_s24, %s11827_s25  }
0x1407   :  { %v7645_v57 = vpop.f32.mrf.mxu3 }
0x1408   :  { %11814 = dma.done.wait [#allocation6], 192  }
0x1409   :  { %11815 = vsyncadd [#allocation6], 4294967104 }
0x140a   :  { %7666 = vsyncpa [#allocation5], 1 }
0x140b   :  { %7667 = vsyncpa [#allocation8], 1 }
0x140c   :  { %7668 = vsyncpa [#allocation6], 1 }

</bundles_post_ra>
